<compile_context>
chip_gen: v7x
topology: tpu7x:2x2x1
jax: 0.10.0
libtpu: 0.0.40
codegen_flags: <defaults>
</compile_context>

<pallas_src>
import functools
import math

import jax
import jax.numpy as jnp
from jax.experimental import pallas as pl
from jax.experimental.pallas import tpu as pltpu


# ----------------------------- fused Pallas kernel -----------------------------

def _fused_vit_cls_kernel(
    patches_ref,   # [TB*Np, CPP] bf16  (flattened patch rows for TB batch elements)
    w_patch_ref,   # [CPP, D]     bf16
    tok_init_ref,  # [M, D]       f32   rows 0..TB-1: cls+pos0 ; rows TB..: pos+b_patch (tiled)
    w_qkv_ref,     # [D, 3D]      bf16
    w_proj_ref,    # [D, D]       bf16
    w_fc1_ref,     # [D, MLP]     bf16
    b_fc1_ref,     # [1, MLP]     f32
    w_fc2_ref,     # [MLP, D]     bf16
    vecs_ref,      # [11, D]      f32   packed LN gammas/betas + biases (see wrapper)
    mask_ref,      # [M, M]       f32   additive block-diagonal mask (0 / -1e30)
    o_ref,         # [TB, D]            CLS features for the TB batch elements of this step
    *, num_heads, scale, eps):

  tb, dim = o_ref.shape
  m = mask_ref.shape[0]
  hd = dim // num_heads

  def mm(a_bf16, b_bf16):
    # bf16 MXU inputs, f32 accumulation.
    return jnp.dot(a_bf16, b_bf16, preferred_element_type=jnp.float32)

  def ln(x, g, b):
    # LayerNorm kept in f32 (v5e VPU/EUP have no bf16 path).
    mu = jnp.mean(x, axis=-1, keepdims=True)
    xc = x - mu
    var = jnp.mean(xc * xc, axis=-1, keepdims=True)
    return xc * jax.lax.rsqrt(var + eps) * g + b

  # unpack the packed (1, D) vectors
  ln1_g = vecs_ref[0:1, :]
  ln1_b = vecs_ref[1:2, :]
  b_q = vecs_ref[2:3, :]
  b_k = vecs_ref[3:4, :]
  b_v = vecs_ref[4:5, :]
  b_proj = vecs_ref[5:6, :]
  ln2_g = vecs_ref[6:7, :]
  ln2_b = vecs_ref[7:8, :]
  b_fc2 = vecs_ref[8:9, :]
  lnf_g = vecs_ref[9:10, :]
  lnf_b = vecs_ref[10:11, :]

  # ---- patch embedding (all TB*Np patch rows in one MXU matmul) ----
  patch_emb = mm(patches_ref[...], w_patch_ref[...])          # [TB*Np, D] f32
  # token layout: first TB rows are CLS tokens, then the TB*Np patch tokens
  tok = jnp.concatenate(
      [tok_init_ref[0:tb, :],                                  # cls + pos[0]
       patch_emb + tok_init_ref[tb:m, :]], axis=0)             # [M, D] f32

  # ---- attention: fused QKV, per-head scores over the whole block + block-diag mask ----
  h1 = ln(tok, ln1_g, ln1_b)
  h1_bf = h1.astype(jnp.bfloat16)                              # cast hoisted (used once anyway)
  qkv = mm(h1_bf, w_qkv_ref[...])                              # [M, 3D] f32
  q = (qkv[:, 0:dim] + b_q).astype(jnp.bfloat16)               # hoisted casts: once per q/k/v
  k = (qkv[:, dim:2 * dim] + b_k).astype(jnp.bfloat16)
  v = (qkv[:, 2 * dim:3 * dim] + b_v).astype(jnp.bfloat16)
  mask = mask_ref[...]                                         # [M, M] additive bias

  heads = []
  for h in range(num_heads):
    qh = q[:, h * hd:(h + 1) * hd]                             # static 32-lane slices
    kh = k[:, h * hd:(h + 1) * hd]
    vh = v[:, h * hd:(h + 1) * hd]
    s = jnp.einsum('qd,kd->qk', qh, kh,
                   preferred_element_type=jnp.float32) * scale + mask   # [M, M]
    s = s - jnp.max(s, axis=-1, keepdims=True)
    p = jnp.exp(s)
    p = p * (1.0 / jnp.sum(p, axis=-1, keepdims=True))         # exact reciprocal
    heads.append(mm(p.astype(jnp.bfloat16), vh))               # [M, hd] f32

  attn_cat = jnp.concatenate(heads, axis=-1).astype(jnp.bfloat16)       # [M, D]
  tok = tok + mm(attn_cat, w_proj_ref[...]) + b_proj           # single lane-dense proj matmul

  # ---- MLP ----
  h2 = ln(tok, ln2_g, ln2_b)
  f = mm(h2.astype(jnp.bfloat16), w_fc1_ref[...]) + b_fc1_ref[...]      # [M, MLP]
  # TODO(synk): PyTorch nn.GELU() default is the exact erf form; tanh approximation used here.
  f = 0.5 * f * (1.0 + jnp.tanh(0.7978845608028654 * (f + 0.044715 * f * f * f)))
  tok = tok + mm(f.astype(jnp.bfloat16), w_fc2_ref[...]) + b_fc2

  # ---- final LayerNorm on the CLS rows only (== backbone(x)[:, 0]) ----
  o_ref[...] = ln(tok[0:tb, :], lnf_g, lnf_b).astype(o_ref.dtype)


# ----------------------------- wrapper / synthetic ViT -----------------------------

def init_params(key, *, C=3, P=8, D=128, heads=4, mlp=512, num_patches=4):
  N = num_patches + 1
  ks = jax.random.split(key, 8)
  s = 0.02

  def nrm(k, shape):
    return s * jax.random.normal(k, shape, jnp.float32)

  return dict(
      patch=P, dim=D, heads=heads,
      w_patch=nrm(ks[0], (C * P * P, D)), b_patch=jnp.zeros((D,), jnp.float32),
      cls_token=nrm(ks[1], (1, D)),
      pos_embed=nrm(ks[2], (N, D)),
      ln1_g=jnp.ones((D,), jnp.float32), ln1_b=jnp.zeros((D,), jnp.float32),
      w_qkv=nrm(ks[3], (D, 3 * D)), b_qkv=jnp.zeros((3 * D,), jnp.float32),
      w_proj=nrm(ks[4], (D, D)), b_proj=jnp.zeros((D,), jnp.float32),
      ln2_g=jnp.ones((D,), jnp.float32), ln2_b=jnp.zeros((D,), jnp.float32),
      w_fc1=nrm(ks[5], (D, mlp)), b_fc1=jnp.zeros((mlp,), jnp.float32),
      w_fc2=nrm(ks[6], (mlp, D)), b_fc2=jnp.zeros((D,), jnp.float32),
      lnf_g=jnp.ones((D,), jnp.float32), lnf_b=jnp.zeros((D,), jnp.float32),
  )


def feature_extractor_forward(params, x, *, tb=24):
  """FeatureExtractor.forward: all_tokens = backbone(x); return all_tokens[:, 0].

  tb = batch elements folded per grid step. tb=24 -> M=120 rows/block (good for v5e's
  128-row MXU); use tb~48 -> M~240 on v6e/v7x (256x256 MXU). VMEM stays ~1-2 MiB either way.
  """
  B, C, H, W = x.shape
  P, D, Hn = params["patch"], params["dim"], params["heads"]
  Hp, Wp = H // P, W // P
  Np = Hp * Wp
  hd = D // Hn
  mlp = params["w_fc1"].shape[1]
  CPP = C * P * P
  M = tb * (Np + 1)            # rows per block (CLS rows first, then patch rows)

  # --- tiny host-side glue (one-time, negligible data volume) ---
  # pad batch to a multiple of tb
  nb = -(-B // tb)
  B_pad = nb * tb
  if B_pad != B:
    x = jnp.pad(x, ((0, B_pad - B), (0, 0), (0, 0), (0, 0)))

  # unfold: Conv2d(C, D, kernel=P, stride=P) == patchify + matmul; flatten batch*patch rows
  patches = x.reshape(B_pad, C, Hp, P, Wp, P).transpose(0, 2, 4, 1, 3, 5)
  patches = patches.reshape(B_pad * Np, CPP).astype(jnp.bfloat16)       # pre-cast activations

  # token init: rows 0..tb-1 = cls + pos[0]; rows tb.. = pos[1:] + b_patch, tiled over tb
  cls_rows = jnp.broadcast_to(params["cls_token"] + params["pos_embed"][0:1, :], (tb, D))
  patch_rows = jnp.tile(params["pos_embed"][1:, :] + params["b_patch"][None, :], (tb, 1))
  tok_init = jnp.concatenate([cls_rows, patch_rows], axis=0).astype(jnp.float32)   # [M, D]

  # block-diagonal additive attention mask (each batch element attends only to itself)
  row_batch = jnp.concatenate([jnp.arange(tb, dtype=jnp.int32),
                               jnp.repeat(jnp.arange(tb, dtype=jnp.int32), Np)])
  mask_bias = jnp.where(row_batch[:, None] == row_batch[None, :],
                        jnp.float32(0.0), jnp.float32(-1e30)).astype(jnp.float32)   # [M, M]

  # pack the small per-channel vectors into one [11, D] array
  b_qkv = params["b_qkv"]
  vecs_d = jnp.stack([
      params["ln1_g"], params["ln1_b"],
      b_qkv[0:D], b_qkv[D:2 * D], b_qkv[2 * D:3 * D],
      params["b_proj"],
      params["ln2_g"], params["ln2_b"],
      params["b_fc2"],
      params["lnf_g"], params["lnf_b"],
  ], axis=0).astype(jnp.float32)                                        # [11, D]

  # pre-cast weights to bf16 (halves weight DMA, no per-step VPU casts of constants)
  w_patch_bf = params["w_patch"].astype(jnp.bfloat16)
  w_qkv_bf = params["w_qkv"].astype(jnp.bfloat16)
  w_proj_bf = params["w_proj"].astype(jnp.bfloat16)
  w_fc1_bf = params["w_fc1"].astype(jnp.bfloat16)
  w_fc2_bf = params["w_fc2"].astype(jnp.bfloat16)
  b_fc1 = params["b_fc1"].reshape(1, mlp).astype(jnp.float32)

  kernel = functools.partial(
      _fused_vit_cls_kernel, num_heads=Hn, scale=1.0 / math.sqrt(hd),
      eps=1e-6)  # timm ViT uses 1e-6 (PyTorch nn.LayerNorm default is 1e-5)

  def full2(shape):
    return pl.BlockSpec(shape, lambda b: (0, 0))

  out = pl.pallas_call(
      kernel,
      out_shape=jax.ShapeDtypeStruct((B_pad, D), x.dtype),
      grid=(nb,),
      in_specs=[
          pl.BlockSpec((tb * Np, CPP), lambda b: (b, 0)),   # patches (per batch tile)
          full2((CPP, D)),                                  # w_patch
          full2((M, D)),                                    # tok_init
          full2((D, 3 * D)),                                # w_qkv (fused)
          full2((D, D)),                                    # w_proj
          full2((D, mlp)),                                  # w_fc1
          full2((1, mlp)),                                  # b_fc1
          full2((mlp, D)),                                  # w_fc2
          full2((11, D)),                                   # packed biases / LN params
          full2((M, M)),                                    # block-diagonal attn mask
      ],
      out_specs=pl.BlockSpec((tb, D), lambda b: (b, 0)),
      compiler_params=pltpu.CompilerParams(
          dimension_semantics=("parallel",)),               # v7x: shard batch tiles on 2 TCs
  )(
      patches, w_patch_bf, tok_init,
      w_qkv_bf, w_proj_bf,
      w_fc1_bf, b_fc1, w_fc2_bf,
      vecs_d, mask_bias,
  )
  return out[:B]


if __name__ == "__main__":
  key = jax.random.PRNGKey(0)
  B, C, H, W = 48, 3, 16, 16
  P, D, heads, mlp = 8, 128, 4, 512        # D=128 -> lane-dense tiles
  num_patches = (H // P) * (W // P)        # 4 patches + CLS = 5 tokens

  x = jax.random.normal(jax.random.fold_in(key, 0), (B, C, H, W), jnp.float32)
  params = init_params(jax.random.fold_in(key, 1),
                       C=C, P=P, D=D, heads=heads, mlp=mlp,
                       num_patches=num_patches)

  out = feature_extractor_forward(params, x, tb=24)   # 2 grid steps of M=120 rows each
  out = jax.block_until_ready(out)
  assert out.shape == (B, D), out.shape
  assert out.dtype == jnp.float32
  assert bool(jnp.all(jnp.isfinite(out)))
  print("KERNEL_OK")
</pallas_src>

<mosaic_0001>
module attributes {stable_mosaic.version = 11 : i64} {
  func.func @_fused_vit_cls_kernel(%arg0: i32, %arg1: memref<96x192xbf16, #tpu.memory_space<vmem>>, %arg2: memref<192x128xbf16, #tpu.memory_space<vmem>>, %arg3: memref<120x128xf32, #tpu.memory_space<vmem>>, %arg4: memref<128x384xbf16, #tpu.memory_space<vmem>>, %arg5: memref<128x128xbf16, #tpu.memory_space<vmem>>, %arg6: memref<128x512xbf16, #tpu.memory_space<vmem>>, %arg7: memref<1x512xf32, #tpu.memory_space<vmem>>, %arg8: memref<512x128xbf16, #tpu.memory_space<vmem>>, %arg9: memref<11x128xf32, #tpu.memory_space<vmem>>, %arg10: memref<120x120xf32, #tpu.memory_space<vmem>>, %arg11: memref<24x128xf32, #tpu.memory_space<vmem>>) attributes {dimension_semantics = [#tpu.dimension_semantics<parallel>], iteration_bounds = array<i64: 2>, scalar_prefetch = 0 : i64, scratch_operands = 0 : i64, tpu.core_type = #tpu.core_type<tc>, window_params = [{transform_indices = @transform_0, window_bounds = array<i64: 96, 192>}, {pipeline_mode = #tpu.pipeline_mode<synchronous>, transform_indices = @transform_1, window_bounds = array<i64: 192, 128>}, {pipeline_mode = #tpu.pipeline_mode<synchronous>, transform_indices = @transform_2, window_bounds = array<i64: 120, 128>}, {pipeline_mode = #tpu.pipeline_mode<synchronous>, transform_indices = @transform_3, window_bounds = array<i64: 128, 384>}, {pipeline_mode = #tpu.pipeline_mode<synchronous>, transform_indices = @transform_4, window_bounds = array<i64: 128, 128>}, {pipeline_mode = #tpu.pipeline_mode<synchronous>, transform_indices = @transform_5, window_bounds = array<i64: 128, 512>}, {pipeline_mode = #tpu.pipeline_mode<synchronous>, transform_indices = @transform_6, window_bounds = array<i64: 1, 512>}, {pipeline_mode = #tpu.pipeline_mode<synchronous>, transform_indices = @transform_7, window_bounds = array<i64: 512, 128>}, {pipeline_mode = #tpu.pipeline_mode<synchronous>, transform_indices = @transform_8, window_bounds = array<i64: 11, 128>}, {pipeline_mode = #tpu.pipeline_mode<synchronous>, transform_indices = @transform_9, window_bounds = array<i64: 120, 120>}, {transform_indices = @transform_10, window_bounds = array<i64: 24, 128>}]} {
    %c0 = arith.constant 0 : index
    %c0_0 = arith.constant 0 : index
    %0 = vector.load %arg9[%c0, %c0_0] : memref<11x128xf32, #tpu.memory_space<vmem>>, vector<1x128xf32>
    %c1 = arith.constant 1 : index
    %c0_1 = arith.constant 0 : index
    %1 = vector.load %arg9[%c1, %c0_1] : memref<11x128xf32, #tpu.memory_space<vmem>>, vector<1x128xf32>
    %c2 = arith.constant 2 : index
    %c0_2 = arith.constant 0 : index
    %2 = vector.load %arg9[%c2, %c0_2] : memref<11x128xf32, #tpu.memory_space<vmem>>, vector<1x128xf32>
    %c3 = arith.constant 3 : index
    %c0_3 = arith.constant 0 : index
    %3 = vector.load %arg9[%c3, %c0_3] : memref<11x128xf32, #tpu.memory_space<vmem>>, vector<1x128xf32>
    %c4 = arith.constant 4 : index
    %c0_4 = arith.constant 0 : index
    %4 = vector.load %arg9[%c4, %c0_4] : memref<11x128xf32, #tpu.memory_space<vmem>>, vector<1x128xf32>
    %c5 = arith.constant 5 : index
    %c0_5 = arith.constant 0 : index
    %5 = vector.load %arg9[%c5, %c0_5] : memref<11x128xf32, #tpu.memory_space<vmem>>, vector<1x128xf32>
    %c6 = arith.constant 6 : index
    %c0_6 = arith.constant 0 : index
    %6 = vector.load %arg9[%c6, %c0_6] : memref<11x128xf32, #tpu.memory_space<vmem>>, vector<1x128xf32>
    %c7 = arith.constant 7 : index
    %c0_7 = arith.constant 0 : index
    %7 = vector.load %arg9[%c7, %c0_7] : memref<11x128xf32, #tpu.memory_space<vmem>>, vector<1x128xf32>
    %c8 = arith.constant 8 : index
    %c0_8 = arith.constant 0 : index
    %8 = vector.load %arg9[%c8, %c0_8] : memref<11x128xf32, #tpu.memory_space<vmem>>, vector<1x128xf32>
    %c9 = arith.constant 9 : index
    %c0_9 = arith.constant 0 : index
    %9 = vector.load %arg9[%c9, %c0_9] : memref<11x128xf32, #tpu.memory_space<vmem>>, vector<1x128xf32>
    %c10 = arith.constant 10 : index
    %c0_10 = arith.constant 0 : index
    %10 = vector.load %arg9[%c10, %c0_10] : memref<11x128xf32, #tpu.memory_space<vmem>>, vector<1x128xf32>
    %c0_11 = arith.constant 0 : index
    %c0_12 = arith.constant 0 : index
    %11 = vector.load %arg1[%c0_11, %c0_12] : memref<96x192xbf16, #tpu.memory_space<vmem>>, vector<96x192xbf16>
    %c0_13 = arith.constant 0 : index
    %c0_14 = arith.constant 0 : index
    %12 = vector.load %arg2[%c0_13, %c0_14] : memref<192x128xbf16, #tpu.memory_space<vmem>>, vector<192x128xbf16>
    %cst = arith.constant dense<0.000000e+00> : vector<96x128xf32>
    %13 = tpu.matmul %11, %12, %cst {dimension_numbers = #tpu.dot_dimension_numbers<[1], [0], [0], [1], [0, 0, 1, 1], [], []>} : vector<96x192xbf16>, vector<192x128xbf16>, vector<96x128xf32> -> vector<96x128xf32>
    %c0_15 = arith.constant 0 : index
    %c0_16 = arith.constant 0 : index
    %14 = vector.load %arg3[%c0_15, %c0_16] : memref<120x128xf32, #tpu.memory_space<vmem>>, vector<24x128xf32>
    %c24 = arith.constant 24 : index
    %c0_17 = arith.constant 0 : index
    %15 = vector.load %arg3[%c24, %c0_17] : memref<120x128xf32, #tpu.memory_space<vmem>>, vector<96x128xf32>
    %16 = arith.addf %13, %15 : vector<96x128xf32>
    %17 = tpu.concatenate %14, %16 in 0 : vector<24x128xf32>, vector<96x128xf32> -> vector<120x128xf32>
    %cst_18 = arith.constant dense<0.000000e+00> : vector<120xf32>
    %18 = vector.multi_reduction <add>, %17, %cst_18 [1] : vector<120x128xf32> to vector<120xf32>
    %19 = vector.shape_cast %18 : vector<120xf32> to vector<120x1xf32>
    %cst_19 = arith.constant 1.280000e+02 : f32
    %20 = vector.broadcast %cst_19 : f32 to vector<120x1xf32>
    %21 = arith.divf %19, %20 : vector<120x1xf32>
    %22 = vector.broadcast %21 : vector<120x1xf32> to vector<120x128xf32>
    %23 = arith.subf %17, %22 : vector<120x128xf32>
    %24 = arith.mulf %23, %23 : vector<120x128xf32>
    %cst_20 = arith.constant dense<0.000000e+00> : vector<120xf32>
    %25 = vector.multi_reduction <add>, %24, %cst_20 [1] : vector<120x128xf32> to vector<120xf32>
    %26 = vector.shape_cast %25 : vector<120xf32> to vector<120x1xf32>
    %cst_21 = arith.constant 1.280000e+02 : f32
    %27 = vector.broadcast %cst_21 : f32 to vector<120x1xf32>
    %28 = arith.divf %26, %27 : vector<120x1xf32>
    %cst_22 = arith.constant 9.99999997E-7 : f32
    %29 = vector.broadcast %cst_22 : f32 to vector<120x1xf32>
    %30 = arith.addf %28, %29 : vector<120x1xf32>
    %31 = math.rsqrt %30 : vector<120x1xf32>
    %32 = vector.broadcast %31 : vector<120x1xf32> to vector<120x128xf32>
    %33 = arith.mulf %23, %32 : vector<120x128xf32>
    %34 = vector.broadcast %0 : vector<1x128xf32> to vector<120x128xf32>
    %35 = arith.mulf %33, %34 : vector<120x128xf32>
    %36 = vector.broadcast %1 : vector<1x128xf32> to vector<120x128xf32>
    %37 = arith.addf %35, %36 : vector<120x128xf32>
    %38 = arith.truncf %37 : vector<120x128xf32> to vector<120x128xbf16>
    %c0_23 = arith.constant 0 : index
    %c0_24 = arith.constant 0 : index
    %39 = vector.load %arg4[%c0_23, %c0_24] : memref<128x384xbf16, #tpu.memory_space<vmem>>, vector<128x384xbf16>
    %cst_25 = arith.constant dense<0.000000e+00> : vector<120x384xf32>
    %40 = tpu.matmul %38, %39, %cst_25 {dimension_numbers = #tpu.dot_dimension_numbers<[1], [0], [0], [1], [0, 0, 1, 1], [], []>} : vector<120x128xbf16>, vector<128x384xbf16>, vector<120x384xf32> -> vector<120x384xf32>
    %41 = vector.extract_strided_slice %40 {offsets = [0, 0], sizes = [120, 128], strides = [1, 1]} : vector<120x384xf32> to vector<120x128xf32>
    %42 = vector.broadcast %2 : vector<1x128xf32> to vector<120x128xf32>
    %43 = arith.addf %41, %42 : vector<120x128xf32>
    %44 = arith.truncf %43 : vector<120x128xf32> to vector<120x128xbf16>
    %45 = vector.extract_strided_slice %40 {offsets = [0, 128], sizes = [120, 128], strides = [1, 1]} : vector<120x384xf32> to vector<120x128xf32>
    %46 = vector.broadcast %3 : vector<1x128xf32> to vector<120x128xf32>
    %47 = arith.addf %45, %46 : vector<120x128xf32>
    %48 = arith.truncf %47 : vector<120x128xf32> to vector<120x128xbf16>
    %49 = vector.extract_strided_slice %40 {offsets = [0, 256], sizes = [120, 128], strides = [1, 1]} : vector<120x384xf32> to vector<120x128xf32>
    %50 = vector.broadcast %4 : vector<1x128xf32> to vector<120x128xf32>
    %51 = arith.addf %49, %50 : vector<120x128xf32>
    %52 = arith.truncf %51 : vector<120x128xf32> to vector<120x128xbf16>
    %c0_26 = arith.constant 0 : index
    %c0_27 = arith.constant 0 : index
    %53 = vector.load %arg10[%c0_26, %c0_27] : memref<120x120xf32, #tpu.memory_space<vmem>>, vector<120x120xf32>
    %54 = vector.extract_strided_slice %44 {offsets = [0, 0], sizes = [120, 32], strides = [1, 1]} : vector<120x128xbf16> to vector<120x32xbf16>
    %55 = vector.extract_strided_slice %48 {offsets = [0, 0], sizes = [120, 32], strides = [1, 1]} : vector<120x128xbf16> to vector<120x32xbf16>
    %56 = vector.extract_strided_slice %52 {offsets = [0, 0], sizes = [120, 32], strides = [1, 1]} : vector<120x128xbf16> to vector<120x32xbf16>
    "tpu.trace_start"() <{level = 10 : i32, message = "qd,kd->qk"}> : () -> ()
    %cst_28 = arith.constant dense<0.000000e+00> : vector<120x120xf32>
    %57 = tpu.matmul %54, %55, %cst_28 {dimension_numbers = #tpu.dot_dimension_numbers<[1], [1], [0], [0], [0, 0, 1, 0], [], []>} : vector<120x32xbf16>, vector<120x32xbf16>, vector<120x120xf32> -> vector<120x120xf32>
    "tpu.trace_stop"() : () -> ()
    %cst_29 = arith.constant 0.176776692 : f32
    %58 = vector.broadcast %cst_29 : f32 to vector<120x120xf32>
    %59 = arith.mulf %57, %58 : vector<120x120xf32>
    %60 = arith.addf %59, %53 : vector<120x120xf32>
    %cst_30 = arith.constant dense<0xFF800000> : vector<120xf32>
    %61 = vector.multi_reduction <maximumf>, %60, %cst_30 [1] : vector<120x120xf32> to vector<120xf32>
    %62 = vector.shape_cast %61 : vector<120xf32> to vector<120x1xf32>
    %63 = vector.broadcast %62 : vector<120x1xf32> to vector<120x120xf32>
    %64 = arith.subf %60, %63 : vector<120x120xf32>
    %65 = math.exp %64 : vector<120x120xf32>
    %cst_31 = arith.constant dense<0.000000e+00> : vector<120xf32>
    %66 = vector.multi_reduction <add>, %65, %cst_31 [1] : vector<120x120xf32> to vector<120xf32>
    %67 = vector.shape_cast %66 : vector<120xf32> to vector<120x1xf32>
    %cst_32 = arith.constant 1.000000e+00 : f32
    %68 = vector.broadcast %cst_32 : f32 to vector<120x1xf32>
    %69 = arith.divf %68, %67 : vector<120x1xf32>
    %70 = vector.broadcast %69 : vector<120x1xf32> to vector<120x120xf32>
    %71 = arith.mulf %65, %70 : vector<120x120xf32>
    %72 = arith.truncf %71 : vector<120x120xf32> to vector<120x120xbf16>
    %cst_33 = arith.constant dense<0.000000e+00> : vector<120x32xf32>
    %73 = tpu.matmul %72, %56, %cst_33 {dimension_numbers = #tpu.dot_dimension_numbers<[1], [0], [0], [1], [0, 0, 1, 1], [], []>} : vector<120x120xbf16>, vector<120x32xbf16>, vector<120x32xf32> -> vector<120x32xf32>
    %74 = vector.extract_strided_slice %44 {offsets = [0, 32], sizes = [120, 32], strides = [1, 1]} : vector<120x128xbf16> to vector<120x32xbf16>
    %75 = vector.extract_strided_slice %48 {offsets = [0, 32], sizes = [120, 32], strides = [1, 1]} : vector<120x128xbf16> to vector<120x32xbf16>
    %76 = vector.extract_strided_slice %52 {offsets = [0, 32], sizes = [120, 32], strides = [1, 1]} : vector<120x128xbf16> to vector<120x32xbf16>
    "tpu.trace_start"() <{level = 10 : i32, message = "qd,kd->qk"}> : () -> ()
    %cst_34 = arith.constant dense<0.000000e+00> : vector<120x120xf32>
    %77 = tpu.matmul %74, %75, %cst_34 {dimension_numbers = #tpu.dot_dimension_numbers<[1], [1], [0], [0], [0, 0, 1, 0], [], []>} : vector<120x32xbf16>, vector<120x32xbf16>, vector<120x120xf32> -> vector<120x120xf32>
    "tpu.trace_stop"() : () -> ()
    %cst_35 = arith.constant 0.176776692 : f32
    %78 = vector.broadcast %cst_35 : f32 to vector<120x120xf32>
    %79 = arith.mulf %77, %78 : vector<120x120xf32>
    %80 = arith.addf %79, %53 : vector<120x120xf32>
    %cst_36 = arith.constant dense<0xFF800000> : vector<120xf32>
    %81 = vector.multi_reduction <maximumf>, %80, %cst_36 [1] : vector<120x120xf32> to vector<120xf32>
    %82 = vector.shape_cast %81 : vector<120xf32> to vector<120x1xf32>
    %83 = vector.broadcast %82 : vector<120x1xf32> to vector<120x120xf32>
    %84 = arith.subf %80, %83 : vector<120x120xf32>
    %85 = math.exp %84 : vector<120x120xf32>
    %cst_37 = arith.constant dense<0.000000e+00> : vector<120xf32>
    %86 = vector.multi_reduction <add>, %85, %cst_37 [1] : vector<120x120xf32> to vector<120xf32>
    %87 = vector.shape_cast %86 : vector<120xf32> to vector<120x1xf32>
    %cst_38 = arith.constant 1.000000e+00 : f32
    %88 = vector.broadcast %cst_38 : f32 to vector<120x1xf32>
    %89 = arith.divf %88, %87 : vector<120x1xf32>
    %90 = vector.broadcast %89 : vector<120x1xf32> to vector<120x120xf32>
    %91 = arith.mulf %85, %90 : vector<120x120xf32>
    %92 = arith.truncf %91 : vector<120x120xf32> to vector<120x120xbf16>
    %cst_39 = arith.constant dense<0.000000e+00> : vector<120x32xf32>
    %93 = tpu.matmul %92, %76, %cst_39 {dimension_numbers = #tpu.dot_dimension_numbers<[1], [0], [0], [1], [0, 0, 1, 1], [], []>} : vector<120x120xbf16>, vector<120x32xbf16>, vector<120x32xf32> -> vector<120x32xf32>
    %94 = vector.extract_strided_slice %44 {offsets = [0, 64], sizes = [120, 32], strides = [1, 1]} : vector<120x128xbf16> to vector<120x32xbf16>
    %95 = vector.extract_strided_slice %48 {offsets = [0, 64], sizes = [120, 32], strides = [1, 1]} : vector<120x128xbf16> to vector<120x32xbf16>
    %96 = vector.extract_strided_slice %52 {offsets = [0, 64], sizes = [120, 32], strides = [1, 1]} : vector<120x128xbf16> to vector<120x32xbf16>
    "tpu.trace_start"() <{level = 10 : i32, message = "qd,kd->qk"}> : () -> ()
    %cst_40 = arith.constant dense<0.000000e+00> : vector<120x120xf32>
    %97 = tpu.matmul %94, %95, %cst_40 {dimension_numbers = #tpu.dot_dimension_numbers<[1], [1], [0], [0], [0, 0, 1, 0], [], []>} : vector<120x32xbf16>, vector<120x32xbf16>, vector<120x120xf32> -> vector<120x120xf32>
    "tpu.trace_stop"() : () -> ()
    %cst_41 = arith.constant 0.176776692 : f32
    %98 = vector.broadcast %cst_41 : f32 to vector<120x120xf32>
    %99 = arith.mulf %97, %98 : vector<120x120xf32>
    %100 = arith.addf %99, %53 : vector<120x120xf32>
    %cst_42 = arith.constant dense<0xFF800000> : vector<120xf32>
    %101 = vector.multi_reduction <maximumf>, %100, %cst_42 [1] : vector<120x120xf32> to vector<120xf32>
    %102 = vector.shape_cast %101 : vector<120xf32> to vector<120x1xf32>
    %103 = vector.broadcast %102 : vector<120x1xf32> to vector<120x120xf32>
    %104 = arith.subf %100, %103 : vector<120x120xf32>
    %105 = math.exp %104 : vector<120x120xf32>
    %cst_43 = arith.constant dense<0.000000e+00> : vector<120xf32>
    %106 = vector.multi_reduction <add>, %105, %cst_43 [1] : vector<120x120xf32> to vector<120xf32>
    %107 = vector.shape_cast %106 : vector<120xf32> to vector<120x1xf32>
    %cst_44 = arith.constant 1.000000e+00 : f32
    %108 = vector.broadcast %cst_44 : f32 to vector<120x1xf32>
    %109 = arith.divf %108, %107 : vector<120x1xf32>
    %110 = vector.broadcast %109 : vector<120x1xf32> to vector<120x120xf32>
    %111 = arith.mulf %105, %110 : vector<120x120xf32>
    %112 = arith.truncf %111 : vector<120x120xf32> to vector<120x120xbf16>
    %cst_45 = arith.constant dense<0.000000e+00> : vector<120x32xf32>
    %113 = tpu.matmul %112, %96, %cst_45 {dimension_numbers = #tpu.dot_dimension_numbers<[1], [0], [0], [1], [0, 0, 1, 1], [], []>} : vector<120x120xbf16>, vector<120x32xbf16>, vector<120x32xf32> -> vector<120x32xf32>
    %114 = vector.extract_strided_slice %44 {offsets = [0, 96], sizes = [120, 32], strides = [1, 1]} : vector<120x128xbf16> to vector<120x32xbf16>
    %115 = vector.extract_strided_slice %48 {offsets = [0, 96], sizes = [120, 32], strides = [1, 1]} : vector<120x128xbf16> to vector<120x32xbf16>
    %116 = vector.extract_strided_slice %52 {offsets = [0, 96], sizes = [120, 32], strides = [1, 1]} : vector<120x128xbf16> to vector<120x32xbf16>
    "tpu.trace_start"() <{level = 10 : i32, message = "qd,kd->qk"}> : () -> ()
    %cst_46 = arith.constant dense<0.000000e+00> : vector<120x120xf32>
    %117 = tpu.matmul %114, %115, %cst_46 {dimension_numbers = #tpu.dot_dimension_numbers<[1], [1], [0], [0], [0, 0, 1, 0], [], []>} : vector<120x32xbf16>, vector<120x32xbf16>, vector<120x120xf32> -> vector<120x120xf32>
    "tpu.trace_stop"() : () -> ()
    %cst_47 = arith.constant 0.176776692 : f32
    %118 = vector.broadcast %cst_47 : f32 to vector<120x120xf32>
    %119 = arith.mulf %117, %118 : vector<120x120xf32>
    %120 = arith.addf %119, %53 : vector<120x120xf32>
    %cst_48 = arith.constant dense<0xFF800000> : vector<120xf32>
    %121 = vector.multi_reduction <maximumf>, %120, %cst_48 [1] : vector<120x120xf32> to vector<120xf32>
    %122 = vector.shape_cast %121 : vector<120xf32> to vector<120x1xf32>
    %123 = vector.broadcast %122 : vector<120x1xf32> to vector<120x120xf32>
    %124 = arith.subf %120, %123 : vector<120x120xf32>
    %125 = math.exp %124 : vector<120x120xf32>
    %cst_49 = arith.constant dense<0.000000e+00> : vector<120xf32>
    %126 = vector.multi_reduction <add>, %125, %cst_49 [1] : vector<120x120xf32> to vector<120xf32>
    %127 = vector.shape_cast %126 : vector<120xf32> to vector<120x1xf32>
    %cst_50 = arith.constant 1.000000e+00 : f32
    %128 = vector.broadcast %cst_50 : f32 to vector<120x1xf32>
    %129 = arith.divf %128, %127 : vector<120x1xf32>
    %130 = vector.broadcast %129 : vector<120x1xf32> to vector<120x120xf32>
    %131 = arith.mulf %125, %130 : vector<120x120xf32>
    %132 = arith.truncf %131 : vector<120x120xf32> to vector<120x120xbf16>
    %cst_51 = arith.constant dense<0.000000e+00> : vector<120x32xf32>
    %133 = tpu.matmul %132, %116, %cst_51 {dimension_numbers = #tpu.dot_dimension_numbers<[1], [0], [0], [1], [0, 0, 1, 1], [], []>} : vector<120x120xbf16>, vector<120x32xbf16>, vector<120x32xf32> -> vector<120x32xf32>
    %134 = tpu.concatenate %73, %93, %113, %133 in 1 : vector<120x32xf32>, vector<120x32xf32>, vector<120x32xf32>, vector<120x32xf32> -> vector<120x128xf32>
    %135 = arith.truncf %134 : vector<120x128xf32> to vector<120x128xbf16>
    %c0_52 = arith.constant 0 : index
    %c0_53 = arith.constant 0 : index
    %136 = vector.load %arg5[%c0_52, %c0_53] : memref<128x128xbf16, #tpu.memory_space<vmem>>, vector<128x128xbf16>
    %cst_54 = arith.constant dense<0.000000e+00> : vector<120x128xf32>
    %137 = tpu.matmul %135, %136, %cst_54 {dimension_numbers = #tpu.dot_dimension_numbers<[1], [0], [0], [1], [0, 0, 1, 1], [], []>} : vector<120x128xbf16>, vector<128x128xbf16>, vector<120x128xf32> -> vector<120x128xf32>
    %138 = arith.addf %17, %137 : vector<120x128xf32>
    %139 = vector.broadcast %5 : vector<1x128xf32> to vector<120x128xf32>
    %140 = arith.addf %138, %139 : vector<120x128xf32>
    %cst_55 = arith.constant dense<0.000000e+00> : vector<120xf32>
    %141 = vector.multi_reduction <add>, %140, %cst_55 [1] : vector<120x128xf32> to vector<120xf32>
    %142 = vector.shape_cast %141 : vector<120xf32> to vector<120x1xf32>
    %cst_56 = arith.constant 1.280000e+02 : f32
    %143 = vector.broadcast %cst_56 : f32 to vector<120x1xf32>
    %144 = arith.divf %142, %143 : vector<120x1xf32>
    %145 = vector.broadcast %144 : vector<120x1xf32> to vector<120x128xf32>
    %146 = arith.subf %140, %145 : vector<120x128xf32>
    %147 = arith.mulf %146, %146 : vector<120x128xf32>
    %cst_57 = arith.constant dense<0.000000e+00> : vector<120xf32>
    %148 = vector.multi_reduction <add>, %147, %cst_57 [1] : vector<120x128xf32> to vector<120xf32>
    %149 = vector.shape_cast %148 : vector<120xf32> to vector<120x1xf32>
    %cst_58 = arith.constant 1.280000e+02 : f32
    %150 = vector.broadcast %cst_58 : f32 to vector<120x1xf32>
    %151 = arith.divf %149, %150 : vector<120x1xf32>
    %cst_59 = arith.constant 9.99999997E-7 : f32
    %152 = vector.broadcast %cst_59 : f32 to vector<120x1xf32>
    %153 = arith.addf %151, %152 : vector<120x1xf32>
    %154 = math.rsqrt %153 : vector<120x1xf32>
    %155 = vector.broadcast %154 : vector<120x1xf32> to vector<120x128xf32>
    %156 = arith.mulf %146, %155 : vector<120x128xf32>
    %157 = vector.broadcast %6 : vector<1x128xf32> to vector<120x128xf32>
    %158 = arith.mulf %156, %157 : vector<120x128xf32>
    %159 = vector.broadcast %7 : vector<1x128xf32> to vector<120x128xf32>
    %160 = arith.addf %158, %159 : vector<120x128xf32>
    %161 = arith.truncf %160 : vector<120x128xf32> to vector<120x128xbf16>
    %c0_60 = arith.constant 0 : index
    %c0_61 = arith.constant 0 : index
    %162 = vector.load %arg6[%c0_60, %c0_61] : memref<128x512xbf16, #tpu.memory_space<vmem>>, vector<128x512xbf16>
    %cst_62 = arith.constant dense<0.000000e+00> : vector<120x512xf32>
    %163 = tpu.matmul %161, %162, %cst_62 {dimension_numbers = #tpu.dot_dimension_numbers<[1], [0], [0], [1], [0, 0, 1, 1], [], []>} : vector<120x128xbf16>, vector<128x512xbf16>, vector<120x512xf32> -> vector<120x512xf32>
    %c0_63 = arith.constant 0 : index
    %c0_64 = arith.constant 0 : index
    %164 = vector.load %arg7[%c0_63, %c0_64] : memref<1x512xf32, #tpu.memory_space<vmem>>, vector<1x512xf32>
    %165 = vector.broadcast %164 : vector<1x512xf32> to vector<120x512xf32>
    %166 = arith.addf %163, %165 : vector<120x512xf32>
    %cst_65 = arith.constant 5.000000e-01 : f32
    %167 = vector.broadcast %cst_65 : f32 to vector<120x512xf32>
    %168 = arith.mulf %167, %166 : vector<120x512xf32>
    %cst_66 = arith.constant 4.471500e-02 : f32
    %169 = vector.broadcast %cst_66 : f32 to vector<120x512xf32>
    %170 = arith.mulf %169, %166 : vector<120x512xf32>
    %171 = arith.mulf %170, %166 : vector<120x512xf32>
    %172 = arith.mulf %171, %166 : vector<120x512xf32>
    %173 = arith.addf %166, %172 : vector<120x512xf32>
    %cst_67 = arith.constant 0.797884583 : f32
    %174 = vector.broadcast %cst_67 : f32 to vector<120x512xf32>
    %175 = arith.mulf %174, %173 : vector<120x512xf32>
    %176 = math.tanh %175 : vector<120x512xf32>
    %cst_68 = arith.constant 1.000000e+00 : f32
    %177 = vector.broadcast %cst_68 : f32 to vector<120x512xf32>
    %178 = arith.addf %177, %176 : vector<120x512xf32>
    %179 = arith.mulf %168, %178 : vector<120x512xf32>
    %180 = arith.truncf %179 : vector<120x512xf32> to vector<120x512xbf16>
    %c0_69 = arith.constant 0 : index
    %c0_70 = arith.constant 0 : index
    %181 = vector.load %arg8[%c0_69, %c0_70] : memref<512x128xbf16, #tpu.memory_space<vmem>>, vector<512x128xbf16>
    %cst_71 = arith.constant dense<0.000000e+00> : vector<120x128xf32>
    %182 = tpu.matmul %180, %181, %cst_71 {dimension_numbers = #tpu.dot_dimension_numbers<[1], [0], [0], [1], [0, 0, 1, 1], [], []>} : vector<120x512xbf16>, vector<512x128xbf16>, vector<120x128xf32> -> vector<120x128xf32>
    %183 = arith.addf %140, %182 : vector<120x128xf32>
    %184 = vector.broadcast %8 : vector<1x128xf32> to vector<120x128xf32>
    %185 = arith.addf %183, %184 : vector<120x128xf32>
    %186 = vector.extract_strided_slice %185 {offsets = [0, 0], sizes = [24, 128], strides = [1, 1]} : vector<120x128xf32> to vector<24x128xf32>
    %cst_72 = arith.constant dense<0.000000e+00> : vector<24xf32>
    %187 = vector.multi_reduction <add>, %186, %cst_72 [1] : vector<24x128xf32> to vector<24xf32>
    %188 = vector.shape_cast %187 : vector<24xf32> to vector<24x1xf32>
    %cst_73 = arith.constant 1.280000e+02 : f32
    %189 = vector.broadcast %cst_73 : f32 to vector<24x1xf32>
    %190 = arith.divf %188, %189 : vector<24x1xf32>
    %191 = vector.broadcast %190 : vector<24x1xf32> to vector<24x128xf32>
    %192 = arith.subf %186, %191 : vector<24x128xf32>
    %193 = arith.mulf %192, %192 : vector<24x128xf32>
    %cst_74 = arith.constant dense<0.000000e+00> : vector<24xf32>
    %194 = vector.multi_reduction <add>, %193, %cst_74 [1] : vector<24x128xf32> to vector<24xf32>
    %195 = vector.shape_cast %194 : vector<24xf32> to vector<24x1xf32>
    %cst_75 = arith.constant 1.280000e+02 : f32
    %196 = vector.broadcast %cst_75 : f32 to vector<24x1xf32>
    %197 = arith.divf %195, %196 : vector<24x1xf32>
    %cst_76 = arith.constant 9.99999997E-7 : f32
    %198 = vector.broadcast %cst_76 : f32 to vector<24x1xf32>
    %199 = arith.addf %197, %198 : vector<24x1xf32>
    %200 = math.rsqrt %199 : vector<24x1xf32>
    %201 = vector.broadcast %200 : vector<24x1xf32> to vector<24x128xf32>
    %202 = arith.mulf %192, %201 : vector<24x128xf32>
    %203 = vector.broadcast %9 : vector<1x128xf32> to vector<24x128xf32>
    %204 = arith.mulf %202, %203 : vector<24x128xf32>
    %205 = vector.broadcast %10 : vector<1x128xf32> to vector<24x128xf32>
    %206 = arith.addf %204, %205 : vector<24x128xf32>
    %c0_77 = arith.constant 0 : index
    %c0_78 = arith.constant 0 : index
    %207 = vector.load %arg11[%c0_77, %c0_78] : memref<24x128xf32, #tpu.memory_space<vmem>>, vector<24x128xf32>
    tpu.vector_store %arg11[%c0_77, %c0_78], %206 {strides = array<i32>} : memref<24x128xf32, #tpu.memory_space<vmem>>, vector<24x128xf32>,
    return
  }
  func.func @transform_0(%arg0: i32) -> (i32, i32) {
    %c0_i32 = arith.constant 0 : i32
    %c0_i32_0 = arith.constant 0 : i32
    return %arg0, %c0_i32 : i32, i32
  }
  func.func @transform_1(%arg0: i32) -> (i32, i32) {
    %c0_i32 = arith.constant 0 : i32
    %c0_i32_0 = arith.constant 0 : i32
    %c0_i32_1 = arith.constant 0 : i32
    return %c0_i32, %c0_i32_0 : i32, i32
  }
  func.func @transform_2(%arg0: i32) -> (i32, i32) {
    %c0_i32 = arith.constant 0 : i32
    %c0_i32_0 = arith.constant 0 : i32
    %c0_i32_1 = arith.constant 0 : i32
    return %c0_i32, %c0_i32_0 : i32, i32
  }
  func.func @transform_3(%arg0: i32) -> (i32, i32) {
    %c0_i32 = arith.constant 0 : i32
    %c0_i32_0 = arith.constant 0 : i32
    %c0_i32_1 = arith.constant 0 : i32
    return %c0_i32, %c0_i32_0 : i32, i32
  }
  func.func @transform_4(%arg0: i32) -> (i32, i32) {
    %c0_i32 = arith.constant 0 : i32
    %c0_i32_0 = arith.constant 0 : i32
    %c0_i32_1 = arith.constant 0 : i32
    return %c0_i32, %c0_i32_0 : i32, i32
  }
  func.func @transform_5(%arg0: i32) -> (i32, i32) {
    %c0_i32 = arith.constant 0 : i32
    %c0_i32_0 = arith.constant 0 : i32
    %c0_i32_1 = arith.constant 0 : i32
    return %c0_i32, %c0_i32_0 : i32, i32
  }
  func.func @transform_6(%arg0: i32) -> (i32, i32) {
    %c0_i32 = arith.constant 0 : i32
    %c0_i32_0 = arith.constant 0 : i32
    %c0_i32_1 = arith.constant 0 : i32
    return %c0_i32, %c0_i32_0 : i32, i32
  }
  func.func @transform_7(%arg0: i32) -> (i32, i32) {
    %c0_i32 = arith.constant 0 : i32
    %c0_i32_0 = arith.constant 0 : i32
    %c0_i32_1 = arith.constant 0 : i32
    return %c0_i32, %c0_i32_0 : i32, i32
  }
  func.func @transform_8(%arg0: i32) -> (i32, i32) {
    %c0_i32 = arith.constant 0 : i32
    %c0_i32_0 = arith.constant 0 : i32
    %c0_i32_1 = arith.constant 0 : i32
    return %c0_i32, %c0_i32_0 : i32, i32
  }
  func.func @transform_9(%arg0: i32) -> (i32, i32) {
    %c0_i32 = arith.constant 0 : i32
    %c0_i32_0 = arith.constant 0 : i32
    %c0_i32_1 = arith.constant 0 : i32
    return %c0_i32, %c0_i32_0 : i32, i32
  }
  func.func @transform_10(%arg0: i32) -> (i32, i32) {
    %c0_i32 = arith.constant 0 : i32
    %c0_i32_0 = arith.constant 0 : i32
    return %arg0, %c0_i32 : i32, i32
  }
}

</mosaic_0001>

<bundles_post_ra>
// kernel: tpu_custom_call.1
= control target key start
LH: loop header
LB: loop body
LE: loop exit
PB: predicated region body
PF: predicated region fallthrough
CT: control target
= control target key end

     0   :  { %s11062_s0 = inlined_call_operand.hbm [shape: bf16[192,192], index: 0, kind: input, shape index: {}]   ;;  %s11063_s1 = inlined_call_operand.hbm [shape: bf16[192,128], index: 1, kind: input, shape index: {}]   ;;  %s11064_s2 = inlined_call_operand.hbm [shape: f32[120,128], index: 2, kind: input, shape index: {}]   ;;  %s11065_s3 = inlined_call_operand.hbm [shape: bf16[128,384], index: 3, kind: input, shape index: {}]   ;;  %s11066_s4 = inlined_call_operand.hbm [shape: bf16[128,128], index: 4, kind: input, shape index: {}]   ;;  %s11067_s5 = inlined_call_operand.hbm [shape: bf16[128,512], index: 5, kind: input, shape index: {}]   ;;  %s11068_s6 = inlined_call_operand.vmem [shape: f32[1,512], index: 6, kind: input, shape index: {}]   ;;  %s11069_s7 = inlined_call_operand.hbm [shape: bf16[512,128], index: 7, kind: input, shape index: {}]   ;;  %s11070_s8 = inlined_call_operand.vmem [shape: f32[11,128], index: 8, kind: input, shape index: {}]   ;;  %s11071_s9 = inlined_call_operand.hbm [shape: f32[120,120], index: 9, kind: input, shape index: {}]   ;;  %s11072_s10 = inlined_call_operand.hbm [shape: f32[48,128], index: 10, kind: output, shape index: {}]  }
   0x1   :  { %11196 = sst [smem:[#allocation69_spill]] %s11063_s1 }
   0x2   :  { %11197 = sst [smem:[#allocation70_spill]] %s11064_s2 }
   0x3   :  { %11198 = sst [smem:[#allocation71_spill]] %s11065_s3 }
   0x4   :  { %11199 = sst [smem:[#allocation72_spill]] %s11066_s4 }
   0x5   :  { %11200 = sst [smem:[#allocation73_spill]] %s11068_s6 }
   0x6   :  { %11201 = sst [smem:[#allocation74_spill]] %s11072_s10 }
   0x7   :  { %15 = vsyncpa [#allocation3], 0 }
   0x8   :  { %17 = vsyncpa [#allocation3 + $0x1], 0 }
   0x9   :  { %18 = vsyncpa [#allocation6], 0 }
   0xa   :  { %19 = vsyncpa [#allocation9], 0 }
   0xb   :  { %20 = vsyncpa [#allocation12], 0 }
   0xc   :  { %21 = vsyncpa [#allocation15], 0 }
   0xd   :  { %22 = vsyncpa [#allocation4], 0 }
   0xe   :  { %24 = vsyncpa [#allocation4 + $0x1], 0  ;;  %s7973_s13 = smov 0   ;;  %s7975_s14 = smov 0  }
   0xf   :  { %s7977_s15 = smov 0   ;;  %s7979_s16 = smov 0  }
  0x10 LB: > { %s7895_s17 = smov [#allocation5]   ;;  %s7994_s19 = sadd.s32 4294967295, %s7893_s16   ;;  %s7893_s16 = sphi %s7979_s16, %s11467_s16   ;;  %s7889_s15 = sphi %s7977_s15, %s11466_s15   ;;  %s7885_s14 = sphi %s7975_s14, %s11465_s14   ;;  %s7881_s13 = sphi %s7973_s13, %s11464_s13  }
  0x11   : > { %s288_s18 = sshll.u32 %s7895_s17, 4  ;;  %p5865_p0 = scmp.ge.s32.totalorder %s7893_s16, 1  ;;  %s7999_s18 = int_to_ptr.vmem [resolvable:$true] %s288_s18 }
  0x12   : > { %p11076_p1 = scmp.eq.s32.totalorder %s7994_s19, 0  ;;  %p276_p2 = scmp.lt.s32.totalorder %s7893_s16, 3 }
  0x13   : > { %s7896_s21 = smov [#allocation8]   ;;  %s7897_s24 = smov [#allocation11]  }
  0x14   : > { %p8001_p3 = pnand %p5865_p0, %p276_p2  ;;  %s314_s22 = sshll.u32 %s7896_s21, 4  ;;  %s8014_s22 = int_to_ptr.vmem [resolvable:$true] %s314_s22 }
  0x15   : > { %s8016_s25 = sshll.u32 %s7897_s24, 4  ;;  %s11204_s1 = sld [smem:[#allocation69_spill]]  ;;  %s341_s25 = int_to_ptr.vmem [resolvable:$true] %s8016_s25 }
  0x16   : > { %s11202_s20 = scalar_select %p8001_p3, 1, 0 }
  0x17   : > { %p6787_p5 = pneg %p8001_p3 }
  0x19   : > { %p8010_p6 = pnand %p6787_p5, %p11076_p1 }
  0x1b   : > { %s7585_s28 = scalar_lea.hbm %s11204_s1, 1536  ;;  %p8026_p8 = pneg %p8010_p6 }
  0x1c   : > { %p7586_p7 = scmp.ne.s32.totalorder %s11204_s1, %s7585_s28  ;;  %p7592_p11 = scmp.lt.u32.totalorder %s7585_s28, %s11204_s1 }
  0x1e   : > { %p7588_p9 = pnand %p8026_p8, %p7586_p7 }
  0x20   : > { %p7589_p10 = pneg %p7588_p9 }
  0x22   : > { %p7594_p12 = pnand %p7592_p11, %p7589_p10 }
  0x24   : > { %7597 = shalt.err (!%p7594_p12)
}
  0x25   : > { %s7598_s21 = scalar_lea.vmem %s7999_s18, 1536  ;;  %p7606_p5 = scmp.lt.s32.totalorder %s7999_s18, %s7999_s18 }
  0x26   : > { %p7599_p13 = scmp.ne.s32.totalorder %s7999_s18, %s7598_s21  ;;  %p7607_p4 = scmp.lt.s32.totalorder %s7598_s21, %s7598_s21 }
  0x28   : > { %p7601_p0 = pnand %p7599_p13, %p8026_p8  ;;  %p7608_p7 = por %p7607_p4, %p7606_p5 }
  0x2a   : > { %p7602_p2 = pneg %p7601_p0 }
  0x2c   : > { %p7609_p9 = pnand %p7608_p7, %p7602_p2 }
  0x2e   : > { %7612 = shalt.err (!%p7609_p9)
}
  0x2f   : > { %s11074_s24 = smov 64   ;;  %s11078_s26 = smov 4  }
  0x30   : > { %6790 = dma.hbm_to_vmem [thread:$0]  (!%p8010_p6), %s11204_s1, 1536, %s7999_s18, [#allocation6], %s11074_s24, %s11074_s24, %s11078_s26  }
  0x31   : > { %s11206_s3 = sld [smem:[#allocation71_spill]] }
  0x37   : > { %s7613_s12 = scalar_lea.hbm %s11206_s3, 3072 }
  0x38   : > { %p7614_p4 = scmp.ne.s32.totalorder %s11206_s3, %s7613_s12  ;;  %p7620_p12 = scmp.lt.u32.totalorder %s7613_s12, %s11206_s3 }
  0x3a   : > { %p7616_p10 = pnand %p7614_p4, %p8026_p8 }
  0x3c   : > { %p7617_p11 = pneg %p7616_p10 }
  0x3e   : > { %p7622_p13 = pnand %p7620_p12, %p7617_p11 }
  0x40   : > { %7625 = shalt.err (!%p7622_p13)
}
  0x41   : > { %s7626_s18 = scalar_lea.vmem %s8014_s22, 3072  ;;  %p7634_p7 = scmp.lt.s32.totalorder %s8014_s22, %s8014_s22 }
  0x42   : > { %p7627_p0 = scmp.ne.s32.totalorder %s8014_s22, %s7626_s18  ;;  %p7635_p9 = scmp.lt.s32.totalorder %s7626_s18, %s7626_s18 }
  0x44   : > { %p7629_p2 = pnand %p7627_p0, %p8026_p8  ;;  %p7636_p4 = por %p7635_p9, %p7634_p7 }
  0x46   : > { %p7630_p5 = pneg %p7629_p2 }
  0x48   : > { %p7637_p10 = pnand %p7636_p4, %p7630_p5 }
  0x4a   : > { %7640 = shalt.err (!%p7637_p10)
}
  0x4b   : > { %s7900_s27 = smov 192   ;;  %s7901_s6 = smov 12  }
  0x4c   : > { %6796 = dma.hbm_to_vmem [thread:$0]  (!%p8010_p6), %s11206_s3, 3072, %s8014_s22, [#allocation9], %s7900_s27, %s7900_s27, %s7901_s6  }
  0x4d   : > { %s7641_s12 = scalar_lea.hbm %s11067_s5, 4096 }
  0x4e   : > { %p7642_p11 = scmp.ne.s32.totalorder %s11067_s5, %s7641_s12  ;;  %p7648_p0 = scmp.lt.u32.totalorder %s7641_s12, %s11067_s5 }
  0x50   : > { %p7644_p12 = pnand %p7642_p11, %p8026_p8 }
  0x52   : > { %p7645_p13 = pneg %p7644_p12 }
  0x54   : > { %p7650_p2 = pnand %p7648_p0, %p7645_p13 }
  0x56   : > { %7653 = shalt.err (!%p7650_p2)
}
  0x57   : > { %s7654_s10 = scalar_lea.vmem %s341_s25, 4096  ;;  %p7662_p4 = scmp.lt.s32.totalorder %s341_s25, %s341_s25 }
  0x58   : > { %p7655_p5 = scmp.ne.s32.totalorder %s341_s25, %s7654_s10  ;;  %p7663_p10 = scmp.lt.s32.totalorder %s7654_s10, %s7654_s10 }
  0x5a   : > { %p7657_p7 = pnand %p7655_p5, %p8026_p8  ;;  %p7664_p1 = por %p7663_p10, %p7662_p4 }
  0x5c   : > { %p7658_p9 = pneg %p7657_p7 }
  0x5e   : > { %p7665_p3 = pnand %p7664_p1, %p7658_p9 }
  0x60   : > { %7668 = shalt.err (!%p7665_p3)
}
  0x61   : > { %s7902_s22 = smov 256   ;;  %s7903_s27 = smov 16  }
  0x62   : > { %6802 = dma.hbm_to_vmem [thread:$0]  (!%p8010_p6), %s11067_s5, 4096, %s341_s25, [#allocation12], %s7902_s22, %s7902_s22, %s7903_s27  }
  0x63   : > { %s7904_s28 = smov [#allocation7]   ;;  %s11207_s2 = sld [smem:[#allocation70_spill]] }
  0x64   : > { %s301_s29 = sshll.u32 %s7904_s28, 4  ;;  %s302_s29 = int_to_ptr.vmem [resolvable:$true] %s301_s29 }
  0x69   : > { %s7669_s17 = scalar_lea.hbm %s11207_s2, 1920 }
  0x6a   : > { %p7670_p1 = scmp.ne.s32.totalorder %s11207_s2, %s7669_s17  ;;  %p7676_p12 = scmp.lt.u32.totalorder %s7669_s17, %s11207_s2 }
  0x6c   : > { %p7672_p3 = pnand %p7670_p1, %p8026_p8 }
  0x6e   : > { %p7673_p11 = pneg %p7672_p3 }
  0x70   : > { %p7678_p13 = pnand %p7676_p12, %p7673_p11 }
  0x72   : > { %7681 = shalt.err (!%p7678_p13)
}
  0x73   : > { %s7682_s25 = scalar_lea.vmem %s302_s29, 1920  ;;  %p7690_p7 = scmp.lt.s32.totalorder %s302_s29, %s302_s29 }
  0x74   : > { %p7683_p0 = scmp.ne.s32.totalorder %s302_s29, %s7682_s25  ;;  %p7691_p9 = scmp.lt.s32.totalorder %s7682_s25, %s7682_s25 }
  0x76   : > { %p7685_p2 = pnand %p7683_p0, %p8026_p8  ;;  %p7692_p4 = por %p7691_p9, %p7690_p7 }
  0x78   : > { %p7686_p5 = pneg %p7685_p2 }
  0x7a   : > { %p7693_p10 = pnand %p7692_p4, %p7686_p5 }
  0x7c   : > { %7696 = shalt.err (!%p7693_p10)
}
  0x7d   : > { %s11080_s22 = smov 128   ;;  %s11082_s27 = smov 8  }
  0x7e   : > { %6793 = dma.hbm_to_vmem [thread:$0]  (!%p8010_p6), %s11207_s2, 1920, %s302_s29, [#allocation6], %s11080_s22, %s11080_s22, %s11082_s27  }
  0x7f   : > { %s7907_s6 = smov [#allocation10]   ;;  %s7908_s30 = smov [#allocation13]  }
  0x80   : > { %s327_s28 = sshll.u32 %s7907_s6, 4  ;;  %s356_s12 = sshll.u32 %s7908_s30, 4  ;;  %s328_s28 = int_to_ptr.vmem [resolvable:$true] %s327_s28  ;;  %s8113_s12 = int_to_ptr.vmem [resolvable:$true] %s356_s12 }
  0x81   : > { %s11208_s4 = sld [smem:[#allocation72_spill]] }
  0x87   : > { %s7697_s18 = scalar_lea.hbm %s11208_s4, 1024 }
  0x88   : > { %p7698_p1 = scmp.ne.s32.totalorder %s11208_s4, %s7697_s18  ;;  %p7704_p12 = scmp.lt.u32.totalorder %s7697_s18, %s11208_s4 }
  0x8a   : > { %p7700_p3 = pnand %p7698_p1, %p8026_p8 }
  0x8c   : > { %p7701_p11 = pneg %p7700_p3 }
  0x8e   : > { %p7706_p13 = pnand %p7704_p12, %p7701_p11 }
  0x90   : > { %7709 = shalt.err (!%p7706_p13)
}
  0x91   : > { %s7710_s24 = scalar_lea.vmem %s328_s28, 1024  ;;  %p7718_p7 = scmp.lt.s32.totalorder %s328_s28, %s328_s28 }
  0x92   : > { %p7711_p0 = scmp.ne.s32.totalorder %s328_s28, %s7710_s24  ;;  %p7719_p9 = scmp.lt.s32.totalorder %s7710_s24, %s7710_s24 }
  0x94   : > { %p7713_p2 = pnand %p7711_p0, %p8026_p8  ;;  %p7720_p4 = por %p7719_p9, %p7718_p7 }
  0x96   : > { %p7714_p5 = pneg %p7713_p2 }
  0x98   : > { %p7721_p10 = pnand %p7720_p4, %p7714_p5 }
  0x9a   : > { %7724 = shalt.err (!%p7721_p10)
}
  0x9b   : > { %s11209_s6 = smov 4   ;;  %s11210_s30 = smov 64  }
  0x9c   : > { %6799 = dma.hbm_to_vmem [thread:$0]  (!%p8010_p6), %s11208_s4, 1024, %s328_s28, [#allocation9], %s11210_s30, %s11210_s30, %s11209_s6  }
  0x9d   : > { %s7725_s25 = scalar_lea.hbm %s11069_s7, 4096 }
  0x9e   : > { %p7726_p1 = scmp.ne.s32.totalorder %s11069_s7, %s7725_s25  ;;  %p7732_p12 = scmp.lt.u32.totalorder %s7725_s25, %s11069_s7 }
  0xa0   : > { %p7728_p3 = pnand %p7726_p1, %p8026_p8 }
  0xa2   : > { %p7729_p11 = pneg %p7728_p3 }
  0xa4   : > { %p7734_p13 = pnand %p7732_p12, %p7729_p11 }
  0xa6   : > { %7737 = shalt.err (!%p7734_p13)
}
  0xa7   : > { %s7738_s28 = scalar_lea.vmem %s8113_s12, 4096  ;;  %p7746_p7 = scmp.lt.s32.totalorder %s8113_s12, %s8113_s12 }
  0xa8   : > { %p7739_p0 = scmp.ne.s32.totalorder %s8113_s12, %s7738_s28  ;;  %p7747_p9 = scmp.lt.s32.totalorder %s7738_s28, %s7738_s28 }
  0xaa   : > { %p7741_p2 = pnand %p7739_p0, %p8026_p8  ;;  %p7748_p4 = por %p7747_p9, %p7746_p7 }
  0xac   : > { %p7742_p5 = pneg %p7741_p2 }
  0xae   : > { %p7749_p10 = pnand %p7748_p4, %p7742_p5 }
  0xb0   : > { %7752 = shalt.err (!%p7749_p10)
}
  0xb1   : > { %6805 = dma.hbm_to_vmem [thread:$0]  (!%p8010_p6), %s11069_s7, 4096, %s8113_s12, [#allocation12], %s11210_s30, %s11210_s30, %s11209_s6  }
  0xb2   : > { %s7909_s21 = smov [#allocation14]   ;;  %s7753_s26 = scalar_lea.hbm %s11071_s9, 1920 }
  0xb3   : > { %s372_s18 = sshll.u32 %s7909_s21, 4  ;;  %p7754_p1 = scmp.ne.s32.totalorder %s11071_s9, %s7753_s26  ;;  %s373_s18 = int_to_ptr.vmem [resolvable:$true] %s372_s18 }
  0xb4   : > { %p7760_p12 = scmp.lt.u32.totalorder %s7753_s26, %s11071_s9 }
  0xb5   : > { %p7756_p3 = pnand %p7754_p1, %p8026_p8 }
  0xb7   : > { %p7757_p11 = pneg %p7756_p3 }
  0xb9   : > { %p7762_p13 = pnand %p7760_p12, %p7757_p11 }
  0xbb   : > { %7765 = shalt.err (!%p7762_p13)
}
  0xbc   : > { %s7766_s12 = scalar_lea.vmem %s373_s18, 1920  ;;  %p7774_p7 = scmp.lt.s32.totalorder %s373_s18, %s373_s18 }
  0xbd   : > { %p7767_p0 = scmp.ne.s32.totalorder %s373_s18, %s7766_s12  ;;  %p7775_p9 = scmp.lt.s32.totalorder %s7766_s12, %s7766_s12 }
  0xbf   : > { %p7769_p2 = pnand %p7767_p0, %p8026_p8  ;;  %p7776_p4 = por %p7775_p9, %p7774_p7 }
  0xc1   : > { %p7770_p5 = pneg %p7769_p2 }
  0xc3   : > { %p7777_p10 = pnand %p7776_p4, %p7770_p5 }
  0xc5   : > { %7780 = shalt.err (!%p7777_p10)
}
  0xc6   : > { %s11211_s6 = smov 8   ;;  %s11212_s30 = smov 128  }
  0xc7   : > { %6808 = dma.hbm_to_vmem [thread:$0]  (!%p8010_p6), %s11071_s9, 1920, %s373_s18, [#allocation15], %s11212_s30, %s11212_s30, %s11211_s6  }
  0xc8   : > { %s5864_s23 = sadd.s32 4294967294, %s7893_s16   ;;  %s8185_s11 = sadd.s32 1, %s7893_s16  }
  0xc9   : > { %s37_s17 = sadd.s32 1, %s7889_s15  ;;  %s34_s21 = ssub.s32 %s7893_s16, %s8185_s11 }
  0xca   : > { %p44_p8 = scmp.ne.s32.totalorder %s7889_s15, %s7885_s14  ;;  %p35_p1 = scmp.eq.s32.totalorder %s34_s21, 0 }
  0xcb   : > { %p45_p3 = scmp.eq.s32.totalorder %s7893_s16, 0  ;;  %p50_p11 = scmp.ne.s32.totalorder %s7885_s14, %s7881_s13 }
  0xcc   : > { %p263_p12 = scmp.eq.s32.totalorder %s7994_s19, 1  ;;  %p11213_p0 = scmp.eq.s32.totalorder %s7994_s19, 0 }
  0xcd   : > { %s8197_s10 = scalar_select %p35_p1, %s7889_s15, %s37_s17  }
  0xce   : > { %p46_p13 = por %p45_p3, %p44_p8  ;;  %p8201_p2 = por %p11213_p0, %p50_p11 }
  0xcf   : > { %p8205_p6 = por %p263_p12, %p44_p8  ;;  %p269_p5 = scmp.eq.s32.totalorder %s5864_s23, 1 }
  0xd0   : > { %p6824_p7 = scmp.lt.s32.totalorder %s7893_s16, 2  ;;  %s386_s26 = sand.u32 1, %s7889_s15  }
  0xd1   : > { %s11215_s18 = scalar_select %p8205_p6, 1, 0 }
  0xd2   : > { %p8211_p9 = por %p269_p5, %p50_p11  ;;  %s6752_s24 = smul.u32 96, %s386_s26 }
  0xd3   : > { %p8215_p4 = pnand %p6824_p7, %p46_p13  ;;  %s6091_s12 = smul.u32 1536, %s7893_s16 }
  0xd4   : > { %s11216_s29 = scalar_select %p8211_p9, 1, 0 }
  0xd5   : > { %s8223_s17 = scalar_lea.hbm %s11062_s0, %s6091_s12  ;;  %s390_s23 = scalar_lea.vmem [#allocation2], %s6752_s24 }
  0xd6   : > { %s398_s21 = sshll.u32 %s390_s23, 4  ;;  %s8227_s1 = scalar_lea.sflag [#allocation3], %s386_s26  ;;  %s8225_s21 = int_to_ptr.vmem [resolvable:$true] %s398_s21 }
  0xd7   : > { %s7781_s2 = scalar_lea.hbm %s8223_s17, 1536  ;;  %p7783_p8 = pneg %p8215_p4 }
  0xd8   : > { %p7782_p10 = scmp.ne.s32.totalorder %s8223_s17, %s7781_s2  ;;  %s7786_s22 = scalar_lea.hbm %s11062_s0, 3072 }
  0xd9   : > { %p7787_p11 = scmp.lt.u32.totalorder %s8223_s17, %s11062_s0  ;;  %p7788_p12 = scmp.lt.u32.totalorder %s7786_s22, %s7781_s2 }
  0xda   : > { %p7784_p1 = pnand %p7783_p8, %p7782_p10  ;;  %p7790_p0 = scmp.lt.u32.totalorder %s7781_s2, %s8223_s17 }
  0xdb   : > { %p7789_p13 = por %p7788_p12, %p7787_p11 }
  0xdc   : > { %p7785_p3 = pneg %p7784_p1 }
  0xdd   : > { %p7791_p5 = por %p7790_p0, %p7789_p13 }
  0xdf   : > { %p7792_p7 = pnand %p7791_p5, %p7785_p3 }
  0xe1   : > { %7795 = shalt.err (!%p7792_p7)
}
  0xe2   : > { %s7796_s26 = scalar_lea.vmem %s8225_s21, 1536  ;;  %s7910_s24 = smov [#allocation2]  }
  0xe3   : > { %p7797_p10 = scmp.ne.s32.totalorder %s8225_s21, %s7796_s26  ;;  %s7801_s23 = sshll.u32 %s7910_s24, 4  ;;  %s7802_s23 = int_to_ptr.vmem [resolvable:$false] %s7801_s23 }
  0xe4   : > { %s7803_s3 = scalar_lea.vmem %s7802_s23, 3072  ;;  %p7804_p6 = scmp.lt.s32.totalorder %s8225_s21, %s7802_s23 }
  0xe5   : > { %p7799_p1 = pnand %p7797_p10, %p7783_p8  ;;  %p7805_p11 = scmp.lt.s32.totalorder %s7803_s3, %s7796_s26 }
  0xe7   : > { %p7800_p9 = pneg %p7799_p1  ;;  %p7806_p12 = por %p7805_p11, %p7804_p6 }
  0xe9   : > { %p7807_p13 = pnand %p7806_p12, %p7800_p9 }
  0xeb   : > { %7810 = shalt.err (!%p7807_p13)
}
  0xec   : > { %6812 = dma.hbm_to_vmem [thread:$0]  (!%p8215_p4), %s8223_s17, 1536, %s8225_s21, %s8227_s1, %s11212_s30, %s11212_s30, %s11211_s6  }
  0xed   : > { %p11218_p8 = scmp.ne.s32.totalorder %s11202_s20, 0 }
  0xef   : > { %410 = sbr.rel (%p11218_p8) target bundleno = 4817 (0x12d1), region = 60 }
  0xf6   : > { %s8261_s2 = sand.u32 1, %s7885_s14  }
  0xf7   : > { %s6753_s4 = smul.u32 96, %s8261_s2  ;;  %s413_s12 = scalar_lea.sflag [#allocation3], %s8261_s2 }
  0xf9   : > { %s8265_s27 = scalar_lea.vmem [#allocation2], %s6753_s4 }
  0xfa   : > { %7856 = dma.done.wait (%p8201_p2), %s413_s12, 1536  }
  0xfb   : > { %7858 = vsyncadd (%p8201_p2), %s413_s12, 4294965760  ;;  %p11219_p6 = scmp.eq.s32.totalorder %s7994_s19, 0 }
  0xfd   : > { %7860 = dma.done.wait (%p11219_p6), [#allocation6], 3456   ;;  %p11220_p9 = pmov %p11219_p6 }
  0xfe   : > { %p11221_p4 = pmov %p11219_p6 }
  0xff   : > { %7862 = vsyncadd (%p11220_p9), [#allocation6], 4294963840 }
 0x100   : > { %7864 = dma.done.wait (%p11221_p4), [#allocation9], 4096   ;;  %p11222_p3 = pmov %p11221_p4 }
 0x102   : > { %7866 = vsyncadd (%p11222_p3), [#allocation9], 4294963200  ;;  %p11223_p0 = pmov %p11222_p3 }
 0x104   : > { %7868 = dma.done.wait (%p11223_p0), [#allocation12], 8192   ;;  %p11224_p5 = pmov %p11223_p0 }
 0x105   : > { %p11225_p2 = pmov %p11223_p0 }
 0x106   : > { %7870 = vsyncadd (%p11224_p5), [#allocation12], 4294959104 }
 0x107   : > { %7872 = dma.done.wait (%p11225_p2), [#allocation15], 1920   ;;  %p11226_p7 = pmov %p11223_p0 }
 0x108   : > { %v11085_v0 = vmov 0   ;;  %v6991_v1 = vld [vmem:[#allocation5] sm:$0xff]   ;;  %v6992_v2 = vld [vmem:[#allocation5 + $0x8] sm:$0xff]   ;;  %v6993_v3 = vld [vmem:[#allocation5 + $0x10] sm:$0xff]   ;;  %vm672_vm0 = vcmask 523264   ;;  %vm1447_vm1 = vcmask 261120  }
 0x109   : > { %7874 = vsyncadd (%p11226_p7), [#allocation15], 4294965376  ;;  %691 = vmatprep.subr.bf16.mxu0 %v11085_v0  ;;  %1176 = vmatprep.mubr.bf16.mxu1 %v11085_v0  ;;  %v6994_v4 = vld [vmem:[#allocation5 + $0x18] sm:$0xff]   ;;  %v7005_v5 = vld [vmem:[%s8265_s27 + $0x4] ss:$8 sps:$4 sm:$0xff]   ;;  %s7912_s22 = smov 96  }
 0x10a   : > { %692 = vmatpush1.bf16.msra.mxu0 %v6991_v1  ;;  %v6995_v6 = vld [vmem:[#allocation5 + $0x20] sm:$0xff]   ;;  %5908 = vmatprep.mubr.msk.bf16.mxu0 %vm672_vm0, %v7005_v5  ;;  %v6996_v7 = vld [vmem:[#allocation5 + $0x28] sm:$0xff]   ;;  %v6997_v8 = vld [vmem:[#allocation5 + $0x30] sm:$0xff]   ;;  %vm1835_vm2 = vcmask 1043456   ;;  %s7913_s23 = smov 64   ;;  %vm1622_vm3 = vcmask 982016  }
 0x10b   : > { %693 = vmatprep.subr.bf16.mxu0 %v11085_v0  ;;  %v8296_v9 = vld [vmem:[#allocation7] sm:$0xff]  ;;  %v8298_v10 = vld [vmem:[#allocation7 + $0x10] sm:$0xff]  ;;  %v8301_v11 = vld [vmem:[#allocation7 + $0x8] sm:$0xff]  ;;  %s7914_s3 = smov 32   ;;  %vm3789_vm4 = vcmask 785408   ;;  %s11375_s28 = sld [smem:[#allocation73_spill]] }
 0x10c   : > { %772 = vadd.xlane.f32.xlu0 %v8296_v9  ;;  %776 = vadd.xlane.f32.xlu1 %v8298_v10  ;;  %v6998_v12 = vld [vmem:[#allocation5 + $0x38] sm:$0xff]   ;;  %v6999_v13 = vld [vmem:[#allocation5 + $0x40] sm:$0xff]   ;;  %v7000_v14 = vld [vmem:[#allocation5 + $0x48] sm:$0xff]   ;;  %s6754_s24 = smul.u32 24, %s8261_s2  ;;  %s11460_s6 = sld [smem:[#allocation74_spill]] }
 0x10d   : > { %v7001_v15 = vld [vmem:[#allocation5 + $0x50] sm:$0xff]   ;;  %v7002_v16 = vld [vmem:[#allocation5 + $0x58] sm:$0xff]   ;;  %v7003_v17 = vld [vmem:[%s8265_s27] ss:$8 sps:$4 sm:$0xff]   ;;  %s6090_s4 = smul.u32 384, %s7994_s19  ;;  %s5711_s25 = scalar_lea.sflag [#allocation4], %s8261_s2 }
 0x10e   : > { %694 = vmatpush1.bf16.msra.mxu0 %v6992_v2  ;;  %v7006_v18 = vld [vmem:[%s8265_s27 + $0x14] ss:$8 sps:$4 sm:$0xff]   ;;  %v7008_v19 = vld [vmem:[%s8265_s27 + $0x10] ss:$8 sps:$4 sm:$0xff]   ;;  %v7009_v20 = vld [vmem:[%s8265_s27 + $0x24] ss:$8 sps:$4 sm:$0xff]  }
 0x10f   : > { %695 = vmatprep.subr.bf16.mxu0 %v11085_v0  ;;  %v7011_v21 = vld [vmem:[%s8265_s27 + $0x20] ss:$8 sps:$4 sm:$0xff]   ;;  %v7012_v22 = vld [vmem:[%s8265_s27 + $0x34] ss:$8 sps:$4 sm:$0xff]   ;;  %v7014_v23 = vld [vmem:[%s8265_s27 + $0x30] ss:$8 sps:$4 sm:$0xff]  }
 0x110   : > { %774 = vadd.xlane.f32.xlu0 %v8301_v11  ;;  %v7015_v24 = vld [vmem:[%s8265_s27 + $0x44] ss:$8 sps:$4 sm:$0xff]   ;;  %v7017_v25 = vld [vmem:[%s8265_s27 + $0x40] ss:$8 sps:$4 sm:$0xff]   ;;  %v7018_v26 = vld [vmem:[%s8265_s27 + $0x54] ss:$8 sps:$4 sm:$0xff]  }
 0x111   : > { %v7020_v27 = vld [vmem:[%s8265_s27 + $0x50] ss:$8 sps:$4 sm:$0xff]   ;;  %v535_v30 = vld [vmem:[#allocation7 + $0x20] sm:$0xff]  ;;  %v536_v36 = vld [vmem:[#allocation7 + $0x28] sm:$0xff]  ;;  %s480_s12 = scalar_lea.vmem [#allocation16], %s6754_s24  ;;  %p11461_p1 = scmp.ne.s32.totalorder %s11215_s18, 0 }
 0x112   : > { %696 = vmatpush1.bf16.msra.mxu0 %v6993_v3  ;;  %v534_v28 = vld [vmem:[#allocation7 + $0x18] sm:$0xff]  ;;  %v537_v38 = vld [vmem:[#allocation7 + $0x30] sm:$0xff]  ;;  %v539_v46 = vld [vmem:[#allocation7 + $0x40] sm:$0xff]  ;;  %s5724_s27 = sshll.u32 %s480_s12, 4  ;;  %s11018_s30 = scalar_lea.hbm %s11460_s6, %s6090_s4  ;;  %s11013_s27 = int_to_ptr.vmem [resolvable:$true] %s5724_s27 }
 0x113   : > { %697 = vmatprep.subr.bf16.mxu0 %v11085_v0  ;;  %v538_v44 = vld [vmem:[#allocation7 + $0x38] sm:$0xff]  ;;  %v540_v52 = vld [vmem:[#allocation7 + $0x48] sm:$0xff]  ;;  %v541_v54 = vld [vmem:[#allocation7 + $0x50] sm:$0xff]  ;;  %s7915_s19 = smov [#allocation16]  }
 0x114   : > { %v542_v61 = vld [vmem:[#allocation7 + $0x58] sm:$0xff]  ;;  %v543_v63 = vld [vmem:[#allocation7 + $0x60] sm:$0xff]  ;;  %s7815_s17 = sshll.u32 %s7915_s19, 4  ;;  %s7816_s17 = int_to_ptr.vmem [resolvable:$false] %s7815_s17 }
 0x115   : > { %s7817_s21 = scalar_lea.vmem %s7816_s17, 768  ;;  %p7818_p13 = scmp.lt.s32.totalorder %s11013_s27, %s7816_s17 }
 0x116   : > { %698 = vmatpush1.bf16.msra.mxu0 %v6994_v4 }
 0x117   : > { %699 = vmatprep.subr.bf16.mxu0 %v11085_v0 }
 0x11a   : > { %700 = vmatpush1.bf16.msra.mxu0 %v6995_v6 }
 0x11b   : > { %701 = vmatprep.subr.bf16.mxu0 %v11085_v0 }
 0x11e   : > { %702 = vmatpush1.bf16.msra.mxu0 %v6996_v7 }
 0x11f   : > { %703 = vmatprep.subr.bf16.mxu0 %v11085_v0 }
 0x122   : > { %704 = vmatpush1.bf16.msra.mxu0 %v6997_v8 }
 0x123   : > { %705 = vmatprep.subr.bf16.mxu0 %v11085_v0 }
 0x126   : > { %706 = vmatpush1.bf16.msra.mxu0 %v6998_v12 }
 0x127   : > { %707 = vmatprep.subr.bf16.mxu0 %v11085_v0 }
 0x12a   : > { %708 = vmatpush1.bf16.msra.mxu0 %v6999_v13  ;;  %v544_v13 = vld [vmem:[#allocation7 + $0x68] sm:$0xff] }
 0x12b   : > { %709 = vmatprep.subr.bf16.mxu0 %v11085_v0 }
 0x12e   : > { %710 = vmatpush1.bf16.msra.mxu0 %v7000_v14 }
 0x12f   : > { %711 = vmatprep.subr.bf16.mxu0 %v11085_v0 }
 0x132   : > { %712 = vmatpush1.bf16.msra.mxu0 %v7001_v15 }
 0x133   : > { %713 = vmatprep.subr.bf16.mxu0 %v11085_v0 }
 0x136   : > { %714 = vmatpush1.bf16.msra.mxu0 %v7002_v16 }
 0x139   : > { %724 = vmatmul.mubr.bf16.vlgmr.msra.gmra.mrb[0].mxu0 %v7003_v17  ;;  %v545_v17 = vld [vmem:[#allocation7 + $0x70] sm:$0xff] }
 0x13a   : > { %5909 = vmatprep.mubr.msk.bf16.mxu0 %vm672_vm0, %v7006_v18 }
 0x141   : > { %732 = vmatmul.mubr.bf16.gmra.mrb[4].mxu0 %v7008_v19 }
 0x142   : > { %5910 = vmatprep.mubr.msk.bf16.mxu0 %vm672_vm0, %v7009_v20 }
 0x149   : > { %740 = vmatmul.mubr.bf16.gmra.mrb[8].mxu0 %v7011_v21 }
 0x14a   : > { %5911 = vmatprep.mubr.msk.bf16.mxu0 %vm672_vm0, %v7012_v22 }
 0x151   : > { %748 = vmatmul.mubr.bf16.gmra.mrb[12].mxu0 %v7014_v23 }
 0x152   : > { %5912 = vmatprep.mubr.msk.bf16.mxu0 %vm672_vm0, %v7015_v24 }
 0x159   : > { %756 = vmatmul.mubr.bf16.gmra.mrb[16].mxu0 %v7017_v25 }
 0x15a   : > { %5913 = vmatprep.mubr.msk.bf16.mxu0 %vm672_vm0, %v7018_v26  ;;  %v7021_v26 = vld [vmem:[#allocation8 + $0x4] ss:$12 sps:$4 sm:$0xff]  }
 0x15b   : > { %1144 = vmatprep.subr.bf16.mxu1 %v7021_v26 }
 0x161   : > { %764 = vmatmul.mubr.bf16.gmra.mrb[20].mxu0 %v7020_v27  ;;  %v7023_v27 = vld [vmem:[#allocation8] ss:$12 sps:$4 sm:$0xff]  }
 0x162   : > { %1145 = vmatpush1.bf16.msra.mxu1 %v7023_v27 }
 0x199   : > { %v773_v60 = vpop.xlane.xlu0 %772  ;;  %v777_v8 = vpop.xlane.xlu1 %776 }
 0x19a   : > { %v803_v7 = vmul.f32 0.0078125, %v773_v60  ;;  %v805_v14 = vmul.f32 0.0078125, %v777_v8 }
 0x19c   : > { %v8358_v15 = vsub.f32 %v8296_v9, %v803_v7  ;;  %v8371_v9 = vsub.f32 %v8298_v10, %v805_v14  ;;  %v7027_v10 = vld [vmem:[#allocation8 + $0x34] ss:$12 sps:$4 sm:$0xff]  }
 0x19d   : > { %v775_v4 = vpop.xlane.xlu0 %774 }
 0x19e   : > { %v804_v12 = vmul.f32 0.0078125, %v775_v4  ;;  %v833_v24 = vmul.f32 %v8358_v15, %v8358_v15 }
 0x1a0   : > { %v8363_v20 = vsub.f32 %v8301_v11, %v804_v12  ;;  %v835_v11 = vmul.f32 %v8371_v9, %v8371_v9 }
 0x1a2   : > { %v834_v25 = vmul.f32 %v8363_v20, %v8363_v20 }
 0x20c   : > { %v725_v29 = vpop.f32.mrb[0].mxu0 }
 0x20d   : > { %v8327_v31 = vadd.f32 %v725_v29, %v534_v28  ;;  %v727_v32 = vpop.f32.mrb[1].mxu0  ;;  %v7024_v28 = vld [vmem:[#allocation8 + $0x1c] ss:$12 sps:$4 sm:$0xff]   ;;  %v7026_v29 = vld [vmem:[#allocation8 + $0x18] ss:$12 sps:$4 sm:$0xff]  }
 0x20e   : > { %v728_v33 = vpop.f32.mrb[2].mxu0  ;;  %1146 = vmatprep.subr.bf16.mxu1 %v7024_v28  ;;  %v7030_v32 = vld [vmem:[#allocation8 + $0x4c] ss:$12 sps:$4 sm:$0xff]  }
 0x20f   : > { %11227 = vst [vmem:[#allocation23_spill] sm:$0xff] %v8327_v31  ;;  %v8329_v34 = vadd.f32 %v728_v33, %v535_v30  ;;  %v730_v35 = vpop.f32.mrb[3].mxu0  ;;  %778 = vadd.xlane.f32.xlu1 %v8327_v31  ;;  %1147 = vmatpush1.bf16.msra.mxu1 %v7026_v29  ;;  %v7029_v30 = vld [vmem:[#allocation8 + $0x30] ss:$12 sps:$4 sm:$0xff]   ;;  %v7032_v33 = vld [vmem:[#allocation8 + $0x48] ss:$12 sps:$4 sm:$0xff]  }
 0x210   : > { %1148 = vmatprep.subr.bf16.mxu1 %v7027_v10  ;;  %v7033_v35 = vld [vmem:[#allocation8 + $0x64] ss:$12 sps:$4 sm:$0xff]   ;;  %v7050_v10 = vld [vmem:[#allocation8 + $0x80] ss:$12 sps:$4 sm:$0xff]  }
 0x211   : > { %11228 = vst [vmem:[#allocation24_spill] sm:$0xff] %v8329_v34  ;;  %780 = vadd.xlane.f32.xlu0 %v8329_v34 }
 0x213   : > { %1149 = vmatpush1.bf16.msra.mxu1 %v7029_v30 }
 0x214   : > { %v733_v37 = vpop.f32.mrb[4].mxu0  ;;  %1150 = vmatprep.subr.bf16.mxu1 %v7030_v32 }
 0x215   : > { %v8333_v39 = vadd.f32 %v733_v37, %v536_v36  ;;  %v735_v40 = vpop.f32.mrb[5].mxu0  ;;  %v7035_v36 = vld [vmem:[#allocation8 + $0x60] ss:$12 sps:$4 sm:$0xff]   ;;  %v7036_v37 = vld [vmem:[#allocation8 + $0x7c] ss:$12 sps:$4 sm:$0xff]  }
 0x216   : > { %v736_v41 = vpop.f32.mrb[6].mxu0  ;;  %v7039_v40 = vld [vmem:[#allocation8 + $0x94] ss:$12 sps:$4 sm:$0xff]  }
 0x217   : > { %11229 = vst [vmem:[#allocation25_spill] sm:$0xff] %v8333_v39  ;;  %v8335_v42 = vadd.f32 %v736_v41, %v537_v38  ;;  %v738_v43 = vpop.f32.mrb[7].mxu0  ;;  %782 = vadd.xlane.f32.xlu1 %v8333_v39  ;;  %1151 = vmatpush1.bf16.msra.mxu1 %v7032_v33  ;;  %v7038_v38 = vld [vmem:[#allocation8 + $0x78] ss:$12 sps:$4 sm:$0xff]   ;;  %v7041_v41 = vld [vmem:[#allocation8 + $0x90] ss:$12 sps:$4 sm:$0xff]  }
 0x218   : > { %1152 = vmatprep.subr.bf16.mxu1 %v7033_v35  ;;  %v7042_v43 = vld [vmem:[#allocation8 + $0xac] ss:$12 sps:$4 sm:$0xff]  }
 0x219   : > { %11230 = vst [vmem:[#allocation26_spill] sm:$0xff] %v8335_v42  ;;  %784 = vadd.xlane.f32.xlu0 %v8335_v42 }
 0x21b   : > { %1153 = vmatpush1.bf16.msra.mxu1 %v7035_v36  ;;  %v7051_v36 = vld [vmem:[#allocation8 + $0x98] ss:$12 sps:$4 sm:$0xff]  }
 0x21c   : > { %v741_v45 = vpop.f32.mrb[8].mxu0  ;;  %1154 = vmatprep.subr.bf16.mxu1 %v7036_v37 }
 0x21d   : > { %v8339_v47 = vadd.f32 %v741_v45, %v538_v44  ;;  %v743_v48 = vpop.f32.mrb[9].mxu0  ;;  %v7044_v44 = vld [vmem:[#allocation8 + $0xa8] ss:$12 sps:$4 sm:$0xff]  }
 0x21e   : > { %v744_v49 = vpop.f32.mrb[10].mxu0  ;;  %v7045_v45 = vld [vmem:[#allocation8 + $0x8] ss:$12 sps:$4 sm:$0xff]   ;;  %v7047_v48 = vld [vmem:[#allocation8 + $0x38] ss:$12 sps:$4 sm:$0xff]  }
 0x21f   : > { %11231 = vst [vmem:[#allocation27_spill] sm:$0xff] %v8339_v47  ;;  %v8341_v50 = vadd.f32 %v744_v49, %v539_v46  ;;  %v746_v51 = vpop.f32.mrb[11].mxu0  ;;  %786 = vadd.xlane.f32.xlu1 %v8339_v47  ;;  %1155 = vmatpush1.bf16.msra.mxu1 %v7038_v38  ;;  %v7046_v46 = vld [vmem:[#allocation8 + $0x20] ss:$12 sps:$4 sm:$0xff]  }
 0x220   : > { %1156 = vmatprep.subr.bf16.mxu1 %v7039_v40  ;;  %6380 = vmatprep.subr.bf16.mxu0 %v7045_v45 }
 0x221   : > { %11232 = vst [vmem:[#allocation28_spill] sm:$0xff] %v8341_v50  ;;  %788 = vadd.xlane.f32.xlu0 %v8341_v50  ;;  %6381 = vmatpush3.bf16.msra.mxu0 %v7045_v45 }
 0x222   : > { %6382 = vmatprep.subr.bf16.mxu0 %v7046_v46 }
 0x223   : > { %1157 = vmatpush1.bf16.msra.mxu1 %v7041_v41 }
 0x224   : > { %v749_v53 = vpop.f32.mrb[12].mxu0  ;;  %1158 = vmatprep.subr.bf16.mxu1 %v7042_v43  ;;  %v7052_v43 = vld [vmem:[#allocation8 + $0xb0] ss:$12 sps:$4 sm:$0xff]  }
 0x225   : > { %v8345_v55 = vadd.f32 %v749_v53, %v540_v52  ;;  %v751_v56 = vpop.f32.mrb[13].mxu0  ;;  %6383 = vmatpush3.bf16.msra.mxu0 %v7046_v46 }
 0x226   : > { %v752_v57 = vpop.f32.mrb[14].mxu0  ;;  %6384 = vmatprep.subr.bf16.mxu0 %v7047_v48 }
 0x227   : > { %11233 = vst [vmem:[#allocation29_spill] sm:$0xff] %v8345_v55  ;;  %v8347_v58 = vadd.f32 %v752_v57, %v541_v54  ;;  %v754_v59 = vpop.f32.mrb[15].mxu0  ;;  %790 = vadd.xlane.f32.xlu1 %v8345_v55  ;;  %1159 = vmatpush1.bf16.msra.mxu1 %v7044_v44 }
 0x229   : > { %11234 = vst [vmem:[#allocation30_spill] sm:$0xff] %v8347_v58  ;;  %792 = vadd.xlane.f32.xlu0 %v8347_v58  ;;  %6385 = vmatpush3.bf16.msra.mxu0 %v7047_v48 }
 0x22c   : > { %v757_v62 = vpop.f32.mrb[16].mxu0 }
 0x22d   : > { %v8351_v1 = vadd.f32 %v757_v62, %v542_v61  ;;  %v759_v2 = vpop.f32.mrb[17].mxu0 }
 0x22e   : > { %v760_v3 = vpop.f32.mrb[18].mxu0 }
 0x22f   : > { %11235 = vst [vmem:[#allocation31_spill] sm:$0xff] %v8351_v1  ;;  %v8353_v5 = vadd.f32 %v760_v3, %v543_v63  ;;  %v762_v6 = vpop.f32.mrb[19].mxu0  ;;  %794 = vadd.xlane.f32.xlu1 %v8351_v1 }
 0x231   : > { %11236 = vst [vmem:[#allocation32_spill] sm:$0xff] %v8353_v5  ;;  %796 = vadd.xlane.f32.xlu0 %v8353_v5 }
 0x234   : > { %v765_v16 = vpop.f32.mrb[20].mxu0 }
 0x235   : > { %v8360_v18 = vadd.f32 %v765_v16, %v544_v13  ;;  %v767_v19 = vpop.f32.mrb[21].mxu0 }
 0x236   : > { %v768_v21 = vpop.f32.mrb[22].mxu0  ;;  %v7048_v19 = vld [vmem:[#allocation8 + $0x50] ss:$12 sps:$4 sm:$0xff]  }
 0x237   : > { %11237 = vst [vmem:[#allocation33_spill] sm:$0xff] %v8360_v18  ;;  %v8365_v22 = vadd.f32 %v768_v21, %v545_v17  ;;  %v770_v23 = vpop.f32.mrb[23].mxu0  ;;  %798 = vadd.xlane.f32.xlu1 %v8360_v18  ;;  %6386 = vmatprep.subr.bf16.mxu0 %v7048_v19 }
 0x238   : > { %6387 = vmatpush3.bf16.msra.mxu0 %v7048_v19  ;;  %v8449_v19 = vld [vmem:[%s11070_s8 + $0x1] ss:$0 sm:$0xff] }
 0x239   : > { %11238 = vst [vmem:[#allocation34_spill] sm:$0xff] %v8365_v22  ;;  %800 = vadd.xlane.f32.xlu0 %v8365_v22 }
 0x23b   : > { %848 = vadd.xlane.f32.xlu1 %v833_v24 }
 0x23d   : > { %850 = vadd.xlane.f32.xlu0 %v834_v25 }
 0x23f   : > { %852 = vadd.xlane.f32.xlu1 %v835_v11  ;;  %v7049_v11 = vld [vmem:[#allocation8 + $0x68] ss:$12 sps:$4 sm:$0xff]  }
 0x240   : > { %6388 = vmatprep.subr.bf16.mxu0 %v7049_v11 }
 0x241   : > { %6389 = vmatpush3.bf16.msra.mxu0 %v7049_v11 }
 0x242   : > { %6390 = vmatprep.subr.bf16.mxu0 %v7050_v10 }
 0x245   : > { %6391 = vmatpush3.bf16.msra.mxu0 %v7050_v10 }
 0x246   : > { %6392 = vmatprep.subr.bf16.mxu0 %v7051_v36 }
 0x249   : > { %6393 = vmatpush3.bf16.msra.mxu0 %v7051_v36 }
 0x24a   : > { %6394 = vmatprep.subr.bf16.mxu0 %v7052_v43 }
 0x24d   : > { %6395 = vmatpush3.bf16.msra.mxu0 %v7052_v43 }
 0x29c   : > { %v779_v49 = vpop.xlane.xlu1 %778 }
 0x29d   : > { %v806_v51 = vmul.f32 0.0078125, %v779_v49 }
 0x29e   : > { %v781_v52 = vpop.xlane.xlu0 %780 }
 0x29f   : > { %v807_v53 = vmul.f32 0.0078125, %v781_v52  ;;  %v8379_v54 = vsub.f32 %v8327_v31, %v806_v51 }
 0x2a1   : > { %v836_v56 = vmul.f32 %v8379_v54, %v8379_v54  ;;  %v8384_v57 = vsub.f32 %v8329_v34, %v807_v53 }
 0x2a3   : > { %854 = vadd.xlane.f32.xlu0 %v836_v56  ;;  %v837_v59 = vmul.f32 %v8384_v57, %v8384_v57 }
 0x2a4   : > { %v783_v60 = vpop.xlane.xlu1 %782 }
 0x2a5   : > { %v808_v61 = vmul.f32 0.0078125, %v783_v60  ;;  %856 = vadd.xlane.f32.xlu1 %v837_v59 }
 0x2a6   : > { %v785_v62 = vpop.xlane.xlu0 %784 }
 0x2a7   : > { %v809_v63 = vmul.f32 0.0078125, %v785_v62  ;;  %v8389_v2 = vsub.f32 %v8333_v39, %v808_v61 }
 0x2a9   : > { %v838_v3 = vmul.f32 %v8389_v2, %v8389_v2  ;;  %v8394_v4 = vsub.f32 %v8335_v42, %v809_v63 }
 0x2ab   : > { %858 = vadd.xlane.f32.xlu0 %v838_v3  ;;  %v839_v6 = vmul.f32 %v8394_v4, %v8394_v4 }
 0x2ac   : > { %v787_v7 = vpop.xlane.xlu1 %786 }
 0x2ad   : > { %v810_v8 = vmul.f32 0.0078125, %v787_v7  ;;  %860 = vadd.xlane.f32.xlu1 %v839_v6  ;;  %v8441_v7 = vld [vmem:[%s11070_s8] ss:$0 sm:$0xff] }
 0x2ae   : > { %v789_v12 = vpop.xlane.xlu0 %788 }
 0x2af   : > { %v811_v13 = vmul.f32 0.0078125, %v789_v12  ;;  %v8399_v14 = vsub.f32 %v8339_v47, %v810_v8 }
 0x2b1   : > { %v840_v16 = vmul.f32 %v8399_v14, %v8399_v14  ;;  %v8404_v17 = vsub.f32 %v8341_v50, %v811_v13 }
 0x2b3   : > { %862 = vadd.xlane.f32.xlu0 %v840_v16  ;;  %v841_v21 = vmul.f32 %v8404_v17, %v8404_v17 }
 0x2b4   : > { %v791_v23 = vpop.xlane.xlu1 %790 }
 0x2b5   : > { %v812_v24 = vmul.f32 0.0078125, %v791_v23  ;;  %864 = vadd.xlane.f32.xlu1 %v841_v21 }
 0x2b6   : > { %v793_v25 = vpop.xlane.xlu0 %792 }
 0x2b7   : > { %v813_v26 = vmul.f32 0.0078125, %v793_v25  ;;  %v8409_v27 = vsub.f32 %v8345_v55, %v812_v24 }
 0x2b9   : > { %v842_v28 = vmul.f32 %v8409_v27, %v8409_v27  ;;  %v8414_v29 = vsub.f32 %v8347_v58, %v813_v26 }
 0x2bb   : > { %866 = vadd.xlane.f32.xlu0 %v842_v28  ;;  %v843_v30 = vmul.f32 %v8414_v29, %v8414_v29 }
 0x2bc   : > { %v795_v32 = vpop.xlane.xlu1 %794 }
 0x2bd   : > { %v814_v33 = vmul.f32 0.0078125, %v795_v32  ;;  %868 = vadd.xlane.f32.xlu1 %v843_v30 }
 0x2be   : > { %v797_v35 = vpop.xlane.xlu0 %796 }
 0x2bf   : > { %v815_v37 = vmul.f32 0.0078125, %v797_v35  ;;  %v8419_v38 = vsub.f32 %v8351_v1, %v814_v33 }
 0x2c1   : > { %v844_v40 = vmul.f32 %v8419_v38, %v8419_v38  ;;  %v8424_v41 = vsub.f32 %v8353_v5, %v815_v37 }
 0x2c3   : > { %870 = vadd.xlane.f32.xlu0 %v844_v40  ;;  %v845_v44 = vmul.f32 %v8424_v41, %v8424_v41 }
 0x2c4   : > { %v799_v45 = vpop.xlane.xlu1 %798 }
 0x2c5   : > { %v816_v46 = vmul.f32 0.0078125, %v799_v45  ;;  %872 = vadd.xlane.f32.xlu1 %v845_v44 }
 0x2c6   : > { %v801_v48 = vpop.xlane.xlu0 %800 }
 0x2c7   : > { %v817_v49 = vmul.f32 0.0078125, %v801_v48  ;;  %v8429_v51 = vsub.f32 %v8360_v18, %v816_v46 }
 0x2c8   : > { %v849_v52 = vpop.xlane.xlu1 %848 }
 0x2c9   : > { %v878_v53 = vmul.f32 0.0078125, %v849_v52  ;;  %v846_v56 = vmul.f32 %v8429_v51, %v8429_v51  ;;  %v8434_v59 = vsub.f32 %v8365_v22, %v817_v49 }
 0x2ca   : > { %v851_v60 = vpop.xlane.xlu0 %850 }
 0x2cb   : > { %v893_v61 = vadd.f32 1e-06, %v878_v53  ;;  %v879_v62 = vmul.f32 0.0078125, %v851_v60  ;;  %874 = vadd.xlane.f32.xlu0 %v846_v56  ;;  %v847_v63 = vmul.f32 %v8434_v59, %v8434_v59 }
 0x2cd   : > { %7141 = vrsqrt.f32 %v893_v61  ;;  %v894_v3 = vadd.f32 1e-06, %v879_v62  ;;  %876 = vadd.xlane.f32.xlu1 %v847_v63 }
 0x2cf   : > { %7143 = vrsqrt.f32 %v894_v3 }
 0x2d7   : > { %v7142_v6 = vpop.eup %7141 }
 0x2d8   : > { %v923_v8 = vmul.f32 %v7142_v6, %v8358_v15  ;;  %v853_v15 = vpop.xlane.xlu1 %852 }
 0x2d9   : > { %v7144_v12 = vpop.eup %7143 }
 0x2da   : > { %v924_v13 = vmul.f32 %v7144_v12, %v8363_v20  ;;  %v942_v16 = vmul.f32 %v8441_v7, %v923_v8  ;;  %v880_v20 = vmul.f32 0.0078125, %v853_v15 }
 0x2dc   : > { %v943_v21 = vmul.f32 %v8441_v7, %v924_v13  ;;  %v961_v23 = vadd.f32 %v8449_v19, %v942_v16  ;;  %v895_v11 = vadd.f32 1e-06, %v880_v20 }
 0x2de   : > { %v962_v24 = vadd.f32 %v8449_v19, %v943_v21  ;;  %7145 = vrsqrt.f32 %v895_v11 }
 0x2e0   : > { %v976_v25 = vpack.c.bf16 %v962_v24, %v961_v23 }
 0x2e2   : > { %1177 = vmatmul.mubr.bf16.vlgmr.msra.gmra.mrb[0].mxu1 %v976_v25  ;;  %6396 = vmatprep.mubr.bf16.mxu0 %v976_v25 }
 0x2e3   : > { %1186 = vmatprep.mubr.bf16.mxu1 %v11085_v0 }
 0x2e8   : > { %v7146_v36 = vpop.eup %7145 }
 0x2e9   : > { %v925_v45 = vmul.f32 %v7146_v36, %v8371_v9 }
 0x2eb   : > { %v944_v53 = vmul.f32 %v8441_v7, %v925_v45 }
 0x2ed   : > { %v963_v6 = vadd.f32 %v8449_v19, %v944_v53 }
 0x330   : > { %v855_v26 = vpop.xlane.xlu0 %854 }
 0x331   : > { %v881_v28 = vmul.f32 0.0078125, %v855_v26 }
 0x332   : > { %v857_v10 = vpop.xlane.xlu1 %856 }
 0x333   : > { %v896_v30 = vadd.f32 1e-06, %v881_v28  ;;  %v882_v32 = vmul.f32 0.0078125, %v857_v10 }
 0x335   : > { %7147 = vrsqrt.f32 %v896_v30  ;;  %v897_v33 = vadd.f32 1e-06, %v882_v32 }
 0x337   : > { %7149 = vrsqrt.f32 %v897_v33 }
 0x338   : > { %v859_v35 = vpop.xlane.xlu0 %858 }
 0x339   : > { %v883_v37 = vmul.f32 0.0078125, %v859_v35 }
 0x33a   : > { %v861_v40 = vpop.xlane.xlu1 %860 }
 0x33b   : > { %v898_v43 = vadd.f32 1e-06, %v883_v37  ;;  %v884_v44 = vmul.f32 0.0078125, %v861_v40 }
 0x33d   : > { %7151 = vrsqrt.f32 %v898_v43  ;;  %v899_v46 = vadd.f32 1e-06, %v884_v44 }
 0x33f   : > { %v7148_v48 = vpop.eup %7147  ;;  %7153 = vrsqrt.f32 %v899_v46 }
 0x340   : > { %v863_v49 = vpop.xlane.xlu0 %862  ;;  %v926_v52 = vmul.f32 %v7148_v48, %v8379_v54 }
 0x341   : > { %v7150_v56 = vpop.eup %7149  ;;  %v885_v60 = vmul.f32 0.0078125, %v863_v49 }
 0x342   : > { %v865_v61 = vpop.xlane.xlu1 %864  ;;  %v945_v62 = vmul.f32 %v8441_v7, %v926_v52  ;;  %v927_v8 = vmul.f32 %v7150_v56, %v8384_v57 }
 0x343   : > { %v900_v63 = vadd.f32 1e-06, %v885_v60  ;;  %v886_v3 = vmul.f32 0.0078125, %v865_v61 }
 0x344   : > { %v964_v9 = vadd.f32 %v8449_v19, %v945_v62  ;;  %v946_v23 = vmul.f32 %v8441_v7, %v927_v8 }
 0x345   : > { %7155 = vrsqrt.f32 %v900_v63  ;;  %v901_v12 = vadd.f32 1e-06, %v886_v3 }
 0x346   : > { %v977_v13 = vpack.c.bf16 %v964_v9, %v963_v6  ;;  %v965_v26 = vadd.f32 %v8449_v19, %v946_v23 }
 0x347   : > { %v7152_v16 = vpop.eup %7151  ;;  %7157 = vrsqrt.f32 %v901_v12 }
 0x348   : > { %v867_v54 = vpop.xlane.xlu0 %866  ;;  %1187 = vmatmul.mubr.bf16.gmra.mrb[4].mxu1 %v977_v13  ;;  %6397 = vmatmul.mubr.bf16.vlgmr.msra.gmra.mrb[24].mxu0 %v977_v13  ;;  %v928_v21 = vmul.f32 %v7152_v16, %v8389_v2 }
 0x349   : > { %v7154_v24 = vpop.eup %7153  ;;  %v887_v25 = vmul.f32 0.0078125, %v867_v54  ;;  %1196 = vmatprep.mubr.bf16.mxu1 %v11085_v0 }
 0x34a   : > { %v869_v15 = vpop.xlane.xlu1 %868  ;;  %v947_v20 = vmul.f32 %v8441_v7, %v928_v21  ;;  %v929_v10 = vmul.f32 %v7154_v24, %v8394_v4 }
 0x34b   : > { %v902_v57 = vadd.f32 1e-06, %v887_v25  ;;  %v888_v11 = vmul.f32 0.0078125, %v869_v15 }
 0x34c   : > { %v966_v28 = vadd.f32 %v8449_v19, %v947_v20  ;;  %v948_v36 = vmul.f32 %v8441_v7, %v929_v10 }
 0x34d   : > { %7159 = vrsqrt.f32 %v902_v57  ;;  %v903_v30 = vadd.f32 1e-06, %v888_v11 }
 0x34e   : > { %v978_v2 = vpack.c.bf16 %v966_v28, %v965_v26  ;;  %v967_v46 = vadd.f32 %v8449_v19, %v948_v36 }
 0x34f   : > { %v7156_v32 = vpop.eup %7155  ;;  %7161 = vrsqrt.f32 %v903_v30 }
 0x350   : > { %v871_v33 = vpop.xlane.xlu0 %870  ;;  %1197 = vmatmul.mubr.bf16.gmra.mrb[8].mxu1 %v978_v2  ;;  %6400 = vmatprep.mubr.bf16.mxu0 %v978_v2  ;;  %v930_v35 = vmul.f32 %v7156_v32, %v8399_v14 }
 0x351   : > { %v7158_v37 = vpop.eup %7157  ;;  %v889_v40 = vmul.f32 0.0078125, %v871_v33  ;;  %1206 = vmatprep.mubr.bf16.mxu1 %v11085_v0 }
 0x352   : > { %v873_v43 = vpop.xlane.xlu1 %872  ;;  %v949_v44 = vmul.f32 %v8441_v7, %v930_v35  ;;  %v931_v49 = vmul.f32 %v7158_v37, %v8404_v17 }
 0x353   : > { %v904_v4 = vadd.f32 1e-06, %v889_v40  ;;  %v890_v45 = vmul.f32 0.0078125, %v873_v43 }
 0x354   : > { %v968_v48 = vadd.f32 %v8449_v19, %v949_v44  ;;  %v950_v61 = vmul.f32 %v8441_v7, %v931_v49 }
 0x355   : > { %7163 = vrsqrt.f32 %v904_v4  ;;  %v905_v52 = vadd.f32 1e-06, %v890_v45 }
 0x356   : > { %v979_v14 = vpack.c.bf16 %v968_v48, %v967_v46  ;;  %v969_v8 = vadd.f32 %v8449_v19, %v950_v61 }
 0x357   : > { %v7160_v53 = vpop.eup %7159  ;;  %7165 = vrsqrt.f32 %v905_v52 }
 0x358   : > { %v875_v56 = vpop.xlane.xlu0 %874  ;;  %1207 = vmatmul.mubr.bf16.gmra.mrb[12].mxu1 %v979_v14  ;;  %6401 = vmatmul.mubr.bf16.gmra.mrb[28].mxu0 %v979_v14  ;;  %v932_v60 = vmul.f32 %v7160_v53, %v8409_v27  ;;  %v8529_v14 = vld [vmem:[%s11070_s8 + $0x4] ss:$0 sm:$0xff] }
 0x359   : > { %v7162_v62 = vpop.eup %7161  ;;  %v891_v63 = vmul.f32 0.0078125, %v875_v56  ;;  %1216 = vmatprep.mubr.bf16.mxu1 %v11085_v0 }
 0x35a   : > { %v877_v3 = vpop.xlane.xlu1 %876  ;;  %v951_v6 = vmul.f32 %v8441_v7, %v932_v60  ;;  %v933_v13 = vmul.f32 %v7162_v62, %v8414_v29 }
 0x35b   : > { %v906_v17 = vadd.f32 1e-06, %v891_v63  ;;  %v892_v9 = vmul.f32 0.0078125, %v877_v3 }
 0x35c   : > { %v970_v12 = vadd.f32 %v8449_v19, %v951_v6  ;;  %v952_v23 = vmul.f32 %v8441_v7, %v933_v13 }
 0x35d   : > { %7167 = vrsqrt.f32 %v906_v17  ;;  %v907_v16 = vadd.f32 1e-06, %v892_v9 }
 0x35e   : > { %v980_v27 = vpack.c.bf16 %v970_v12, %v969_v8  ;;  %v971_v15 = vadd.f32 %v8449_v19, %v952_v23 }
 0x35f   : > { %v7164_v54 = vpop.eup %7163  ;;  %7169 = vrsqrt.f32 %v907_v16 }
 0x360   : > { %1217 = vmatmul.mubr.bf16.gmra.mrb[16].mxu1 %v980_v27  ;;  %6404 = vmatprep.mubr.bf16.mxu0 %v980_v27  ;;  %v934_v21 = vmul.f32 %v7164_v54, %v8419_v38 }
 0x361   : > { %v7166_v24 = vpop.eup %7165  ;;  %1226 = vmatprep.mubr.bf16.mxu1 %v11085_v0 }
 0x362   : > { %v953_v25 = vmul.f32 %v8441_v7, %v934_v21  ;;  %v935_v20 = vmul.f32 %v7166_v24, %v8424_v41 }
 0x364   : > { %v972_v29 = vadd.f32 %v8449_v19, %v953_v25  ;;  %v954_v38 = vmul.f32 %v8441_v7, %v935_v20 }
 0x366   : > { %v981_v57 = vpack.c.bf16 %v972_v29, %v971_v15  ;;  %v973_v2 = vadd.f32 %v8449_v19, %v954_v38 }
 0x367   : > { %v7168_v11 = vpop.eup %7167 }
 0x368   : > { %1227 = vmatmul.mubr.bf16.gmra.mrb[20].mxu1 %v981_v57  ;;  %6405 = vmatmul.mubr.bf16.gmra.mrb[32].mxu0 %v981_v57  ;;  %v936_v26 = vmul.f32 %v7168_v11, %v8429_v51 }
 0x369   : > { %v7170_v28 = vpop.eup %7169  ;;  %1236 = vmatprep.mubr.bf16.mxu1 %v11085_v0 }
 0x36a   : > { %v955_v10 = vmul.f32 %v8441_v7, %v936_v26  ;;  %v937_v30 = vmul.f32 %v7170_v28, %v8434_v59  ;;  %v8503_v59 = vld [vmem:[%s11070_s8 + $0x2] ss:$0 sm:$0xff] }
 0x36c   : > { %v974_v32 = vadd.f32 %v8449_v19, %v955_v10  ;;  %v956_v41 = vmul.f32 %v8441_v7, %v937_v30  ;;  %v8508_v7 = vld [vmem:[%s11070_s8 + $0x3] ss:$0 sm:$0xff] }
 0x36e   : > { %v982_v33 = vpack.c.bf16 %v974_v32, %v973_v2  ;;  %v975_v35 = vadd.f32 %v8449_v19, %v956_v41 }
 0x370   : > { %1237 = vmatmul.mubr.bf16.gmra.mrb[24].mxu1 %v982_v33  ;;  %6408 = vmatprep.mubr.bf16.mxu0 %v982_v33  ;;  %v983_v51 = vpack.c.bf16 %v975_v35, %v975_v35 }
 0x371   : > { %1246 = vmatprep.mubr.bf16.mxu1 %v11085_v0 }
 0x372   : > { %6409 = vmatmul.mubr.bf16.gmra.mrb[36].mxu0 %v983_v51 }
 0x378   : > { %1247 = vmatmul.mubr.bf16.gmra.mrb[28].mxu1 %v983_v51 }
 0x3b5   : > { %v1178_v36 = vpop.f32.mrb[0].mxu1 }
 0x3b6   : > { %v1180_v37 = vpop.f32.mrb[1].mxu1  ;;  %v1355_v40 = vadd.f32 %v8503_v59, %v1178_v36 }
 0x3b7   : > { %v1182_v19 = vpop.f32.mrb[2].mxu1  ;;  %v1382_v4 = vadd.f32 %v8508_v7, %v1180_v37 }
 0x3b8   : > { %v1356_v43 = vadd.f32 %v8503_v59, %v1182_v19  ;;  %v1184_v44 = vpop.f32.mrb[3].mxu1 }
 0x3b9   : > { %v1383_v45 = vadd.f32 %v8508_v7, %v1184_v44 }
 0x3ba   : > { %v8514_v46 = vpack.c.bf16 %v1356_v43, %v1355_v40 }
 0x3bb   : > { %v8516_v48 = vpack.c.bf16 %v1383_v45, %v1382_v4 }
 0x3bc   : > { %11239 = vst [vmem:[#allocation35_spill] sm:$0xff] %v8514_v46  ;;  %6428 = vmatprep.mubr.msk.bf16.mxu1 %vm1447_vm1, %v8514_v46 }
 0x3bd   : > { %11240 = vst [vmem:[#allocation36_spill] sm:$0xff] %v8516_v48  ;;  %1967 = vrot.lane.b32.xlu0 %v8516_v48, %s7912_s22  ;;  %6716 = vmatprep.subr.msk.bf16.mxu1 %vm1447_vm1, %v8516_v48  ;;  %v1473_v49 = vsel %vm1447_vm1, %v8516_v48, 0 }
 0x3be   : > { %6413 = vmatpush3.bf16.xpose.msra.mxu1 %v1473_v49 }
 0x41b   : > { %v1188_v52 = vpop.f32.mrb[4].mxu1  ;;  %v6398_v53 = vpop.f32.mrb[24].mxu0 }
 0x41c   : > { %v1190_v56 = vpop.f32.mrb[5].mxu1  ;;  %v1289_v60 = vpop.f32.mrb[25].mxu0  ;;  %v1357_v63 = vadd.f32 %v8503_v59, %v1188_v52  ;;  %v1411_v3 = vadd.f32 %v6398_v53, %v8529_v14 }
 0x41d   : > { %v1192_v61 = vpop.f32.mrb[6].mxu1  ;;  %v6399_v62 = vpop.f32.mrb[26].mxu0  ;;  %v1384_v12 = vadd.f32 %v8508_v7, %v1190_v56  ;;  %v1409_v13 = vadd.f32 %v8529_v14, %v1289_v60 }
 0x41e   : > { %v1358_v6 = vadd.f32 %v8503_v59, %v1192_v61  ;;  %v1412_v17 = vadd.f32 %v6399_v62, %v8529_v14  ;;  %v1194_v9 = vpop.f32.mrb[7].mxu1  ;;  %v1292_v8 = vpop.f32.mrb[27].mxu0 }
 0x41f   : > { %v1385_v16 = vadd.f32 %v8508_v7, %v1194_v9  ;;  %v1410_v27 = vadd.f32 %v8529_v14, %v1292_v8 }
 0x420   : > { %v8539_v54 = vpack.c.bf16 %v1358_v6, %v1357_v63  ;;  %v8541_v21 = vpack.c.bf16 %v1412_v17, %v1411_v3 }
 0x421   : > { %v8543_v23 = vpack.c.bf16 %v1385_v16, %v1384_v12  ;;  %v8545_v24 = vpack.c.bf16 %v1410_v27, %v1409_v13 }
 0x422   : > { %11241 = vst [vmem:[#allocation37_spill] sm:$0xff] %v8539_v54  ;;  %11242 = vst [vmem:[#allocation38_spill] sm:$0xff] %v8541_v21 }
 0x423   : > { %11243 = vst [vmem:[#allocation39_spill] sm:$0xff] %v8543_v23  ;;  %11244 = vst [vmem:[#allocation40_spill] sm:$0xff] %v8545_v24  ;;  %6444 = vmatprep.subr.bf16.mxu0 %v8545_v24  ;;  %1969 = vrot.lane.b32.xlu1 %v8543_v23, %s7912_s22  ;;  %v1198_v25 = vpop.f32.mrb[8].mxu1  ;;  %v1476_v15 = vsel %vm1447_vm1, %v8543_v23, 0 }
 0x424   : > { %6717 = vmatprep.subr.msk.bf16.mxu1 %vm1447_vm1, %v8543_v23  ;;  %v1200_v29 = vpop.f32.mrb[9].mxu1  ;;  %6445 = vmatpush3.bf16.msra.mxu0 %v8545_v24  ;;  %v1359_v57 = vadd.f32 %v8503_v59, %v1198_v25 }
 0x425   : > { %6415 = vmatpush3.bf16.xpose.msra.mxu1 %v1476_v15  ;;  %v1202_v20 = vpop.f32.mrb[10].mxu1  ;;  %6446 = vmatprep.subr.bf16.mxu0 %v8541_v21  ;;  %v1386_v38 = vadd.f32 %v8508_v7, %v1200_v29 }
 0x426   : > { %v1360_v11 = vadd.f32 %v8503_v59, %v1202_v20  ;;  %v1204_v26 = vpop.f32.mrb[11].mxu1 }
 0x427   : > { %v1387_v28 = vadd.f32 %v8508_v7, %v1204_v26 }
 0x428   : > { %v8560_v10 = vpack.c.bf16 %v1360_v11, %v1359_v57  ;;  %6447 = vmatpush3.bf16.msra.mxu0 %v8541_v21 }
 0x429   : > { %v8563_v30 = vpack.c.bf16 %v1387_v28, %v1386_v38 }
 0x42a   : > { %11245 = vst [vmem:[#allocation41_spill] sm:$0xff] %v8560_v10 }
 0x42b   : > { %11246 = vst [vmem:[#allocation42_spill] sm:$0xff] %v8563_v30  ;;  %v6402_v2 = vpop.f32.mrb[28].mxu0  ;;  %1971 = vrot.lane.b32.xlu1 %v8563_v30, %s7912_s22  ;;  %v1208_v32 = vpop.f32.mrb[12].mxu1  ;;  %6718 = vmatprep.subr.msk.bf16.mxu1 %vm1447_vm1, %v8563_v30  ;;  %v1479_v41 = vsel %vm1447_vm1, %v8563_v30, 0 }
 0x42c   : > { %v1210_v33 = vpop.f32.mrb[13].mxu1  ;;  %v1305_v35 = vpop.f32.mrb[29].mxu0  ;;  %v1415_v37 = vadd.f32 %v6402_v2, %v8529_v14  ;;  %v1361_v19 = vadd.f32 %v8503_v59, %v1208_v32 }
 0x42d   : > { %6417 = vmatpush3.bf16.xpose.msra.mxu1 %v1479_v41  ;;  %v1212_v51 = vpop.f32.mrb[14].mxu1  ;;  %v6403_v36 = vpop.f32.mrb[30].mxu0  ;;  %v1388_v45 = vadd.f32 %v8508_v7, %v1210_v33  ;;  %v1413_v49 = vadd.f32 %v8529_v14, %v1305_v35 }
 0x42e   : > { %v1362_v40 = vadd.f32 %v8503_v59, %v1212_v51  ;;  %v1416_v43 = vadd.f32 %v6403_v36, %v8529_v14  ;;  %v1214_v44 = vpop.f32.mrb[15].mxu1  ;;  %v1308_v4 = vpop.f32.mrb[31].mxu0 }
 0x42f   : > { %v1389_v52 = vadd.f32 %v8508_v7, %v1214_v44  ;;  %v1414_v53 = vadd.f32 %v8529_v14, %v1308_v4 }
 0x430   : > { %v8579_v56 = vpack.c.bf16 %v1362_v40, %v1361_v19  ;;  %v8581_v60 = vpack.c.bf16 %v1416_v43, %v1415_v37 }
 0x431   : > { %v8583_v61 = vpack.c.bf16 %v1389_v52, %v1388_v45  ;;  %v8585_v62 = vpack.c.bf16 %v1414_v53, %v1413_v49 }
 0x432   : > { %11247 = vst [vmem:[#allocation43_spill] sm:$0xff] %v8579_v56  ;;  %11248 = vst [vmem:[#allocation44_spill] sm:$0xff] %v8581_v60 }
 0x433   : > { %11249 = vst [vmem:[#allocation45_spill] sm:$0xff] %v8583_v61  ;;  %11250 = vst [vmem:[#allocation46_spill] sm:$0xff] %v8585_v62  ;;  %6448 = vmatprep.subr.bf16.mxu0 %v8585_v62  ;;  %1973 = vrot.lane.b32.xlu1 %v8583_v61, %s7912_s22  ;;  %v1218_v63 = vpop.f32.mrb[16].mxu1  ;;  %v1482_v3 = vsel %vm1447_vm1, %v8583_v61, 0 }
 0x434   : > { %6719 = vmatprep.subr.msk.bf16.mxu1 %vm1447_vm1, %v8583_v61  ;;  %v1220_v6 = vpop.f32.mrb[17].mxu1  ;;  %6449 = vmatpush3.bf16.msra.mxu0 %v8585_v62  ;;  %v1363_v9 = vadd.f32 %v8503_v59, %v1218_v63 }
 0x435   : > { %6419 = vmatpush3.bf16.xpose.msra.mxu1 %v1482_v3  ;;  %v1222_v17 = vpop.f32.mrb[18].mxu1  ;;  %6450 = vmatprep.subr.bf16.mxu0 %v8581_v60  ;;  %v1390_v13 = vadd.f32 %v8508_v7, %v1220_v6 }
 0x436   : > { %v1364_v8 = vadd.f32 %v8503_v59, %v1222_v17  ;;  %v1224_v12 = vpop.f32.mrb[19].mxu1 }
 0x437   : > { %v1391_v16 = vadd.f32 %v8508_v7, %v1224_v12 }
 0x438   : > { %v8600_v27 = vpack.c.bf16 %v1364_v8, %v1363_v9  ;;  %6451 = vmatpush3.bf16.msra.mxu0 %v8581_v60 }
 0x439   : > { %v8603_v25 = vpack.c.bf16 %v1391_v16, %v1390_v13 }
 0x43a   : > { %11251 = vst [vmem:[#allocation47_spill] sm:$0xff] %v8600_v27 }
 0x43b   : > { %v6406_v15 = vpop.f32.mrb[32].mxu0  ;;  %1975 = vrot.lane.b32.xlu0 %v8603_v25, %s7912_s22  ;;  %v1228_v29 = vpop.f32.mrb[20].mxu1  ;;  %6720 = vmatprep.subr.msk.bf16.mxu1 %vm1447_vm1, %v8603_v25  ;;  %v1485_v20 = vsel %vm1447_vm1, %v8603_v25, 0 }
 0x43c   : > { %v1230_v57 = vpop.f32.mrb[21].mxu1  ;;  %v1321_v11 = vpop.f32.mrb[33].mxu0  ;;  %v1419_v28 = vadd.f32 %v6406_v15, %v8529_v14  ;;  %v1365_v2 = vadd.f32 %v8503_v59, %v1228_v29 }
 0x43d   : > { %6421 = vmatpush3.bf16.xpose.msra.mxu1 %v1485_v20  ;;  %v1232_v26 = vpop.f32.mrb[22].mxu1  ;;  %v6407_v38 = vpop.f32.mrb[34].mxu0  ;;  %v1392_v51 = vadd.f32 %v8508_v7, %v1230_v57  ;;  %v1417_v36 = vadd.f32 %v8529_v14, %v1321_v11 }
 0x43e   : > { %v1366_v32 = vadd.f32 %v8503_v59, %v1232_v26  ;;  %v1420_v41 = vadd.f32 %v6407_v38, %v8529_v14  ;;  %v1234_v33 = vpop.f32.mrb[23].mxu1  ;;  %v1324_v35 = vpop.f32.mrb[35].mxu0 }
 0x43f   : > { %v1393_v37 = vadd.f32 %v8508_v7, %v1234_v33  ;;  %v1418_v19 = vadd.f32 %v8529_v14, %v1324_v35 }
 0x440   : > { %v8619_v40 = vpack.c.bf16 %v1366_v32, %v1365_v2  ;;  %v8621_v43 = vpack.c.bf16 %v1420_v41, %v1419_v28 }
 0x441   : > { %v8623_v44 = vpack.c.bf16 %v1393_v37, %v1392_v51  ;;  %v8625_v4 = vpack.c.bf16 %v1418_v19, %v1417_v36  ;;  %v1968_v36 = vpop.permute.xlu0 %1967 }
 0x442   : > { %11252 = vst [vmem:[#allocation48_spill] sm:$0xff] %v8619_v40  ;;  %11253 = vst [vmem:[#allocation49_spill] sm:$0xff] %v8621_v43  ;;  %v2008_v19 = vsel %vm1447_vm1, %v1968_v36, 0 }
 0x443   : > { %11254 = vst [vmem:[#allocation50_spill] sm:$0xff] %v8625_v4  ;;  %6452 = vmatprep.subr.bf16.mxu0 %v8625_v4  ;;  %1977 = vrot.lane.b32.xlu1 %v8623_v44, %s7912_s22  ;;  %v1238_v45 = vpop.f32.mrb[24].mxu1  ;;  %v1488_v49 = vsel %vm1447_vm1, %v8623_v44, 0 }
 0x444   : > { %6721 = vmatprep.subr.msk.bf16.mxu1 %vm1447_vm1, %v8623_v44  ;;  %v1240_v52 = vpop.f32.mrb[25].mxu1  ;;  %6453 = vmatpush3.bf16.msra.mxu0 %v8625_v4  ;;  %v1367_v3 = vadd.f32 %v8503_v59, %v1238_v45 }
 0x445   : > { %6423 = vmatpush3.bf16.xpose.msra.mxu1 %v1488_v49  ;;  %v1242_v53 = vpop.f32.mrb[26].mxu1  ;;  %v6410_v63 = vpop.f32.mrb[36].mxu0  ;;  %6454 = vmatprep.subr.bf16.mxu0 %v8621_v43  ;;  %v1394_v8 = vadd.f32 %v8508_v7, %v1240_v52 }
 0x446   : > { %v1368_v6 = vadd.f32 %v8503_v59, %v1242_v53  ;;  %v1244_v17 = vpop.f32.mrb[27].mxu1  ;;  %v1337_v9 = vpop.f32.mrb[37].mxu0  ;;  %v1423_v29 = vadd.f32 %v6410_v63, %v8529_v14 }
 0x447   : > { %v1395_v12 = vadd.f32 %v8508_v7, %v1244_v17  ;;  %v6411_v13 = vpop.f32.mrb[38].mxu0  ;;  %v1421_v57 = vadd.f32 %v8529_v14, %v1337_v9 }
 0x448   : > { %v8640_v16 = vpack.c.bf16 %v1368_v6, %v1367_v3  ;;  %v1340_v15 = vpop.f32.mrb[39].mxu0  ;;  %6455 = vmatpush3.bf16.msra.mxu0 %v8621_v43  ;;  %v8656_v32 = vpack.c.bf16 %v1423_v29, %v1423_v29 }
 0x449   : > { %v8644_v20 = vpack.c.bf16 %v1395_v12, %v1394_v8  ;;  %v1422_v11 = vadd.f32 %v8529_v14, %v1340_v15 }
 0x44a   : > { %11255 = vst [vmem:[#allocation51_spill] sm:$0xff] %v8640_v16  ;;  %11258 = vst [vmem:[#allocation54_spill] sm:$0xff] %v8656_v32 }
 0x44b   : > { %11256 = vst [vmem:[#allocation52_spill] sm:$0xff] %v8644_v20  ;;  %v8648_v26 = vpack.c.bf16 %v1422_v11, %v1421_v57  ;;  %1979 = vrot.lane.b32.xlu0 %v8644_v20, %s7912_s22  ;;  %v1248_v38 = vpop.f32.mrb[28].mxu1  ;;  %6722 = vmatprep.subr.msk.bf16.mxu1 %vm1447_vm1, %v8644_v20  ;;  %v1491_v28 = vsel %vm1447_vm1, %v8644_v20, 0 }
 0x44c   : > { %v1250_v2 = vpop.f32.mrb[29].mxu1  ;;  %v1369_v37 = vadd.f32 %v8503_v59, %v1248_v38 }
 0x44d   : > { %11257 = vst [vmem:[#allocation53_spill] sm:$0xff] %v8648_v26  ;;  %v1396_v41 = vadd.f32 %v8508_v7, %v1250_v2  ;;  %6425 = vmatpush3.bf16.xpose.msra.mxu1 %v1491_v28  ;;  %v1252_v33 = vpop.f32.mrb[30].mxu1  ;;  %6456 = vmatprep.subr.bf16.mxu0 %v8648_v26  ;;  %v1837_v7 = vsel %vm1835_vm2, %v8656_v32, 0 }
 0x44e   : > { %v1253_v14 = vpop.f32.mrb[31].mxu1  ;;  %6457 = vmatpush3.bf16.msra.mxu0 %v8648_v26  ;;  %v8696_v45 = vpack.c.bf16 %v1369_v37, %v1369_v37 }
 0x44f   : > { %v8661_v35 = vpack.c.bf16 %v1396_v41, %v1396_v41  ;;  %6724 = vmatprep.subr.msk.bf16.mxu0 %vm1835_vm2, %v8656_v32  ;;  %1943 = vrot.lane.b32.xlu0 %v8514_v46, %s7912_s22 }
 0x450   : > { %11260 = vst [vmem:[#allocation56_spill] sm:$0xff] %v8696_v45 }
 0x451   : > { %11259 = vst [vmem:[#allocation55_spill] sm:$0xff] %v8661_v35  ;;  %1981 = vrot.lane.b32.xlu1 %v8661_v35, %s7912_s22  ;;  %6723 = vmatprep.subr.msk.bf16.mxu1 %vm1447_vm1, %v8661_v35  ;;  %v1494_v51 = vsel %vm1447_vm1, %v8661_v35, 0 }
 0x452   : > { %6459 = vmatpush3.bf16.msra.mxu0 %v1837_v7 }
 0x453   : > { %1947 = vrot.lane.b32.xlu0 %v8560_v10, %s7912_s22 }
 0x455   : > { %6427 = vmatpush3.bf16.xpose.msra.mxu1 %v1494_v51  ;;  %1945 = vrot.lane.b32.xlu1 %v8539_v54, %s7912_s22 }
 0x456   : > { %6725 = vmatprep.subr.msk.bf16.mxu1 %vm1447_vm1, %v1968_v36  ;;  %v8753_v36 = vld [vmem:[#allocation14 + $0x10] sm:$0xff] }
 0x457   : > { %1951 = vrot.lane.b32.xlu0 %v8600_v27, %s7912_s22 }
 0x459   : > { %1949 = vrot.lane.b32.xlu1 %v8579_v56, %s7912_s22 }
 0x45b   : > { %1955 = vrot.lane.b32.xlu0 %v8640_v16, %s7912_s22 }
 0x45c   : > { %6429 = vmatmul.mubr.msk.bf16.vlgmr.msra.gmra.mrb[32].mxu1 %vm1447_vm1, %v8539_v54 }
 0x45d   : > { %6432 = vmatprep.mubr.msk.bf16.mxu1 %vm1447_vm1, %v8560_v10  ;;  %6477 = vmatpush3.bf16.xpose.msra.mxu1 %v2008_v19 }
 0x45e   : > { %1953 = vrot.lane.b32.xlu1 %v8619_v40, %s7912_s22 }
 0x45f   : > { %2353 = vrot.lane.b32.xlu0 %v8545_v24, %s7912_s22 }
 0x462   : > { %1957 = vrot.lane.b32.xlu1 %v8696_v45, %s7912_s22 }
 0x463   : > { %2357 = vrot.lane.b32.xlu0 %v8585_v62, %s7912_s22 }
 0x464   : > { %6433 = vmatmul.mubr.msk.bf16.gmra.mrb[36].mxu1 %vm1447_vm1, %v8579_v56 }
 0x465   : > { %6436 = vmatprep.mubr.msk.bf16.mxu1 %vm1447_vm1, %v8600_v27 }
 0x466   : > { %2355 = vrot.lane.b32.xlu1 %v8541_v21, %s7912_s22 }
 0x467   : > { %2361 = vrot.lane.b32.xlu0 %v8625_v4, %s7912_s22 }
 0x46a   : > { %2359 = vrot.lane.b32.xlu1 %v8581_v60, %s7912_s22 }
 0x46b   : > { %2363 = vrot.lane.b32.xlu0 %v8621_v43, %s7912_s22 }
 0x46c   : > { %6437 = vmatmul.mubr.msk.bf16.gmra.mrb[40].mxu1 %vm1447_vm1, %v8619_v40 }
 0x46d   : > { %6440 = vmatprep.mubr.msk.bf16.mxu1 %vm1447_vm1, %v8640_v16 }
 0x46e   : > { %2365 = vrot.lane.b32.xlu1 %v8648_v26, %s7912_s22 }
 0x46f   : > { %2367 = vrot.lane.b32.xlu0 %v8656_v32, %s7912_s22 }
 0x472   : > { %2515 = vrot.lane.b32.xlu1 %v8516_v48, %s7913_s23 }
 0x473   : > { %2517 = vrot.lane.b32.xlu0 %v8543_v23, %s7913_s23 }
 0x474   : > { %6441 = vmatmul.mubr.msk.bf16.gmra.mrb[44].mxu1 %vm1447_vm1, %v8696_v45 }
 0x495   : > { %v1970_v59 = vpop.permute.xlu1 %1969 }
 0x496   : > { %6726 = vmatprep.subr.msk.bf16.mxu1 %vm1447_vm1, %v1970_v59  ;;  %v2011_v49 = vsel %vm1447_vm1, %v1970_v59, 0 }
 0x497   : > { %6479 = vmatpush3.bf16.xpose.msra.mxu1 %v2011_v49 }
 0x49d   : > { %v1972_v52 = vpop.permute.xlu1 %1971 }
 0x49e   : > { %6727 = vmatprep.subr.msk.bf16.mxu1 %vm1447_vm1, %v1972_v52  ;;  %v2014_v53 = vsel %vm1447_vm1, %v1972_v52, 0  ;;  %v8755_v52 = vld [vmem:[#allocation14] sm:$0xff] }
 0x49f   : > { %6481 = vmatpush3.bf16.xpose.msra.mxu1 %v2014_v53 }
 0x4a5   : > { %v1974_v63 = vpop.permute.xlu1 %1973 }
 0x4a6   : > { %6728 = vmatprep.subr.msk.bf16.mxu1 %vm1447_vm1, %v1974_v63  ;;  %v2017_v3 = vsel %vm1447_vm1, %v1974_v63, 0 }
 0x4a7   : > { %6483 = vmatpush3.bf16.xpose.msra.mxu1 %v2017_v3  ;;  %v8760_v3 = vld [vmem:[#allocation14 + $0x8] sm:$0xff] }
 0x4ad   : > { %v1976_v6 = vpop.permute.xlu0 %1975 }
 0x4ae   : > { %6729 = vmatprep.subr.msk.bf16.mxu1 %vm1447_vm1, %v1976_v6  ;;  %v2020_v17 = vsel %vm1447_vm1, %v1976_v6, 0 }
 0x4af   : > { %6485 = vmatpush3.bf16.xpose.msra.mxu1 %v2020_v17 }
 0x4b5   : > { %v1978_v9 = vpop.permute.xlu1 %1977 }
 0x4b6   : > { %6730 = vmatprep.subr.msk.bf16.mxu1 %vm1447_vm1, %v1978_v9  ;;  %v2023_v8 = vsel %vm1447_vm1, %v1978_v9, 0 }
 0x4b7   : > { %6487 = vmatpush3.bf16.xpose.msra.mxu1 %v2023_v8 }
 0x4bd   : > { %v1980_v12 = vpop.permute.xlu0 %1979 }
 0x4be   : > { %6731 = vmatprep.subr.msk.bf16.mxu1 %vm1447_vm1, %v1980_v12  ;;  %v2026_v13 = vsel %vm1447_vm1, %v1980_v12, 0 }
 0x4bf   : > { %6489 = vmatpush3.bf16.xpose.msra.mxu1 %v2026_v13  ;;  %v8770_v13 = vld [vmem:[#allocation14 + $0x18] sm:$0xff] }
 0x4c1   : > { %v1944_v15 = vpop.permute.xlu0 %1943 }
 0x4c2   : > { %6492 = vmatprep.mubr.msk.bf16.mxu1 %vm1447_vm1, %v1944_v15 }
 0x4c3   : > { %v1982_v29 = vpop.permute.xlu1 %1981 }
 0x4c4   : > { %6732 = vmatprep.subr.msk.bf16.mxu1 %vm1447_vm1, %v1982_v29  ;;  %v2029_v11 = vsel %vm1447_vm1, %v1982_v29, 0 }
 0x4c5   : > { %v1948_v57 = vpop.permute.xlu0 %1947 }
 0x4c7   : > { %6491 = vmatpush3.bf16.xpose.msra.mxu1 %v2029_v11  ;;  %v1946_v28 = vpop.permute.xlu1 %1945 }
 0x4c9   : > { %v1952_v38 = vpop.permute.xlu0 %1951 }
 0x4cb   : > { %v1950_v33 = vpop.permute.xlu1 %1949 }
 0x4cd   : > { %v1956_v2 = vpop.permute.xlu0 %1955 }
 0x4ce   : > { %6493 = vmatmul.mubr.msk.bf16.vlgmr.msra.gmra.mrb[48].mxu1 %vm1447_vm1, %v1946_v28 }
 0x4cf   : > { %6496 = vmatprep.mubr.msk.bf16.mxu1 %vm1447_vm1, %v1948_v57 }
 0x4d0   : > { %v1954_v14 = vpop.permute.xlu1 %1953 }
 0x4d1   : > { %v8745_v41 = vpop.permute.xlu0 %2353 }
 0x4d2   : > { %6508 = vmatprep.subr.bf16.mxu0 %v8745_v41 }
 0x4d4   : > { %v1958_v7 = vpop.permute.xlu1 %1957 }
 0x4d5   : > { %v8861_v43 = vpop.permute.xlu0 %2357 }
 0x4d6   : > { %6497 = vmatmul.mubr.msk.bf16.gmra.mrb[52].mxu1 %vm1447_vm1, %v1950_v33  ;;  %v8779_v33 = vld [vmem:[#allocation14 + $0x38] sm:$0xff] }
 0x4d7   : > { %6500 = vmatprep.mubr.msk.bf16.mxu1 %vm1447_vm1, %v1952_v38 }
 0x4de   : > { %6501 = vmatmul.mubr.msk.bf16.gmra.mrb[56].mxu1 %vm1447_vm1, %v1954_v14  ;;  %v8781_v14 = vld [vmem:[#allocation14 + $0x30] sm:$0xff] }
 0x4df   : > { %6504 = vmatprep.mubr.msk.bf16.mxu1 %vm1447_vm1, %v1956_v2 }
 0x4e6   : > { %6505 = vmatmul.mubr.msk.bf16.gmra.mrb[60].mxu1 %vm1447_vm1, %v1958_v7 }
 0x52f   : > { %v6430_v51 = vpop.f32.mrb[32].mxu1 }
 0x530   : > { %v1594_v37 = vmul.f32 0.17677669, %v6430_v51  ;;  %v1530_v19 = vpop.f32.mrb[33].mxu1 }
 0x531   : > { %v1592_v59 = vmul.f32 0.17677669, %v1530_v19  ;;  %v6431_v49 = vpop.f32.mrb[34].mxu1  ;;  %v8783_v19 = vld [vmem:[#allocation14 + $0x28] sm:$0xff] }
 0x532   : > { %v1533_v53 = vpop.f32.mrb[35].mxu1  ;;  %v8758_v63 = vadd.f32 %v1594_v37, %v8753_v36  ;;  %v1595_v17 = vmul.f32 0.17677669, %v6431_v49 }
 0x533   : > { %v1593_v6 = vmul.f32 0.17677669, %v1533_v53  ;;  %v8765_v8 = vadd.f32 %v1592_v59, %v8755_v52 }
 0x534   : > { %v1629_v9 = vsel %vm1622_vm3, %v8758_v63, -inf  ;;  %v8777_v28 = vadd.f32 %v1595_v17, %v8770_v13  ;;  %v8793_v17 = vld [vmem:[#allocation14 + $0x20] sm:$0xff] }
 0x535   : > { %1630 = vmax.xlane.f32.xlu0 %v1629_v9  ;;  %v8768_v12 = vadd.f32 %v1593_v6, %v8760_v3  ;;  %v1623_v38 = vsel %vm1622_vm3, %v8765_v8, -inf }
 0x536   : > { %v1632_v49 = vsel %vm1622_vm3, %v8777_v28, -inf }
 0x537   : > { %v6434_v15 = vpop.f32.mrb[36].mxu1  ;;  %v1626_v29 = vsel %vm1622_vm3, %v8768_v12, -inf }
 0x538   : > { %v1598_v57 = vmul.f32 0.17677669, %v6434_v15  ;;  %1627 = vmax.xlane.f32.xlu1 %v1626_v29  ;;  %v1546_v11 = vpop.f32.mrb[37].mxu1 }
 0x539   : > { %1624 = vmax.xlane.f32.xlu0 %v1623_v38  ;;  %v6435_v2 = vpop.f32.mrb[38].mxu1  ;;  %v1596_v59 = vmul.f32 0.17677669, %v1546_v11 }
 0x53a   : > { %v1599_v7 = vmul.f32 0.17677669, %v6435_v2  ;;  %v1549_v51 = vpop.f32.mrb[39].mxu1  ;;  %v8791_v6 = vadd.f32 %v1598_v57, %v8781_v14 }
 0x53b   : > { %v1597_v37 = vmul.f32 0.17677669, %v1549_v51  ;;  %v8805_v51 = vld [vmem:[#allocation14 + $0x58] sm:$0xff] }
 0x53c   : > { %v8788_v53 = vadd.f32 %v1599_v7, %v8779_v33  ;;  %v1641_v2 = vsel %vm1622_vm3, %v8791_v6, -inf  ;;  %v8803_v7 = vadd.f32 %v1596_v59, %v8793_v17 }
 0x53d   : > { %1633 = vmax.xlane.f32.xlu0 %v1632_v49  ;;  %v8798_v15 = vadd.f32 %v1597_v37, %v8783_v19  ;;  %v8807_v49 = vld [vmem:[#allocation14 + $0x50] sm:$0xff] }
 0x53e   : > { %v1644_v9 = vsel %vm1622_vm3, %v8788_v53, -inf  ;;  %v1635_v59 = vsel %vm1622_vm3, %v8803_v7, -inf }
 0x53f   : > { %1645 = vmax.xlane.f32.xlu1 %v1644_v9  ;;  %v6438_v29 = vpop.f32.mrb[40].mxu1  ;;  %v1638_v37 = vsel %vm1622_vm3, %v8798_v15, -inf }
 0x540   : > { %v1602_v11 = vmul.f32 0.17677669, %v6438_v29  ;;  %v1562_v38 = vpop.f32.mrb[41].mxu1  ;;  %v8811_v29 = vld [vmem:[#allocation14 + $0x48] sm:$0xff] }
 0x541   : > { %1642 = vmax.xlane.f32.xlu0 %v1641_v2  ;;  %v6439_v57 = vpop.f32.mrb[42].mxu1  ;;  %v1600_v22 = vmul.f32 0.17677669, %v1562_v38 }
 0x542   : > { %v1603_v0 = vmul.f32 0.17677669, %v6439_v57  ;;  %v1565_v18 = vpop.f32.mrb[43].mxu1  ;;  %v8819_v5 = vadd.f32 %v1602_v11, %v8807_v49  ;;  %v8821_v57 = vld [vmem:[#allocation14 + $0x40] sm:$0xff] }
 0x543   : > { %v1601_v9 = vmul.f32 0.17677669, %v1565_v18  ;;  %1639 = vmax.xlane.f32.xlu1 %v1638_v37  ;;  %v8831_v58 = vadd.f32 %v1600_v22, %v8821_v57 }
 0x544   : > { %v8816_v2 = vadd.f32 %v1603_v0, %v8805_v51  ;;  %v1653_v0 = vsel %vm1622_vm3, %v8819_v5, -inf }
 0x545   : > { %1636 = vmax.xlane.f32.xlu0 %v1635_v59  ;;  %v8826_v18 = vadd.f32 %v1601_v9, %v8811_v29  ;;  %v8833_v59 = vld [vmem:[#allocation14 + $0x70] sm:$0xff]  ;;  %v8837_v9 = vld [vmem:[#allocation14 + $0x68] sm:$0xff]  ;;  %v1647_v39 = vsel %vm1622_vm3, %v8831_v58, -inf }
 0x546   : > { %v1656_v1 = vsel %vm1622_vm3, %v8816_v2, -inf }
 0x547   : > { %1657 = vmax.xlane.f32.xlu1 %v1656_v1  ;;  %v6442_v38 = vpop.f32.mrb[44].mxu1  ;;  %v1650_v47 = vsel %vm1622_vm3, %v8826_v18, -inf }
 0x548   : > { %v1606_v37 = vmul.f32 0.17677669, %v6442_v38  ;;  %v1578_v55 = vpop.f32.mrb[45].mxu1 }
 0x549   : > { %1654 = vmax.xlane.f32.xlu0 %v1653_v0  ;;  %v6443_v11 = vpop.f32.mrb[46].mxu1  ;;  %v1604_v38 = vmul.f32 0.17677669, %v1578_v55  ;;  %v8847_v0 = vld [vmem:[#allocation14 + $0x60] sm:$0xff] }
 0x54a   : > { %v1581_v50 = vpop.f32.mrb[47].mxu1  ;;  %v8842_v42 = vadd.f32 %v1606_v37, %v8833_v59 }
 0x54b   : > { %v1605_v1 = vmul.f32 0.17677669, %v1581_v50  ;;  %1651 = vmax.xlane.f32.xlu1 %v1650_v47  ;;  %v8854_v50 = vadd.f32 %v1604_v38, %v8847_v0 }
 0x54c   : > { %v1665_v47 = vsel %vm1622_vm3, %v8842_v42, -inf }
 0x54d   : > { %1648 = vmax.xlane.f32.xlu0 %v1647_v39  ;;  %v8845_v22 = vadd.f32 %v1605_v1, %v8837_v9  ;;  %v1659_v55 = vsel %vm1622_vm3, %v8854_v50, -inf }
 0x54f   : > { %v1662_v11 = vsel %vm1622_vm3, %v8845_v22, -inf }
 0x550   : > { %1663 = vmax.xlane.f32.xlu1 %v1662_v11 }
 0x551   : > { %1666 = vmax.xlane.f32.xlu0 %v1665_v47 }
 0x555   : > { %1660 = vmax.xlane.f32.xlu0 %v1659_v55 }
 0x5a1   : > { %v6494_v39 = vpop.f32.mrb[48].mxu1 }
 0x5a2   : > { %v2129_v37 = vmul.f32 0.17677669, %v6494_v39  ;;  %v2065_v1 = vpop.f32.mrb[49].mxu1 }
 0x5a3   : > { %v2127_v34 = vmul.f32 0.17677669, %v2065_v1  ;;  %v6495_v31 = vpop.f32.mrb[50].mxu1 }
 0x5a4   : > { %v2130_v23 = vmul.f32 0.17677669, %v6495_v31  ;;  %v2068_v48 = vpop.f32.mrb[51].mxu1  ;;  %v8859_v11 = vadd.f32 %v2129_v37, %v8753_v36 }
 0x5a5   : > { %v2128_v32 = vmul.f32 0.17677669, %v2068_v48  ;;  %v8869_v55 = vadd.f32 %v2127_v34, %v8755_v52 }
 0x5a6   : > { %v2163_v38 = vsel %vm1622_vm3, %v8859_v11, -inf  ;;  %v8866_v47 = vadd.f32 %v2130_v23, %v8770_v13  ;;  %v8880_v23 = vpop.permute.xlu0 %2361 }
 0x5a7   : > { %2164 = vmax.xlane.f32.xlu1 %v2163_v38  ;;  %v8874_v39 = vadd.f32 %v2128_v32, %v8760_v3  ;;  %v2157_v37 = vsel %vm1622_vm3, %v8869_v55, -inf  ;;  %v8887_v3 = vpop.permute.xlu1 %2355 }
 0x5a8   : > { %v2166_v31 = vsel %vm1622_vm3, %v8866_v47, -inf }
 0x5a9   : > { %2167 = vmax.xlane.f32.xlu0 %v2166_v31  ;;  %v6498_v48 = vpop.f32.mrb[52].mxu1  ;;  %v2160_v13 = vsel %vm1622_vm3, %v8874_v39, -inf }
 0x5aa   : > { %v8876_v36 = vpop.f32.mrb[53].mxu1  ;;  %v2133_v35 = vmul.f32 0.17677669, %v6498_v48 }
 0x5ab   : > { %v6499_v1 = vpop.f32.mrb[54].mxu1  ;;  %2158 = vmax.xlane.f32.xlu1 %v2157_v37  ;;  %v8902_v16 = vpop.permute.xlu1 %2359 }
 0x5ac   : > { %v2134_v34 = vmul.f32 0.17677669, %v6499_v1  ;;  %v2084_v52 = vpop.f32.mrb[55].mxu1  ;;  %v8896_v1 = vpop.permute.xlu0 %2363 }
 0x5ad   : > { %v2132_v38 = vmul.f32 0.17677669, %v2084_v52  ;;  %2161 = vmax.xlane.f32.xlu0 %v2160_v13 }
 0x5ae   : > { %v8885_v32 = vadd.f32 %v2134_v34, %v8779_v33 }
 0x5af   : > { %v8892_v4 = vadd.f32 %v2132_v38, %v8783_v19 }
 0x5b0   : > { %v2178_v31 = vsel %vm1622_vm3, %v8885_v32, -inf  ;;  %v8907_v38 = vpop.permute.xlu0 %2367 }
 0x5b1   : > { %2179 = vmax.xlane.f32.xlu0 %v2178_v31  ;;  %v8894_v37 = vpop.f32.mrb[56].mxu1  ;;  %v2172_v33 = vsel %vm1622_vm3, %v8892_v4, -inf }
 0x5b2   : > { %v8898_v62 = vpop.f32.mrb[57].mxu1  ;;  %v2137_v48 = vmul.f32 0.17677669, %v8894_v37 }
 0x5b3   : > { %v6503_v52 = vpop.f32.mrb[58].mxu1  ;;  %v2135_v37 = vmul.f32 0.17677669, %v8898_v62 }
 0x5b4   : > { %v2138_v13 = vmul.f32 0.17677669, %v6503_v52  ;;  %v2100_v24 = vpop.f32.mrb[59].mxu1  ;;  %v8924_v54 = vpop.permute.xlu0 %2517 }
 0x5b5   : > { %v2136_v34 = vmul.f32 0.17677669, %v2100_v24  ;;  %2173 = vmax.xlane.f32.xlu0 %v2172_v33  ;;  %v8918_v33 = vpop.permute.xlu1 %2365  ;;  %11261 = vst [vmem:[#allocation57_spill] sm:$0xff] %v8924_v54 }
 0x5b6   : > { %v8905_v19 = vadd.f32 %v2138_v13, %v8805_v51 }
 0x5b7   : > { %v8912_v27 = vadd.f32 %v2136_v34, %v8811_v29 }
 0x5b8   : > { %v2190_v31 = vsel %vm1622_vm3, %v8905_v19, -inf }
 0x5b9   : > { %2191 = vmax.xlane.f32.xlu0 %v2190_v31  ;;  %v8914_v52 = vpop.f32.mrb[60].mxu1  ;;  %v2184_v51 = vsel %vm1622_vm3, %v8912_v27, -inf  ;;  %v8931_v31 = vpop.permute.xlu1 %2515 }
 0x5ba   : > { %v8916_v56 = vpop.f32.mrb[61].mxu1  ;;  %v2141_v62 = vmul.f32 0.17677669, %v8914_v52 }
 0x5bb   : > { %v6507_v24 = vpop.f32.mrb[62].mxu1  ;;  %v2139_v52 = vmul.f32 0.17677669, %v8916_v56 }
 0x5bc   : > { %v2116_v10 = vpop.f32.mrb[63].mxu1  ;;  %2519 = vrot.lane.b32.xlu1 %v8563_v30, %s7913_s23 }
 0x5bd   : > { %v2140_v13 = vmul.f32 0.17677669, %v2116_v10  ;;  %2185 = vmax.xlane.f32.xlu0 %v2184_v51 }
 0x5bf   : > { %v8927_v29 = vadd.f32 %v2140_v13, %v8837_v9 }
 0x5c1   : > { %v2196_v34 = vsel %vm1622_vm3, %v8927_v29, -inf }
 0x5c2   : > { %v1631_v24 = vpop.xlane.xlu0 %1630  ;;  %2197 = vmax.xlane.f32.xlu0 %v2196_v34 }
 0x5c5   : > { %v1628_v46 = vpop.xlane.xlu1 %1627 }
 0x5c6   : > { %v8933_v20 = vpop.xlane.xlu0 %1624  ;;  %v1669_v30 = vsub.f32 %v8768_v12, %v1628_v46 }
 0x5c8   : > { %v1685_v51 = vmul.f32 1.442695, %v1669_v30 }
 0x5ca   : > { %v1634_v26 = vpop.xlane.xlu0 %1633 }
 0x5cb   : > { %v1671_v10 = vsub.f32 %v8777_v28, %v1634_v26  ;;  %v2131_v28 = vmul.f32 0.17677669, %v8876_v36 }
 0x5cd   : > { %v1689_v54 = vmul.f32 1.442695, %v1671_v10 }
 0x5ce   : > { %v1643_v60 = vpop.xlane.xlu0 %1642 }
 0x5cf   : > { %7171 = vpow2.f32 %v1689_v54  ;;  %v1674_v9 = vsub.f32 %v8791_v6, %v1643_v60 }
 0x5d0   : > { %7173 = vpow2.f32 %v1685_v51 }
 0x5d1   : > { %v1695_v13 = vmul.f32 1.442695, %v1674_v9 }
 0x5d2   : > { %v1637_v21 = vpop.xlane.xlu0 %1636 }
 0x5d3   : > { %v1672_v45 = vsub.f32 %v8803_v7, %v1637_v21  ;;  %7175 = vpow2.f32 %v1695_v13 }
 0x5d5   : > { %v1691_v34 = vmul.f32 1.442695, %v1672_v45  ;;  %v8949_v45 = vadd.f32 %v2133_v35, %v8781_v14  ;;  %v1646_v35 = vpop.xlane.xlu1 %1645  ;;  %v1670_v14 = vsub.f32 %v8758_v63, %v1631_v24  ;;  %v1668_v24 = vsub.f32 %v8765_v8, %v8933_v20 }
 0x5d6   : > { %v1655_v40 = vpop.xlane.xlu0 %1654  ;;  %v1675_v20 = vsub.f32 %v8788_v53, %v1646_v35  ;;  %v9004_v35 = vadd.f32 %v2139_v52, %v8847_v0 }
 0x5d7   : > { %v1678_v46 = vsub.f32 %v8819_v5, %v1655_v40  ;;  %7177 = vpow2.f32 %v1691_v34  ;;  %v2175_v36 = vsel %vm1622_vm3, %v8949_v45, -inf  ;;  %v8973_v34 = vadd.f32 %v2137_v48, %v8807_v49 }
 0x5d8   : > { %v1687_v63 = vmul.f32 1.442695, %v1670_v14  ;;  %v1697_v48 = vmul.f32 1.442695, %v1675_v20 }
 0x5d9   : > { %v8940_v12 = vpop.eup %7171  ;;  %v1703_v30 = vmul.f32 1.442695, %v1678_v46  ;;  %v2187_v49 = vsel %vm1622_vm3, %v8973_v34, -inf }
 0x5da   : > { %v1649_v26 = vpop.xlane.xlu0 %1648  ;;  %v1722_v54 = vsel %vm1622_vm3, %v8940_v12, 0.0  ;;  %v8944_v60 = vpop.eup %7173 }
 0x5db   : > { %v1676_v21 = vsub.f32 %v8831_v58, %v1649_v26  ;;  %1723 = vadd.xlane.f32.xlu0 %v1722_v54  ;;  %7179 = vpow2.f32 %v1703_v30  ;;  %v1716_v6 = vsel %vm1622_vm3, %v8944_v60, 0.0  ;;  %v8961_v58 = vadd.f32 %v2131_v28, %v8793_v17 }
 0x5dc   : > { %v8985_v54 = vadd.f32 %v2135_v37, %v8821_v57  ;;  %v1683_v28 = vmul.f32 1.442695, %v1668_v24  ;;  %v2193_v37 = vsel %vm1622_vm3, %v9004_v35, -inf }
 0x5dd   : > { %v1699_v5 = vmul.f32 1.442695, %v1676_v21  ;;  %v8955_v7 = vpop.eup %7175  ;;  %v2169_v17 = vsel %vm1622_vm3, %v8961_v58, -inf }
 0x5de   : > { %v8951_v40 = vpop.xlane.xlu0 %1666  ;;  %v1731_v51 = vsel %vm1622_vm3, %v8955_v7, 0.0 }
 0x5df   : > { %1717 = vadd.xlane.f32.xlu0 %v1716_v6  ;;  %7181 = vpow2.f32 %v1699_v5  ;;  %v2181_v5 = vsel %vm1622_vm3, %v8985_v54, -inf  ;;  %v8996_v6 = vadd.f32 %v2141_v62, %v8833_v59  ;;  %v1682_v24 = vsub.f32 %v8842_v42, %v8951_v40 }
 0x5e0   : > { %2176 = vmax.xlane.f32.xlu1 %v2175_v36 }
 0x5e1   : > { %v8966_v9 = vpop.eup %7177  ;;  %v2199_v56 = vsel %vm1622_vm3, %v8996_v6, -inf }
 0x5e2   : > { %v1661_v10 = vpop.xlane.xlu0 %1660  ;;  %v1725_v30 = vsel %vm1622_vm3, %v8966_v9, 0.0 }
 0x5e3   : > { %v1680_v13 = vsub.f32 %v8854_v50, %v1661_v10  ;;  %1732 = vadd.xlane.f32.xlu0 %v1731_v51  ;;  %v1640_v50 = vpop.xlane.xlu1 %1639 }
 0x5e4   : > { %2170 = vmax.xlane.f32.xlu1 %v2169_v17  ;;  %v1673_v53 = vsub.f32 %v8798_v15, %v1640_v50 }
 0x5e5   : > { %v1707_v46 = vmul.f32 1.442695, %v1680_v13  ;;  %v8979_v26 = vpop.eup %7179 }
 0x5e6   : > { %v1743_v8 = vsel %vm1622_vm3, %v8979_v26, 0.0  ;;  %v1693_v59 = vmul.f32 1.442695, %v1673_v53 }
 0x5e7   : > { %7183 = vpow2.f32 %v1707_v46  ;;  %1726 = vadd.xlane.f32.xlu0 %v1725_v30  ;;  %v1658_v57 = vpop.xlane.xlu1 %1657 }
 0x5e8   : > { %2188 = vmax.xlane.f32.xlu1 %v2187_v49  ;;  %7185 = vpow2.f32 %v1687_v63  ;;  %v1679_v10 = vsub.f32 %v8816_v2, %v1658_v57  ;;  %v1711_v49 = vmul.f32 1.442695, %v1682_v24 }
 0x5e9   : > { %v8990_v21 = vpop.eup %7181  ;;  %7187 = vpow2.f32 %v1683_v28 }
 0x5ea   : > { %v1737_v36 = vsel %vm1622_vm3, %v8990_v21, 0.0  ;;  %7189 = vpow2.f32 %v1697_v48  ;;  %v1705_v0 = vmul.f32 1.442695, %v1679_v10 }
 0x5eb   : > { %1744 = vadd.xlane.f32.xlu0 %v1743_v8  ;;  %v1652_v51 = vpop.xlane.xlu1 %1651  ;;  %7191 = vpow2.f32 %v1693_v59 }
 0x5ec   : > { %2182 = vmax.xlane.f32.xlu1 %v2181_v5  ;;  %v1677_v17 = vsub.f32 %v8826_v18, %v1652_v51  ;;  %7193 = vpow2.f32 %v1705_v0 }
 0x5ee   : > { %v1701_v2 = vmul.f32 1.442695, %v1677_v17 }
 0x5ef   : > { %1738 = vadd.xlane.f32.xlu0 %v1737_v36  ;;  %v1664_v30 = vpop.xlane.xlu1 %1663 }
 0x5f0   : > { %2200 = vmax.xlane.f32.xlu1 %v2199_v56  ;;  %7195 = vpow2.f32 %v1701_v2  ;;  %v1681_v18 = vsub.f32 %v8845_v22, %v1664_v30 }
 0x5f1   : > { %v9006_v14 = vpop.eup %7183  ;;  %7197 = vpow2.f32 %v1711_v49 }
 0x5f2   : > { %v1749_v15 = vsel %vm1622_vm3, %v9006_v14, 0.0  ;;  %v9013_v13 = vpop.eup %7185  ;;  %v1709_v8 = vmul.f32 1.442695, %v1681_v18 }
 0x5f3   : > { %1750 = vadd.xlane.f32.xlu0 %v1749_v15  ;;  %v1719_v46 = vsel %vm1622_vm3, %v9013_v13, 0.0  ;;  %v9018_v63 = vpop.eup %7187 }
 0x5f4   : > { %2194 = vmax.xlane.f32.xlu1 %v2193_v37  ;;  %v1713_v62 = vsel %vm1622_vm3, %v9018_v63, 0.0  ;;  %v9024_v50 = vpop.eup %7189  ;;  %7199 = vpow2.f32 %v1709_v8 }
 0x5f5   : > { %v1734_v28 = vsel %vm1622_vm3, %v9024_v50, 0.0  ;;  %v9029_v20 = vpop.eup %7191 }
 0x5f6   : > { %v1728_v42 = vsel %vm1622_vm3, %v9029_v20, 0.0  ;;  %v9033_v40 = vpop.eup %7193 }
 0x5f7   : > { %v1746_v52 = vsel %vm1622_vm3, %v9033_v40, 0.0 }
 0x5f8   : > { %1720 = vadd.xlane.f32.xlu1 %v1719_v46 }
 0x5fa   : > { %v9037_v22 = vpop.eup %7195 }
 0x5fb   : > { %v1740_v5 = vsel %vm1622_vm3, %v9037_v22, 0.0  ;;  %v9041_v57 = vpop.eup %7197 }
 0x5fc   : > { %1714 = vadd.xlane.f32.xlu1 %v1713_v62  ;;  %v1755_v48 = vsel %vm1622_vm3, %v9041_v57, 0.0 }
 0x5fe   : > { %v9045_v53 = vpop.eup %7199 }
 0x5ff   : > { %v1752_v36 = vsel %vm1622_vm3, %v9045_v53, 0.0 }
 0x600   : > { %1735 = vadd.xlane.f32.xlu1 %v1734_v28 }
 0x604   : > { %1729 = vadd.xlane.f32.xlu1 %v1728_v42 }
 0x608   : > { %1747 = vadd.xlane.f32.xlu1 %v1746_v52 }
 0x60c   : > { %1741 = vadd.xlane.f32.xlu1 %v1740_v5 }
 0x610   : > { %1756 = vadd.xlane.f32.xlu1 %v1755_v48 }
 0x614   : > { %1753 = vadd.xlane.f32.xlu1 %v1752_v36 }
 0x634   : > { %v2165_v56 = vpop.xlane.xlu1 %2164 }
 0x635   : > { %v2204_v59 = vsub.f32 %v8859_v11, %v2165_v56 }
 0x636   : > { %v2168_v10 = vpop.xlane.xlu0 %2167 }
 0x637   : > { %v2221_v15 = vmul.f32 1.442695, %v2204_v59  ;;  %v2205_v51 = vsub.f32 %v8866_v47, %v2168_v10 }
 0x638   : > { %v2159_v37 = vpop.xlane.xlu1 %2158 }
 0x639   : > { %7201 = vpow2.f32 %v2221_v15  ;;  %v2202_v0 = vsub.f32 %v8869_v55, %v2159_v37  ;;  %v2223_v17 = vmul.f32 1.442695, %v2205_v51 }
 0x63a   : > { %v2162_v46 = vpop.xlane.xlu0 %2161 }
 0x63b   : > { %v2217_v2 = vmul.f32 1.442695, %v2202_v0  ;;  %v2203_v24 = vsub.f32 %v8874_v39, %v2162_v46 }
 0x63c   : > { %v9075_v5 = vpop.permute.xlu1 %2519 }
 0x63d   : > { %7203 = vpow2.f32 %v2217_v2  ;;  %v2219_v30 = vmul.f32 1.442695, %v2203_v24 }
 0x63e   : > { %7205 = vpow2.f32 %v2223_v17  ;;  %v9069_v8 = vpop.xlane.xlu0 %2179 }
 0x63f   : > { %7207 = vpow2.f32 %v2219_v30 }
 0x642   : > { %v9071_v42 = vpop.xlane.xlu0 %2173 }
 0x643   : > { %v9053_v62 = vpop.eup %7201 }
 0x644   : > { %v2253_v11 = vsel %vm1622_vm3, %v9053_v62, 0.0 }
 0x645   : > { %2254 = vadd.xlane.f32.xlu1 %v2253_v11 }
 0x646   : > { %v9073_v52 = vpop.xlane.xlu0 %2191 }
 0x647   : > { %v9057_v47 = vpop.eup %7203 }
 0x648   : > { %v9059_v18 = vpop.eup %7205  ;;  %v2247_v55 = vsel %vm1622_vm3, %v9057_v47, 0.0 }
 0x649   : > { %v9063_v49 = vpop.eup %7207  ;;  %2248 = vadd.xlane.f32.xlu1 %v2247_v55  ;;  %v2256_v28 = vsel %vm1622_vm3, %v9059_v18, 0.0 }
 0x64a   : > { %v2250_v39 = vsel %vm1622_vm3, %v9063_v49, 0.0  ;;  %v9077_v48 = vpop.xlane.xlu0 %2185 }
 0x64b   : > { %2251 = vadd.xlane.f32.xlu0 %v2250_v39 }
 0x64d   : > { %2257 = vadd.xlane.f32.xlu1 %v2256_v28 }
 0x64f   : > { %v9081_v51 = vpop.xlane.xlu0 %2197 }
 0x668   : > { %v1724_v17 = vpop.xlane.xlu0 %1723 }
 0x66c   : > { %v1718_v24 = vpop.xlane.xlu0 %1717 }
 0x66d   : > { %v2177_v36 = vpop.xlane.xlu1 %2176 }
 0x66e   : > { %v2208_v56 = vsub.f32 %v8949_v45, %v2177_v36 }
 0x670   : > { %v2229_v59 = vmul.f32 1.442695, %v2208_v56  ;;  %v1733_v39 = vpop.xlane.xlu0 %1732 }
 0x671   : > { %v2171_v10 = vpop.xlane.xlu1 %2170 }
 0x672   : > { %7209 = vpow2.f32 %v2229_v59  ;;  %v2206_v15 = vsub.f32 %v8961_v58, %v2171_v10 }
 0x674   : > { %v2225_v37 = vmul.f32 1.442695, %v2206_v15  ;;  %v1727_v36 = vpop.xlane.xlu0 %1726 }
 0x675   : > { %v9083_v0 = vpop.xlane.xlu1 %2188 }
 0x676   : > { %7211 = vpow2.f32 %v2225_v37 }
 0x678   : > { %v1745_v10 = vpop.xlane.xlu0 %1744 }
 0x679   : > { %v9085_v46 = vpop.xlane.xlu1 %2182 }
 0x67c   : > { %v9087_v2 = vpop.eup %7209 }
 0x67d   : > { %11262 = vst [vmem:[#allocation58_spill] sm:$0xff] %v9087_v2  ;;  %v9089_v30 = vpop.xlane.xlu1 %2200  ;;  %v2265_v45 = vsel %vm1622_vm3, %v9087_v2, 0.0 }
 0x67e   : > { %2266 = vadd.xlane.f32.xlu0 %v2265_v45 }
 0x680   : > { %v9093_v11 = vpop.eup %7211 }
 0x681   : > { %v9095_v58 = vpop.xlane.xlu1 %2194  ;;  %v2259_v55 = vsel %vm1622_vm3, %v9093_v11, 0.0 }
 0x682   : > { %2260 = vadd.xlane.f32.xlu1 %v2259_v55 }
 0x685   : > { %v1721_v28 = vpop.xlane.xlu1 %1720 }
 0x686   : > { %7213 = vrcp.f32 %v1721_v28 }
 0x687   : > { %7215 = vrcp.f32 %v1718_v24 }
 0x688   : > { %7217 = vrcp.f32 %v1724_v17  ;;  %v1739_v17 = vpop.xlane.xlu0 %1738 }
 0x689   : > { %v1715_v56 = vpop.xlane.xlu1 %1714 }
 0x68a   : > { %7219 = vrcp.f32 %v1715_v56 }
 0x68d   : > { %v1736_v59 = vpop.xlane.xlu1 %1735 }
 0x68e   : > { %7221 = vrcp.f32 %v1736_v59 }
 0x68f   : > { %7223 = vrcp.f32 %v1727_v36 }
 0x690   : > { %v7214_v15 = vpop.eup %7213  ;;  %7225 = vrcp.f32 %v1733_v39 }
 0x691   : > { %v1730_v37 = vpop.xlane.xlu1 %1729  ;;  %v7216_v45 = vpop.eup %7215  ;;  %v1790_v24 = vmul.f32 %v7214_v15, %v9013_v13 }
 0x692   : > { %7227 = vrcp.f32 %v1730_v37  ;;  %v7218_v2 = vpop.eup %7217  ;;  %v1789_v36 = vmul.f32 %v7216_v45, %v8944_v60 }
 0x693   : > { %2521 = vrot.lane.b32.xlu1 %v8583_v61, %s7913_s23  ;;  %v1791_v39 = vmul.f32 %v7218_v2, %v8940_v12  ;;  %v1751_v2 = vpop.xlane.xlu0 %1750 }
 0x694   : > { %v7220_v55 = vpop.eup %7219  ;;  %2523 = vrot.lane.b32.xlu0 %v8603_v25, %s7913_s23 }
 0x695   : > { %v1748_v28 = vpop.xlane.xlu1 %1747  ;;  %v1788_v56 = vmul.f32 %v7220_v55, %v9018_v63  ;;  %v1804_v37 = vpack.c.bf16 %v1791_v39, %v1790_v24 }
 0x696   : > { %7229 = vrcp.f32 %v1748_v28 }
 0x697   : > { %v1803_v59 = vpack.c.bf16 %v1789_v36, %v1788_v56  ;;  %7231 = vrcp.f32 %v1739_v17  ;;  %v2207_v56 = vsub.f32 %v8892_v4, %v9071_v42  ;;  %v2210_v42 = vsub.f32 %v8985_v54, %v9085_v46 }
 0x698   : > { %2525 = vrot.lane.b32.xlu0 %v8623_v44, %s7913_s23  ;;  %v7222_v61 = vpop.eup %7221  ;;  %7233 = vrcp.f32 %v1745_v10 }
 0x699   : > { %6460 = vmatprep.mubr.msk.bf16.mxu0 %vm1622_vm3, %v1803_v59  ;;  %v1742_v13 = vpop.xlane.xlu1 %1741  ;;  %v7224_v15 = vpop.eup %7223  ;;  %v1795_v60 = vmul.f32 %v7222_v61, %v9024_v50  ;;  %v2209_v61 = vsub.f32 %v8885_v32, %v9069_v8 }
 0x69a   : > { %7235 = vrcp.f32 %v1742_v13  ;;  %6461 = vmatmul.mubr.msk.bf16.vlgmr.msra.gmra.mrb[40].mxu0 %vm1622_vm3, %v1804_v37  ;;  %v7226_v63 = vpop.eup %7225  ;;  %v1792_v55 = vmul.f32 %v7224_v15, %v8966_v9  ;;  %v2213_v15 = vsub.f32 %v8905_v19, %v9073_v52 }
 0x69b   : > { %6509 = vmatpush3.bf16.msra.mxu0 %v8745_v41  ;;  %v1794_v24 = vmul.f32 %v7226_v63, %v8955_v7  ;;  %v2231_v8 = vmul.f32 1.442695, %v2209_v61  ;;  %v2233_v63 = vmul.f32 1.442695, %v2210_v42  ;;  %v11273_v42 = vld [vmem:[#allocation41_spill] sm:$0xff] }
 0x69c   : > { %v7228_v12 = vpop.eup %7227  ;;  %6510 = vmatprep.subr.bf16.mxu0 %v8887_v3 }
 0x69d   : > { %v1757_v45 = vpop.xlane.xlu1 %1756  ;;  %v1793_v10 = vmul.f32 %v7228_v12, %v9029_v20  ;;  %v1806_v41 = vpack.c.bf16 %v1795_v60, %v1794_v24  ;;  %v2215_v20 = vsub.f32 %v8927_v29, %v9081_v51  ;;  %v2214_v60 = vsub.f32 %v9004_v35, %v9095_v58  ;;  %v11263_v35 = vld [vmem:[#allocation55_spill] sm:$0xff] }
 0x69e   : > { %7237 = vrcp.f32 %v1757_v45 }
 0x69f   : > { %6511 = vmatpush3.bf16.msra.mxu0 %v8887_v3  ;;  %v1805_v17 = vpack.c.bf16 %v1793_v10, %v1792_v55  ;;  %7239 = vrcp.f32 %v1751_v2  ;;  %v2243_v29 = vmul.f32 1.442695, %v2215_v20  ;;  %v2241_v55 = vmul.f32 1.442695, %v2214_v60 }
 0x6a0   : > { %6512 = vmatprep.subr.bf16.mxu0 %v8861_v43  ;;  %v7230_v28 = vpop.eup %7229 }
 0x6a1   : > { %6464 = vmatprep.mubr.msk.bf16.mxu0 %vm1622_vm3, %v1805_v17  ;;  %v1754_v50 = vpop.xlane.xlu1 %1753  ;;  %v7232_v9 = vpop.eup %7231  ;;  %v1799_v32 = vmul.f32 %v7230_v28, %v9033_v40  ;;  %v2212_v40 = vsub.f32 %v8973_v34, %v9083_v0 }
 0x6a2   : > { %7241 = vrcp.f32 %v1754_v50  ;;  %6465 = vmatmul.mubr.msk.bf16.gmra.mrb[44].mxu0 %vm1622_vm3, %v1806_v41  ;;  %v7234_v3 = vpop.eup %7233  ;;  %v1796_v36 = vmul.f32 %v7232_v9, %v8990_v21  ;;  %v11264_v41 = vld [vmem:[#allocation48_spill] sm:$0xff] }
 0x6a3   : > { %6513 = vmatpush3.bf16.msra.mxu0 %v8861_v43  ;;  %v1798_v51 = vmul.f32 %v7234_v3, %v8979_v26  ;;  %v2227_v43 = vmul.f32 1.442695, %v2207_v56  ;;  %7243 = vpow2.f32 %v2231_v8  ;;  %v11265_v50 = vld [vmem:[#allocation56_spill] sm:$0xff]  ;;  %v11266_v3 = vld [vmem:[#allocation38_spill] sm:$0xff] }
 0x6a4   : > { %v7236_v7 = vpop.eup %7235  ;;  %6514 = vmatprep.subr.bf16.mxu0 %v8902_v16  ;;  %7245 = vpow2.f32 %v2243_v29 }
 0x6a5   : > { %v1797_v39 = vmul.f32 %v7236_v7, %v9037_v22  ;;  %v1808_v37 = vpack.c.bf16 %v1799_v32, %v1798_v51  ;;  %7247 = vpow2.f32 %v2227_v43  ;;  %v2237_v22 = vmul.f32 1.442695, %v2212_v40  ;;  %v11267_v32 = vld [vmem:[#allocation44_spill] sm:$0xff] }
 0x6a7   : > { %6515 = vmatpush3.bf16.msra.mxu0 %v8902_v16  ;;  %v1807_v59 = vpack.c.bf16 %v1797_v39, %v1796_v36  ;;  %7249 = vpow2.f32 %v2237_v22  ;;  %v11268_v36 = vld [vmem:[#allocation53_spill] sm:$0xff]  ;;  %v2556_v22 = vsel %vm1447_vm1, %v8931_v31, 0 }
 0x6a8   : > { %6516 = vmatprep.subr.bf16.mxu0 %v8880_v23  ;;  %v7238_v4 = vpop.eup %7237  ;;  %7251 = vpow2.f32 %v2233_v63  ;;  %v11279_v63 = vld [vmem:[#allocation50_spill] sm:$0xff] }
 0x6a9   : > { %6468 = vmatprep.mubr.msk.bf16.mxu0 %vm1622_vm3, %v1807_v59  ;;  %v7240_v21 = vpop.eup %7239  ;;  %v1802_v16 = vmul.f32 %v7238_v4, %v9041_v57  ;;  %v2211_v57 = vsub.f32 %v8912_v27, %v9077_v48  ;;  %v2216_v48 = vsub.f32 %v8996_v6, %v9089_v30 }
 0x6aa   : > { %6469 = vmatmul.mubr.msk.bf16.gmra.mrb[48].mxu0 %vm1622_vm3, %v1808_v37  ;;  %v1800_v34 = vmul.f32 %v7240_v21, %v9006_v14 }
 0x6ab   : > { %6517 = vmatpush3.bf16.msra.mxu0 %v8880_v23  ;;  %v1810_v23 = vpack.c.bf16 %v1802_v16, %v1802_v16  ;;  %v2235_v27 = vmul.f32 1.442695, %v2211_v57  ;;  %v2245_v12 = vmul.f32 1.442695, %v2216_v48  ;;  %v11269_v16 = vld [vmem:[#allocation52_spill] sm:$0xff] }
 0x6ac   : > { %v7242_v26 = vpop.eup %7241  ;;  %6518 = vmatprep.subr.bf16.mxu0 %v8896_v1 }
 0x6ad   : > { %v1801_v0 = vmul.f32 %v7242_v26, %v9045_v53  ;;  %v9152_v54 = vpop.eup %7243  ;;  %v2401_v53 = vsel %vm1835_vm2, %v8907_v38, 0 }
 0x6ae   : > { %v9155_v14 = vpop.eup %7245  ;;  %v2268_v52 = vsel %vm1622_vm3, %v9152_v54, 0.0 }
 0x6af   : > { %6519 = vmatpush3.bf16.msra.mxu0 %v8896_v1  ;;  %v1809_v13 = vpack.c.bf16 %v1801_v0, %v1800_v34  ;;  %v2239_v1 = vmul.f32 1.442695, %v2213_v15  ;;  %v9161_v19 = vpop.eup %7247  ;;  %v2562_v34 = vsel %vm1447_vm1, %v9075_v5, 0  ;;  %v11275_v0 = vld [vmem:[#allocation47_spill] sm:$0xff]  ;;  %v11278_v15 = vld [vmem:[#allocation46_spill] sm:$0xff] }
 0x6b0   : > { %6520 = vmatprep.subr.bf16.mxu0 %v8918_v33 }
 0x6b1   : > { %6472 = vmatprep.mubr.msk.bf16.mxu0 %vm1622_vm3, %v1809_v13  ;;  %7253 = vpow2.f32 %v2239_v1  ;;  %v9175_v46 = vpop.eup %7249  ;;  %v11276_v13 = vld [vmem:[#allocation51_spill] sm:$0xff] }
 0x6b2   : > { %6473 = vmatmul.mubr.msk.bf16.gmra.mrb[52].mxu0 %vm1622_vm3, %v1810_v23  ;;  %7255 = vpow2.f32 %v2235_v27  ;;  %v2277_v2 = vsel %vm1622_vm3, %v9175_v46, 0.0  ;;  %v9181_v45 = vpop.eup %7251  ;;  %v11277_v23 = vld [vmem:[#allocation40_spill] sm:$0xff]  ;;  %v11281_v27 = vld [vmem:[#allocation54_spill] sm:$0xff] }
 0x6b3   : > { %6521 = vmatpush3.bf16.msra.mxu0 %v8918_v33  ;;  %v2286_v33 = vsel %vm1622_vm3, %v9155_v14, 0.0  ;;  %7257 = vpow2.f32 %v2245_v12  ;;  %v2271_v6 = vsel %vm1622_vm3, %v9181_v45, 0.0 }
 0x6b4   : > { %6733 = vmatprep.subr.msk.bf16.mxu0 %vm1835_vm2, %v8907_v38  ;;  %v2262_v38 = vsel %vm1622_vm3, %v9161_v19, 0.0  ;;  %7259 = vpow2.f32 %v2241_v55 }
 0x6b7   : > { %6523 = vmatpush3.bf16.msra.mxu0 %v2401_v53  ;;  %2269 = vadd.xlane.f32.xlu0 %v2268_v52 }
 0x6b8   : > { %2287 = vadd.xlane.f32.xlu1 %v2286_v33  ;;  %6734 = vmatprep.subr.msk.bf16.mxu0 %vm1447_vm1, %v8931_v31  ;;  %v11274_v31 = vld [vmem:[#allocation43_spill] sm:$0xff] }
 0x6bb   : > { %2263 = vadd.xlane.f32.xlu0 %v2262_v38  ;;  %v9185_v30 = vpop.eup %7253 }
 0x6bc   : > { %v2280_v10 = vsel %vm1622_vm3, %v9185_v30, 0.0  ;;  %v9189_v24 = vpop.eup %7255 }
 0x6bd   : > { %v2274_v58 = vsel %vm1622_vm3, %v9189_v24, 0.0  ;;  %v9195_v17 = vpop.eup %7257 }
 0x6be   : > { %v2289_v28 = vsel %vm1622_vm3, %v9195_v17, 0.0  ;;  %v9201_v61 = vpop.eup %7259 }
 0x6bf   : > { %2278 = vadd.xlane.f32.xlu0 %v2277_v2  ;;  %v2283_v20 = vsel %vm1622_vm3, %v9201_v61, 0.0 }
 0x6c3   : > { %2272 = vadd.xlane.f32.xlu0 %v2271_v6 }
 0x6c7   : > { %2281 = vadd.xlane.f32.xlu0 %v2280_v10 }
 0x6c9   : > { %2529 = vrot.lane.b32.xlu1 %v11263_v35, %s7913_s23 }
 0x6cb   : > { %2275 = vadd.xlane.f32.xlu0 %v2274_v58 }
 0x6cd   : > { %2509 = vrot.lane.b32.xlu1 %v11264_v41, %s7913_s23 }
 0x6cf   : > { %2290 = vadd.xlane.f32.xlu0 %v2289_v28 }
 0x6d1   : > { %2513 = vrot.lane.b32.xlu1 %v11265_v50, %s7913_s23 }
 0x6d2   : > { %v2255_v9 = vpop.xlane.xlu1 %2254 }
 0x6d3   : > { %2284 = vadd.xlane.f32.xlu0 %v2283_v20 }
 0x6d5   : > { %2895 = vrot.lane.b32.xlu1 %v11266_v3, %s7913_s23 }
 0x6d6   : > { %v2249_v7 = vpop.xlane.xlu1 %2248 }
 0x6d7   : > { %7261 = vrcp.f32 %v2249_v7 }
 0x6d8   : > { %7263 = vrcp.f32 %v2255_v9  ;;  %v2252_v56 = vpop.xlane.xlu0 %2251 }
 0x6d9   : > { %7265 = vrcp.f32 %v2252_v56  ;;  %2899 = vrot.lane.b32.xlu1 %v11267_v32, %s7913_s23 }
 0x6da   : > { %v2258_v8 = vpop.xlane.xlu1 %2257 }
 0x6db   : > { %7267 = vrcp.f32 %v2258_v8 }
 0x6dd   : > { %2905 = vrot.lane.b32.xlu1 %v11268_v36, %s7913_s23 }
 0x6e1   : > { %v7262_v39 = vpop.eup %7261 }
 0x6e2   : > { %v7264_v29 = vpop.eup %7263  ;;  %v2322_v59 = vmul.f32 %v7262_v39, %v9057_v47  ;;  %v11270_v47 = vld [vmem:[#allocation57_spill] sm:$0xff]  ;;  %v11282_v39 = vld [vmem:[#allocation58_spill] sm:$0xff] }
 0x6e3   : > { %v7266_v51 = vpop.eup %7265  ;;  %v2324_v4 = vmul.f32 %v7264_v29, %v9053_v62  ;;  %v11271_v62 = vld [vmem:[#allocation35_spill] sm:$0xff] }
 0x6e4   : > { %v2323_v43 = vmul.f32 %v7266_v51, %v9063_v49  ;;  %v2559_v49 = vsel %vm1447_vm1, %v11270_v47, 0 }
 0x6e5   : > { %v7268_v37 = vpop.eup %7267 }
 0x6e6   : > { %v2325_v40 = vmul.f32 %v7268_v37, %v9059_v18  ;;  %v2337_v21 = vpack.c.bf16 %v2323_v43, %v2322_v59  ;;  %v11272_v18 = vld [vmem:[#allocation37_spill] sm:$0xff] }
 0x6e8   : > { %v2338_v26 = vpack.c.bf16 %v2325_v40, %v2324_v4  ;;  %6524 = vmatprep.mubr.msk.bf16.mxu0 %vm1622_vm3, %v2337_v21 }
 0x6e9   : > { %2527 = vrot.lane.b32.xlu0 %v11269_v16, %s7913_s23 }
 0x6ea   : > { %6525 = vmatmul.mubr.msk.bf16.vlgmr.msra.gmra.mrb[56].mxu0 %vm1622_vm3, %v2338_v26 }
 0x6eb   : > { %6541 = vmatpush3.bf16.xpose.msra.mxu0 %v2556_v22 }
 0x6ec   : > { %6735 = vmatprep.subr.msk.bf16.mxu0 %vm1447_vm1, %v11270_v47 }
 0x6ed   : > { %2499 = vrot.lane.b32.xlu0 %v11271_v62, %s7913_s23 }
 0x6f1   : > { %2501 = vrot.lane.b32.xlu0 %v11272_v18, %s7913_s23 }
 0x6f3   : > { %6543 = vmatpush3.bf16.xpose.msra.mxu0 %v2559_v49 }
 0x6f4   : > { %6736 = vmatprep.subr.msk.bf16.mxu0 %vm1447_vm1, %v9075_v5  ;;  %v11280_v5 = vld [vmem:[#allocation49_spill] sm:$0xff] }
 0x6f5   : > { %2503 = vrot.lane.b32.xlu0 %v11273_v42, %s7913_s23 }
 0x6f9   : > { %2505 = vrot.lane.b32.xlu0 %v11274_v31, %s7913_s23 }
 0x6fb   : > { %6545 = vmatpush3.bf16.xpose.msra.mxu0 %v2562_v34 }
 0x6fd   : > { %2507 = vrot.lane.b32.xlu0 %v11275_v0, %s7913_s23 }
 0x701   : > { %2511 = vrot.lane.b32.xlu0 %v11276_v13, %s7913_s23 }
 0x705   : > { %2893 = vrot.lane.b32.xlu0 %v11277_v23, %s7913_s23 }
 0x709   : > { %2897 = vrot.lane.b32.xlu0 %v11278_v15, %s7913_s23 }
 0x70b   : > { %v2267_v1 = vpop.xlane.xlu0 %2266 }
 0x70d   : > { %2901 = vrot.lane.b32.xlu0 %v11279_v63, %s7913_s23 }
 0x70f   : > { %v2261_v57 = vpop.xlane.xlu1 %2260  ;;  %v2524_v33 = vpop.permute.xlu0 %2523 }
 0x710   : > { %v2568_v48 = vsel %vm1447_vm1, %v2524_v33, 0 }
 0x711   : > { %2903 = vrot.lane.b32.xlu0 %v11280_v5, %s7913_s23 }
 0x713   : > { %v2522_v53 = vpop.permute.xlu1 %2521  ;;  %v2526_v38 = vpop.permute.xlu0 %2525 }
 0x714   : > { %6737 = vmatprep.subr.msk.bf16.mxu0 %vm1447_vm1, %v2522_v53  ;;  %v2565_v52 = vsel %vm1447_vm1, %v2522_v53, 0  ;;  %v2571_v12 = vsel %vm1447_vm1, %v2526_v38, 0 }
 0x715   : > { %2907 = vrot.lane.b32.xlu0 %v11281_v27, %s7913_s23  ;;  %6547 = vmatpush3.bf16.xpose.msra.mxu0 %v2565_v52 }
 0x716   : > { %6738 = vmatprep.subr.msk.bf16.mxu0 %vm1447_vm1, %v2524_v33 }
 0x71d   : > { %6549 = vmatpush3.bf16.xpose.msra.mxu0 %v2568_v48 }
 0x71e   : > { %6739 = vmatprep.subr.msk.bf16.mxu0 %vm1447_vm1, %v2526_v38 }
 0x725   : > { %6551 = vmatpush3.bf16.xpose.msra.mxu0 %v2571_v12 }
 0x744   : > { %v2270_v60 = vpop.xlane.xlu0 %2269 }
 0x745   : > { %7269 = vrcp.f32 %v2270_v60  ;;  %v2288_v37 = vpop.xlane.xlu1 %2287 }
 0x746   : > { %7271 = vrcp.f32 %v2261_v57 }
 0x747   : > { %7273 = vrcp.f32 %v2267_v1 }
 0x748   : > { %v2264_v2 = vpop.xlane.xlu0 %2263 }
 0x749   : > { %7275 = vrcp.f32 %v2264_v2  ;;  %v2530_v57 = vpop.permute.xlu1 %2529 }
 0x74a   : > { %v2577_v2 = vsel %vm1447_vm1, %v2530_v57, 0 }
 0x74c   : > { %v2279_v55 = vpop.xlane.xlu0 %2278 }
 0x74f   : > { %v7270_v6 = vpop.eup %7269 }
 0x750   : > { %v2273_v10 = vpop.xlane.xlu0 %2272  ;;  %v7272_v58 = vpop.eup %7271  ;;  %v2329_v20 = vmul.f32 %v7270_v6, %v9152_v54 }
 0x751   : > { %v7274_v28 = vpop.eup %7273  ;;  %v2326_v56 = vmul.f32 %v7272_v58, %v9093_v11 }
 0x752   : > { %v2328_v29 = vmul.f32 %v7274_v28, %v11282_v39 }
 0x753   : > { %v7276_v9 = vpop.eup %7275 }
 0x754   : > { %v2282_v7 = vpop.xlane.xlu0 %2281  ;;  %v2327_v8 = vmul.f32 %v7276_v9, %v9161_v19  ;;  %v2340_v59 = vpack.c.bf16 %v2329_v20, %v2328_v29 }
 0x755   : > { %7277 = vrcp.f32 %v2282_v7 }
 0x756   : > { %v2339_v51 = vpack.c.bf16 %v2327_v8, %v2326_v56  ;;  %7279 = vrcp.f32 %v2273_v10 }
 0x757   : > { %7281 = vrcp.f32 %v2279_v55 }
 0x758   : > { %v2276_v43 = vpop.xlane.xlu0 %2275  ;;  %6528 = vmatprep.mubr.msk.bf16.mxu0 %vm1622_vm3, %v2339_v51 }
 0x759   : > { %7283 = vrcp.f32 %v2276_v43  ;;  %6529 = vmatmul.mubr.msk.bf16.gmra.mrb[60].mxu0 %vm1622_vm3, %v2340_v59 }
 0x75c   : > { %v2291_v54 = vpop.xlane.xlu0 %2290 }
 0x75d   : > { %7285 = vrcp.f32 %v2291_v54 }
 0x75e   : > { %7287 = vrcp.f32 %v2288_v37 }
 0x75f   : > { %v7278_v11 = vpop.eup %7277 }
 0x760   : > { %v2285_v4 = vpop.xlane.xlu0 %2284  ;;  %v7280_v19 = vpop.eup %7279  ;;  %v2333_v26 = vmul.f32 %v7278_v11, %v9185_v30 }
 0x761   : > { %7289 = vrcp.f32 %v2285_v4  ;;  %v7282_v40 = vpop.eup %7281  ;;  %v2330_v47 = vmul.f32 %v7280_v19, %v9181_v45 }
 0x762   : > { %v2332_v1 = vmul.f32 %v7282_v40, %v9175_v46 }
 0x763   : > { %v7284_v21 = vpop.eup %7283 }
 0x764   : > { %v2528_v22 = vpop.permute.xlu0 %2527  ;;  %v2331_v49 = vmul.f32 %v7284_v21, %v9189_v24  ;;  %v2342_v52 = vpack.c.bf16 %v2333_v26, %v2332_v1 }
 0x765   : > { %6740 = vmatprep.subr.msk.bf16.mxu0 %vm1447_vm1, %v2528_v22  ;;  %v2574_v34 = vsel %vm1447_vm1, %v2528_v22, 0 }
 0x766   : > { %6553 = vmatpush3.bf16.xpose.msra.mxu0 %v2574_v34  ;;  %v2341_v53 = vpack.c.bf16 %v2331_v49, %v2330_v47 }
 0x767   : > { %6741 = vmatprep.subr.msk.bf16.mxu0 %vm1447_vm1, %v2530_v57  ;;  %v7286_v33 = vpop.eup %7285 }
 0x768   : > { %v2500_v48 = vpop.permute.xlu0 %2499  ;;  %6532 = vmatprep.mubr.msk.bf16.mxu0 %vm1622_vm3, %v2341_v53  ;;  %v7288_v30 = vpop.eup %7287  ;;  %v2336_v24 = vmul.f32 %v7286_v33, %v9195_v17 }
 0x769   : > { %6533 = vmatmul.mubr.msk.bf16.gmra.mrb[64].mxu0 %vm1622_vm3, %v2342_v52  ;;  %v2335_v46 = vmul.f32 %v7288_v30, %v9155_v14 }
 0x76a   : > { %v2344_v58 = vpack.c.bf16 %v2336_v24, %v2336_v24 }
 0x76b   : > { %v7290_v45 = vpop.eup %7289 }
 0x76c   : > { %v2502_v38 = vpop.permute.xlu0 %2501  ;;  %v2334_v12 = vmul.f32 %v7290_v45, %v9201_v61  ;;  %v2510_v61 = vpop.permute.xlu1 %2509 }
 0x76d   : > { %v9277_v60 = vpop.f32.mrb[40].mxu0 }
 0x76e   : > { %11283 = vst [vmem:[#allocation55_spill] sm:$0xff] %v9277_v60  ;;  %v9280_v55 = vpop.f32.mrb[41].mxu0  ;;  %6555 = vmatpush3.bf16.xpose.msra.mxu0 %v2577_v2  ;;  %v2343_v6 = vpack.c.bf16 %v2335_v46, %v2334_v12  ;;  %v9369_v46 = vld [vmem:[#allocation14] sm:$0xff]  ;;  %v9448_v60 = vld [vmem:[#allocation14 + $0x48] sm:$0xff] }
 0x76f   : > { %11284 = vst [vmem:[#allocation48_spill] sm:$0xff] %v9280_v55  ;;  %v9282_v10 = vpop.f32.mrb[42].mxu0  ;;  %v9434_v55 = vld [vmem:[#allocation14 + $0x58] sm:$0xff] }
 0x770   : > { %11285 = vst [vmem:[#allocation56_spill] sm:$0xff] %v9282_v10  ;;  %v2504_v28 = vpop.permute.xlu0 %2503  ;;  %v9284_v9 = vpop.f32.mrb[43].mxu0  ;;  %6536 = vmatprep.mubr.msk.bf16.mxu0 %vm1622_vm3, %v2343_v6  ;;  %v9462_v10 = vld [vmem:[#allocation14 + $0x68] sm:$0xff] }
 0x771   : > { %11286 = vst [vmem:[#allocation38_spill] sm:$0xff] %v9284_v9  ;;  %6537 = vmatmul.mubr.msk.bf16.gmra.mrb[68].mxu0 %vm1622_vm3, %v2344_v58  ;;  %v2514_v39 = vpop.permute.xlu1 %2513 }
 0x772   : > { %6556 = vmatprep.mubr.msk.bf16.mxu0 %vm1447_vm1, %v2500_v48 }
 0x774   : > { %v2506_v14 = vpop.permute.xlu0 %2505 }
 0x775   : > { %v9289_v17 = vpop.f32.mrb[44].mxu0  ;;  %v2896_v11 = vpop.permute.xlu1 %2895 }
 0x776   : > { %11287 = vst [vmem:[#allocation44_spill] sm:$0xff] %v9289_v17  ;;  %v9291_v20 = vpop.f32.mrb[45].mxu0 }
 0x777   : > { %11288 = vst [vmem:[#allocation53_spill] sm:$0xff] %v9291_v20  ;;  %v9293_v7 = vpop.f32.mrb[46].mxu0 }
 0x778   : > { %11289 = vst [vmem:[#allocation52_spill] sm:$0xff] %v9293_v7  ;;  %v2508_v56 = vpop.permute.xlu0 %2507  ;;  %v9295_v8 = vpop.f32.mrb[47].mxu0  ;;  %v9396_v7 = vld [vmem:[#allocation14 + $0x30] sm:$0xff] }
 0x779   : > { %11290 = vst [vmem:[#allocation57_spill] sm:$0xff] %v9295_v8  ;;  %6557 = vmatmul.mubr.msk.bf16.vlgmr.msra.gmra.mrb[72].mxu0 %vm1447_vm1, %v2502_v38  ;;  %v2900_v22 = vpop.permute.xlu1 %2899 }
 0x77a   : > { %6560 = vmatprep.mubr.msk.bf16.mxu0 %vm1447_vm1, %v2504_v28 }
 0x77c   : > { %v2512_v29 = vpop.permute.xlu0 %2511 }
 0x77d   : > { %v9299_v51 = vpop.f32.mrb[48].mxu0  ;;  %v2906_v34 = vpop.permute.xlu1 %2905 }
 0x77e   : > { %11291 = vst [vmem:[#allocation35_spill] sm:$0xff] %v9299_v51  ;;  %v9301_v59 = vpop.f32.mrb[49].mxu0 }
 0x77f   : > { %11292 = vst [vmem:[#allocation37_spill] sm:$0xff] %v9301_v59  ;;  %v9303_v43 = vpop.f32.mrb[50].mxu0 }
 0x780   : > { %11293 = vst [vmem:[#allocation41_spill] sm:$0xff] %v9303_v43  ;;  %v2894_v37 = vpop.permute.xlu0 %2893  ;;  %v9305_v54 = vpop.f32.mrb[51].mxu0 }
 0x781   : > { %11294 = vst [vmem:[#allocation43_spill] sm:$0xff] %v9305_v54  ;;  %6561 = vmatmul.mubr.msk.bf16.gmra.mrb[76].mxu0 %vm1447_vm1, %v2506_v14  ;;  %6572 = vmatprep.subr.bf16.mxu1 %v2894_v37 }
 0x782   : > { %6564 = vmatprep.mubr.msk.bf16.mxu0 %vm1447_vm1, %v2508_v56  ;;  %6573 = vmatpush3.bf16.msra.mxu1 %v2894_v37 }
 0x783   : > { %6574 = vmatprep.subr.bf16.mxu1 %v2896_v11 }
 0x784   : > { %v2898_v19 = vpop.permute.xlu0 %2897 }
 0x785   : > { %v9309_v4 = vpop.f32.mrb[52].mxu0 }
 0x786   : > { %11295 = vst [vmem:[#allocation47_spill] sm:$0xff] %v9309_v4  ;;  %v9311_v40 = vpop.f32.mrb[53].mxu0  ;;  %6575 = vmatpush3.bf16.msra.mxu1 %v2896_v11 }
 0x787   : > { %11296 = vst [vmem:[#allocation51_spill] sm:$0xff] %v9311_v40  ;;  %v6475_v21 = vpop.f32.mrb[54].mxu0  ;;  %6576 = vmatprep.subr.bf16.mxu1 %v2898_v19 }
 0x788   : > { %v9313_v26 = vpop.f32.mrb[55].mxu0  ;;  %v2902_v47 = vpop.permute.xlu0 %2901 }
 0x789   : > { %11297 = vst [vmem:[#allocation40_spill] sm:$0xff] %v9313_v26  ;;  %6565 = vmatmul.mubr.msk.bf16.gmra.mrb[80].mxu0 %vm1447_vm1, %v2510_v61 }
 0x78a   : > { %6568 = vmatprep.mubr.msk.bf16.mxu0 %vm1447_vm1, %v2512_v29  ;;  %6577 = vmatpush3.bf16.msra.mxu1 %v2898_v19 }
 0x78b   : > { %6578 = vmatprep.subr.bf16.mxu1 %v2900_v22 }
 0x78c   : > { %v2904_v49 = vpop.permute.xlu0 %2903 }
 0x78e   : > { %6579 = vmatpush3.bf16.msra.mxu1 %v2900_v22 }
 0x78f   : > { %6580 = vmatprep.subr.bf16.mxu1 %v2902_v47 }
 0x790   : > { %v2908_v1 = vpop.permute.xlu0 %2907 }
 0x791   : > { %6569 = vmatmul.mubr.msk.bf16.gmra.mrb[84].mxu0 %vm1447_vm1, %v2514_v39  ;;  %v2941_v57 = vsel %vm1835_vm2, %v2908_v1, 0 }
 0x792   : > { %6581 = vmatpush3.bf16.msra.mxu1 %v2902_v47 }
 0x793   : > { %6582 = vmatprep.subr.bf16.mxu1 %v2904_v49 }
 0x796   : > { %6583 = vmatpush3.bf16.msra.mxu1 %v2904_v49 }
 0x797   : > { %6584 = vmatprep.subr.bf16.mxu1 %v2906_v34 }
 0x79a   : > { %6585 = vmatpush3.bf16.msra.mxu1 %v2906_v34 }
 0x79b   : > { %6742 = vmatprep.subr.msk.bf16.mxu1 %vm1835_vm2, %v2908_v1 }
 0x79e   : > { %6587 = vmatpush3.bf16.msra.mxu1 %v2941_v57  ;;  %v9364_v57 = vld [vmem:[#allocation14 + $0x10] sm:$0xff] }
 0x7bd   : > { %v9320_v53 = vpop.f32.mrb[56].mxu0 }
 0x7be   : > { %11298 = vst [vmem:[#allocation46_spill] sm:$0xff] %v9320_v53  ;;  %v9322_v52 = vpop.f32.mrb[57].mxu0 }
 0x7bf   : > { %11299 = vst [vmem:[#allocation50_spill] sm:$0xff] %v9322_v52  ;;  %v9324_v33 = vpop.f32.mrb[58].mxu0 }
 0x7c0   : > { %11300 = vst [vmem:[#allocation49_spill] sm:$0xff] %v9324_v33  ;;  %v9328_v30 = vpop.f32.mrb[59].mxu0 }
 0x7c1   : > { %11301 = vst [vmem:[#allocation54_spill] sm:$0xff] %v9328_v30 }
 0x82c   : > { %v9332_v24 = vpop.f32.mrb[60].mxu0 }
 0x82d   : > { %11302 = vst [vmem:[#allocation58_spill] sm:$0xff] %v9332_v24  ;;  %v9334_v38 = vpop.f32.mrb[61].mxu0 }
 0x82e   : > { %11303 = vst [vmem:[#allocation59_spill] sm:$0xff] %v9334_v38  ;;  %v9336_v12 = vpop.f32.mrb[62].mxu0 }
 0x82f   : > { %11304 = vst [vmem:[#allocation60_spill] sm:$0xff] %v9336_v12  ;;  %v9340_v2 = vpop.f32.mrb[63].mxu0 }
 0x830   : > { %11305 = vst [vmem:[#allocation61_spill] sm:$0xff] %v9340_v2 }
 0x83c   : > { %v9344_v58 = vpop.f32.mrb[64].mxu0 }
 0x83d   : > { %11306 = vst [vmem:[#allocation62_spill] sm:$0xff] %v9344_v58  ;;  %v9346_v28 = vpop.f32.mrb[65].mxu0 }
 0x83e   : > { %11307 = vst [vmem:[#allocation63_spill] sm:$0xff] %v9346_v28  ;;  %v9348_v14 = vpop.f32.mrb[66].mxu0 }
 0x83f   : > { %11308 = vst [vmem:[#allocation64_spill] sm:$0xff] %v9348_v14  ;;  %v9352_v56 = vpop.f32.mrb[67].mxu0 }
 0x840   : > { %11309 = vst [vmem:[#allocation65_spill] sm:$0xff] %v9352_v56 }
 0x844   : > { %v9356_v29 = vpop.f32.mrb[68].mxu0 }
 0x845   : > { %11310 = vst [vmem:[#allocation66_spill] sm:$0xff] %v9356_v29  ;;  %v9358_v37 = vpop.f32.mrb[69].mxu0  ;;  %v9401_v29 = vld [vmem:[#allocation14 + $0x20] sm:$0xff] }
 0x846   : > { %11311 = vst [vmem:[#allocation67_spill] sm:$0xff] %v9358_v37  ;;  %v6539_v11 = vpop.f32.mrb[70].mxu0 }
 0x847   : > { %v9360_v19 = vpop.f32.mrb[71].mxu0 }
 0x848   : > { %11312 = vst [vmem:[#allocation68_spill] sm:$0xff] %v9360_v19 }
 0x84c   : > { %v6558_v22 = vpop.f32.mrb[72].mxu0 }
 0x84d   : > { %v2677_v47 = vmul.f32 0.17677669, %v6558_v22  ;;  %v2613_v49 = vpop.f32.mrb[73].mxu0  ;;  %v9376_v22 = vld [vmem:[#allocation14 + $0x8] sm:$0xff] }
 0x84e   : > { %v2675_v34 = vmul.f32 0.17677669, %v2613_v49  ;;  %v6559_v1 = vpop.f32.mrb[74].mxu0 }
 0x84f   : > { %v9367_v61 = vadd.f32 %v9364_v57, %v2677_v47  ;;  %v2616_v39 = vpop.f32.mrb[75].mxu0  ;;  %v2678_v48 = vmul.f32 0.17677669, %v6559_v1 }
 0x850   : > { %v2676_v6 = vmul.f32 0.17677669, %v2616_v39  ;;  %v9372_v11 = vadd.f32 %v9369_v46, %v2675_v34  ;;  %v9383_v39 = vld [vmem:[#allocation14 + $0x18] sm:$0xff] }
 0x851   : > { %v2711_v21 = vsel %vm1622_vm3, %v9367_v61, -inf  ;;  %v9386_v40 = vadd.f32 %v9383_v39, %v2678_v48  ;;  %v11313_v48 = vld [vmem:[#allocation36_spill] sm:$0xff] }
 0x852   : > { %v9379_v49 = vadd.f32 %v9376_v22, %v2676_v6  ;;  %2712 = vmax.xlane.f32.xlu0 %v2711_v21  ;;  %v2705_v1 = vsel %vm1622_vm3, %v9372_v11, -inf  ;;  %11315 = vst [vmem:[#allocation36_spill] sm:$0xff] %v9462_v10 }
 0x853   : > { %v2714_v6 = vsel %vm1622_vm3, %v9386_v40, -inf }
 0x854   : > { %v6562_v45 = vpop.f32.mrb[76].mxu0  ;;  %v2708_v47 = vsel %vm1622_vm3, %v9379_v49, -inf }
 0x855   : > { %2709 = vmax.xlane.f32.xlu1 %v2708_v47  ;;  %v2629_v34 = vpop.f32.mrb[77].mxu0  ;;  %v2681_v17 = vmul.f32 0.17677669, %v6562_v45 }
 0x856   : > { %2706 = vmax.xlane.f32.xlu0 %v2705_v1  ;;  %v6563_v26 = vpop.f32.mrb[78].mxu0  ;;  %v11314_v1 = vld [vmem:[#allocation39_spill] sm:$0xff]  ;;  %v2679_v37 = vmul.f32 0.17677669, %v2629_v34 }
 0x857   : > { %v2632_v4 = vpop.f32.mrb[79].mxu0  ;;  %v2682_v19 = vmul.f32 0.17677669, %v6563_v26 }
 0x858   : > { %v9404_v28 = vadd.f32 %v9401_v29, %v2679_v37 }
 0x85a   : > { %2715 = vmax.xlane.f32.xlu0 %v2714_v6  ;;  %v9399_v6 = vadd.f32 %v9396_v7, %v2681_v17  ;;  %v9413_v17 = vld [vmem:[#allocation14 + $0x50] sm:$0xff]  ;;  %v2717_v37 = vsel %vm1622_vm3, %v9404_v28, -inf }
 0x85c   : > { %v6566_v21 = vpop.f32.mrb[80].mxu0 }
 0x85d   : > { %v2645_v59 = vpop.f32.mrb[81].mxu0  ;;  %v2685_v56 = vmul.f32 0.17677669, %v6566_v21  ;;  %v9420_v21 = vld [vmem:[#allocation14 + $0x28] sm:$0xff] }
 0x85e   : > { %v6567_v54 = vpop.f32.mrb[82].mxu0  ;;  %v2683_v34 = vmul.f32 0.17677669, %v2645_v59 }
 0x85f   : > { %v2648_v51 = vpop.f32.mrb[83].mxu0  ;;  %v9416_v26 = vadd.f32 %v9413_v17, %v2685_v56  ;;  %v2686_v14 = vmul.f32 0.17677669, %v6567_v54 }
 0x860   : > { %v2684_v54 = vmul.f32 0.17677669, %v2648_v51 }
 0x864   : > { %v6570_v43 = vpop.f32.mrb[84].mxu0 }
 0x865   : > { %v2661_v20 = vpop.f32.mrb[85].mxu0  ;;  %v2689_v59 = vmul.f32 0.17677669, %v6570_v43 }
 0x866   : > { %3055 = vrot.lane.b32.xlu1 %v11313_v48, %s7914_s3  ;;  %v6571_v47 = vpop.f32.mrb[86].mxu0  ;;  %v2723_v48 = vsel %vm1622_vm3, %v9399_v6, -inf  ;;  %v2687_v43 = vmul.f32 0.17677669, %v2661_v20 }
 0x867   : > { %v2664_v8 = vpop.f32.mrb[87].mxu0  ;;  %v9408_v47 = vld [vmem:[#allocation14 + $0x38] sm:$0xff] }
 0x868   : > { %v9411_v45 = vadd.f32 %v9408_v47, %v2682_v19  ;;  %v9427_v19 = vld [vmem:[#allocation14 + $0x40] sm:$0xff]  ;;  %v2688_v51 = vmul.f32 0.17677669, %v2664_v8 }
 0x869   : > { %v9430_v56 = vadd.f32 %v9427_v19, %v2683_v34 }
 0x86a   : > { %v9465_v38 = vadd.f32 %v9462_v10, %v2688_v51 }
 0x86b   : > { %v2729_v9 = vsel %vm1622_vm3, %v9430_v56, -inf }
 0x870   : > { %3057 = vrot.lane.b32.xlu0 %v11314_v1, %s7914_s3  ;;  %v2680_v1 = vmul.f32 0.17677669, %v2632_v4  ;;  %v2726_v4 = vsel %vm1622_vm3, %v9411_v45, -inf }
 0x872   : > { %v9423_v58 = vadd.f32 %v9420_v21, %v2680_v1  ;;  %v9437_v1 = vadd.f32 %v9434_v55, %v2686_v14  ;;  %v9451_v14 = vadd.f32 %v9448_v60, %v2684_v54  ;;  %v2744_v54 = vsel %vm1622_vm3, %v9465_v38, -inf }
 0x88a   : > { %2724 = vmax.xlane.f32.xlu1 %v2723_v48  ;;  %v2735_v48 = vsel %vm1622_vm3, %v9416_v26, -inf }
 0x88e   : > { %2718 = vmax.xlane.f32.xlu1 %v2717_v37  ;;  %v2720_v37 = vsel %vm1622_vm3, %v9423_v58, -inf }
 0x88f   : > { %2727 = vmax.xlane.f32.xlu0 %v2726_v4  ;;  %v9441_v4 = vld [vmem:[#allocation14 + $0x70] sm:$0xff] }
 0x890   : > { %v9444_v34 = vadd.f32 %v9441_v4, %v2689_v59 }
 0x892   : > { %2736 = vmax.xlane.f32.xlu1 %v2735_v48  ;;  %v2738_v48 = vsel %vm1622_vm3, %v9437_v1, -inf  ;;  %v2747_v20 = vsel %vm1622_vm3, %v9444_v34, -inf }
 0x893   : > { %2721 = vmax.xlane.f32.xlu0 %v2720_v37  ;;  %v9455_v37 = vld [vmem:[#allocation14 + $0x60] sm:$0xff] }
 0x894   : > { %v9458_v59 = vadd.f32 %v9455_v37, %v2687_v43  ;;  %v11316_v43 = vld [vmem:[#allocation42_spill] sm:$0xff] }
 0x896   : > { %2730 = vmax.xlane.f32.xlu1 %v2729_v9  ;;  %v2732_v9 = vsel %vm1622_vm3, %v9451_v14, -inf  ;;  %v2741_v8 = vsel %vm1622_vm3, %v9458_v59, -inf }
 0x897   : > { %2739 = vmax.xlane.f32.xlu0 %v2738_v48 }
 0x89a   : > { %2748 = vmax.xlane.f32.xlu1 %v2747_v20 }
 0x89b   : > { %2733 = vmax.xlane.f32.xlu0 %v2732_v9 }
 0x89e   : > { %2742 = vmax.xlane.f32.xlu1 %v2741_v8 }
 0x89f   : > { %2745 = vmax.xlane.f32.xlu0 %v2744_v54 }
 0x8b5   : > { %3059 = vrot.lane.b32.xlu0 %v11316_v43, %s7914_s3 }
 0x8df   : > { %v2713_v48 = vpop.xlane.xlu0 %2712 }
 0x8e0   : > { %v2752_v51 = vsub.f32 %v9367_v61, %v2713_v48 }
 0x8e2   : > { %v2769_v2 = vmul.f32 1.442695, %v2752_v51  ;;  %v2710_v20 = vpop.xlane.xlu1 %2709  ;;  %v11317_v51 = vld [vmem:[#allocation45_spill] sm:$0xff] }
 0x8e3   : > { %v2751_v24 = vsub.f32 %v9379_v49, %v2710_v20  ;;  %v2707_v12 = vpop.xlane.xlu0 %2706 }
 0x8e4   : > { %7291 = vpow2.f32 %v2769_v2  ;;  %v2750_v9 = vsub.f32 %v9372_v11, %v2707_v12 }
 0x8e5   : > { %v2767_v53 = vmul.f32 1.442695, %v2751_v24 }
 0x8e6   : > { %v2765_v8 = vmul.f32 1.442695, %v2750_v9  ;;  %v9478_v33 = vpop.permute.xlu1 %3055 }
 0x8e7   : > { %7293 = vpow2.f32 %v2767_v53  ;;  %v2716_v54 = vpop.xlane.xlu0 %2715  ;;  %6743 = vmatprep.subr.msk.bf16.mxu1 %vm1447_vm1, %v9478_v33 }
 0x8e8   : > { %7295 = vpow2.f32 %v2765_v8  ;;  %v2753_v61 = vsub.f32 %v9386_v40, %v2716_v54 }
 0x8ea   : > { %v2771_v43 = vmul.f32 1.442695, %v2753_v61 }
 0x8eb   : > { %v9503_v9 = vpop.permute.xlu0 %3057 }
 0x8ec   : > { %7297 = vpow2.f32 %v2771_v43 }
 0x8ee   : > { %v9483_v48 = vpop.eup %7291 }
 0x8ef   : > { %v2801_v2 = vsel %vm1622_vm3, %v9483_v48, 0.0 }
 0x8f0   : > { %2802 = vadd.xlane.f32.xlu1 %v2801_v2 }
 0x8f1   : > { %v9487_v24 = vpop.eup %7293 }
 0x8f2   : > { %v9489_v12 = vpop.eup %7295  ;;  %v2798_v53 = vsel %vm1622_vm3, %v9487_v24, 0.0 }
 0x8f3   : > { %2799 = vadd.xlane.f32.xlu0 %v2798_v53  ;;  %v2795_v11 = vsel %vm1622_vm3, %v9489_v12, 0.0 }
 0x8f4   : > { %2796 = vadd.xlane.f32.xlu1 %v2795_v11 }
 0x8f6   : > { %v9495_v40 = vpop.eup %7297 }
 0x8f7   : > { %v2804_v49 = vsel %vm1622_vm3, %v9495_v40, 0.0 }
 0x8f8   : > { %2805 = vadd.xlane.f32.xlu1 %v2804_v49 }
 0x909   : > { %3061 = vrot.lane.b32.xlu1 %v11317_v51, %s7914_s3  ;;  %3063 = vrot.lane.b32.xlu0 %v8603_v25, %s7914_s3 }
 0x917   : > { %v2725_v20 = vpop.xlane.xlu1 %2724 }
 0x918   : > { %v2756_v8 = vsub.f32 %v9399_v6, %v2725_v20 }
 0x91a   : > { %v2777_v54 = vmul.f32 1.442695, %v2756_v8 }
 0x91b   : > { %v2719_v61 = vpop.xlane.xlu1 %2718 }
 0x91c   : > { %7299 = vpow2.f32 %v2777_v54  ;;  %v2754_v43 = vsub.f32 %v9404_v28, %v2719_v61  ;;  %v2728_v2 = vpop.xlane.xlu0 %2727 }
 0x91d   : > { %v2757_v53 = vsub.f32 %v9411_v45, %v2728_v2 }
 0x91e   : > { %v2773_v11 = vmul.f32 1.442695, %v2754_v43 }
 0x91f   : > { %v2779_v49 = vmul.f32 1.442695, %v2757_v53  ;;  %v2737_v52 = vpop.xlane.xlu1 %2736 }
 0x920   : > { %7301 = vpow2.f32 %v2773_v11  ;;  %v2760_v51 = vsub.f32 %v9416_v26, %v2737_v52  ;;  %v2722_v25 = vpop.xlane.xlu0 %2721 }
 0x921   : > { %v2755_v30 = vsub.f32 %v9423_v58, %v2722_v25  ;;  %7303 = vpow2.f32 %v2779_v49 }
 0x922   : > { %v2785_v10 = vmul.f32 1.442695, %v2760_v51 }
 0x923   : > { %v2775_v6 = vmul.f32 1.442695, %v2755_v30  ;;  %v2731_v20 = vpop.xlane.xlu1 %2730 }
 0x924   : > { %v2758_v8 = vsub.f32 %v9430_v56, %v2731_v20  ;;  %v2740_v54 = vpop.xlane.xlu0 %2739 }
 0x925   : > { %7305 = vpow2.f32 %v2775_v6  ;;  %v2761_v61 = vsub.f32 %v9437_v1, %v2740_v54 }
 0x926   : > { %v9511_v28 = vpop.eup %7299  ;;  %7307 = vpow2.f32 %v2785_v10  ;;  %v2781_v45 = vmul.f32 1.442695, %v2758_v8 }
 0x927   : > { %v2749_v43 = vpop.xlane.xlu1 %2748  ;;  %v2813_v52 = vsel %vm1622_vm3, %v9511_v28, 0.0  ;;  %v2787_v56 = vmul.f32 1.442695, %v2761_v61 }
 0x928   : > { %v2764_v58 = vsub.f32 %v9444_v34, %v2749_v43  ;;  %v2734_v26 = vpop.xlane.xlu0 %2733  ;;  %2814 = vadd.xlane.f32.xlu0 %v2813_v52  ;;  %7309 = vpow2.f32 %v2781_v45 }
 0x929   : > { %v2759_v53 = vsub.f32 %v9451_v14, %v2734_v26 }
 0x92a   : > { %v9517_v30 = vpop.eup %7301  ;;  %v2793_v2 = vmul.f32 1.442695, %v2764_v58 }
 0x92b   : > { %v2743_v11 = vpop.xlane.xlu1 %2742  ;;  %v2807_v10 = vsel %vm1622_vm3, %v9517_v30, 0.0  ;;  %v9523_v51 = vpop.eup %7303  ;;  %v2783_v6 = vmul.f32 1.442695, %v2759_v53 }
 0x92c   : > { %7311 = vpow2.f32 %v2793_v2  ;;  %v2762_v1 = vsub.f32 %v9458_v59, %v2743_v11  ;;  %v2746_v49 = vpop.xlane.xlu0 %2745  ;;  %v2816_v8 = vsel %vm1622_vm3, %v9523_v51, 0.0 }
 0x92d   : > { %2808 = vadd.xlane.f32.xlu1 %v2807_v10  ;;  %7313 = vpow2.f32 %v2787_v56  ;;  %v2763_v20 = vsub.f32 %v9465_v38, %v2746_v49 }
 0x92e   : > { %v2789_v34 = vmul.f32 1.442695, %v2762_v1 }
 0x92f   : > { %v9525_v25 = vpop.eup %7305  ;;  %v2791_v59 = vmul.f32 1.442695, %v2763_v20 }
 0x930   : > { %7315 = vpow2.f32 %v2789_v34  ;;  %v2810_v14 = vsel %vm1622_vm3, %v9525_v25, 0.0  ;;  %v9532_v54 = vpop.eup %7307 }
 0x931   : > { %2811 = vadd.xlane.f32.xlu0 %v2810_v14  ;;  %2817 = vadd.xlane.f32.xlu1 %v2816_v8  ;;  %7317 = vpow2.f32 %v2783_v6  ;;  %v2825_v45 = vsel %vm1622_vm3, %v9532_v54, 0.0  ;;  %v3096_v14 = vsel %vm1447_vm1, %v9478_v33, 0 }
 0x932   : > { %v9536_v61 = vpop.eup %7309  ;;  %7319 = vpow2.f32 %v2791_v59 }
 0x933   : > { %v2819_v52 = vsel %vm1622_vm3, %v9536_v61, 0.0 }
 0x935   : > { %2826 = vadd.xlane.f32.xlu1 %v2825_v45 }
 0x936   : > { %v9538_v38 = vpop.eup %7311 }
 0x937   : > { %v2837_v43 = vsel %vm1622_vm3, %v9538_v38, 0.0  ;;  %v9544_v58 = vpop.eup %7313 }
 0x938   : > { %2838 = vadd.xlane.f32.xlu0 %v2837_v43  ;;  %v2828_v56 = vsel %vm1622_vm3, %v9544_v58, 0.0 }
 0x939   : > { %2820 = vadd.xlane.f32.xlu1 %v2819_v52 }
 0x93a   : > { %v9546_v26 = vpop.eup %7315 }
 0x93b   : > { %v2831_v2 = vsel %vm1622_vm3, %v9546_v26, 0.0  ;;  %v9552_v53 = vpop.eup %7317 }
 0x93c   : > { %2832 = vadd.xlane.f32.xlu0 %v2831_v2  ;;  %v2822_v11 = vsel %vm1622_vm3, %v9552_v53, 0.0  ;;  %v9556_v10 = vpop.eup %7319 }
 0x93d   : > { %2829 = vadd.xlane.f32.xlu1 %v2828_v56  ;;  %v2834_v1 = vsel %vm1622_vm3, %v9556_v10, 0.0 }
 0x941   : > { %2823 = vadd.xlane.f32.xlu1 %v2822_v11 }
 0x945   : > { %2835 = vadd.xlane.f32.xlu1 %v2834_v1 }
 0x952   : > { %3067 = vrot.lane.b32.xlu0 %v11269_v16, %s7914_s3 }
 0x956   : > { %3065 = vrot.lane.b32.xlu1 %v8623_v44, %s7914_s3  ;;  %3069 = vrot.lane.b32.xlu0 %v11263_v35, %s7914_s3  ;;  %v3060_v44 = vpop.permute.xlu0 %3059 }
 0x95a   : > { %3041 = vrot.lane.b32.xlu1 %v11272_v18, %s7914_s3  ;;  %3039 = vrot.lane.b32.xlu0 %v11271_v62, %s7914_s3 }
 0x95e   : > { %3045 = vrot.lane.b32.xlu1 %v11274_v31, %s7914_s3  ;;  %3043 = vrot.lane.b32.xlu0 %v11273_v42, %s7914_s3 }
 0x962   : > { %3049 = vrot.lane.b32.xlu1 %v11264_v41, %s7914_s3  ;;  %3047 = vrot.lane.b32.xlu0 %v11275_v0, %s7914_s3 }
 0x966   : > { %3053 = vrot.lane.b32.xlu1 %v11265_v50, %s7914_s3  ;;  %3051 = vrot.lane.b32.xlu0 %v11276_v13, %s7914_s3 }
 0x97d   : > { %v2803_v35 = vpop.xlane.xlu1 %2802 }
 0x980   : > { %v2800_v16 = vpop.xlane.xlu0 %2799 }
 0x981   : > { %7321 = vrcp.f32 %v2800_v16  ;;  %v2797_v62 = vpop.xlane.xlu1 %2796 }
 0x982   : > { %7323 = vrcp.f32 %v2797_v62 }
 0x983   : > { %7325 = vrcp.f32 %v2803_v35 }
 0x984   : > { %v3064_v8 = vpop.permute.xlu0 %3063 }
 0x985   : > { %v2806_v18 = vpop.xlane.xlu1 %2805  ;;  %v3108_v33 = vsel %vm1447_vm1, %v3064_v8, 0 }
 0x986   : > { %7327 = vrcp.f32 %v2806_v18 }
 0x98b   : > { %v7322_v42 = vpop.eup %7321 }
 0x98c   : > { %v7324_v41 = vpop.eup %7323  ;;  %v2871_v31 = vmul.f32 %v7322_v42, %v9487_v24  ;;  %v3099_v24 = vsel %vm1447_vm1, %v9503_v9, 0 }
 0x98d   : > { %v2870_v0 = vmul.f32 %v7324_v41, %v9489_v12  ;;  %v7326_v49 = vpop.eup %7325  ;;  %v3062_v12 = vpop.permute.xlu1 %3061 }
 0x98e   : > { %v2872_v13 = vmul.f32 %v7326_v49, %v9483_v48  ;;  %v3102_v48 = vsel %vm1447_vm1, %v3060_v44, 0 }
 0x98f   : > { %v2885_v50 = vpack.c.bf16 %v2871_v31, %v2870_v0 }
 0x990   : > { %v7328_v34 = vpop.eup %7327 }
 0x991   : > { %v2873_v6 = vmul.f32 %v7328_v34, %v9495_v40  ;;  %6588 = vmatprep.mubr.msk.bf16.mxu1 %vm1622_vm3, %v2885_v50  ;;  %v3105_v40 = vsel %vm1447_vm1, %v3062_v12, 0 }
 0x993   : > { %v2886_v20 = vpack.c.bf16 %v2873_v6, %v2872_v13 }
 0x995   : > { %6589 = vmatmul.mubr.msk.bf16.vlgmr.msra.gmra.mrb[64].mxu1 %vm1622_vm3, %v2886_v20 }
 0x996   : > { %6605 = vmatpush3.bf16.xpose.msra.mxu1 %v3096_v14 }
 0x997   : > { %6744 = vmatprep.subr.msk.bf16.mxu1 %vm1447_vm1, %v9503_v9 }
 0x99e   : > { %6607 = vmatpush3.bf16.xpose.msra.mxu1 %v3099_v24 }
 0x99f   : > { %6745 = vmatprep.subr.msk.bf16.mxu1 %vm1447_vm1, %v3060_v44 }
 0x9a6   : > { %6609 = vmatpush3.bf16.xpose.msra.mxu1 %v3102_v48 }
 0x9a7   : > { %6746 = vmatprep.subr.msk.bf16.mxu1 %vm1447_vm1, %v3062_v12 }
 0x9ae   : > { %6611 = vmatpush3.bf16.xpose.msra.mxu1 %v3105_v40 }
 0x9af   : > { %6747 = vmatprep.subr.msk.bf16.mxu1 %vm1447_vm1, %v3064_v8 }
 0x9b5   : > { %v2815_v59 = vpop.xlane.xlu0 %2814 }
 0x9b6   : > { %6613 = vmatpush3.bf16.xpose.msra.mxu1 %v3108_v33 }
 0x9ba   : > { %v2809_v9 = vpop.xlane.xlu1 %2808 }
 0x9bb   : > { %7329 = vrcp.f32 %v2809_v9 }
 0x9bc   : > { %7331 = vrcp.f32 %v2815_v59 }
 0x9be   : > { %v2812_v45 = vpop.xlane.xlu0 %2811  ;;  %v2818_v43 = vpop.xlane.xlu1 %2817 }
 0x9bf   : > { %7333 = vrcp.f32 %v2812_v45 }
 0x9c0   : > { %7335 = vrcp.f32 %v2818_v43 }
 0x9c2   : > { %v2827_v52 = vpop.xlane.xlu1 %2826 }
 0x9c5   : > { %v7330_v56 = vpop.eup %7329  ;;  %v2839_v1 = vpop.xlane.xlu0 %2838 }
 0x9c6   : > { %v2821_v2 = vpop.xlane.xlu1 %2820  ;;  %v7332_v11 = vpop.eup %7331  ;;  %v2874_v62 = vmul.f32 %v7330_v56, %v9517_v30 }
 0x9c7   : > { %v2876_v42 = vmul.f32 %v7332_v11, %v9511_v28 }
 0x9c9   : > { %v7334_v44 = vpop.eup %7333  ;;  %v2833_v49 = vpop.xlane.xlu0 %2832 }
 0x9ca   : > { %v7336_v35 = vpop.eup %7335  ;;  %v2830_v16 = vpop.xlane.xlu1 %2829  ;;  %v2875_v18 = vmul.f32 %v7334_v44, %v9525_v25 }
 0x9cb   : > { %v2877_v41 = vmul.f32 %v7336_v35, %v9523_v51  ;;  %7337 = vrcp.f32 %v2830_v16  ;;  %v11318_v16 = vmov 0  }
 0x9cc   : > { %v2887_v31 = vpack.c.bf16 %v2875_v18, %v2874_v62  ;;  %7339 = vrcp.f32 %v2821_v2 }
 0x9cd   : > { %v2888_v0 = vpack.c.bf16 %v2877_v41, %v2876_v42  ;;  %7341 = vrcp.f32 %v2827_v52  ;;  %v3068_v6 = vpop.permute.xlu0 %3067 }
 0x9ce   : > { %6592 = vmatprep.mubr.msk.bf16.mxu1 %vm1622_vm3, %v2887_v31  ;;  %v2824_v50 = vpop.xlane.xlu1 %2823 }
 0x9cf   : > { %7343 = vrcp.f32 %v2824_v50  ;;  %6593 = vmatmul.mubr.msk.bf16.gmra.mrb[68].mxu1 %vm1622_vm3, %v2888_v0 }
 0x9d0   : > { %7345 = vrcp.f32 %v2833_v49 }
 0x9d2   : > { %v2836_v30 = vpop.xlane.xlu1 %2835 }
 0x9d3   : > { %7347 = vrcp.f32 %v2836_v30 }
 0x9d4   : > { %7349 = vrcp.f32 %v2839_v1 }
 0x9d5   : > { %v7338_v25 = vpop.eup %7337 }
 0x9d6   : > { %v3066_v28 = vpop.permute.xlu1 %3065  ;;  %v7340_v34 = vpop.eup %7339  ;;  %v2881_v14 = vmul.f32 %v7338_v25, %v9544_v58  ;;  %v3114_v58 = vsel %vm1447_vm1, %v3068_v6, 0 }
 0x9d7   : > { %6748 = vmatprep.subr.msk.bf16.mxu1 %vm1447_vm1, %v3066_v28  ;;  %v3111_v51 = vsel %vm1447_vm1, %v3066_v28, 0  ;;  %v7342_v13 = vpop.eup %7341  ;;  %v2878_v24 = vmul.f32 %v7340_v34, %v9536_v61  ;;  %v3070_v61 = vpop.permute.xlu0 %3069 }
 0x9d8   : > { %6615 = vmatpush3.bf16.xpose.msra.mxu1 %v3111_v51  ;;  %v2880_v40 = vmul.f32 %v7342_v13, %v9532_v54 }
 0x9d9   : > { %v7344_v20 = vpop.eup %7343  ;;  %6749 = vmatprep.subr.msk.bf16.mxu1 %vm1447_vm1, %v3068_v6 }
 0x9da   : > { %v2879_v48 = vmul.f32 %v7344_v20, %v9552_v53  ;;  %v7346_v12 = vpop.eup %7345  ;;  %v2890_v59 = vpack.c.bf16 %v2881_v14, %v2880_v40 }
 0x9db   : > { %v2882_v45 = vmul.f32 %v7346_v12, %v9546_v26  ;;  %v3040_v2 = vpop.permute.xlu0 %3039  ;;  %v3117_v26 = vsel %vm1447_vm1, %v3070_v61, 0 }
 0x9dc   : > { %v2889_v8 = vpack.c.bf16 %v2879_v48, %v2878_v24 }
 0x9dd   : > { %v7348_v33 = vpop.eup %7347 }
 0x9de   : > { %v7350_v9 = vpop.eup %7349  ;;  %6596 = vmatprep.mubr.msk.bf16.mxu1 %vm1622_vm3, %v2889_v8  ;;  %v2883_v43 = vmul.f32 %v7348_v33, %v9556_v10  ;;  %v3042_v10 = vpop.permute.xlu1 %3041 }
 0x9df   : > { %6597 = vmatmul.mubr.msk.bf16.gmra.mrb[72].mxu1 %vm1622_vm3, %v2890_v59  ;;  %v2884_v54 = vmul.f32 %v7350_v9, %v9538_v38  ;;  %v3044_v56 = vpop.permute.xlu0 %3043 }
 0x9e0   : > { %6617 = vmatpush3.bf16.xpose.msra.mxu1 %v3114_v58  ;;  %v2891_v53 = vpack.c.bf16 %v2883_v43, %v2882_v45 }
 0x9e1   : > { %6750 = vmatprep.subr.msk.bf16.mxu1 %vm1447_vm1, %v3070_v61  ;;  %v2892_v52 = vpack.c.bf16 %v2884_v54, %v2884_v54 }
 0x9e2   : > { %6600 = vmatprep.mubr.msk.bf16.mxu1 %vm1622_vm3, %v2891_v53  ;;  %v3046_v11 = vpop.permute.xlu1 %3045 }
 0x9e3   : > { %v3048_v1 = vpop.permute.xlu0 %3047 }
 0x9e6   : > { %v3050_v38 = vpop.permute.xlu1 %3049 }
 0x9e7   : > { %6601 = vmatmul.mubr.msk.bf16.gmra.mrb[76].mxu1 %vm1622_vm3, %v2892_v52  ;;  %v3052_v44 = vpop.permute.xlu0 %3051 }
 0x9e8   : > { %6619 = vmatpush3.bf16.xpose.msra.mxu1 %v3117_v26  ;;  %6620 = vmatprep.mubr.msk.bf16.mxu1 %vm1447_vm1, %v3040_v2 }
 0x9ea   : > { %v3054_v35 = vpop.permute.xlu1 %3053 }
 0x9ef   : > { %6621 = vmatmul.mubr.msk.bf16.vlgmr.msra.gmra.mrb[80].mxu1 %vm1447_vm1, %v3042_v10 }
 0x9f0   : > { %6624 = vmatprep.mubr.msk.bf16.mxu1 %vm1447_vm1, %v3044_v56 }
 0x9f7   : > { %6625 = vmatmul.mubr.msk.bf16.gmra.mrb[84].mxu1 %vm1447_vm1, %v3046_v11 }
 0x9f8   : > { %6628 = vmatprep.mubr.msk.bf16.mxu1 %vm1447_vm1, %v3048_v1 }
 0x9ff   : > { %6629 = vmatmul.mubr.msk.bf16.gmra.mrb[88].mxu1 %vm1447_vm1, %v3050_v38 }
 0xa00   : > { %6632 = vmatprep.mubr.msk.bf16.mxu1 %vm1447_vm1, %v3052_v44 }
 0xa07   : > { %6633 = vmatmul.mubr.msk.bf16.gmra.mrb[92].mxu1 %vm1447_vm1, %v3054_v35 }
 0xa08   : > { %4464 = vmatprep.mubr.bf16.mxu1 %v11318_v16 }
 0xa68   : > { %v9632_v62 = vpop.f32.mrb[64].mxu1 }
 0xa69   : > { %v9634_v18 = vpop.f32.mrb[65].mxu1 }
 0xa6a   : > { %v9636_v42 = vpop.f32.mrb[66].mxu1 }
 0xa6b   : > { %v6901_v41 = vpack.i.bf16 %v9636_v42, %v9632_v62  ;;  %v9640_v31 = vpop.f32.mrb[67].mxu1 }
 0xa6c   : > { %v6896_v0 = vpack.i.bf16 %v9640_v31, %v9634_v18  ;;  %v7056_v18 = vld [vmem:[#allocation10 + $0x18] sm:$0xff]   ;;  %v7057_v31 = vld [vmem:[#allocation10 + $0x20] sm:$0xff]  }
 0xaa2   : > { %v9644_v49 = vpop.f32.mrb[68].mxu1 }
 0xaa3   : > { %v9646_v50 = vpop.f32.mrb[69].mxu1 }
 0xaa4   : > { %v9648_v30 = vpop.f32.mrb[70].mxu1 }
 0xaa5   : > { %v6931_v25 = vpack.i.bf16 %v9648_v30, %v9644_v49  ;;  %v9652_v28 = vpop.f32.mrb[71].mxu1  ;;  %v11333_v30 = vld [vmem:[#allocation55_spill] sm:$0xff] }
 0xaa6   : > { %v6926_v34 = vpack.i.bf16 %v9652_v28, %v9646_v50  ;;  %v11334_v28 = vld [vmem:[#allocation38_spill] sm:$0xff] }
 0xab2   : > { %v9656_v51 = vpop.f32.mrb[72].mxu1 }
 0xab3   : > { %v9658_v13 = vpop.f32.mrb[73].mxu1 }
 0xab4   : > { %v9660_v6 = vpop.f32.mrb[74].mxu1 }
 0xab5   : > { %v6961_v20 = vpack.i.bf16 %v9660_v6, %v9656_v51  ;;  %v9664_v14 = vpop.f32.mrb[75].mxu1  ;;  %v11343_v51 = vld [vmem:[#allocation68_spill] sm:$0xff]  ;;  %v11344_v6 = vld [vmem:[#allocation67_spill] sm:$0xff] }
 0xab6   : > { %v6956_v24 = vpack.i.bf16 %v9664_v14, %v9658_v13 }
 0xaba   : > { %v9668_v48 = vpop.f32.mrb[76].mxu1 }
 0xabb   : > { %v9670_v12 = vpop.f32.mrb[77].mxu1 }
 0xabc   : > { %v6603_v40 = vpop.f32.mrb[78].mxu1 }
 0xabd   : > { %v9672_v8 = vpop.f32.mrb[79].mxu1 }
 0xabe   : > { %v6981_v33 = vpack.i.bf16 %v9672_v8, %v9670_v12  ;;  %v11347_v8 = vld [vmem:[#allocation44_spill] sm:$0xff] }
 0xac2   : > { %v6622_v59 = vpop.f32.mrb[80].mxu1 }
 0xac3   : > { %v3153_v9 = vpop.f32.mrb[81].mxu1  ;;  %v3217_v45 = vmul.f32 0.17677669, %v6622_v59 }
 0xac4   : > { %v3215_v43 = vmul.f32 0.17677669, %v3153_v9  ;;  %v6623_v58 = vpop.f32.mrb[82].mxu1 }
 0xac5   : > { %v3156_v61 = vpop.f32.mrb[83].mxu1  ;;  %v3232_v52 = vadd.f32 %v9364_v57, %v3217_v45  ;;  %v3218_v2 = vmul.f32 0.17677669, %v6623_v58 }
 0xac6   : > { %v3230_v53 = vadd.f32 %v9369_v46, %v3215_v43  ;;  %v3216_v54 = vmul.f32 0.17677669, %v3156_v61 }
 0xac7   : > { %v3233_v46 = vadd.f32 %v9383_v39, %v3218_v2  ;;  %v3251_v57 = vsel %vm1622_vm3, %v3232_v52, -inf }
 0xac8   : > { %v9679_v26 = vadd.f32 %v9376_v22, %v3216_v54  ;;  %v3245_v10 = vsel %vm1622_vm3, %v3230_v53, -inf }
 0xac9   : > { %3246 = vmax.xlane.f32.xlu0 %v3245_v10  ;;  %v3254_v44 = vsel %vm1622_vm3, %v3233_v46, -inf }
 0xaca   : > { %v9682_v56 = vpop.f32.mrb[84].mxu1  ;;  %v3248_v11 = vsel %vm1622_vm3, %v9679_v26, -inf }
 0xacb   : > { %3249 = vmax.xlane.f32.xlu1 %v3248_v11  ;;  %v9686_v1 = vpop.f32.mrb[85].mxu1 }
 0xacc   : > { %v9689_v38 = vpop.f32.mrb[86].mxu1 }
 0xacd   : > { %3252 = vmax.xlane.f32.xlu0 %v3251_v57  ;;  %v3172_v22 = vpop.f32.mrb[87].mxu1 }
 0xad1   : > { %3255 = vmax.xlane.f32.xlu0 %v3254_v44 }
 0xad2   : > { %v6630_v35 = vpop.f32.mrb[88].mxu1 }
 0xad3   : > { %v3185_v40 = vpop.f32.mrb[89].mxu1  ;;  %v3225_v54 = vmul.f32 0.17677669, %v6630_v35 }
 0xad4   : > { %v9693_v59 = vpop.f32.mrb[90].mxu1 }
 0xad5   : > { %v9695_v9 = vpop.f32.mrb[91].mxu1 }
 0xada   : > { %v6634_v45 = vpop.f32.mrb[92].mxu1 }
 0xadb   : > { %v3201_v43 = vpop.f32.mrb[93].mxu1  ;;  %v3229_v2 = vmul.f32 0.17677669, %v6634_v45 }
 0xadc   : > { %3433 = vrot.lane.b32.xlu1 %v11277_v23, %s7914_s3  ;;  %v6635_v39 = vpop.f32.mrb[94].mxu1  ;;  %v3220_v23 = vmul.f32 0.17677669, %v3172_v22 }
 0xadd   : > { %v9699_v58 = vpop.f32.mrb[95].mxu1  ;;  %v9732_v10 = vadd.f32 %v9441_v4, %v3229_v2 }
 0xade   : > { %v9714_v61 = vadd.f32 %v9420_v21, %v3220_v23 }
 0xadf   : > { %v3287_v11 = vsel %vm1622_vm3, %v9732_v10, -inf }
 0xae0   : > { %3435 = vrot.lane.b32.xlu1 %v11266_v3, %s7914_s3  ;;  %v3223_v3 = vmul.f32 0.17677669, %v3185_v40 }
 0xae4   : > { %3439 = vrot.lane.b32.xlu1 %v11267_v32, %s7914_s3  ;;  %v9717_v32 = vadd.f32 %v9427_v19, %v3223_v3 }
 0xae8   : > { %3441 = vrot.lane.b32.xlu1 %v11279_v63, %s7914_s3  ;;  %v3260_v63 = vsel %vm1622_vm3, %v9714_v61, -inf }
 0xaec   : > { %3443 = vrot.lane.b32.xlu1 %v11280_v5, %s7914_s3  ;;  %v9722_v5 = vadd.f32 %v9413_v17, %v3225_v54 }
 0xaee   : > { %v3275_v19 = vsel %vm1622_vm3, %v9722_v5, -inf }
 0xaf0   : > { %3445 = vrot.lane.b32.xlu1 %v11268_v36, %s7914_s3  ;;  %v3227_v36 = vmul.f32 0.17677669, %v3201_v43 }
 0xaf2   : > { %v9727_v21 = vadd.f32 %v9455_v37, %v3227_v36 }
 0xaf4   : > { %3447 = vrot.lane.b32.xlu1 %v11281_v27, %s7914_s3  ;;  %v3269_v27 = vsel %vm1622_vm3, %v9717_v32, -inf  ;;  %v3281_v17 = vsel %vm1622_vm3, %v9727_v21, -inf }
 0xb18   : > { %3261 = vmax.xlane.f32.xlu1 %v3260_v63 }
 0xb1c   : > { %3270 = vmax.xlane.f32.xlu1 %v3269_v27 }
 0xb20   : > { %3276 = vmax.xlane.f32.xlu1 %v3275_v19 }
 0xb24   : > { %3282 = vmax.xlane.f32.xlu1 %v3281_v17 }
 0xb28   : > { %3288 = vmax.xlane.f32.xlu1 %v3287_v11 }
 0xb56   : > { %v3247_v57 = vpop.xlane.xlu0 %3246 }
 0xb57   : > { %v3290_v44 = vsub.f32 %v3230_v53, %v3247_v57 }
 0xb58   : > { %v3250_v22 = vpop.xlane.xlu1 %3249 }
 0xb59   : > { %v3305_v45 = vmul.f32 1.442695, %v3290_v44  ;;  %v3291_v3 = vsub.f32 %v9679_v26, %v3250_v22 }
 0xb5a   : > { %v3253_v37 = vpop.xlane.xlu0 %3252 }
 0xb5b   : > { %v3292_v35 = vsub.f32 %v3232_v52, %v3253_v37  ;;  %v3307_v63 = vmul.f32 1.442695, %v3291_v3  ;;  %v3219_v37 = vmul.f32 0.17677669, %v9686_v1 }
 0xb5c   : > { %v3434_v40 = vpop.permute.xlu1 %3433 }
 0xb5d   : > { %v3309_v43 = vmul.f32 1.442695, %v3292_v35  ;;  %6636 = vmatprep.subr.bf16.mxu0 %v3434_v40 }
 0xb5e   : > { %v3256_v39 = vpop.xlane.xlu0 %3255  ;;  %6637 = vmatpush3.bf16.msra.mxu0 %v3434_v40 }
 0xb5f   : > { %7351 = vpow2.f32 %v3309_v43  ;;  %v3293_v4 = vsub.f32 %v3233_v46, %v3256_v39  ;;  %v9758_v43 = vadd.f32 %v9401_v29, %v3219_v37 }
 0xb60   : > { %v3436_v23 = vpop.permute.xlu1 %3435  ;;  %7353 = vpow2.f32 %v3305_v45  ;;  %v3221_v45 = vmul.f32 0.17677669, %v9682_v56  ;;  %v3226_v56 = vmul.f32 0.17677669, %v9693_v59 }
 0xb61   : > { %v3311_v54 = vmul.f32 1.442695, %v3293_v4  ;;  %6638 = vmatprep.subr.bf16.mxu0 %v3436_v23 }
 0xb62   : > { %6639 = vmatpush3.bf16.msra.mxu0 %v3436_v23  ;;  %v9761_v4 = vadd.f32 %v9396_v7, %v3221_v45  ;;  %v3257_v23 = vsel %vm1622_vm3, %v9758_v43, -inf }
 0xb63   : > { %7355 = vpow2.f32 %v3311_v54  ;;  %v3228_v54 = vmul.f32 0.17677669, %v9699_v58 }
 0xb64   : > { %7357 = vpow2.f32 %v3307_v63  ;;  %v3440_v17 = vpop.permute.xlu1 %3439  ;;  %v3263_v29 = vsel %vm1622_vm3, %v9761_v4, -inf }
 0xb68   : > { %v3442_v11 = vpop.permute.xlu1 %3441 }
 0xb69   : > { %v9739_v53 = vpop.eup %7351 }
 0xb6a   : > { %v3341_v52 = vsel %vm1622_vm3, %v9739_v53, 0.0  ;;  %v9743_v36 = vpop.eup %7353 }
 0xb6b   : > { %3342 = vadd.xlane.f32.xlu0 %v3341_v52  ;;  %v3335_v46 = vsel %vm1622_vm3, %v9743_v36, 0.0 }
 0xb6c   : > { %v3444_v57 = vpop.permute.xlu1 %3443 }
 0xb6d   : > { %v9747_v27 = vpop.eup %7355 }
 0xb6e   : > { %v3344_v26 = vsel %vm1622_vm3, %v9747_v27, 0.0  ;;  %v7358_v2 = vpop.eup %7357 }
 0xb6f   : > { %3336 = vadd.xlane.f32.xlu0 %v3335_v46  ;;  %v3338_v19 = vsel %vm1622_vm3, %v7358_v2, 0.0 }
 0xb70   : > { %v3446_v22 = vpop.permute.xlu1 %3445 }
 0xb73   : > { %3345 = vadd.xlane.f32.xlu0 %v3344_v26 }
 0xb74   : > { %v3448_v44 = vpop.permute.xlu1 %3447 }
 0xb77   : > { %3339 = vadd.xlane.f32.xlu0 %v3338_v19 }
 0xb8d   : > { %3437 = vrot.lane.b32.xlu0 %v11278_v15, %s7914_s3  ;;  %v3222_v15 = vmul.f32 0.17677669, %v9689_v38 }
 0xb8f   : > { %v9767_v1 = vadd.f32 %v9408_v47, %v3222_v15 }
 0xb91   : > { %v3266_v38 = vsel %vm1622_vm3, %v9767_v1, -inf }
 0xba5   : > { %v3262_v35 = vpop.xlane.xlu1 %3261 }
 0xba6   : > { %v3295_v40 = vsub.f32 %v9714_v61, %v3262_v35  ;;  %v3224_v61 = vmul.f32 0.17677669, %v9695_v9  ;;  %v9783_v9 = vadd.f32 %v9434_v55, %v3226_v56 }
 0xba8   : > { %v3315_v39 = vmul.f32 1.442695, %v3295_v40  ;;  %v9774_v7 = vadd.f32 %v9448_v60, %v3224_v61  ;;  %v11319_v60 = vld [vmem:[#allocation36_spill] sm:$0xff]  ;;  %v3278_v52 = vsel %vm1622_vm3, %v9783_v9, -inf }
 0xba9   : > { %v9789_v63 = vadd.f32 %v11319_v60, %v3228_v54 }
 0xbaa   : > { %7359 = vpow2.f32 %v3315_v39  ;;  %v3272_v59 = vsel %vm1622_vm3, %v9774_v7, -inf }
 0xbab   : > { %v3284_v46 = vsel %vm1622_vm3, %v9789_v63, -inf }
 0xbac   : > { %3258 = vmax.xlane.f32.xlu0 %v3257_v23 }
 0xbb0   : > { %3264 = vmax.xlane.f32.xlu0 %v3263_v29 }
 0xbb4   : > { %v9778_v3 = vpop.eup %7359  ;;  %3267 = vmax.xlane.f32.xlu0 %v3266_v38 }
 0xbb5   : > { %v3350_v47 = vsel %vm1622_vm3, %v9778_v3, 0.0 }
 0xbb6   : > { %3351 = vadd.xlane.f32.xlu1 %v3350_v47 }
 0xbb8   : > { %3273 = vmax.xlane.f32.xlu0 %v3272_v59 }
 0xbbc   : > { %3279 = vmax.xlane.f32.xlu0 %v3278_v52 }
 0xbc0   : > { %3285 = vmax.xlane.f32.xlu0 %v3284_v46 }
 0xbf8   : > { %v3343_v26 = vpop.xlane.xlu0 %3342 }
 0xbfc   : > { %v3337_v55 = vpop.xlane.xlu0 %3336 }
 0xbfd   : > { %7361 = vrcp.f32 %v3337_v55 }
 0xc00   : > { %v3346_v19 = vpop.xlane.xlu0 %3345 }
 0xc04   : > { %v3340_v58 = vpop.xlane.xlu0 %3339 }
 0xc05   : > { %7363 = vrcp.f32 %v3340_v58 }
 0xc06   : > { %7365 = vrcp.f32 %v3346_v19 }
 0xc07   : > { %v7362_v35 = vpop.eup %7361  ;;  %7367 = vrcp.f32 %v3343_v26 }
 0xc08   : > { %v3438_v37 = vpop.permute.xlu0 %3437  ;;  %v3410_v45 = vmul.f32 %v7362_v35, %v9743_v36 }
 0xc09   : > { %6640 = vmatprep.subr.bf16.mxu0 %v3438_v37 }
 0xc0a   : > { %6641 = vmatpush3.bf16.msra.mxu0 %v3438_v37 }
 0xc0b   : > { %6642 = vmatprep.subr.bf16.mxu0 %v3440_v17 }
 0xc0e   : > { %6643 = vmatpush3.bf16.msra.mxu0 %v3440_v17  ;;  %v3481_v17 = vsel %vm1835_vm2, %v3448_v44, 0 }
 0xc0f   : > { %v7364_v40 = vpop.eup %7363  ;;  %6644 = vmatprep.subr.bf16.mxu0 %v3442_v11 }
 0xc10   : > { %v3411_v39 = vmul.f32 %v7364_v40, %v7358_v2  ;;  %v7366_v23 = vpop.eup %7365  ;;  %v3271_v2 = vpop.xlane.xlu1 %3270 }
 0xc11   : > { %v7368_v61 = vpop.eup %7367  ;;  %v3413_v29 = vmul.f32 %v7366_v23, %v9747_v27  ;;  %v3298_v47 = vsub.f32 %v9717_v32, %v3271_v2 }
 0xc12   : > { %6645 = vmatpush3.bf16.msra.mxu0 %v3442_v11  ;;  %v3425_v15 = vpack.c.bf16 %v3411_v39, %v3410_v45  ;;  %v3412_v56 = vmul.f32 %v7368_v61, %v9739_v53 }
 0xc13   : > { %6646 = vmatprep.subr.bf16.mxu0 %v3444_v57 }
 0xc14   : > { %6652 = vmatprep.mubr.msk.bf16.mxu0 %vm1622_vm3, %v3425_v15  ;;  %v3426_v36 = vpack.c.bf16 %v3413_v29, %v3412_v56  ;;  %v3277_v11 = vpop.xlane.xlu1 %3276 }
 0xc15   : > { %v3300_v53 = vsub.f32 %v9722_v5, %v3277_v11 }
 0xc16   : > { %6647 = vmatpush3.bf16.msra.mxu0 %v3444_v57 }
 0xc17   : > { %6648 = vmatprep.subr.bf16.mxu0 %v3446_v22  ;;  %v3325_v26 = vmul.f32 1.442695, %v3300_v53  ;;  %v11320_v53 = vld [vmem:[#allocation54_spill] sm:$0xff] }
 0xc18   : > { %v3283_v59 = vpop.xlane.xlu1 %3282 }
 0xc1a   : > { %6649 = vmatpush3.bf16.msra.mxu0 %v3446_v22 }
 0xc1b   : > { %6751 = vmatprep.subr.msk.bf16.mxu0 %vm1835_vm2, %v3448_v44  ;;  %v3321_v44 = vmul.f32 1.442695, %v3298_v47 }
 0xc1c   : > { %v3289_v32 = vpop.xlane.xlu1 %3288 }
 0xc1d   : > { %v3304_v5 = vsub.f32 %v9732_v10, %v3289_v32  ;;  %v7054_v32 = vld [vmem:[#allocation10 + $0x8] sm:$0xff]  }
 0xc1e   : > { %6651 = vmatpush3.bf16.msra.mxu0 %v3481_v17 }
 0xc1f   : > { %v3333_v39 = vmul.f32 1.442695, %v3304_v5 }
 0xc21   : > { %6653 = vmatmul.mubr.msk.bf16.vlgmr.msra.gmra.mrb[88].mxu0 %vm1622_vm3, %v3426_v36 }
 0xc39   : > { %v3259_v38 = vpop.xlane.xlu0 %3258 }
 0xc3a   : > { %v3294_v57 = vsub.f32 %v9758_v43, %v3259_v38  ;;  %v3302_v43 = vsub.f32 %v9727_v21, %v3283_v59 }
 0xc3c   : > { %v3313_v22 = vmul.f32 1.442695, %v3294_v57  ;;  %v3329_v37 = vmul.f32 1.442695, %v3302_v43 }
 0xc3d   : > { %v3265_v54 = vpop.xlane.xlu0 %3264 }
 0xc3e   : > { %7369 = vpow2.f32 %v3313_v22  ;;  %v3296_v27 = vsub.f32 %v9761_v4, %v3265_v54 }
 0xc40   : > { %v3317_v60 = vmul.f32 1.442695, %v3296_v27 }
 0xc41   : > { %v3268_v52 = vpop.xlane.xlu0 %3267 }
 0xc42   : > { %7371 = vpow2.f32 %v3317_v60  ;;  %v3297_v46 = vsub.f32 %v9767_v1, %v3268_v52  ;;  %v11321_v60 = vld [vmem:[#allocation50_spill] sm:$0xff] }
 0xc43   : > { %7373 = vpow2.f32 %v3321_v44  ;;  %v11322_v52 = vpack.i.bf16 %v11320_v53, %v11321_v60  ;;  %v3352_v62 = vpop.xlane.xlu1 %3351 }
 0xc44   : > { %v3319_v55 = vmul.f32 1.442695, %v3297_v46  ;;  %v11323_v46 = vld [vmem:[#allocation49_spill] sm:$0xff] }
 0xc45   : > { %v3274_v19 = vpop.xlane.xlu0 %3273 }
 0xc46   : > { %7375 = vpow2.f32 %v3319_v55  ;;  %v3299_v58 = vsub.f32 %v9774_v7, %v3274_v19  ;;  %v7053_v55 = vld [vmem:[#allocation10] sm:$0xff]   ;;  %v7055_v19 = vld [vmem:[#allocation10 + $0x10] sm:$0xff]  }
 0xc47   : > { %7377 = vpow2.f32 %v3325_v26  ;;  %v11324_v26 = vld [vmem:[#allocation46_spill] sm:$0xff]  ;;  %6668 = vmatprep.subr.bf16.mxu0 %v7053_v55 }
 0xc48   : > { %v9809_v4 = vpop.eup %7369  ;;  %v3323_v35 = vmul.f32 1.442695, %v3299_v58  ;;  %v11325_v43 = vpack.i.bf16 %v11323_v46, %v11324_v26  ;;  %6669 = vmatpush3.bf16.msra.mxu0 %v7053_v55  ;;  %v7059_v58 = vld [vmem:[#allocation10 + $0x30] sm:$0xff]  }
 0xc49   : > { %v3280_v40 = vpop.xlane.xlu0 %3279  ;;  %v3347_v1 = vsel %vm1622_vm3, %v9809_v4, 0.0  ;;  %6670 = vmatprep.subr.bf16.mxu0 %v7054_v32 }
 0xc4a   : > { %7379 = vpow2.f32 %v3323_v35  ;;  %v3301_v21 = vsub.f32 %v9783_v9, %v3280_v40  ;;  %3348 = vadd.xlane.f32.xlu0 %v3347_v1 }
 0xc4b   : > { %7381 = vpow2.f32 %v3329_v37 }
 0xc4c   : > { %v9815_v45 = vpop.eup %7371  ;;  %v3327_v7 = vmul.f32 1.442695, %v3301_v21  ;;  %6671 = vmatpush3.bf16.msra.mxu0 %v7054_v32 }
 0xc4d   : > { %v3286_v15 = vpop.xlane.xlu0 %3285  ;;  %v3353_v23 = vsel %vm1622_vm3, %v9815_v45, 0.0  ;;  %v9819_v61 = vpop.eup %7373  ;;  %6672 = vmatprep.subr.bf16.mxu0 %v7055_v19 }
 0xc4e   : > { %7383 = vpow2.f32 %v3327_v7  ;;  %v3303_v10 = vsub.f32 %v9789_v63, %v3286_v15  ;;  %3354 = vadd.xlane.f32.xlu0 %v3353_v23  ;;  %v3359_v56 = vsel %vm1622_vm3, %v9819_v61, 0.0 }
 0xc4f   : > { %7385 = vpow2.f32 %v3333_v39 }
 0xc50   : > { %v9822_v29 = vpop.eup %7375  ;;  %v3331_v9 = vmul.f32 1.442695, %v3303_v10  ;;  %6673 = vmatpush3.bf16.msra.mxu0 %v7055_v19 }
 0xc51   : > { %v3356_v17 = vsel %vm1622_vm3, %v9822_v29, 0.0  ;;  %v9828_v36 = vpop.eup %7377  ;;  %6674 = vmatprep.subr.bf16.mxu0 %v7056_v18 }
 0xc52   : > { %7387 = vpow2.f32 %v3331_v9  ;;  %3357 = vadd.xlane.f32.xlu1 %v3356_v17  ;;  %3360 = vadd.xlane.f32.xlu0 %v3359_v56  ;;  %v3365_v11 = vsel %vm1622_vm3, %v9828_v36, 0.0 }
 0xc53   : > { %7389 = vrcp.f32 %v3352_v62 }
 0xc54   : > { %v9830_v2 = vpop.eup %7379  ;;  %6675 = vmatpush3.bf16.msra.mxu0 %v7056_v18 }
 0xc55   : > { %v3362_v63 = vsel %vm1622_vm3, %v9830_v2, 0.0  ;;  %v9836_v38 = vpop.eup %7381  ;;  %6676 = vmatprep.subr.bf16.mxu0 %v7057_v31 }
 0xc56   : > { %3363 = vadd.xlane.f32.xlu1 %v3362_v63  ;;  %3366 = vadd.xlane.f32.xlu0 %v3365_v11  ;;  %v3371_v22 = vsel %vm1622_vm3, %v9836_v38, 0.0 }
 0xc58   : > { %v9838_v57 = vpop.eup %7383  ;;  %6677 = vmatpush3.bf16.msra.mxu0 %v7057_v31 }
 0xc59   : > { %v3368_v47 = vsel %vm1622_vm3, %v9838_v57, 0.0  ;;  %v9844_v54 = vpop.eup %7385 }
 0xc5a   : > { %3369 = vadd.xlane.f32.xlu1 %v3368_v47  ;;  %3372 = vadd.xlane.f32.xlu0 %v3371_v22  ;;  %v3377_v44 = vsel %vm1622_vm3, %v9844_v54, 0.0 }
 0xc5c   : > { %v9846_v27 = vpop.eup %7387 }
 0xc5d   : > { %v3374_v59 = vsel %vm1622_vm3, %v9846_v27, 0.0  ;;  %v7390_v35 = vpop.eup %7389 }
 0xc5e   : > { %3375 = vadd.xlane.f32.xlu1 %v3374_v59  ;;  %3378 = vadd.xlane.f32.xlu0 %v3377_v44  ;;  %v3415_v7 = vmul.f32 %v7390_v35, %v9778_v3  ;;  %v7060_v59 = vld [vmem:[#allocation10 + $0x38] sm:$0xff]   ;;  %v11330_v35 = vld [vmem:[#allocation59_spill] sm:$0xff] }
 0xc6f   : > { %6887 = vrot.lane.b32.xlu1 %v11322_v52, %s7914_s3 }
 0xc73   : > { %6897 = vrot.lane.b32.xlu1 %v6896_v0, %s7913_s23  ;;  %v7058_v0 = vld [vmem:[#allocation10 + $0x28] sm:$0xff]  }
 0xc74   : > { %6892 = vrot.lane.b32.xlu0 %v11325_v43, %s7914_s3  ;;  %6678 = vmatprep.subr.bf16.mxu0 %v7058_v0 }
 0xc75   : > { %6679 = vmatpush3.bf16.msra.mxu0 %v7058_v0 }
 0xc76   : > { %6680 = vmatprep.subr.bf16.mxu0 %v7059_v58 }
 0xc77   : > { %6902 = vrot.lane.b32.xlu1 %v6901_v41, %s7913_s23 }
 0xc79   : > { %6681 = vmatpush3.bf16.msra.mxu0 %v7059_v58 }
 0xc7a   : > { %6682 = vmatprep.subr.bf16.mxu0 %v7060_v59 }
 0xc7d   : > { %6683 = vmatpush3.bf16.msra.mxu0 %v7060_v59 }
 0xcd7   : > { %v3349_v42 = vpop.xlane.xlu0 %3348 }
 0xcd8   : > { %7391 = vrcp.f32 %v3349_v42  ;;  %v11326_v42 = vld [vmem:[#allocation60_spill] sm:$0xff] }
 0xcdb   : > { %v3355_v41 = vpop.xlane.xlu0 %3354 }
 0xcdc   : > { %7393 = vrcp.f32 %v3355_v41  ;;  %v11327_v41 = vld [vmem:[#allocation58_spill] sm:$0xff] }
 0xcdf   : > { %v3361_v37 = vpop.xlane.xlu0 %3360  ;;  %v3358_v5 = vpop.xlane.xlu1 %3357 }
 0xce0   : > { %7395 = vrcp.f32 %v3358_v5  ;;  %v11329_v5 = vld [vmem:[#allocation61_spill] sm:$0xff] }
 0xce1   : > { %7397 = vrcp.f32 %v3361_v37  ;;  %v11328_v37 = vpack.i.bf16 %v11326_v42, %v11327_v41  ;;  %v11339_v41 = vld [vmem:[#allocation65_spill] sm:$0xff] }
 0xce2   : > { %v7392_v40 = vpop.eup %7391 }
 0xce3   : > { %v3367_v1 = vpop.xlane.xlu0 %3366  ;;  %v3364_v21 = vpop.xlane.xlu1 %3363  ;;  %v3414_v39 = vmul.f32 %v7392_v40, %v9809_v4 }
 0xce4   : > { %7399 = vrcp.f32 %v3364_v21 }
 0xce5   : > { %v3427_v15 = vpack.c.bf16 %v3415_v7, %v3414_v39  ;;  %7401 = vrcp.f32 %v3367_v1 }
 0xce6   : > { %v7394_v9 = vpop.eup %7393 }
 0xce7   : > { %v3373_v23 = vpop.xlane.xlu0 %3372  ;;  %6656 = vmatprep.mubr.msk.bf16.mxu0 %vm1622_vm3, %v3427_v15  ;;  %v3370_v10 = vpop.xlane.xlu1 %3369  ;;  %v3416_v11 = vmul.f32 %v7394_v9, %v9815_v45 }
 0xce8   : > { %7403 = vrcp.f32 %v3370_v10 }
 0xce9   : > { %7405 = vrcp.f32 %v3373_v23 }
 0xcea   : > { %v7396_v17 = vpop.eup %7395 }
 0xceb   : > { %v3379_v56 = vpop.xlane.xlu0 %3378  ;;  %v3376_v63 = vpop.xlane.xlu1 %3375  ;;  %v3417_v4 = vmul.f32 %v7396_v17, %v9822_v29 }
 0xcec   : > { %7407 = vrcp.f32 %v3379_v56  ;;  %v7398_v3 = vpop.eup %7397 }
 0xced   : > { %7409 = vrcp.f32 %v3376_v63  ;;  %v3428_v47 = vpack.c.bf16 %v3417_v4, %v3416_v11  ;;  %v3418_v53 = vmul.f32 %v7398_v3, %v9819_v61  ;;  %v11332_v63 = vld [vmem:[#allocation56_spill] sm:$0xff] }
 0xcee   : > { %v7400_v22 = vpop.eup %7399  ;;  %v11335_v11 = vld [vmem:[#allocation48_spill] sm:$0xff] }
 0xcef   : > { %6657 = vmatmul.mubr.msk.bf16.gmra.mrb[92].mxu0 %vm1622_vm3, %v3428_v47  ;;  %v7402_v44 = vpop.eup %7401  ;;  %v3419_v60 = vmul.f32 %v7400_v22, %v9830_v2  ;;  %v6893_v1 = vpop.permute.xlu0 %6892 }
 0xcf0   : > { %v3420_v45 = vmul.f32 %v7402_v44, %v9828_v36  ;;  %v6895_v39 = vunpack.i.h.bf16 %v6893_v1  ;;  %v6894_v7 = vunpack.i.l.bf16 %v6893_v1 }
 0xcf1   : > { %v3429_v46 = vpack.c.bf16 %v3419_v60, %v3418_v53 }
 0xcf2   : > { %v7404_v52 = vpop.eup %7403  ;;  %v3762_v49 = vsel %vm1447_vm1, %v11332_v63, %v6895_v39 }
 0xcf3   : > { %v3421_v29 = vmul.f32 %v7404_v52, %v9838_v57  ;;  %v7406_v43 = vpop.eup %7405  ;;  %6660 = vmatprep.mubr.msk.bf16.mxu0 %vm1622_vm3, %v3429_v46 }
 0xcf4   : > { %v6654_v26 = vpop.f32.mrb[88].mxu0  ;;  %v3422_v58 = vmul.f32 %v7406_v43, %v9836_v38  ;;  %v11331_v38 = vpack.i.bf16 %v11329_v5, %v11330_v35 }
 0xcf5   : > { %v3517_v55 = vpop.f32.mrb[89].mxu0  ;;  %v3430_v18 = vpack.c.bf16 %v3421_v29, %v3420_v45 }
 0xcf6   : > { %v7408_v32 = vpop.eup %7407  ;;  %v6655_v19 = vpop.f32.mrb[90].mxu0 }
 0xcf7   : > { %v7410_v31 = vpop.eup %7409  ;;  %v6911_v61 = vpack.i.bf16 %v6655_v19, %v6654_v26  ;;  %v3520_v0 = vpop.f32.mrb[91].mxu0  ;;  %6661 = vmatmul.mubr.msk.bf16.gmra.mrb[96].mxu0 %vm1622_vm3, %v3430_v18  ;;  %v3424_v57 = vmul.f32 %v7408_v32, %v9844_v54 }
 0xcf8   : > { %v6906_v2 = vpack.i.bf16 %v3520_v0, %v3517_v55  ;;  %v3423_v62 = vmul.f32 %v7410_v31, %v9846_v27  ;;  %v6888_v54 = vpop.permute.xlu1 %6887 }
 0xcf9   : > { %6912 = vrot.lane.b32.xlu1 %v6911_v61, %s7912_s22  ;;  %v3432_v27 = vpack.c.bf16 %v3424_v57, %v3424_v57  ;;  %v6890_v15 = vunpack.i.h.bf16 %v6888_v54  ;;  %v6889_v23 = vunpack.i.l.bf16 %v6888_v54 }
 0xcfa   : > { %6907 = vrot.lane.b32.xlu0 %v6906_v2, %s7912_s22  ;;  %v3431_v36 = vpack.c.bf16 %v3423_v62, %v3422_v58  ;;  %v11336_v62 = vld [vmem:[#allocation64_spill] sm:$0xff] }
 0xcfb   : > { %v3759_v4 = vsel %vm1447_vm1, %v11335_v11, %v6889_v23  ;;  %v11349_v11 = vld [vmem:[#allocation53_spill] sm:$0xff] }
 0xcfc   : > { %6664 = vmatprep.mubr.msk.bf16.mxu0 %vm1622_vm3, %v3431_v36  ;;  %v6898_v40 = vpop.permute.xlu1 %6897  ;;  %v11337_v36 = vld [vmem:[#allocation62_spill] sm:$0xff] }
 0xcfd   : > { %6922 = vrot.lane.b32.xlu1 %v11328_v37, %s7914_s3  ;;  %v6900_v17 = vunpack.i.h.bf16 %v6898_v40  ;;  %v6899_v56 = vunpack.i.l.bf16 %v6898_v40  ;;  %v11338_v57 = vpack.i.bf16 %v11336_v62, %v11337_v36  ;;  %v11340_v37 = vld [vmem:[#allocation63_spill] sm:$0xff] }
 0xcfe   : > { %6917 = vrot.lane.b32.xlu0 %v11331_v38, %s7914_s3  ;;  %v11341_v5 = vpack.i.bf16 %v11339_v41, %v11340_v37  ;;  %v11350_v37 = vld [vmem:[#allocation41_spill] sm:$0xff] }
 0xcff   : > { %6665 = vmatmul.mubr.msk.bf16.gmra.mrb[100].mxu0 %vm1622_vm3, %v3432_v27  ;;  %v3774_v52 = vsel %vm672_vm0, %v3759_v4, %v6899_v56 }
 0xd00   : > { %v6903_v21 = vpop.permute.xlu1 %6902 }
 0xd01   : > { %6932 = vrot.lane.b32.xlu1 %v6931_v25, %s7913_s23  ;;  %v6905_v10 = vunpack.i.h.bf16 %v6903_v21  ;;  %v6904_v9 = vunpack.i.l.bf16 %v6903_v21  ;;  %v3761_v25 = vsel %vm1447_vm1, %v11333_v30, %v6894_v7 }
 0xd02   : > { %6927 = vrot.lane.b32.xlu0 %v6926_v34, %s7913_s23  ;;  %v3760_v34 = vsel %vm1447_vm1, %v11334_v28, %v6890_v15  ;;  %v11342_v15 = vld [vmem:[#allocation66_spill] sm:$0xff]  ;;  %v11348_v28 = vld [vmem:[#allocation57_spill] sm:$0xff] }
 0xd03   : > { %v3777_v59 = vsel %vm672_vm0, %v3762_v49, %v6905_v10  ;;  %v3776_v44 = vsel %vm672_vm0, %v3761_v25, %v6904_v9  ;;  %v3775_v46 = vsel %vm672_vm0, %v3760_v34, %v6900_v17  ;;  %v11346_v25 = vld [vmem:[#allocation52_spill] sm:$0xff] }
 0xd6b   : > { %v6913_v50 = vpop.permute.xlu1 %6912 }
 0xd6c   : > { %v6915_v3 = vunpack.i.h.bf16 %v6913_v50  ;;  %v6914_v47 = vunpack.i.l.bf16 %v6913_v50  ;;  %v6908_v22 = vpop.permute.xlu0 %6907 }
 0xd6d   : > { %v6910_v53 = vunpack.i.h.bf16 %v6908_v22  ;;  %v6909_v60 = vunpack.i.l.bf16 %v6908_v22 }
 0xd6e   : > { %v3792_v26 = vsel %vm3789_vm4, %v3776_v44, %v6914_v47  ;;  %v3793_v45 = vsel %vm3789_vm4, %v3777_v59, %v6915_v3 }
 0xd6f   : > { %v3806_v29 = vpack.c.bf16 %v3793_v45, %v3792_v26  ;;  %v3790_v43 = vsel %vm3789_vm4, %v3774_v52, %v6909_v60  ;;  %v3791_v55 = vsel %vm3789_vm4, %v3775_v46, %v6910_v53  ;;  %v6923_v13 = vpop.permute.xlu1 %6922 }
 0xd70   : > { %v3805_v32 = vpack.c.bf16 %v3791_v55, %v3790_v43  ;;  %v6918_v14 = vpop.permute.xlu0 %6917  ;;  %v6925_v23 = vunpack.i.h.bf16 %v6923_v13  ;;  %v6924_v10 = vunpack.i.l.bf16 %v6923_v13  ;;  %v9982_v13 = vld [vmem:[%s11070_s8 + $0x5] ss:$0 sm:$0xff] }
 0xd71   : > { %v6920_v17 = vunpack.i.h.bf16 %v6918_v14  ;;  %v6919_v56 = vunpack.i.l.bf16 %v6918_v14 }
 0xd72   : > { %6684 = vmatprep.mubr.bf16.mxu0 %v3805_v32  ;;  %v3766_v12 = vsel %vm1447_vm1, %v11346_v25, %v6925_v23 }
 0xd73   : > { %6685 = vmatmul.mubr.bf16.vlgmr.msra.gmra.mrb[104].mxu0 %v3806_v29  ;;  %v3764_v34 = vsel %vm1447_vm1, %v11348_v28, %v6920_v17  ;;  %v3763_v4 = vsel %vm1447_vm1, %v11349_v11, %v6919_v56 }
 0xd74   : > { %v6928_v9 = vpop.permute.xlu0 %6927 }
 0xd75   : > { %v6929_v30 = vunpack.i.l.bf16 %v6928_v9 }
 0xd77   : > { %v3778_v52 = vsel %vm672_vm0, %v3763_v4, %v6929_v30 }
 0xdc2   : > { %v6658_v19 = vpop.f32.mrb[92].mxu0 }
 0xdc3   : > { %v3533_v18 = vpop.f32.mrb[93].mxu0 }
 0xdc4   : > { %v6659_v31 = vpop.f32.mrb[94].mxu0 }
 0xdc5   : > { %v6941_v61 = vpack.i.bf16 %v6659_v31, %v6658_v19  ;;  %v3536_v0 = vpop.f32.mrb[95].mxu0 }
 0xdc6   : > { %v6936_v2 = vpack.i.bf16 %v3536_v0, %v3533_v18 }
 0xdc7   : > { %6942 = vrot.lane.b32.xlu1 %v6941_v61, %s7912_s22 }
 0xdc8   : > { %6937 = vrot.lane.b32.xlu0 %v6936_v2, %s7912_s22 }
 0xdca   : > { %v6662_v58 = vpop.f32.mrb[96].mxu0 }
 0xdcb   : > { %6952 = vrot.lane.b32.xlu1 %v11338_v57, %s7914_s3  ;;  %v3549_v42 = vpop.f32.mrb[97].mxu0 }
 0xdcc   : > { %6947 = vrot.lane.b32.xlu0 %v11341_v5, %s7914_s3  ;;  %v6663_v35 = vpop.f32.mrb[98].mxu0 }
 0xdcd   : > { %v6971_v38 = vpack.i.bf16 %v6663_v35, %v6662_v58  ;;  %v3552_v27 = vpop.f32.mrb[99].mxu0  ;;  %v11351_v35 = vld [vmem:[#allocation35_spill] sm:$0xff] }
 0xdce   : > { %v6966_v54 = vpack.i.bf16 %v3552_v27, %v3549_v42  ;;  %v11352_v27 = vld [vmem:[#allocation43_spill] sm:$0xff] }
 0xdcf   : > { %6962 = vrot.lane.b32.xlu1 %v6961_v20, %s7913_s23  ;;  %v11345_v20 = vpack.i.bf16 %v11343_v51, %v11344_v6 }
 0xdd0   : > { %6957 = vrot.lane.b32.xlu0 %v6956_v24, %s7913_s23  ;;  %v6933_v24 = vpop.permute.xlu1 %6932 }
 0xdd1   : > { %v6935_v63 = vunpack.i.h.bf16 %v6933_v24  ;;  %v6934_v49 = vunpack.i.l.bf16 %v6933_v24 }
 0xdd2   : > { %v6666_v40 = vpop.f32.mrb[100].mxu0 }
 0xdd3   : > { %6972 = vrot.lane.b32.xlu1 %v6971_v38, %s7912_s22  ;;  %v3565_v1 = vpop.f32.mrb[101].mxu0  ;;  %v3781_v44 = vsel %vm672_vm0, %v3766_v12, %v6935_v63 }
 0xdd4   : > { %6967 = vrot.lane.b32.xlu0 %v6966_v54, %s7912_s22  ;;  %v6667_v21 = vpop.f32.mrb[102].mxu0 }
 0xdd5   : > { %v3568_v39 = vpop.f32.mrb[103].mxu0 }
 0xdd6   : > { %v6986_v7 = vpack.i.bf16 %v3568_v39, %v3565_v1 }
 0xdd7   : > { %3622 = vrot.lane.b32.xlu1 %v11342_v15, %s7914_s3 }
 0xdd8   : > { %6977 = vrot.lane.b32.xlu0 %v11345_v20, %s7914_s3 }
 0xddb   : > { %3682 = vrot.lane.b32.xlu1 %v9668_v48, %s7913_s23  ;;  %v6930_v48 = vunpack.i.h.bf16 %v6928_v9  ;;  %v7582_v9 = vld [vmem:[#allocation7] sm:$0xff] }
 0xddc   : > { %6982 = vrot.lane.b32.xlu0 %v6981_v33, %s7913_s23  ;;  %v3765_v33 = vsel %vm1447_vm1, %v11347_v8, %v6924_v10 }
 0xddd   : > { %v3780_v59 = vsel %vm672_vm0, %v3765_v33, %v6934_v49  ;;  %v3779_v46 = vsel %vm672_vm0, %v3764_v34, %v6930_v48  ;;  %v7583_v49 = vld [vmem:[#allocation7 + $0x10] sm:$0xff] }
 0xddf   : > { %3742 = vrot.lane.b32.xlu1 %v6666_v40, %s7912_s22  ;;  %v11353_v40 = vld [vmem:[#allocation37_spill] sm:$0xff] }
 0xde0   : > { %6987 = vrot.lane.b32.xlu0 %v6986_v7, %s7912_s22 }
 0xe39   : > { %v6943_v50 = vpop.permute.xlu1 %6942 }
 0xe3a   : > { %v6945_v3 = vunpack.i.h.bf16 %v6943_v50  ;;  %v6944_v47 = vunpack.i.l.bf16 %v6943_v50  ;;  %v6938_v22 = vpop.permute.xlu0 %6937  ;;  %v7584_v50 = vld [vmem:[#allocation7 + $0x8] sm:$0xff] }
 0xe3b   : > { %v6940_v53 = vunpack.i.h.bf16 %v6938_v22  ;;  %v6939_v60 = vunpack.i.l.bf16 %v6938_v22 }
 0xe3c   : > { %v3796_v26 = vsel %vm3789_vm4, %v3780_v59, %v6944_v47  ;;  %v3797_v45 = vsel %vm3789_vm4, %v3781_v44, %v6945_v3  ;;  %v11357_v44 = vld [vmem:[#allocation23_spill] sm:$0xff] }
 0xe3d   : > { %v6953_v29 = vpop.permute.xlu1 %6952  ;;  %v3794_v43 = vsel %vm3789_vm4, %v3778_v52, %v6939_v60  ;;  %v3795_v55 = vsel %vm3789_vm4, %v3779_v46, %v6940_v53  ;;  %v3808_v32 = vpack.c.bf16 %v3797_v45, %v3796_v26 }
 0xe3e   : > { %v6948_v19 = vpop.permute.xlu0 %6947  ;;  %v3807_v18 = vpack.c.bf16 %v3795_v55, %v3794_v43  ;;  %v6955_v31 = vunpack.i.h.bf16 %v6953_v29  ;;  %v6954_v61 = vunpack.i.l.bf16 %v6953_v29 }
 0xe3f   : > { %v6950_v0 = vunpack.i.h.bf16 %v6948_v19  ;;  %v6949_v2 = vunpack.i.l.bf16 %v6948_v19 }
 0xe40   : > { %6688 = vmatprep.mubr.bf16.mxu0 %v3807_v18  ;;  %v3770_v5 = vsel %vm1447_vm1, %v11350_v37, %v6955_v31  ;;  %v3769_v38 = vsel %vm1447_vm1, %v11351_v35, %v6954_v61  ;;  %v11359_v18 = vld [vmem:[#allocation40_spill] sm:$0xff] }
 0xe41   : > { %v6963_v58 = vpop.permute.xlu1 %6962  ;;  %6689 = vmatmul.mubr.bf16.gmra.mrb[108].mxu0 %v3808_v32  ;;  %v3768_v54 = vsel %vm1447_vm1, %v11352_v27, %v6950_v0  ;;  %v3767_v1 = vsel %vm1447_vm1, %v11353_v40, %v6949_v2  ;;  %v11358_v32 = vld [vmem:[#allocation47_spill] sm:$0xff]  ;;  %v7061_v27 = vld [vmem:[#allocation11] ss:$16 sps:$4 sm:$0xff]  }
 0xe42   : > { %v6965_v62 = vunpack.i.h.bf16 %v6963_v58  ;;  %v6964_v36 = vunpack.i.l.bf16 %v6963_v58  ;;  %v6958_v57 = vpop.permute.xlu0 %6957  ;;  %v11360_v0 = vld [vmem:[#allocation51_spill] sm:$0xff] }
 0xe43   : > { %v6959_v42 = vunpack.i.l.bf16 %v6958_v57  ;;  %v6960_v41 = vunpack.i.h.bf16 %v6958_v57  ;;  %v7064_v40 = vld [vmem:[#allocation11 + $0x8] ss:$16 sps:$4 sm:$0xff]  }
 0xe44   : > { %v3784_v7 = vsel %vm672_vm0, %v3769_v38, %v6964_v36  ;;  %v3785_v15 = vsel %vm672_vm0, %v3770_v5, %v6965_v62 }
 0xe45   : > { %v6973_v21 = vpop.permute.xlu1 %6972  ;;  %v3782_v24 = vsel %vm672_vm0, %v3767_v1, %v6959_v42  ;;  %v3783_v63 = vsel %vm672_vm0, %v3768_v54, %v6960_v41  ;;  %v7063_v54 = vld [vmem:[#allocation11 + $0x4] ss:$16 sps:$4 sm:$0xff]   ;;  %v7066_v1 = vld [vmem:[#allocation11 + $0xc] ss:$16 sps:$4 sm:$0xff]  }
 0xe46   : > { %v6686_v39 = vpop.f32.mrb[104].mxu0  ;;  %v6975_v51 = vunpack.i.h.bf16 %v6973_v21  ;;  %v6974_v6 = vunpack.i.l.bf16 %v6973_v21  ;;  %v6968_v20 = vpop.permute.xlu0 %6967  ;;  %v7069_v21 = vld [vmem:[#allocation11 + $0x24] ss:$16 sps:$4 sm:$0xff]   ;;  %4432 = vmatprep.subr.bf16.mxu1 %v7063_v54  ;;  %4543 = vmatprep.subr.bf16.mxu0 %v7066_v1 }
 0xe47   : > { %v3911_v14 = vpop.f32.mrb[105].mxu0  ;;  %v6970_v23 = vunpack.i.h.bf16 %v6968_v20  ;;  %v6969_v10 = vunpack.i.l.bf16 %v6968_v20  ;;  %v3975_v48 = vadd.f32 %v7583_v49, %v6686_v39  ;;  %v7072_v39 = vld [vmem:[#allocation11 + $0x2c] ss:$16 sps:$4 sm:$0xff]   ;;  %4433 = vmatpush1.bf16.msra.mxu1 %v7061_v27  ;;  %4544 = vmatpush1.bf16.msra.mxu0 %v7064_v40 }
 0xe48   : > { %v3973_v17 = vadd.f32 %v7582_v9, %v3911_v14  ;;  %v6687_v56 = vpop.f32.mrb[106].mxu0  ;;  %v3800_v25 = vsel %vm3789_vm4, %v3784_v7, %v6974_v6  ;;  %v3801_v12 = vsel %vm3789_vm4, %v3785_v15, %v6975_v51  ;;  %v7067_v7 = vld [vmem:[#allocation11 + $0x20] ss:$16 sps:$4 sm:$0xff]   ;;  %4434 = vmatprep.subr.bf16.mxu1 %v7069_v21  ;;  %v7070_v15 = vld [vmem:[#allocation11 + $0x28] ss:$16 sps:$4 sm:$0xff]   ;;  %4545 = vmatprep.subr.bf16.mxu0 %v7072_v39 }
 0xe49   : > { %v3914_v30 = vpop.f32.mrb[107].mxu0  ;;  %v3623_v33 = vpop.permute.xlu1 %3622  ;;  %v3798_v34 = vsel %vm3789_vm4, %v3782_v24, %v6969_v10  ;;  %v3799_v11 = vsel %vm3789_vm4, %v3783_v63, %v6970_v23  ;;  %v3810_v47 = vpack.c.bf16 %v3801_v12, %v3800_v25  ;;  %v9998_v59 = vadd.f32 %v9982_v13, %v3975_v48  ;;  %v11364_v27 = vld [vmem:[#allocation27_spill] sm:$0xff] }
 0xe4a   : > { %v9989_v8 = vadd.f32 %v9982_v13, %v3973_v17  ;;  %v3974_v28 = vadd.f32 %v7584_v50, %v3914_v30  ;;  %v6978_v4 = vpop.permute.xlu0 %6977  ;;  %v3809_v3 = vpack.c.bf16 %v3799_v11, %v3798_v34  ;;  %v3976_v53 = vadd.f32 %v6687_v56, %v11357_v44  ;;  %v7078_v50 = vld [vmem:[#allocation11 + $0x4c] ss:$16 sps:$4 sm:$0xff]   ;;  %v7076_v34 = vld [vmem:[#allocation11 + $0x48] ss:$16 sps:$4 sm:$0xff]   ;;  %v7081_v11 = vld [vmem:[#allocation11 + $0x64] ss:$16 sps:$4 sm:$0xff]  }
 0xe4b   : > { %11356 = vst [vmem:[#allocation45_spill] sm:$0xff] %v9998_v59  ;;  %v6980_v52 = vunpack.i.h.bf16 %v6978_v4  ;;  %v6979_v26 = vunpack.i.l.bf16 %v6978_v4  ;;  %v3773_v19 = vsel %vm1447_vm1, %v11358_v32, %v3623_v33  ;;  %4435 = vmatpush1.bf16.msra.mxu1 %v7067_v7  ;;  %4546 = vmatpush1.bf16.msra.mxu0 %v7070_v15  ;;  %v7075_v33 = vld [vmem:[#allocation11 + $0x44] ss:$16 sps:$4 sm:$0xff]   ;;  %v7084_v4 = vld [vmem:[#allocation11 + $0x6c] ss:$16 sps:$4 sm:$0xff]  }
 0xe4c   : > { %11354 = vst [vmem:[#allocation39_spill] sm:$0xff] %v9989_v8  ;;  %v9994_v22 = vadd.f32 %v9982_v13, %v3974_v28  ;;  %4007 = vadd.xlane.f32.xlu0 %v9989_v8  ;;  %6692 = vmatprep.mubr.bf16.mxu0 %v3809_v3  ;;  %v3995_v43 = vadd.f32 %v9982_v13, %v3976_v53  ;;  %v7073_v28 = vld [vmem:[#allocation11 + $0x40] ss:$16 sps:$4 sm:$0xff]   ;;  %v7087_v44 = vld [vmem:[#allocation11 + $0x84] ss:$16 sps:$4 sm:$0xff]  }
 0xe4d   : > { %v3683_v60 = vpop.permute.xlu1 %3682  ;;  %6693 = vmatmul.mubr.bf16.gmra.mrb[112].mxu0 %v3810_v47  ;;  %v3772_v31 = vsel %vm1447_vm1, %v11359_v18, %v6980_v52  ;;  %v3771_v2 = vsel %vm1447_vm1, %v11360_v0, %v6979_v26  ;;  %4436 = vmatprep.subr.bf16.mxu1 %v7075_v33  ;;  %v7079_v3 = vld [vmem:[#allocation11 + $0x60] ss:$16 sps:$4 sm:$0xff]   ;;  %v7082_v47 = vld [vmem:[#allocation11 + $0x68] ss:$16 sps:$4 sm:$0xff]   ;;  %v7090_v53 = vld [vmem:[#allocation11 + $0x8c] ss:$16 sps:$4 sm:$0xff]  }
 0xe4e   : > { %11355 = vst [vmem:[#allocation42_spill] sm:$0xff] %v9994_v22  ;;  %4009 = vadd.xlane.f32.xlu1 %v9994_v22  ;;  %v6983_v46 = vpop.permute.xlu0 %6982  ;;  %v3788_v58 = vsel %vm672_vm0, %v3773_v19, %v3683_v60  ;;  %4547 = vmatprep.subr.bf16.mxu0 %v7078_v50  ;;  %v7085_v60 = vld [vmem:[#allocation11 + $0x80] ss:$16 sps:$4 sm:$0xff]   ;;  %v7088_v52 = vld [vmem:[#allocation11 + $0x88] ss:$16 sps:$4 sm:$0xff]  }
 0xe4f   : > { %v6985_v45 = vunpack.i.h.bf16 %v6983_v46  ;;  %v6984_v29 = vunpack.i.l.bf16 %v6983_v46  ;;  %4437 = vmatpush1.bf16.msra.mxu1 %v7073_v28  ;;  %4548 = vmatpush1.bf16.msra.mxu0 %v7076_v34  ;;  %v7093_v46 = vld [vmem:[#allocation11 + $0xa4] ss:$16 sps:$4 sm:$0xff]   ;;  %v7096_v26 = vld [vmem:[#allocation11 + $0xac] ss:$16 sps:$4 sm:$0xff]   ;;  %v7097_v32 = vld [vmem:[#allocation11 + $0xc0] ss:$16 sps:$4 sm:$0xff]  }
 0xe50   : > { %4011 = vadd.xlane.f32.xlu0 %v9998_v59  ;;  %4438 = vmatprep.subr.bf16.mxu1 %v7081_v11  ;;  %v7100_v19 = vld [vmem:[#allocation11 + $0xc8] ss:$16 sps:$4 sm:$0xff]   ;;  %v7105_v18 = vld [vmem:[#allocation11 + $0xe4] ss:$16 sps:$4 sm:$0xff]   ;;  %v7108_v0 = vld [vmem:[#allocation11 + $0xec] ss:$16 sps:$4 sm:$0xff]  }
 0xe51   : > { %v3743_v55 = vpop.permute.xlu1 %3742  ;;  %v3786_v57 = vsel %vm672_vm0, %v3771_v2, %v6984_v29  ;;  %v3787_v42 = vsel %vm672_vm0, %v3772_v31, %v6985_v45  ;;  %4549 = vmatprep.subr.bf16.mxu0 %v7084_v4  ;;  %v7091_v45 = vld [vmem:[#allocation11 + $0xa0] ss:$16 sps:$4 sm:$0xff]   ;;  %v7094_v29 = vld [vmem:[#allocation11 + $0xa8] ss:$16 sps:$4 sm:$0xff]  }
 0xe52   : > { %v6988_v61 = vpop.permute.xlu0 %6987  ;;  %v3804_v41 = vsel %vm3789_vm4, %v3788_v58, %v3743_v55  ;;  %v7102_v55 = vld [vmem:[#allocation11 + $0xcc] ss:$16 sps:$4 sm:$0xff]   ;;  %v7103_v31 = vld [vmem:[#allocation11 + $0xe0] ss:$16 sps:$4 sm:$0xff]  }
 0xe53   : > { %v6990_v62 = vunpack.i.h.bf16 %v6988_v61  ;;  %v6989_v36 = vunpack.i.l.bf16 %v6988_v61  ;;  %v3812_v38 = vpack.c.bf16 %v3804_v41, %v3804_v41  ;;  %4439 = vmatpush1.bf16.msra.mxu1 %v7079_v3  ;;  %4550 = vmatpush1.bf16.msra.mxu0 %v7082_v47  ;;  %v7106_v61 = vld [vmem:[#allocation11 + $0xe8] ss:$16 sps:$4 sm:$0xff]   ;;  %v11362_v41 = vld [vmem:[#allocation26_spill] sm:$0xff]  ;;  %v11365_v15 = vld [vmem:[#allocation28_spill] sm:$0xff] }
 0xe54   : > { %4013 = vadd.xlane.f32.xlu0 %v3995_v43  ;;  %4440 = vmatprep.subr.bf16.mxu1 %v7087_v44  ;;  %v11369_v34 = vld [vmem:[#allocation32_spill] sm:$0xff]  ;;  %v11370_v47 = vld [vmem:[#allocation34_spill] sm:$0xff] }
 0xe55   : > { %v3802_v37 = vsel %vm3789_vm4, %v3786_v57, %v6989_v36  ;;  %v3803_v5 = vsel %vm3789_vm4, %v3787_v42, %v6990_v62  ;;  %4551 = vmatprep.subr.bf16.mxu0 %v7090_v53  ;;  %v11361_v62 = vld [vmem:[#allocation24_spill] sm:$0xff] }
 0xe56   : > { %v3811_v35 = vpack.c.bf16 %v3803_v5, %v3802_v37 }
 0xe57   : > { %4441 = vmatpush1.bf16.msra.mxu1 %v7085_v60  ;;  %4552 = vmatpush1.bf16.msra.mxu0 %v7088_v52  ;;  %v11371_v60 = vld [vmem:[#allocation33_spill] sm:$0xff] }
 0xe58   : > { %6696 = vmatprep.mubr.bf16.mxu0 %v3811_v35  ;;  %4442 = vmatprep.subr.bf16.mxu1 %v7093_v46  ;;  %v11363_v35 = vld [vmem:[#allocation25_spill] sm:$0xff] }
 0xe59   : > { %6697 = vmatmul.mubr.bf16.gmra.mrb[116].mxu0 %v3812_v38  ;;  %4553 = vmatprep.subr.bf16.mxu0 %v7096_v26 }
 0xe5a   : > { %4575 = vmatprep.mubr.bf16.mxu0 %v11318_v16 }
 0xe5b   : > { %4443 = vmatpush1.bf16.msra.mxu1 %v7091_v45  ;;  %4554 = vmatpush1.bf16.msra.mxu0 %v7094_v29 }
 0xe5c   : > { %4555 = vmatprep.subr.bf16.mxu0 %v7102_v55 }
 0xe5f   : > { %4556 = vmatpush1.bf16.msra.mxu0 %v7100_v19 }
 0xe60   : > { %4557 = vmatprep.subr.bf16.mxu0 %v7108_v0 }
 0xe63   : > { %4558 = vmatpush1.bf16.msra.mxu0 %v7106_v61 }
 0xed9   : > { %v4008_v51 = vpop.xlane.xlu0 %4007 }
 0xeda   : > { %v4037_v6 = vmul.f32 0.0078125, %v4008_v51 }
 0xedb   : > { %v4010_v20 = vpop.xlane.xlu1 %4009 }
 0xedc   : > { %v10018_v14 = vsub.f32 %v9989_v8, %v4037_v6  ;;  %v4038_v24 = vmul.f32 0.0078125, %v4010_v20 }
 0xedd   : > { %v4012_v23 = vpop.xlane.xlu0 %4011 }
 0xede   : > { %v10021_v10 = vsub.f32 %v9994_v22, %v4038_v24  ;;  %v4039_v9 = vmul.f32 0.0078125, %v4012_v23  ;;  %v4067_v17 = vmul.f32 %v10018_v14, %v10018_v14  ;;  %v11366_v24 = vld [vmem:[#allocation30_spill] sm:$0xff] }
 0xee0   : > { %v10026_v56 = vsub.f32 %v9998_v59, %v4039_v9  ;;  %4082 = vadd.xlane.f32.xlu1 %v4067_v17  ;;  %v4068_v63 = vmul.f32 %v10021_v10, %v10021_v10  ;;  %v11367_v17 = vld [vmem:[#allocation29_spill] sm:$0xff] }
 0xee1   : > { %v4014_v49 = vpop.xlane.xlu0 %4013 }
 0xee2   : > { %v4040_v48 = vmul.f32 0.0078125, %v4014_v49  ;;  %4084 = vadd.xlane.f32.xlu0 %v4068_v63  ;;  %v4069_v30 = vmul.f32 %v10026_v56, %v10026_v56  ;;  %v11368_v49 = vld [vmem:[#allocation31_spill] sm:$0xff] }
 0xee4   : > { %v10032_v25 = vsub.f32 %v3995_v43, %v4040_v48  ;;  %4086 = vadd.xlane.f32.xlu1 %v4069_v30  ;;  %v7099_v43 = vld [vmem:[#allocation11 + $0xc4] ss:$16 sps:$4 sm:$0xff]  }
 0xee5   : > { %4444 = vmatprep.subr.bf16.mxu1 %v7099_v43 }
 0xee6   : > { %v4070_v12 = vmul.f32 %v10032_v25, %v10032_v25  ;;  %4445 = vmatpush1.bf16.msra.mxu1 %v7097_v32 }
 0xee7   : > { %4446 = vmatprep.subr.bf16.mxu1 %v7105_v18 }
 0xee8   : > { %4088 = vadd.xlane.f32.xlu0 %v4070_v12 }
 0xeea   : > { %4447 = vmatpush1.bf16.msra.mxu1 %v7103_v31 }
 0xf14   : > { %v6690_v2 = vpop.f32.mrb[108].mxu0 }
 0xf15   : > { %v3927_v58 = vpop.f32.mrb[109].mxu0  ;;  %v3979_v37 = vadd.f32 %v6690_v2, %v11362_v41 }
 0xf16   : > { %v3977_v36 = vadd.f32 %v3927_v58, %v11361_v62  ;;  %v6691_v57 = vpop.f32.mrb[110].mxu0  ;;  %v10094_v62 = vld [vmem:[%s11070_s8 + $0x6] ss:$0 sm:$0xff] }
 0xf17   : > { %v3930_v42 = vpop.f32.mrb[111].mxu0  ;;  %v3980_v54 = vadd.f32 %v6691_v57, %v11364_v27  ;;  %v10048_v1 = vadd.f32 %v9982_v13, %v3979_v37 }
 0xf18   : > { %v10039_v5 = vadd.f32 %v9982_v13, %v3977_v36  ;;  %v3978_v38 = vadd.f32 %v3930_v42, %v11363_v35  ;;  %v10102_v35 = vld [vmem:[%s11070_s8 + $0x7] ss:$0 sm:$0xff] }
 0xf19   : > { %v10052_v21 = vadd.f32 %v9982_v13, %v3980_v54 }
 0xf1a   : > { %v10044_v40 = vadd.f32 %v9982_v13, %v3978_v38  ;;  %4015 = vadd.xlane.f32.xlu1 %v10039_v5 }
 0xf1c   : > { %4017 = vadd.xlane.f32.xlu0 %v10044_v40 }
 0xf1e   : > { %4019 = vadd.xlane.f32.xlu1 %v10048_v1 }
 0xf20   : > { %4021 = vadd.xlane.f32.xlu0 %v10052_v21  ;;  %v6694_v39 = vpop.f32.mrb[112].mxu0 }
 0xf21   : > { %v3943_v7 = vpop.f32.mrb[113].mxu0  ;;  %v3983_v23 = vadd.f32 %v6694_v39, %v11366_v24 }
 0xf22   : > { %v3981_v51 = vadd.f32 %v3943_v7, %v11365_v15  ;;  %v6695_v6 = vpop.f32.mrb[114].mxu0 }
 0xf23   : > { %v3946_v20 = vpop.f32.mrb[115].mxu0  ;;  %v3984_v48 = vadd.f32 %v6695_v6, %v11368_v49  ;;  %v10068_v12 = vadd.f32 %v9982_v13, %v3983_v23 }
 0xf24   : > { %v10059_v9 = vadd.f32 %v9982_v13, %v3981_v51  ;;  %v3982_v63 = vadd.f32 %v3946_v20, %v11367_v17 }
 0xf25   : > { %v10072_v33 = vadd.f32 %v9982_v13, %v3984_v48 }
 0xf26   : > { %v10064_v30 = vadd.f32 %v9982_v13, %v3982_v63  ;;  %4023 = vadd.xlane.f32.xlu1 %v10059_v9 }
 0xf28   : > { %4025 = vadd.xlane.f32.xlu0 %v10064_v30 }
 0xf2a   : > { %4027 = vadd.xlane.f32.xlu1 %v10068_v12 }
 0xf2c   : > { %4029 = vadd.xlane.f32.xlu0 %v10072_v33  ;;  %v6698_v50 = vpop.f32.mrb[116].mxu0 }
 0xf2d   : > { %v3959_v28 = vpop.f32.mrb[117].mxu0  ;;  %v3987_v44 = vadd.f32 %v6698_v50, %v11370_v47 }
 0xf2e   : > { %v3985_v11 = vadd.f32 %v3959_v28, %v11369_v34  ;;  %v6699_v4 = vpop.f32.mrb[118].mxu0 }
 0xf2f   : > { %v3962_v3 = vpop.f32.mrb[119].mxu0  ;;  %v10087_v26 = vadd.f32 %v9982_v13, %v3987_v44 }
 0xf30   : > { %v10079_v53 = vadd.f32 %v9982_v13, %v3985_v11  ;;  %v3986_v52 = vadd.f32 %v3962_v3, %v11371_v60 }
 0xf32   : > { %v10083_v46 = vadd.f32 %v9982_v13, %v3986_v52  ;;  %4031 = vadd.xlane.f32.xlu1 %v10079_v53 }
 0xf34   : > { %4033 = vadd.xlane.f32.xlu0 %v10083_v46 }
 0xf36   : > { %4035 = vadd.xlane.f32.xlu1 %v10087_v26 }
 0xf6d   : > { %v4083_v45 = vpop.xlane.xlu1 %4082 }
 0xf6e   : > { %v4112_v29 = vmul.f32 0.0078125, %v4083_v45 }
 0xf6f   : > { %v4085_v43 = vpop.xlane.xlu0 %4084 }
 0xf70   : > { %v4127_v55 = vadd.f32 1e-06, %v4112_v29  ;;  %v4113_v32 = vmul.f32 0.0078125, %v4085_v43 }
 0xf71   : > { %v4087_v19 = vpop.xlane.xlu1 %4086 }
 0xf72   : > { %7411 = vrsqrt.f32 %v4127_v55  ;;  %v4128_v18 = vadd.f32 1e-06, %v4113_v32  ;;  %v4114_v31 = vmul.f32 0.0078125, %v4087_v19 }
 0xf74   : > { %7413 = vrsqrt.f32 %v4128_v18  ;;  %v4129_v61 = vadd.f32 1e-06, %v4114_v31 }
 0xf75   : > { %v4089_v0 = vpop.xlane.xlu0 %4088 }
 0xf76   : > { %7415 = vrsqrt.f32 %v4129_v61  ;;  %v4115_v2 = vmul.f32 0.0078125, %v4089_v0 }
 0xf78   : > { %v4130_v13 = vadd.f32 1e-06, %v4115_v2 }
 0xf7a   : > { %7417 = vrsqrt.f32 %v4130_v13 }
 0xf7c   : > { %v7412_v58 = vpop.eup %7411 }
 0xf7d   : > { %v4157_v36 = vmul.f32 %v7412_v58, %v10018_v14 }
 0xf7e   : > { %v7414_v57 = vpop.eup %7413 }
 0xf7f   : > { %v4176_v42 = vmul.f32 %v10094_v62, %v4157_v36  ;;  %v4158_v41 = vmul.f32 %v7414_v57, %v10021_v10 }
 0xf80   : > { %v7416_v37 = vpop.eup %7415 }
 0xf81   : > { %v4177_v38 = vmul.f32 %v10094_v62, %v4158_v41  ;;  %v4195_v27 = vadd.f32 %v10102_v35, %v4176_v42  ;;  %v4159_v39 = vmul.f32 %v7416_v37, %v10026_v56 }
 0xf83   : > { %v4196_v54 = vadd.f32 %v10102_v35, %v4177_v38  ;;  %v4178_v10 = vmul.f32 %v10094_v62, %v4159_v39  ;;  %v7109_v38 = vld [vmem:[#allocation13 + $0x40] sm:$0xff]   ;;  %v10178_v39 = vld [vmem:[#allocation13 + $0xc8] sm:$0xff]  }
 0xf84   : > { %v7418_v14 = vpop.eup %7417  ;;  %6252 = vmatprep.subr.bf16.mxu1 %v7109_v38 }
 0xf85   : > { %v4210_v7 = vpack.c.bf16 %v4196_v54, %v4195_v27  ;;  %v4160_v15 = vmul.f32 %v7418_v14, %v10032_v25  ;;  %v4197_v20 = vadd.f32 %v10102_v35, %v4178_v10  ;;  %v10170_v27 = vld [vmem:[#allocation13 + $0xc0] sm:$0xff]   ;;  %v7115_v14 = vld [vmem:[#allocation13 + $0x8] sm:$0xff]   ;;  %v10184_v10 = vld [vmem:[#allocation13 + $0xd0] sm:$0xff]  }
 0xf86   : > { %v10172_v54 = vld [vmem:[#allocation13 + $0x80] sm:$0xff]   ;;  %6316 = vmatprep.subr.bf16.mxu0 %v10170_v27 }
 0xf87   : > { %4465 = vmatmul.mubr.bf16.vlgmr.msra.gmra.mrb[96].mxu1 %v4210_v7  ;;  %4576 = vmatmul.mubr.bf16.vlgmr.msra.gmra.mrb[120].mxu0 %v4210_v7  ;;  %v4179_v51 = vmul.f32 %v10094_v62, %v4160_v15  ;;  %v10180_v7 = vld [vmem:[#allocation13 + $0x88] sm:$0xff]   ;;  %v7117_v15 = vld [vmem:[#allocation13 + $0x50] sm:$0xff]  }
 0xf88   : > { %4474 = vmatprep.mubr.bf16.mxu1 %v11318_v16  ;;  %4585 = vmatprep.mubr.bf16.mxu0 %v11318_v16 }
 0xf89   : > { %v4198_v6 = vadd.f32 %v10102_v35, %v4179_v51  ;;  %6317 = vmatpush3.bf16.msra.mxu0 %v10172_v54  ;;  %v7119_v51 = vld [vmem:[#allocation13 + $0x10] sm:$0xff]  }
 0xf8a   : > { %6318 = vmatprep.subr.bf16.mxu0 %v10178_v39 }
 0xf8b   : > { %v4211_v24 = vpack.c.bf16 %v4198_v6, %v4197_v20  ;;  %v10186_v6 = vld [vmem:[#allocation13 + $0x90] sm:$0xff]   ;;  %v7121_v20 = vld [vmem:[#allocation13 + $0x58] sm:$0xff]  }
 0xf8d   : > { %6319 = vmatpush3.bf16.msra.mxu0 %v10180_v7 }
 0xf8e   : > { %6320 = vmatprep.subr.bf16.mxu0 %v10184_v10 }
 0xf8f   : > { %4475 = vmatmul.mubr.bf16.gmra.mrb[100].mxu1 %v4211_v24  ;;  %4586 = vmatmul.mubr.bf16.gmra.mrb[124].mxu0 %v4211_v24  ;;  %v10190_v24 = vld [vmem:[#allocation13 + $0xd8] sm:$0xff]  }
 0xf90   : > { %4484 = vmatprep.mubr.bf16.mxu1 %v11318_v16  ;;  %4595 = vmatprep.mubr.bf16.mxu0 %v11318_v16 }
 0xf91   : > { %6321 = vmatpush3.bf16.msra.mxu0 %v10186_v6 }
 0xf92   : > { %6322 = vmatprep.subr.bf16.mxu0 %v10190_v24 }
 0xfa7   : > { %v4016_v56 = vpop.xlane.xlu1 %4015 }
 0xfa8   : > { %v4041_v25 = vmul.f32 0.0078125, %v4016_v56  ;;  %v7123_v56 = vld [vmem:[#allocation13 + $0x18] sm:$0xff]  }
 0xfa9   : > { %v4018_v23 = vpop.xlane.xlu0 %4017 }
 0xfaa   : > { %v10118_v17 = vsub.f32 %v10039_v5, %v4041_v25  ;;  %v4042_v63 = vmul.f32 0.0078125, %v4018_v23  ;;  %v10192_v25 = vld [vmem:[#allocation13 + $0x98] sm:$0xff]   ;;  %v7125_v23 = vld [vmem:[#allocation13 + $0x60] sm:$0xff]  }
 0xfab   : > { %v4020_v49 = vpop.xlane.xlu1 %4019  ;;  %6323 = vmatpush3.bf16.msra.mxu0 %v10192_v25 }
 0xfac   : > { %v10121_v48 = vsub.f32 %v10044_v40, %v4042_v63  ;;  %v4043_v50 = vmul.f32 0.0078125, %v4020_v49  ;;  %v4071_v28 = vmul.f32 %v10118_v17, %v10118_v17  ;;  %v10196_v63 = vld [vmem:[#allocation13 + $0xe0] sm:$0xff]  }
 0xfad   : > { %v4022_v34 = vpop.xlane.xlu0 %4021  ;;  %6324 = vmatprep.subr.bf16.mxu0 %v10196_v63  ;;  %v7127_v49 = vld [vmem:[#allocation13 + $0x20] sm:$0xff]  }
 0xfae   : > { %v10126_v11 = vsub.f32 %v10048_v1, %v4043_v50  ;;  %v4044_v4 = vmul.f32 0.0078125, %v4022_v34  ;;  %4090 = vadd.xlane.f32.xlu0 %v4071_v28  ;;  %v4072_v3 = vmul.f32 %v10121_v48, %v10121_v48  ;;  %v10199_v50 = vld [vmem:[#allocation13 + $0xa0] sm:$0xff]   ;;  %v7129_v28 = vld [vmem:[#allocation13 + $0x68] sm:$0xff]  }
 0xfaf   : > { %v10201_v34 = vld [vmem:[#allocation13 + $0xe8] sm:$0xff]   ;;  %6325 = vmatpush3.bf16.msra.mxu0 %v10199_v50 }
 0xfb0   : > { %v10131_v5 = vsub.f32 %v10052_v21, %v4044_v4  ;;  %4092 = vadd.xlane.f32.xlu1 %v4072_v3  ;;  %v4073_v40 = vmul.f32 %v10126_v11, %v10126_v11  ;;  %6326 = vmatprep.subr.bf16.mxu0 %v10201_v34  ;;  %v7131_v4 = vld [vmem:[#allocation13 + $0x28] sm:$0xff]  }
 0xfb1   : > { %v10205_v3 = vld [vmem:[#allocation13 + $0xa8] sm:$0xff]  }
 0xfb2   : > { %4094 = vadd.xlane.f32.xlu0 %v4073_v40  ;;  %v4074_v47 = vmul.f32 %v10131_v5, %v10131_v5  ;;  %v7133_v40 = vld [vmem:[#allocation13 + $0x70] sm:$0xff]  }
 0xfb3   : > { %v4024_v44 = vpop.xlane.xlu1 %4023  ;;  %6327 = vmatpush3.bf16.msra.mxu0 %v10205_v3 }
 0xfb4   : > { %v4045_v60 = vmul.f32 0.0078125, %v4024_v44  ;;  %4096 = vadd.xlane.f32.xlu1 %v4074_v47  ;;  %v10207_v47 = vld [vmem:[#allocation13 + $0xf0] sm:$0xff]  }
 0xfb5   : > { %v4026_v1 = vpop.xlane.xlu0 %4025  ;;  %6328 = vmatprep.subr.bf16.mxu0 %v10207_v47  ;;  %v7135_v44 = vld [vmem:[#allocation13 + $0x30] sm:$0xff]  }
 0xfb6   : > { %v10138_v52 = vsub.f32 %v10059_v9, %v4045_v60  ;;  %v4046_v45 = vmul.f32 0.0078125, %v4026_v1  ;;  %v10211_v60 = vld [vmem:[#allocation13 + $0xb0] sm:$0xff]   ;;  %v7137_v1 = vld [vmem:[#allocation13 + $0x78] sm:$0xff]  }
 0xfb7   : > { %v4028_v29 = vpop.xlane.xlu1 %4027  ;;  %11372 = vst [vmem:[#allocation36_spill] sm:$0xff] %v10211_v60  ;;  %6329 = vmatpush3.bf16.msra.mxu0 %v10211_v60 }
 0xfb8   : > { %v10141_v21 = vsub.f32 %v10064_v30, %v4046_v45  ;;  %v4047_v43 = vmul.f32 0.0078125, %v4028_v29  ;;  %v4075_v55 = vmul.f32 %v10138_v52, %v10138_v52  ;;  %v10213_v45 = vld [vmem:[#allocation13 + $0xf8] sm:$0xff]  }
 0xfb9   : > { %v4030_v32 = vpop.xlane.xlu0 %4029  ;;  %11373 = vst [vmem:[#allocation54_spill] sm:$0xff] %v10213_v45  ;;  %6330 = vmatprep.subr.bf16.mxu0 %v10213_v45  ;;  %v7139_v29 = vld [vmem:[#allocation13 + $0x38] sm:$0xff]  }
 0xfba   : > { %v10146_v19 = vsub.f32 %v10068_v12, %v4047_v43  ;;  %v4048_v18 = vmul.f32 0.0078125, %v4030_v32  ;;  %4098 = vadd.xlane.f32.xlu0 %v4075_v55  ;;  %v4076_v31 = vmul.f32 %v10141_v21, %v10141_v21  ;;  %v10217_v43 = vld [vmem:[#allocation13 + $0xb8] sm:$0xff]  }
 0xfbb   : > { %11374 = vst [vmem:[#allocation50_spill] sm:$0xff] %v10217_v43  ;;  %6331 = vmatpush3.bf16.msra.mxu0 %v10217_v43 }
 0xfbc   : > { %v10151_v9 = vsub.f32 %v10072_v33, %v4048_v18  ;;  %4100 = vadd.xlane.f32.xlu1 %v4076_v31  ;;  %v4077_v30 = vmul.f32 %v10146_v19, %v10146_v19 }
 0xfbe   : > { %4102 = vadd.xlane.f32.xlu0 %v4077_v30  ;;  %v4078_v61 = vmul.f32 %v10151_v9, %v10151_v9 }
 0xfbf   : > { %v4032_v0 = vpop.xlane.xlu1 %4031 }
 0xfc0   : > { %v4049_v2 = vmul.f32 0.0078125, %v4032_v0  ;;  %4104 = vadd.xlane.f32.xlu1 %v4078_v61 }
 0xfc1   : > { %v4034_v12 = vpop.xlane.xlu0 %4033 }
 0xfc2   : > { %v10158_v13 = vsub.f32 %v10079_v53, %v4049_v2  ;;  %v4050_v58 = vmul.f32 0.0078125, %v4034_v12  ;;  %v7111_v53 = vld [vmem:[#allocation13] sm:$0xff]  }
 0xfc3   : > { %v4036_v36 = vpop.xlane.xlu1 %4035  ;;  %6253 = vmatpush3.bf16.msra.mxu1 %v7111_v53 }
 0xfc4   : > { %v10161_v33 = vsub.f32 %v10083_v46, %v4050_v58  ;;  %v4051_v57 = vmul.f32 0.0078125, %v4036_v36  ;;  %v4079_v42 = vmul.f32 %v10158_v13, %v10158_v13 }
 0xfc6   : > { %v10166_v41 = vsub.f32 %v10087_v26, %v4051_v57  ;;  %4106 = vadd.xlane.f32.xlu0 %v4079_v42  ;;  %v4080_v37 = vmul.f32 %v10161_v33, %v10161_v33  ;;  %v7113_v26 = vld [vmem:[#allocation13 + $0x48] sm:$0xff]  }
 0xfc7   : > { %6254 = vmatprep.subr.bf16.mxu1 %v7113_v26  ;;  %v4252_v26 = vlaneseq }
 0xfc8   : > { %4108 = vadd.xlane.f32.xlu1 %v4080_v37  ;;  %v4081_v46 = vmul.f32 %v10166_v41, %v10166_v41  ;;  %6255 = vmatpush3.bf16.msra.mxu1 %v7115_v14 }
 0xfc9   : > { %6256 = vmatprep.subr.bf16.mxu1 %v7117_v15 }
 0xfca   : > { %4110 = vadd.xlane.f32.xlu0 %v4081_v46 }
 0xfcc   : > { %6257 = vmatpush3.bf16.msra.mxu1 %v7119_v51 }
 0xfcd   : > { %6258 = vmatprep.subr.bf16.mxu1 %v7121_v20 }
 0xfd0   : > { %6259 = vmatpush3.bf16.msra.mxu1 %v7123_v56 }
 0xfd1   : > { %6260 = vmatprep.subr.bf16.mxu1 %v7125_v23 }
 0xfd4   : > { %6261 = vmatpush3.bf16.msra.mxu1 %v7127_v49  ;;  %v4253_v49 = vshrl.u32 %v4252_v26, 7 }
 0xfd5   : > { %6262 = vmatprep.subr.bf16.mxu1 %v7129_v28 }
 0xfd8   : > { %6263 = vmatpush3.bf16.msra.mxu1 %v7131_v4 }
 0xfd9   : > { %6264 = vmatprep.subr.bf16.mxu1 %v7133_v40 }
 0xfdc   : > { %6265 = vmatpush3.bf16.msra.mxu1 %v7135_v44 }
 0xfdd   : > { %6266 = vmatprep.subr.bf16.mxu1 %v7137_v1 }
 0xfe0   : > { %6267 = vmatpush3.bf16.msra.mxu1 %v7139_v29 }
 0xfe1   : > { %6700 = vmatprep.subr.bf16.mxu1 %v10170_v27 }
0x103b   : > { %v4091_v55 = vpop.xlane.xlu0 %4090 }
0x103c   : > { %v4116_v32 = vmul.f32 0.0078125, %v4091_v55 }
0x103d   : > { %v4093_v18 = vpop.xlane.xlu1 %4092 }
0x103e   : > { %v4131_v31 = vadd.f32 1e-06, %v4116_v32  ;;  %v4117_v30 = vmul.f32 0.0078125, %v4093_v18  ;;  %v4254_v32 = vsub.s32 0, %v4253_v49 }
0x103f   : > { %v4095_v61 = vpop.xlane.xlu0 %4094 }
0x1040   : > { %7419 = vrsqrt.f32 %v4131_v31  ;;  %v4132_v0 = vadd.f32 1e-06, %v4117_v30  ;;  %v4118_v2 = vmul.f32 0.0078125, %v4095_v61  ;;  %v4250_v61 = vld [vmem:[%s11375_s28] sm:$0xf]  ;;  %s7811_s28 = scalar_lea.vmem %s11013_s27, 384 }
0x1041   : > { %v4097_v12 = vpop.xlane.xlu1 %4096  ;;  %p7812_p10 = scmp.ne.s32.totalorder %s11013_s27, %s7811_s28  ;;  %p7819_p8 = scmp.lt.s32.totalorder %s7817_s21, %s7811_s28 }
0x1042   : > { %7421 = vrsqrt.f32 %v4132_v0  ;;  %v4133_v58 = vadd.f32 1e-06, %v4118_v2  ;;  %v4119_v36 = vmul.f32 0.0078125, %v4097_v12  ;;  %v4258_v12 = vsub.s32 1, %v4253_v49 }
0x1043   : > { %p7813_p11 = pnand %p7812_p10, %p11461_p1  ;;  %p7820_p6 = por %p7819_p8, %p7818_p13 }
0x1044   : > { %7423 = vrsqrt.f32 %v4133_v58  ;;  %v4134_v57 = vadd.f32 1e-06, %v4119_v36 }
0x1045   : > { %p7814_p12 = pneg %p7813_p11 }
0x1046   : > { %7425 = vrsqrt.f32 %v4134_v57  ;;  %v10234_v57 = vrot.slane %v4250_v61, %v4254_v32 }
0x1047   : > { %v4099_v42 = vpop.xlane.xlu0 %4098  ;;  %p7821_p9 = pnand %p7820_p6, %p7814_p12 }
0x1048   : > { %v4120_v37 = vmul.f32 0.0078125, %v4099_v42  ;;  %11376 = vst [vmem:[#allocation49_spill] sm:$0xff] %v10234_v57 }
0x1049   : > { %v4101_v38 = vpop.xlane.xlu1 %4100 }
0x104a   : > { %v7420_v27 = vpop.eup %7419  ;;  %v4135_v53 = vadd.f32 1e-06, %v4120_v37  ;;  %v4121_v46 = vmul.f32 0.0078125, %v4101_v38  ;;  %v4266_v37 = vsub.s32 3, %v4253_v49 }
0x104b   : > { %v4161_v14 = vmul.f32 %v7420_v27, %v10118_v17  ;;  %v4103_v28 = vpop.xlane.xlu0 %4102 }
0x104c   : > { %v7422_v15 = vpop.eup %7421  ;;  %7427 = vrsqrt.f32 %v4135_v53  ;;  %v4136_v51 = vadd.f32 1e-06, %v4121_v46  ;;  %v4122_v18 = vmul.f32 0.0078125, %v4103_v28 }
0x104d   : > { %v4162_v20 = vmul.f32 %v7422_v15, %v10121_v48  ;;  %v4180_v56 = vmul.f32 %v10094_v62, %v4161_v14  ;;  %v4105_v44 = vpop.xlane.xlu1 %4104  ;;  %v4262_v48 = vsub.s32 2, %v4253_v49  ;;  %v10241_v14 = vrot.slane %v4250_v61, %v4258_v12 }
0x104e   : > { %v7424_v23 = vpop.eup %7423  ;;  %7429 = vrsqrt.f32 %v4136_v51  ;;  %v4123_v2 = vmul.f32 0.0078125, %v4105_v44  ;;  %v4137_v38 = vadd.f32 1e-06, %v4122_v18  ;;  %v10247_v44 = vrot.slane %v4250_v61, %v4266_v37 }
0x104f   : > { %v4181_v4 = vmul.f32 %v10094_v62, %v4162_v20  ;;  %v4199_v1 = vadd.f32 %v10102_v35, %v4180_v56  ;;  %v4163_v17 = vmul.f32 %v7424_v23, %v10126_v11  ;;  %v10236_v42 = vrot.slane %v4250_v61, %v4262_v48  ;;  %11378 = vst [vmem:[#allocation60_spill] sm:$0xff] %v10241_v14 }
0x1050   : > { %v7426_v40 = vpop.eup %7425  ;;  %v4138_v46 = vadd.f32 1e-06, %v4123_v2  ;;  %11379 = vst [vmem:[#allocation58_spill] sm:$0xff] %v10247_v44  ;;  %7431 = vrsqrt.f32 %v4137_v38 }
0x1051   : > { %v4200_v29 = vadd.f32 %v10102_v35, %v4181_v4  ;;  %v4164_v55 = vmul.f32 %v7426_v40, %v10131_v5  ;;  %v4182_v11 = vmul.f32 %v10094_v62, %v4163_v17  ;;  %11377 = vst [vmem:[#allocation46_spill] sm:$0xff] %v10236_v42 }
0x1052   : > { %7433 = vrsqrt.f32 %v4138_v46 }
0x1053   : > { %v4107_v31 = vpop.xlane.xlu0 %4106  ;;  %v4212_v30 = vpack.c.bf16 %v4200_v29, %v4199_v1  ;;  %v4183_v0 = vmul.f32 %v10094_v62, %v4164_v55  ;;  %v4201_v20 = vadd.f32 %v10102_v35, %v4182_v11 }
0x1054   : > { %v4124_v5 = vmul.f32 0.0078125, %v4107_v31 }
0x1055   : > { %v4109_v58 = vpop.xlane.xlu1 %4108  ;;  %4485 = vmatmul.mubr.bf16.gmra.mrb[104].mxu1 %v4212_v30  ;;  %4596 = vmatmul.mubr.bf16.gmra.mrb[128].mxu0 %v4212_v30  ;;  %v4202_v53 = vadd.f32 %v10102_v35, %v4183_v0 }
0x1056   : > { %v7428_v36 = vpop.eup %7427  ;;  %4494 = vmatprep.mubr.bf16.mxu1 %v11318_v16  ;;  %4605 = vmatprep.mubr.bf16.mxu0 %v11318_v16  ;;  %v4125_v27 = vmul.f32 0.0078125, %v4109_v58  ;;  %v4139_v49 = vadd.f32 1e-06, %v4124_v5 }
0x1057   : > { %v4111_v26 = vpop.xlane.xlu0 %4110  ;;  %v4165_v56 = vmul.f32 %v7428_v36, %v10138_v52  ;;  %v4213_v48 = vpack.c.bf16 %v4202_v53, %v4201_v20 }
0x1058   : > { %v7430_v23 = vpop.eup %7429  ;;  %v4140_v29 = vadd.f32 1e-06, %v4125_v27  ;;  %v4126_v17 = vmul.f32 0.0078125, %v4111_v26  ;;  %7435 = vrsqrt.f32 %v4139_v49 }
0x1059   : > { %v4166_v61 = vmul.f32 %v7430_v23, %v10141_v21  ;;  %v4184_v12 = vmul.f32 %v10094_v62, %v4165_v56 }
0x105a   : > { %v4466_v15 = vpop.f32.mrb[96].mxu1  ;;  %v4577_v51 = vpop.f32.mrb[120].mxu0  ;;  %7437 = vrsqrt.f32 %v4140_v29  ;;  %v4141_v5 = vadd.f32 1e-06, %v4126_v17 }
0x105b   : > { %v4467_v28 = vadd.f32 %v4466_v15, %v10234_v57  ;;  %v4578_v4 = vadd.f32 %v4577_v51, %v10236_v42  ;;  %v4468_v40 = vpop.f32.mrb[97].mxu1  ;;  %v4579_v1 = vpop.f32.mrb[121].mxu0  ;;  %v4185_v20 = vmul.f32 %v10094_v62, %v4166_v61  ;;  %v4203_v56 = vadd.f32 %v10102_v35, %v4184_v12 }
0x105c   : > { %v4470_v55 = vpop.f32.mrb[98].mxu1  ;;  %v4581_v32 = vpop.f32.mrb[122].mxu0  ;;  %v10250_v52 = vadd.f32 %v4468_v40, %v10241_v14  ;;  %v10256_v11 = vadd.f32 %v4579_v1, %v10247_v44  ;;  %7439 = vrsqrt.f32 %v4141_v5 }
0x105d   : > { %v4714_v18 = vmul.f32 0.044715, %v4467_v28  ;;  %v4472_v31 = vpop.f32.mrb[99].mxu1  ;;  %v4583_v30 = vpop.f32.mrb[123].mxu0  ;;  %v4716_v0 = vmul.f32 0.044715, %v4578_v4  ;;  %v4471_v2 = vadd.f32 %v4470_v55, %v10234_v57  ;;  %4495 = vmatmul.mubr.bf16.gmra.mrb[108].mxu1 %v4213_v48  ;;  %4606 = vmatmul.mubr.bf16.gmra.mrb[132].mxu0 %v4213_v48  ;;  %v10259_v36 = vadd.f32 %v4581_v32, %v10236_v42 }
0x105e   : > { %4504 = vmatprep.mubr.bf16.mxu1 %v11318_v16  ;;  %4615 = vmatprep.mubr.bf16.mxu0 %v11318_v16  ;;  %v4715_v21 = vmul.f32 0.044715, %v10250_v52  ;;  %v10266_v26 = vadd.f32 %v4472_v31, %v10241_v14  ;;  %v4717_v49 = vmul.f32 0.044715, %v10256_v11  ;;  %v10273_v32 = vadd.f32 %v4583_v30, %v10247_v44 }
0x105f   : > { %v4774_v58 = vmul.f32 %v4714_v18, %v4467_v28  ;;  %v4776_v37 = vmul.f32 %v4716_v0, %v4578_v4  ;;  %v4718_v27 = vmul.f32 0.044715, %v4471_v2  ;;  %v4720_v53 = vmul.f32 0.044715, %v10259_v36 }
0x1060   : > { %v10278_v0 = vmul.f32 0.5, %v4467_v28  ;;  %v4775_v61 = vmul.f32 %v4715_v21, %v10250_v52  ;;  %v4719_v30 = vmul.f32 0.044715, %v10266_v26  ;;  %v10289_v59 = vmul.f32 0.5, %v4471_v2 }
0x1061   : > { %v4834_v38 = vmul.f32 %v4774_v58, %v4467_v28  ;;  %v4836_v46 = vmul.f32 %v4776_v37, %v4578_v4  ;;  %v4778_v40 = vmul.f32 %v4718_v27, %v4471_v2  ;;  %v4780_v1 = vmul.f32 %v4720_v53, %v10259_v36  ;;  %v7432_v27 = vpop.eup %7431 }
0x1062   : > { %v4476_v15 = vpop.f32.mrb[100].mxu1  ;;  %v4587_v51 = vpop.f32.mrb[124].mxu0  ;;  %v10282_v53 = vmul.f32 0.5, %v4578_v4  ;;  %v4721_v22 = vmul.f32 0.044715, %v10273_v32 }
0x1063   : > { %v4894_v23 = vadd.f32 %v4834_v38, %v4467_v28  ;;  %v4478_v29 = vpop.f32.mrb[101].mxu1  ;;  %v4589_v17 = vpop.f32.mrb[125].mxu0  ;;  %v4896_v55 = vadd.f32 %v4836_v46, %v4578_v4  ;;  %v10276_v48 = vadd.f32 %v4476_v15, %v10234_v57  ;;  %v4838_v12 = vmul.f32 %v4778_v40, %v4471_v2 }
0x1064   : > { %v4480_v18 = vpop.f32.mrb[102].mxu1  ;;  %v4591_v31 = vpop.f32.mrb[126].mxu0  ;;  %v4840_v58 = vmul.f32 %v4780_v1, %v10259_v36  ;;  %v10286_v46 = vadd.f32 %v4587_v51, %v10236_v42  ;;  %v4777_v28 = vmul.f32 %v4717_v49, %v10256_v11  ;;  %v10295_v4 = vadd.f32 %v4478_v29, %v10241_v14 }
0x1065   : > { %v4482_v37 = vpop.f32.mrb[103].mxu1  ;;  %v4593_v38 = vpop.f32.mrb[127].mxu0  ;;  %v4954_v5 = vmul.f32 0.7978846, %v4894_v23  ;;  %v4898_v21 = vadd.f32 %v4838_v12, %v4471_v2  ;;  %v4956_v1 = vmul.f32 0.7978846, %v4896_v55  ;;  %v4835_v51 = vmul.f32 %v4775_v61, %v10250_v52 }
0x1066   : > { %v7434_v15 = vpop.eup %7433  ;;  %v4900_v40 = vadd.f32 %v4840_v58, %v10259_v36  ;;  %v4722_v23 = vmul.f32 0.044715, %v10276_v48  ;;  %v10299_v49 = vadd.f32 %v4589_v17, %v10247_v44  ;;  %v4779_v2 = vmul.f32 %v4719_v30, %v10266_v26 }
0x1067   : > { %v7436_v8 = vpop.eup %7435  ;;  %v4958_v43 = vmul.f32 0.7978846, %v4898_v21  ;;  %7441 = vtanh.f32 %v4954_v5  ;;  %v4724_v55 = vmul.f32 0.044715, %v10286_v46  ;;  %v10304_v12 = vadd.f32 %v4480_v18, %v10234_v57 }
0x1068   : > { %v4960_v45 = vmul.f32 0.7978846, %v4900_v40  ;;  %v7438_v60 = vpop.eup %7437  ;;  %v4723_v29 = vmul.f32 0.044715, %v10295_v4  ;;  %v10308_v58 = vadd.f32 %v4591_v31, %v10236_v42  ;;  %v10311_v61 = vadd.f32 %v4482_v37, %v10241_v14 }
0x1069   : > { %7443 = vtanh.f32 %v4958_v43  ;;  %v4781_v17 = vmul.f32 %v4721_v22, %v10273_v32  ;;  %v4782_v5 = vmul.f32 %v4722_v23, %v10276_v48  ;;  %v4204_v30 = vadd.f32 %v10102_v35, %v4185_v20  ;;  %v7440_v31 = vpop.eup %7439 }
0x106a   : > { %7445 = vtanh.f32 %v4956_v1  ;;  %v4725_v18 = vmul.f32 0.044715, %v10299_v49  ;;  %v4727_v43 = vmul.f32 0.044715, %v10311_v61  ;;  %v10319_v21 = vadd.f32 %v4593_v38, %v10247_v44 }
0x106b   : > { %7447 = vtanh.f32 %v4960_v45  ;;  %v4784_v40 = vmul.f32 %v4724_v55, %v10286_v46  ;;  %v4726_v37 = vmul.f32 0.044715, %v10304_v12  ;;  %v4214_v1 = vpack.c.bf16 %v4204_v30, %v4203_v56 }
0x106c   : > { %v4167_v22 = vmul.f32 %v7432_v27, %v10146_v19  ;;  %v4837_v23 = vmul.f32 %v4777_v28, %v10256_v11  ;;  %v4839_v20 = vmul.f32 %v4779_v2, %v10266_v26  ;;  %v4783_v45 = vmul.f32 %v4723_v29, %v10295_v4 }
0x106d   : > { %v4728_v14 = vmul.f32 0.044715, %v10308_v58  ;;  %v4841_v42 = vmul.f32 %v4781_v17, %v10273_v32  ;;  %4505 = vmatmul.mubr.bf16.gmra.mrb[112].mxu1 %v4214_v1  ;;  %v4729_v38 = vmul.f32 0.044715, %v10319_v21  ;;  %4616 = vmatmul.mubr.bf16.gmra.mrb[136].mxu0 %v4214_v1  ;;  %v4168_v55 = vmul.f32 %v7434_v15, %v10151_v9 }
0x106e   : > { %v4186_v56 = vmul.f32 %v10094_v62, %v4167_v22  ;;  %v4660_v19 = vmul.f32 0.5, %v10259_v36  ;;  %v10334_v27 = vmul.f32 %v4782_v5, %v10276_v48  ;;  %v4785_v28 = vmul.f32 %v4725_v18, %v10299_v49  ;;  %4514 = vmatprep.mubr.bf16.mxu1 %v11318_v16  ;;  %4625 = vmatprep.mubr.bf16.mxu0 %v11318_v16 }
0x106f   : > { %v4787_v2 = vmul.f32 %v4727_v43, %v10311_v61  ;;  %v10341_v29 = vmul.f32 %v4784_v40, %v10286_v46  ;;  %v4786_v9 = vmul.f32 %v4726_v37, %v10304_v12  ;;  %v4187_v15 = vmul.f32 %v10094_v62, %v4168_v55 }
0x1070   : > { %v4170_v36 = vmul.f32 %v7438_v60, %v10161_v33  ;;  %v4843_v17 = vmul.f32 %v4783_v45, %v10295_v4  ;;  %v4788_v5 = vmul.f32 %v4728_v14, %v10308_v58  ;;  %v4895_v30 = vadd.f32 %v4835_v51, %v10250_v52 }
0x1071   : > { %v4899_v18 = vadd.f32 %v4839_v20, %v10266_v26  ;;  %v7442_v43 = vpop.eup %7441  ;;  %v4789_v1 = vmul.f32 %v4729_v38, %v10319_v21  ;;  %v4205_v40 = vadd.f32 %v10102_v35, %v4186_v56  ;;  %v4206_v22 = vadd.f32 %v10102_v35, %v4187_v15 }
0x1072   : > { %v4169_v37 = vmul.f32 %v7436_v8, %v10158_v13  ;;  %v4845_v33 = vmul.f32 %v4785_v28, %v10299_v49  ;;  %v4847_v60 = vmul.f32 %v4787_v2, %v10311_v61  ;;  %v4955_v45 = vmul.f32 0.7978846, %v4895_v30 }
0x1073   : > { %v7444_v55 = vpop.eup %7443  ;;  %v4959_v14 = vmul.f32 0.7978846, %v4899_v18  ;;  %v4215_v51 = vpack.c.bf16 %v4206_v22, %v4205_v40  ;;  %v4189_v20 = vmul.f32 %v10094_v62, %v4170_v36  ;;  %v4171_v57 = vmul.f32 %v7440_v31, %v10166_v41 }
0x1074   : > { %v7446_v44 = vpop.eup %7445  ;;  %v4897_v38 = vadd.f32 %v4837_v23, %v10256_v11  ;;  %7449 = vtanh.f32 %v4955_v45  ;;  %v4901_v15 = vadd.f32 %v4841_v42, %v10273_v32  ;;  %v5074_v8 = vadd.f32 1.0, %v7442_v43 }
0x1075   : > { %v7448_v56 = vpop.eup %7447  ;;  %v5078_v13 = vadd.f32 1.0, %v7444_v55  ;;  %v4849_v28 = vmul.f32 %v4789_v1, %v10319_v21  ;;  %4515 = vmatmul.mubr.bf16.gmra.mrb[116].mxu1 %v4215_v51  ;;  %4626 = vmatmul.mubr.bf16.gmra.mrb[140].mxu0 %v4215_v51  ;;  %v4188_v2 = vmul.f32 %v10094_v62, %v4169_v37  ;;  %7451 = vtanh.f32 %v4959_v14 }
0x1076   : > { %v4957_v30 = vmul.f32 0.7978846, %v4897_v38  ;;  %4524 = vmatprep.mubr.bf16.mxu1 %v11318_v16  ;;  %4635 = vmatprep.mubr.bf16.mxu0 %v11318_v16  ;;  %v4961_v41 = vmul.f32 0.7978846, %v4901_v15  ;;  %v10365_v31 = vmul.f32 %v5074_v8, %v10278_v0  ;;  %v5076_v23 = vadd.f32 1.0, %v7446_v44 }
0x1077   : > { %v10368_v42 = vmul.f32 %v5078_v13, %v10289_v59  ;;  %v4846_v36 = vmul.f32 %v4786_v9, %v10304_v12  ;;  %v4208_v18 = vadd.f32 %v10102_v35, %v4189_v20  ;;  %v5080_v43 = vadd.f32 1.0, %v7448_v56 }
0x1078   : > { %7453 = vtanh.f32 %v4957_v30  ;;  %v4848_v1 = vmul.f32 %v4788_v5, %v10308_v58  ;;  %v4903_v22 = vadd.f32 %v4843_v17, %v10295_v4  ;;  %v4207_v0 = vadd.f32 %v10102_v35, %v4188_v2 }
0x1079   : > { %7455 = vtanh.f32 %v4961_v41  ;;  %v5194_v40 = vpack.c.bf16 %v10368_v42, %v10365_v31  ;;  %v10378_v59 = vmul.f32 %v5076_v23, %v10282_v53  ;;  %v10380_v44 = vmul.f32 %v5080_v43, %v4660_v19 }
0x107a   : > { %v4907_v9 = vadd.f32 %v4847_v60, %v10311_v61  ;;  %v4190_v37 = vmul.f32 %v10094_v62, %v4171_v57  ;;  %v4963_v55 = vmul.f32 0.7978846, %v4903_v22  ;;  %v4905_v5 = vadd.f32 %v4845_v33, %v10299_v49 }
0x107b   : > { %v4909_v45 = vadd.f32 %v4849_v28, %v10319_v21  ;;  %v4216_v14 = vpack.c.bf16 %v4208_v18, %v4207_v0  ;;  %v5196_v17 = vpack.c.bf16 %v10380_v44, %v10378_v59  ;;  %v4902_v53 = vadd.f32 %v10334_v27, %v10276_v48 }
0x107c   : > { %v4967_v51 = vmul.f32 0.7978846, %v4907_v9  ;;  %7457 = vtanh.f32 %v4963_v55  ;;  %v4965_v19 = vmul.f32 0.7978846, %v4905_v5  ;;  %v4906_v60 = vadd.f32 %v4846_v36, %v10304_v12 }
0x107d   : > { %v4969_v20 = vmul.f32 0.7978846, %v4909_v45  ;;  %4525 = vmatmul.mubr.bf16.gmra.mrb[120].mxu1 %v4216_v14  ;;  %4636 = vmatmul.mubr.bf16.gmra.mrb[144].mxu0 %v4216_v14  ;;  %v4655_v62 = vmul.f32 0.5, %v10250_v52  ;;  %v4962_v57 = vmul.f32 0.7978846, %v4902_v53  ;;  %v4904_v27 = vadd.f32 %v10341_v29, %v10286_v46 }
0x107e   : > { %7459 = vtanh.f32 %v4967_v51  ;;  %v7450_v33 = vpop.eup %7449  ;;  %4534 = vmatprep.mubr.bf16.mxu1 %v11318_v16  ;;  %4645 = vmatprep.mubr.bf16.mxu0 %v11318_v16  ;;  %v4966_v38 = vmul.f32 0.7978846, %v4906_v60  ;;  %v4908_v56 = vadd.f32 %v4848_v1, %v10308_v58  ;;  %v4209_v8 = vadd.f32 %v10102_v35, %v4190_v37 }
0x107f   : > { %7461 = vtanh.f32 %v4965_v19  ;;  %v7452_v15 = vpop.eup %7451  ;;  %v4659_v13 = vmul.f32 0.5, %v10266_v26  ;;  %v5075_v52 = vadd.f32 1.0, %v7450_v33  ;;  %v4964_v2 = vmul.f32 0.7978846, %v4904_v27 }
0x1080   : > { %7463 = vtanh.f32 %v4969_v20  ;;  %v5079_v28 = vadd.f32 1.0, %v7452_v15  ;;  %v4968_v30 = vmul.f32 0.7978846, %v4908_v56  ;;  %v4657_v16 = vmul.f32 0.5, %v10256_v11 }
0x1081   : > { %7465 = vtanh.f32 %v4962_v57  ;;  %v5135_v36 = vmul.f32 %v5075_v52, %v4655_v62  ;;  %v4217_v43 = vpack.c.bf16 %v4209_v8, %v4209_v8  ;;  %v4661_v35 = vmul.f32 0.5, %v10273_v32 }
0x1082   : > { %v7454_v41 = vpop.eup %7453  ;;  %7467 = vtanh.f32 %v4966_v38  ;;  %v5139_v29 = vmul.f32 %v5079_v28, %v4659_v13  ;;  %v4663_v45 = vmul.f32 0.5, %v10295_v4  ;;  %v4667_v14 = vmul.f32 0.5, %v10311_v61 }
0x1083   : > { %v7456_v23 = vpop.eup %7455  ;;  %v5077_v18 = vadd.f32 1.0, %v7454_v41  ;;  %7469 = vtanh.f32 %v4964_v2  ;;  %v4665_v32 = vmul.f32 0.5, %v10299_v49  ;;  %v4669_v57 = vmul.f32 0.5, %v10319_v21 }
0x1084   : > { %v5081_v1 = vadd.f32 1.0, %v7456_v23  ;;  %7471 = vtanh.f32 %v4968_v30  ;;  %v5195_v26 = vpack.c.bf16 %v5139_v29, %v5135_v36  ;;  %v4662_v27 = vmul.f32 0.5, %v10276_v48 }
0x1085   : > { %4535 = vmatmul.mubr.bf16.gmra.mrb[124].mxu1 %v4217_v43  ;;  %4646 = vmatmul.mubr.bf16.gmra.mrb[148].mxu0 %v4217_v43  ;;  %v5137_v22 = vmul.f32 %v5077_v18, %v4657_v16  ;;  %v4666_v56 = vmul.f32 0.5, %v10304_v12  ;;  %v4664_v49 = vmul.f32 0.5, %v10286_v46  ;;  %v4668_v48 = vmul.f32 0.5, %v10308_v58  ;;  %v11385_v58 = vld [vmem:[#allocation60_spill] sm:$0xff] }
0x1086   : > { %v5141_v0 = vmul.f32 %v5081_v1, %v4661_v35  ;;  %v7458_v9 = vpop.eup %7457  ;;  %5514 = vmatprep.mubr.bf16.mxu1 %v5195_v26 }
0x1087   : > { %v5083_v55 = vadd.f32 1.0, %v7458_v9 }
0x1088   : > { %v7460_v37 = vpop.eup %7459  ;;  %v5197_v11 = vpack.c.bf16 %v5141_v0, %v5137_v22 }
0x1089   : > { %v7462_v5 = vpop.eup %7461  ;;  %v5087_v51 = vadd.f32 1.0, %v7460_v37  ;;  %v5143_v60 = vmul.f32 %v5083_v55, %v4663_v45 }
0x108a   : > { %v7464_v53 = vpop.eup %7463  ;;  %5598 = vmatprep.mubr.bf16.mxu0 %v5197_v11  ;;  %v5085_v19 = vadd.f32 1.0, %v7462_v5 }
0x108b   : > { %v7466_v20 = vpop.eup %7465  ;;  %v5147_v62 = vmul.f32 %v5087_v51, %v4667_v14  ;;  %v5089_v33 = vadd.f32 1.0, %v7464_v53 }
0x108c   : > { %v7468_v38 = vpop.eup %7467  ;;  %v5082_v4 = vadd.f32 1.0, %v7466_v20  ;;  %v5145_v8 = vmul.f32 %v5085_v19, %v4665_v32 }
0x108d   : > { %v7470_v15 = vpop.eup %7469  ;;  %v5199_v61 = vpack.c.bf16 %v5147_v62, %v5143_v60  ;;  %v5149_v13 = vmul.f32 %v5089_v33, %v4669_v57  ;;  %v5086_v52 = vadd.f32 1.0, %v7468_v38  ;;  %5515 = vmatmul.mubr.bf16.vlgmr.msra.gmra.mrb[128].mxu1 %v5194_v40  ;;  %5599 = vmatmul.mubr.bf16.vlgmr.msra.gmra.mrb[152].mxu0 %v5196_v17 }
0x108e   : > { %v7472_v28 = vpop.eup %7471  ;;  %v5084_v12 = vadd.f32 1.0, %v7470_v15  ;;  %v5142_v2 = vmul.f32 %v5082_v4, %v4662_v27  ;;  %6708 = vmatpush3.bf16.msra.mxu1 %v10172_v54  ;;  %v11380_v54 = vld [vmem:[#allocation36_spill] sm:$0xff] }
0x108f   : > { %5522 = vmatprep.mubr.bf16.mxu1 %v5199_v61  ;;  %v5201_v21 = vpack.c.bf16 %v5149_v13, %v5145_v8  ;;  %v5146_v30 = vmul.f32 %v5086_v52, %v4666_v56  ;;  %v5088_v41 = vadd.f32 1.0, %v7472_v28  ;;  %6701 = vmatprep.subr.bf16.mxu1 %v10178_v39  ;;  %v11381_v39 = vld [vmem:[#allocation54_spill] sm:$0xff] }
0x1090   : > { %v5144_v42 = vmul.f32 %v5084_v12, %v4664_v49 }
0x1091   : > { %5606 = vmatprep.mubr.bf16.mxu0 %v5201_v21  ;;  %v5198_v31 = vpack.c.bf16 %v5146_v30, %v5142_v2  ;;  %v5148_v40 = vmul.f32 %v5088_v41, %v4668_v48 }
0x1092   : > { %6709 = vmatpush3.bf16.msra.mxu1 %v10180_v7  ;;  %v11382_v7 = vld [vmem:[#allocation50_spill] sm:$0xff] }
0x1093   : > { %v5200_v59 = vpack.c.bf16 %v5148_v40, %v5144_v42  ;;  %6702 = vmatprep.subr.bf16.mxu1 %v10184_v10 }
0x1095   : > { %5523 = vmatmul.mubr.bf16.gmra.mrb[132].mxu1 %v5198_v31  ;;  %5607 = vmatmul.mubr.bf16.gmra.mrb[156].mxu0 %v5200_v59 }
0x1096   : > { %6710 = vmatpush3.bf16.msra.mxu1 %v10186_v6 }
0x1097   : > { %6703 = vmatprep.subr.bf16.mxu1 %v10190_v24  ;;  %v11383_v24 = vld [vmem:[#allocation49_spill] sm:$0xff] }
0x109a   : > { %6711 = vmatpush3.bf16.msra.mxu1 %v10192_v25 }
0x109b   : > { %6704 = vmatprep.subr.bf16.mxu1 %v10196_v63  ;;  %v11384_v63 = vld [vmem:[#allocation46_spill] sm:$0xff] }
0x109e   : > { %6712 = vmatpush3.bf16.msra.mxu1 %v10199_v50 }
0x109f   : > { %6705 = vmatprep.subr.bf16.mxu1 %v10201_v34 }
0x10a2   : > { %6713 = vmatpush3.bf16.msra.mxu1 %v10205_v3 }
0x10a3   : > { %6706 = vmatprep.subr.bf16.mxu1 %v10207_v47  ;;  %v11386_v47 = vld [vmem:[#allocation58_spill] sm:$0xff] }
0x10a6   : > { %6714 = vmatpush3.bf16.msra.mxu1 %v11380_v54 }
0x10a7   : > { %6707 = vmatprep.subr.bf16.mxu1 %v11381_v39 }
0x10aa   : > { %6715 = vmatpush3.bf16.msra.mxu1 %v11382_v7 }
0x1128   : > { %v4486_v10 = vpop.f32.mrb[104].mxu1  ;;  %v4597_v6 = vpop.f32.mrb[128].mxu0 }
0x1129   : > { %v10431_v25 = vadd.f32 %v4486_v10, %v11383_v24  ;;  %v10434_v46 = vadd.f32 %v4597_v6, %v11384_v63  ;;  %v4488_v50 = vpop.f32.mrb[105].mxu1  ;;  %v4599_v34 = vpop.f32.mrb[129].mxu0 }
0x112a   : > { %v10437_v3 = vadd.f32 %v4488_v50, %v11385_v58  ;;  %v10440_v44 = vadd.f32 %v4599_v34, %v11386_v47  ;;  %v4490_v17 = vpop.f32.mrb[106].mxu1  ;;  %v4601_v16 = vpop.f32.mrb[130].mxu0 }
0x112b   : > { %v4730_v23 = vmul.f32 0.044715, %v10431_v25  ;;  %v4732_v36 = vmul.f32 0.044715, %v10434_v46  ;;  %v10445_v29 = vadd.f32 %v4490_v17, %v11383_v24  ;;  %v10448_v18 = vadd.f32 %v4601_v16, %v11384_v63  ;;  %v4492_v43 = vpop.f32.mrb[107].mxu1  ;;  %v4603_v35 = vpop.f32.mrb[131].mxu0 }
0x112c   : > { %v4731_v1 = vmul.f32 0.044715, %v10437_v3  ;;  %v4733_v26 = vmul.f32 0.044715, %v10440_v44  ;;  %v10453_v22 = vadd.f32 %v4492_v43, %v11385_v58  ;;  %v10456_v0 = vadd.f32 %v4603_v35, %v11386_v47 }
0x112d   : > { %v4734_v9 = vmul.f32 0.044715, %v10445_v29  ;;  %v4736_v37 = vmul.f32 0.044715, %v10448_v18  ;;  %v4790_v45 = vmul.f32 %v4730_v23, %v10431_v25  ;;  %v4792_v14 = vmul.f32 %v4732_v36, %v10434_v46 }
0x112e   : > { %v4791_v11 = vmul.f32 %v4731_v1, %v10437_v3  ;;  %v4735_v55 = vmul.f32 0.044715, %v10453_v22  ;;  %v4737_v5 = vmul.f32 0.044715, %v10456_v0  ;;  %v4793_v51 = vmul.f32 %v4733_v26, %v10440_v44 }
0x112f   : > { %v4794_v53 = vmul.f32 %v4734_v9, %v10445_v29  ;;  %v4796_v60 = vmul.f32 %v4736_v37, %v10448_v18  ;;  %v4850_v16 = vmul.f32 %v4790_v45, %v10431_v25  ;;  %v4852_v23 = vmul.f32 %v4792_v14, %v10434_v46 }
0x1130   : > { %v4496_v32 = vpop.f32.mrb[108].mxu1  ;;  %v4607_v19 = vpop.f32.mrb[132].mxu0  ;;  %v4851_v20 = vmul.f32 %v4791_v11, %v10437_v3  ;;  %v4795_v27 = vmul.f32 %v4735_v55, %v10453_v22  ;;  %v4797_v56 = vmul.f32 %v4737_v5, %v10456_v0  ;;  %v4853_v6 = vmul.f32 %v4793_v51, %v10440_v44 }
0x1131   : > { %v10470_v62 = vadd.f32 %v4496_v32, %v11383_v24  ;;  %v10473_v57 = vadd.f32 %v4607_v19, %v11384_v63  ;;  %v4498_v33 = vpop.f32.mrb[109].mxu1  ;;  %v4609_v38 = vpop.f32.mrb[133].mxu0  ;;  %v4854_v36 = vmul.f32 %v4794_v53, %v10445_v29  ;;  %v4856_v35 = vmul.f32 %v4796_v60, %v10448_v18 }
0x1132   : > { %v10478_v4 = vadd.f32 %v4498_v33, %v11385_v58  ;;  %v10481_v15 = vadd.f32 %v4609_v38, %v11386_v47  ;;  %v4500_v61 = vpop.f32.mrb[110].mxu1  ;;  %v4611_v8 = vpop.f32.mrb[134].mxu0  ;;  %v4855_v54 = vmul.f32 %v4795_v27, %v10453_v22  ;;  %v4857_v50 = vmul.f32 %v4797_v56, %v10456_v0 }
0x1133   : > { %v4738_v13 = vmul.f32 0.044715, %v10470_v62  ;;  %v4740_v52 = vmul.f32 0.044715, %v10473_v57  ;;  %v10486_v28 = vadd.f32 %v4500_v61, %v11383_v24  ;;  %v10489_v49 = vadd.f32 %v4611_v8, %v11384_v63  ;;  %v4502_v48 = vpop.f32.mrb[111].mxu1  ;;  %v4613_v12 = vpop.f32.mrb[135].mxu0 }
0x1134   : > { %v4739_v21 = vmul.f32 0.044715, %v10478_v4  ;;  %v4741_v2 = vmul.f32 0.044715, %v10481_v15  ;;  %v10494_v30 = vadd.f32 %v4502_v48, %v11385_v58  ;;  %v10497_v41 = vadd.f32 %v4613_v12, %v11386_v47 }
0x1135   : > { %11387 = vst [vmem:[#allocation61_spill] sm:$0xff] %v10489_v49  ;;  %v4798_v31 = vmul.f32 %v4738_v13, %v10470_v62  ;;  %v4800_v42 = vmul.f32 %v4740_v52, %v10473_v57  ;;  %v4742_v40 = vmul.f32 0.044715, %v10486_v28  ;;  %v4744_v59 = vmul.f32 0.044715, %v10489_v49 }
0x1136   : > { %v4799_v39 = vmul.f32 %v4739_v21, %v10478_v4  ;;  %v4743_v7 = vmul.f32 0.044715, %v10494_v30  ;;  %v4745_v10 = vmul.f32 0.044715, %v10497_v41  ;;  %v4801_v34 = vmul.f32 %v4741_v2, %v10481_v15 }
0x1137   : > { %v4802_v17 = vmul.f32 %v4742_v40, %v10486_v28  ;;  %v4804_v43 = vmul.f32 %v4744_v59, %v10489_v49  ;;  %v10517_v1 = vmul.f32 %v4798_v31, %v10470_v62  ;;  %v10520_v26 = vmul.f32 %v4800_v42, %v10473_v57 }
0x1138   : > { %v4859_v9 = vmul.f32 %v4799_v39, %v10478_v4  ;;  %v4803_v37 = vmul.f32 %v4743_v7, %v10494_v30  ;;  %v4805_v11 = vmul.f32 %v4745_v10, %v10497_v41  ;;  %v4911_v55 = vadd.f32 %v4851_v20, %v10437_v3 }
0x1139   : > { %v4915_v5 = vadd.f32 %v4855_v54, %v10453_v22  ;;  %v10528_v45 = vmul.f32 %v4801_v34, %v10481_v15  ;;  %v10531_v14 = vmul.f32 %v4802_v17, %v10486_v28  ;;  %v4913_v51 = vadd.f32 %v4853_v6, %v10440_v44 }
0x113a   : > { %v4917_v53 = vadd.f32 %v4857_v50, %v10456_v0  ;;  %v10536_v32 = vmul.f32 %v4804_v43, %v10489_v49  ;;  %v10539_v19 = vmul.f32 0.5, %v10437_v3  ;;  %v4971_v60 = vmul.f32 0.7978846, %v4911_v55 }
0x113b   : > { %v4975_v20 = vmul.f32 0.7978846, %v4915_v5  ;;  %v10542_v33 = vmul.f32 0.5, %v10453_v22  ;;  %v4973_v38 = vmul.f32 0.7978846, %v4913_v51  ;;  %v4910_v27 = vadd.f32 %v4850_v16, %v10431_v25 }
0x113c   : > { %11388 = vst [vmem:[#allocation59_spill] sm:$0xff] %v10536_v32  ;;  %v4914_v56 = vadd.f32 %v4854_v36, %v10445_v29  ;;  %v4863_v61 = vmul.f32 %v4803_v37, %v10494_v30  ;;  %v10548_v8 = vmul.f32 %v4805_v11, %v10497_v41  ;;  %v4977_v13 = vmul.f32 0.7978846, %v4917_v53 }
0x113d   : > { %v4912_v52 = vadd.f32 %v4852_v23, %v10434_v46  ;;  %7473 = vtanh.f32 %v4971_v60  ;;  %v10552_v3 = vmul.f32 0.5, %v10440_v44  ;;  %v10555_v22 = vmul.f32 0.5, %v10456_v0 }
0x113e   : > { %v4916_v48 = vadd.f32 %v4856_v35, %v10448_v18  ;;  %7475 = vtanh.f32 %v4975_v20  ;;  %v10559_v12 = vmul.f32 0.5, %v10431_v25  ;;  %v10562_v21 = vmul.f32 0.5, %v10445_v29 }
0x113f   : > { %v4970_v2 = vmul.f32 0.7978846, %v4910_v27  ;;  %7477 = vtanh.f32 %v4973_v38  ;;  %v4974_v31 = vmul.f32 0.7978846, %v4914_v56  ;;  %v10565_v42 = vmul.f32 0.5, %v10434_v46 }
0x1140   : > { %v10568_v44 = vmul.f32 0.5, %v10448_v18  ;;  %v4506_v0 = vpop.f32.mrb[112].mxu1  ;;  %v4617_v40 = vpop.f32.mrb[136].mxu0  ;;  %7479 = vtanh.f32 %v4977_v13  ;;  %v4972_v59 = vmul.f32 0.7978846, %v4912_v52  ;;  %v10571_v54 = vmul.f32 0.5, %v10478_v4 }
0x1141   : > { %v10574_v25 = vmul.f32 0.5, %v10494_v30  ;;  %v10577_v29 = vadd.f32 %v4506_v0, %v11383_v24  ;;  %v10580_v39 = vadd.f32 %v4617_v40, %v11384_v63  ;;  %v4508_v46 = vpop.f32.mrb[113].mxu1  ;;  %v4619_v7 = vpop.f32.mrb[137].mxu0  ;;  %v10582_v18 = vmul.f32 0.7978846, %v4916_v48 }
0x1142   : > { %11389 = vst [vmem:[#allocation56_spill] sm:$0xff] %v10571_v54  ;;  %v4919_v10 = vadd.f32 %v4859_v9, %v10478_v4  ;;  %v10586_v6 = vadd.f32 %v4508_v46, %v11385_v58  ;;  %v10589_v50 = vadd.f32 %v4619_v7, %v11386_v47  ;;  %v4510_v34 = vpop.f32.mrb[114].mxu1  ;;  %v4621_v17 = vpop.f32.mrb[138].mxu0  ;;  %7481 = vtanh.f32 %v4970_v2 }
0x1143   : > { %11390 = vst [vmem:[#allocation55_spill] sm:$0xff] %v10574_v25  ;;  %11391 = vst [vmem:[#allocation38_spill] sm:$0xff] %v10577_v29  ;;  %v4923_v16 = vadd.f32 %v4863_v61, %v10494_v30  ;;  %v4746_v23 = vmul.f32 0.044715, %v10577_v29  ;;  %v4748_v36 = vmul.f32 0.044715, %v10580_v39  ;;  %v10595_v43 = vadd.f32 %v4510_v34, %v11383_v24 }
0x1144   : > { %11392 = vst [vmem:[#allocation48_spill] sm:$0xff] %v10580_v39  ;;  %v10598_v4 = vadd.f32 %v4621_v17, %v11384_v63  ;;  %v4512_v35 = vpop.f32.mrb[115].mxu1  ;;  %v4623_v9 = vpop.f32.mrb[139].mxu0  ;;  %v4747_v37 = vmul.f32 0.044715, %v10586_v6  ;;  %v10612_v60 = vmul.f32 0.5, %v10481_v15  ;;  %7483 = vtanh.f32 %v4974_v31 }
0x1145   : > { %11393 = vst [vmem:[#allocation64_spill] sm:$0xff] %v10595_v43  ;;  %v4749_v11 = vmul.f32 0.044715, %v10589_v50  ;;  %v10603_v55 = vadd.f32 %v4512_v35, %v11385_v58  ;;  %v10606_v30 = vadd.f32 %v4623_v9, %v11386_v47  ;;  %v4806_v5 = vmul.f32 %v4746_v23, %v10577_v29 }
0x1146   : > { %11394 = vst [vmem:[#allocation62_spill] sm:$0xff] %v10598_v4  ;;  %v4750_v51 = vmul.f32 0.044715, %v10595_v43  ;;  %v4752_v53 = vmul.f32 0.044715, %v10598_v4  ;;  %11396 = vst [vmem:[#allocation63_spill] sm:$0xff] %v10612_v60  ;;  %7485 = vtanh.f32 %v4972_v59  ;;  %v10627_v52 = vadd.f32 %v10528_v45, %v10481_v15 }
0x1147   : > { %11395 = vst [vmem:[#allocation65_spill] sm:$0xff] %v10606_v30  ;;  %v4751_v20 = vmul.f32 0.044715, %v10603_v55  ;;  %v4753_v38 = vmul.f32 0.044715, %v10606_v30  ;;  %v10617_v27 = vmul.f32 0.5, %v10497_v41  ;;  %v10619_v56 = vpop.eup %7473  ;;  %v10632_v2 = vmul.f32 %v4806_v5, %v10577_v29 }
0x1148   : > { %v10621_v61 = vmul.f32 0.7978846, %v4919_v10  ;;  %v10623_v13 = vmul.f32 0.7978846, %v4923_v16  ;;  %v10629_v48 = vpop.eup %7475  ;;  %v4808_v31 = vmul.f32 %v4748_v36, %v10580_v39  ;;  %v4807_v0 = vmul.f32 %v4747_v37, %v10586_v6  ;;  %v4516_v59 = vpop.f32.mrb[116].mxu1 }
0x1149   : > { %11397 = vst [vmem:[#allocation66_spill] sm:$0xff] %v10617_v27  ;;  %11398 = vst [vmem:[#allocation68_spill] sm:$0xff] %v10632_v2  ;;  %v4809_v40 = vmul.f32 %v4749_v11, %v10589_v50  ;;  %v4627_v46 = vpop.f32.mrb[140].mxu0  ;;  %v10637_v7 = vpop.eup %7477  ;;  %v4810_v10 = vmul.f32 %v4750_v51, %v10595_v43  ;;  %v4812_v15 = vmul.f32 %v4752_v53, %v10598_v4  ;;  %7487 = vtanh.f32 %v10582_v18 }
0x114a   : > { %v10642_v45 = vadd.f32 %v4516_v59, %v11383_v24  ;;  %v10645_v34 = vadd.f32 %v4627_v46, %v11384_v63  ;;  %v4518_v17 = vpop.f32.mrb[117].mxu1  ;;  %v4629_v16 = vpop.f32.mrb[141].mxu0  ;;  %v4811_v36 = vmul.f32 %v4751_v20, %v10603_v55  ;;  %v4813_v35 = vmul.f32 %v4753_v38, %v10606_v30 }
0x114b   : > { %v7480_v23 = vpop.eup %7479  ;;  %v10650_v9 = vadd.f32 %v4518_v17, %v11385_v58  ;;  %v10653_v37 = vadd.f32 %v4629_v16, %v11386_v47  ;;  %v4520_v11 = vpop.f32.mrb[118].mxu1  ;;  %v10680_v54 = vmul.f32 %v4807_v0, %v10586_v6  ;;  %v10683_v32 = vmul.f32 %v4809_v40, %v10589_v50 }
0x114c   : > { %11399 = vst [vmem:[#allocation67_spill] sm:$0xff] %v10642_v45  ;;  %11400 = vst [vmem:[#allocation52_spill] sm:$0xff] %v10645_v34  ;;  %v4631_v5 = vpop.f32.mrb[142].mxu0  ;;  %v4754_v51 = vmul.f32 0.044715, %v10642_v45  ;;  %v10658_v59 = vadd.f32 %v4520_v11, %v11383_v24  ;;  %v4522_v20 = vpop.f32.mrb[119].mxu1  ;;  %v10674_v11 = vmul.f32 %v4808_v31, %v10580_v39  ;;  %v10688_v49 = vmul.f32 %v4810_v10, %v10595_v43 }
0x114d   : > { %11401 = vst [vmem:[#allocation44_spill] sm:$0xff] %v10650_v9  ;;  %11402 = vst [vmem:[#allocation57_spill] sm:$0xff] %v10653_v37  ;;  %v4756_v53 = vmul.f32 0.044715, %v10645_v34  ;;  %v10661_v46 = vadd.f32 %v4631_v5, %v11384_v63  ;;  %v4633_v38 = vpop.f32.mrb[143].mxu0  ;;  %v10663_v27 = vpop.eup %7481  ;;  %v10668_v60 = vadd.f32 %v4522_v20, %v11385_v58  ;;  %v10691_v31 = vmul.f32 %v4812_v15, %v10598_v4 }
0x114e   : > { %v4755_v17 = vmul.f32 0.044715, %v10650_v9  ;;  %v4757_v16 = vmul.f32 0.044715, %v10653_v37  ;;  %v10671_v2 = vadd.f32 %v4633_v38, %v11386_v47  ;;  %11404 = vst [vmem:[#allocation41_spill] sm:$0xff] %v10674_v11  ;;  %v4814_v5 = vmul.f32 %v4754_v51, %v10642_v45  ;;  %11405 = vst [vmem:[#allocation35_spill] sm:$0xff] %v10683_v32  ;;  %v7484_v39 = vpop.eup %7483 }
0x114f   : > { %11403 = vst [vmem:[#allocation53_spill] sm:$0xff] %v10661_v46  ;;  %v4758_v29 = vmul.f32 0.044715, %v10658_v59  ;;  %v4760_v25 = vmul.f32 0.044715, %v10661_v46  ;;  %v4816_v20 = vmul.f32 %v4756_v53, %v10645_v34  ;;  %11406 = vst [vmem:[#allocation43_spill] sm:$0xff] %v10688_v49  ;;  %v10696_v0 = vmul.f32 %v4811_v36, %v10603_v55 }
0x1150   : > { %v4815_v38 = vmul.f32 %v4755_v17, %v10650_v9  ;;  %11407 = vst [vmem:[#allocation37_spill] sm:$0xff] %v10691_v31  ;;  %v4817_v51 = vmul.f32 %v4757_v16, %v10653_v37  ;;  %v4759_v11 = vmul.f32 0.044715, %v10668_v60  ;;  %v10699_v40 = vmul.f32 %v4813_v35, %v10606_v30  ;;  %v4526_v17 = vpop.f32.mrb[120].mxu1  ;;  %v4637_v49 = vpop.f32.mrb[144].mxu0 }
0x1151   : > { %v10702_v53 = vmul.f32 %v4814_v5, %v10642_v45  ;;  %v4761_v10 = vmul.f32 0.044715, %v10671_v2  ;;  %v10705_v15 = vpop.eup %7485  ;;  %v4818_v16 = vmul.f32 %v4758_v29, %v10658_v59  ;;  %v4820_v31 = vmul.f32 %v4760_v25, %v10661_v46  ;;  %v4528_v35 = vpop.f32.mrb[121].mxu1 }
0x1152   : > { %11408 = vst [vmem:[#allocation23_spill] sm:$0xff] %v10699_v40  ;;  %v10710_v4 = vadd.f32 %v4526_v17, %v11383_v24  ;;  %v4638_v36 = vadd.f32 %v4637_v49, %v11384_v63  ;;  %v4639_v43 = vpop.f32.mrb[145].mxu0  ;;  %v10714_v5 = vmul.f32 %v4816_v20, %v10645_v34  ;;  %v10720_v45 = vadd.f32 %v4528_v35, %v11385_v58  ;;  %v4530_v25 = vpop.f32.mrb[122].mxu1 }
0x1153   : > { %11409 = vst [vmem:[#allocation47_spill] sm:$0xff] %v10702_v53  ;;  %v10717_v53 = vmul.f32 %v4815_v38, %v10650_v9  ;;  %v10723_v29 = vadd.f32 %v4639_v43, %v11386_v47  ;;  %v4641_v40 = vpop.f32.mrb[146].mxu0  ;;  %v10726_v17 = vmul.f32 %v4817_v51, %v10653_v37  ;;  %v4819_v49 = vmul.f32 %v4759_v11, %v10668_v60  ;;  %v4532_v11 = vpop.f32.mrb[123].mxu1 }
0x1154   : > { %11410 = vst [vmem:[#allocation40_spill] sm:$0xff] %v10714_v5  ;;  %v4764_v30 = vmul.f32 0.044715, %v4638_v36  ;;  %v5091_v20 = vadd.f32 1.0, %v10619_v56  ;;  %v4821_v5 = vmul.f32 %v4761_v10, %v10671_v2  ;;  %v4762_v38 = vmul.f32 0.044715, %v10710_v4 }
0x1155   : > { %11411 = vst [vmem:[#allocation51_spill] sm:$0xff] %v10717_v53  ;;  %11412 = vst [vmem:[#allocation24_spill] sm:$0xff] %v10726_v17  ;;  %v5095_v35 = vadd.f32 1.0, %v10629_v48  ;;  %v5093_v34 = vadd.f32 1.0, %v10637_v7  ;;  %v10735_v43 = vmul.f32 %v4818_v16, %v10658_v59  ;;  %v10738_v53 = vmul.f32 %v4820_v31, %v10661_v46  ;;  %v4643_v37 = vpop.f32.mrb[147].mxu0 }
0x1156   : > { %v4824_v51 = vmul.f32 %v4764_v30, %v4638_v36  ;;  %v5097_v17 = vadd.f32 1.0, %v7480_v23  ;;  %v4763_v56 = vmul.f32 0.044715, %v10720_v45  ;;  %v4765_v10 = vmul.f32 0.044715, %v10723_v29 }
0x1157   : > { %11413 = vst [vmem:[#allocation26_spill] sm:$0xff] %v10735_v43  ;;  %11414 = vst [vmem:[#allocation25_spill] sm:$0xff] %v10738_v53  ;;  %v5151_v9 = vmul.f32 %v5091_v20, %v10539_v19  ;;  %v5155_v48 = vmul.f32 %v5095_v35, %v10542_v33  ;;  %v5153_v7 = vmul.f32 %v5093_v34, %v10552_v3  ;;  %v5090_v3 = vadd.f32 1.0, %v10663_v27 }
0x1158   : > { %v4884_v32 = vmul.f32 %v4824_v51, %v4638_v36  ;;  %v5157_v16 = vmul.f32 %v5097_v17, %v10555_v22  ;;  %v10747_v31 = vadd.f32 %v4530_v25, %v11383_v24  ;;  %v10750_v30 = vmul.f32 %v4819_v49, %v10668_v60  ;;  %v4536_v43 = vpop.f32.mrb[124].mxu1  ;;  %v4647_v19 = vpop.f32.mrb[148].mxu0 }
0x1159   : > { %v4822_v23 = vmul.f32 %v4762_v38, %v10710_v4  ;;  %v5203_v53 = vpack.c.bf16 %v5155_v48, %v5151_v9  ;;  %v4642_v46 = vadd.f32 %v4641_v40, %v11384_v63  ;;  %v4538_v22 = vpop.f32.mrb[125].mxu1  ;;  %v4649_v34 = vpop.f32.mrb[149].mxu0  ;;  %v10757_v25 = vmul.f32 %v4821_v5, %v10671_v2 }
0x115a   : > { %v4944_v20 = vadd.f32 %v4884_v32, %v4638_v36  ;;  %v5205_v33 = vpack.c.bf16 %v5157_v16, %v5153_v7  ;;  %v4766_v35 = vmul.f32 0.044715, %v10747_v31  ;;  %v5094_v49 = vadd.f32 1.0, %v7484_v39  ;;  %v4540_v9 = vpop.f32.mrb[126].mxu1  ;;  %v4651_v40 = vpop.f32.mrb[150].mxu0 }
0x115b   : > { %5529 = vmatprep.mubr.bf16.mxu1 %v5203_v53  ;;  %v4768_v17 = vmul.f32 0.044715, %v4642_v46  ;;  %v10760_v38 = vmul.f32 0.5, %v4638_v36  ;;  %v4823_v32 = vmul.f32 %v4763_v56, %v10720_v45  ;;  %v4825_v51 = vmul.f32 %v4765_v10, %v10723_v29  ;;  %v4541_v48 = vpop.f32.mrb[127].mxu1  ;;  %v4652_v7 = vpop.f32.mrb[151].mxu0 }
0x115c   : > { %5613 = vmatprep.mubr.bf16.mxu0 %v5205_v33  ;;  %v5150_v27 = vmul.f32 %v5090_v3, %v10559_v12  ;;  %v5154_v53 = vmul.f32 %v5094_v49, %v10562_v21  ;;  %v10767_v39 = vadd.f32 %v4532_v11, %v11385_v58  ;;  %v10770_v18 = vadd.f32 %v4643_v37, %v11386_v47  ;;  %v7488_v48 = vpop.eup %7487 }
0x115d   : > { %11415 = vst [vmem:[#allocation27_spill] sm:$0xff] %v10760_v38  ;;  %v4828_v5 = vmul.f32 %v4768_v17, %v4642_v46  ;;  %v10773_v36 = vmul.f32 %v4822_v23, %v10710_v4  ;;  %v5004_v56 = vmul.f32 0.7978846, %v4944_v20  ;;  %v4826_v10 = vmul.f32 %v4766_v35, %v10747_v31 }
0x115e   : > { %v10777_v16 = vadd.f32 %v4536_v43, %v11383_v24  ;;  %v5202_v33 = vpack.c.bf16 %v5154_v53, %v5150_v27  ;;  %v4767_v3 = vmul.f32 0.044715, %v10767_v39  ;;  %v4769_v21 = vmul.f32 0.044715, %v10770_v18 }
0x115f   : > { %v4888_v12 = vmul.f32 %v4828_v5, %v4642_v46  ;;  %v5092_v11 = vadd.f32 1.0, %v10705_v15  ;;  %v10783_v37 = vadd.f32 %v4647_v19, %v11384_v63  ;;  %v10786_v23 = vadd.f32 %v4538_v22, %v11385_v58 }
0x1160   : > { %v10789_v20 = vadd.f32 %v4649_v34, %v11386_v47  ;;  %5530 = vmatmul.mubr.bf16.gmra.mrb[136].mxu1 %v5202_v33  ;;  %v4827_v24 = vmul.f32 %v4767_v3, %v10767_v39  ;;  %v4770_v43 = vmul.f32 0.044715, %v10777_v16  ;;  %7489 = vtanh.f32 %v10621_v61  ;;  %v6268_v17 = vpop.f32.mrb[128].mxu1  ;;  %v6332_v49 = vpop.f32.mrb[152].mxu0 }
0x1161   : > { %11416 = vst [vmem:[#allocation28_spill] sm:$0xff] %v10783_v37  ;;  %v4948_v35 = vadd.f32 %v4888_v12, %v4642_v46  ;;  %7491 = vtanh.f32 %v5004_v56  ;;  %v10795_v63 = vmul.f32 %v4823_v32, %v10720_v45  ;;  %v10798_v58 = vmul.f32 %v4825_v51, %v10723_v29  ;;  %v6269_v61 = vpop.f32.mrb[129].mxu1  ;;  %v6333_v34 = vpop.f32.mrb[153].mxu0 }
0x1162   : > { %11417 = vst [vmem:[#allocation30_spill] sm:$0xff] %v10789_v20  ;;  %v10800_v15 = vmul.f32 0.5, %v4642_v46  ;;  %v10803_v47 = vmul.f32 %v4826_v10, %v10747_v31  ;;  %v4829_v19 = vmul.f32 %v4769_v21, %v10770_v18  ;;  %v4772_v22 = vmul.f32 0.044715, %v10783_v37  ;;  %v10813_v51 = vpop.f32.mrb[130].mxu1  ;;  %v10815_v27 = vpop.f32.mrb[154].mxu0 }
0x1163   : > { %7493 = vtanh.f32 %v10623_v13  ;;  %v5152_v9 = vmul.f32 %v5092_v11, %v10565_v42  ;;  %v4771_v40 = vmul.f32 0.044715, %v10786_v23  ;;  %v4773_v32 = vmul.f32 0.044715, %v10789_v20  ;;  %v10824_v53 = vpop.f32.mrb[131].mxu1  ;;  %v10826_v56 = vpop.f32.mrb[155].mxu0 }
0x1164   : > { %11418 = vst [vmem:[#allocation29_spill] sm:$0xff] %v10800_v15  ;;  %v4925_v46 = vadd.f32 %v10548_v8, %v10497_v41  ;;  %v5008_v7 = vmul.f32 0.7978846, %v4948_v35  ;;  %v10818_v5 = vmul.f32 %v4827_v24, %v10767_v39  ;;  %v10821_v13 = vmul.f32 %v4770_v43, %v10777_v16  ;;  %v11421_v24 = vld [vmem:[#allocation59_spill] sm:$0xff]  ;;  %v11436_v15 = vld [vmem:[#allocation62_spill] sm:$0xff] }
0x1165   : > { %v4981_v42 = vmul.f32 0.7978846, %v10627_v52  ;;  %v5096_v10 = vadd.f32 1.0, %v7488_v48  ;;  %v4918_v8 = vadd.f32 %v10517_v1, %v10470_v62  ;;  %v4922_v12 = vadd.f32 %v10531_v14, %v10486_v28  ;;  %v11420_v1 = vld [vmem:[#allocation61_spill] sm:$0xff] }
0x1166   : > { %v4985_v41 = vmul.f32 0.7978846, %v4925_v46  ;;  %v10833_v33 = vmul.f32 %v4829_v19, %v10770_v18  ;;  %v10836_v3 = vmul.f32 %v4772_v22, %v10783_v37  ;;  %v4920_v52 = vadd.f32 %v10520_v26, %v10473_v57 }
0x1167   : > { %7495 = vtanh.f32 %v4981_v42  ;;  %v5156_v21 = vmul.f32 %v5096_v10, %v10568_v44  ;;  %v4978_v11 = vmul.f32 0.7978846, %v4918_v8  ;;  %v4982_v35 = vmul.f32 0.7978846, %v4922_v12 }
0x1168   : > { %11419 = vst [vmem:[#allocation31_spill] sm:$0xff] %v10836_v3  ;;  %7497 = vtanh.f32 %v4985_v41  ;;  %v4924_v43 = vadd.f32 %v11421_v24, %v11420_v1  ;;  %v4980_v14 = vmul.f32 0.7978846, %v4920_v52  ;;  %v6270_v46 = vadd.f32 %v6269_v61, %v6268_v17  ;;  %v10843_v19 = vpop.f32.mrb[132].mxu1  ;;  %v10845_v48 = vpop.f32.mrb[156].mxu0  ;;  %v11430_v3 = vld [vmem:[#allocation64_spill] sm:$0xff] }
0x1169   : > { %7499 = vtanh.f32 %v5008_v7  ;;  %v5204_v22 = vpack.c.bf16 %v5156_v21, %v5152_v9  ;;  %v10848_v42 = vmul.f32 %v4771_v40, %v10786_v23  ;;  %v4927_v26 = vadd.f32 %v10680_v54, %v10586_v6  ;;  %v10852_v44 = vpop.f32.mrb[133].mxu1  ;;  %v10854_v7 = vpop.f32.mrb[157].mxu0 }
0x116a   : > { %7501 = vtanh.f32 %v4978_v11  ;;  %v7490_v10 = vpop.eup %7489  ;;  %v4984_v41 = vmul.f32 0.7978846, %v4924_v43  ;;  %v4931_v17 = vadd.f32 %v10696_v0, %v10603_v55  ;;  %v6334_v61 = vadd.f32 %v6333_v34, %v6332_v49  ;;  %v6277_v8 = vpop.f32.mrb[134].mxu1 }
0x116b   : > { %7503 = vtanh.f32 %v4982_v35  ;;  %v6341_v9 = vpop.f32.mrb[158].mxu0  ;;  %v10858_v12 = vpop.eup %7491  ;;  %5614 = vmatmul.mubr.bf16.gmra.mrb[160].mxu0 %v5204_v22  ;;  %v10861_v40 = vmul.f32 %v4773_v32, %v10789_v20  ;;  %v5099_v54 = vadd.f32 1.0, %v7490_v10  ;;  %v4987_v52 = vmul.f32 0.7978846, %v4927_v26  ;;  %v11423_v22 = vld [vmem:[#allocation35_spill] sm:$0xff]  ;;  %v11424_v26 = vld [vmem:[#allocation65_spill] sm:$0xff] }
0x116c   : > { %7505 = vtanh.f32 %v4980_v14  ;;  %v6278_v21 = vpop.f32.mrb[135].mxu1  ;;  %v6342_v11 = vpop.f32.mrb[159].mxu0  ;;  %v4678_v35 = vmul.f32 0.5, %v10470_v62  ;;  %v4991_v43 = vmul.f32 0.7978846, %v4931_v17  ;;  %v5601_v0 = vadd.f32 %v6334_v61, %v6270_v46  ;;  %v11425_v10 = vld [vmem:[#allocation23_spill] sm:$0xff] }
0x116d   : > { %11422 = vst [vmem:[#allocation32_spill] sm:$0xff] %v10861_v40  ;;  %v7494_v24 = vpop.eup %7493  ;;  %7507 = vtanh.f32 %v4984_v41  ;;  %v4682_v34 = vmul.f32 0.5, %v10486_v28  ;;  %v4929_v8 = vadd.f32 %v11423_v22, %v10589_v50  ;;  %v4680_v32 = vmul.f32 0.5, %v10473_v57  ;;  %v11426_v21 = vld [vmem:[#allocation56_spill] sm:$0xff]  ;;  %v11427_v41 = vld [vmem:[#allocation55_spill] sm:$0xff]  ;;  %v11428_v61 = vld [vmem:[#allocation38_spill] sm:$0xff] }
0x116e   : > { %v5103_v49 = vadd.f32 1.0, %v7494_v24  ;;  %7509 = vtanh.f32 %v4987_v52  ;;  %v4684_v14 = vmul.f32 0.5, %v11420_v1  ;;  %v4933_v9 = vadd.f32 %v11425_v10, %v11424_v26  ;;  %v11429_v11 = vld [vmem:[#allocation68_spill] sm:$0xff]  ;;  %v11431_v1 = vld [vmem:[#allocation43_spill] sm:$0xff] }
0x116f   : > { %7511 = vtanh.f32 %v4991_v43  ;;  %v5159_v62 = vmul.f32 %v5099_v54, %v11426_v21  ;;  %v4989_v46 = vmul.f32 0.7978846, %v4929_v8  ;;  %v4926_v28 = vadd.f32 %v11429_v11, %v11428_v61  ;;  %v11434_v11 = vld [vmem:[#allocation41_spill] sm:$0xff] }
0x1170   : > { %v5163_v17 = vmul.f32 %v5103_v49, %v11427_v41  ;;  %v4687_v24 = vmul.f32 0.5, %v10586_v6  ;;  %v4691_v22 = vmul.f32 0.5, %v10603_v55  ;;  %v4993_v57 = vmul.f32 0.7978846, %v4933_v9  ;;  %v11433_v41 = vld [vmem:[#allocation48_spill] sm:$0xff]  ;;  %v11435_v55 = vld [vmem:[#allocation63_spill] sm:$0xff] }
0x1171   : > { %v7496_v52 = vpop.eup %7495  ;;  %v4930_v43 = vadd.f32 %v11431_v1, %v11430_v3  ;;  %7513 = vtanh.f32 %v4989_v46  ;;  %v4986_v54 = vmul.f32 0.7978846, %v4926_v28  ;;  %v4928_v20 = vadd.f32 %v11434_v11, %v11433_v41  ;;  %v11437_v1 = vld [vmem:[#allocation37_spill] sm:$0xff]  ;;  %v11438_v46 = vld [vmem:[#allocation66_spill] sm:$0xff] }
0x1172   : > { %v7498_v37 = vpop.eup %7497  ;;  %v5207_v40 = vpack.c.bf16 %v5163_v17, %v5159_v62  ;;  %v5101_v10 = vadd.f32 1.0, %v7496_v52  ;;  %7515 = vtanh.f32 %v4993_v57  ;;  %v4932_v38 = vadd.f32 %v11437_v1, %v11436_v15 }
0x1173   : > { %v10879_v21 = vpop.eup %7499  ;;  %v5105_v49 = vadd.f32 1.0, %v7498_v37  ;;  %v4990_v8 = vmul.f32 0.7978846, %v4930_v43  ;;  %7517 = vtanh.f32 %v4986_v54  ;;  %v6273_v62 = vadd.f32 %v10824_v53, %v10813_v51 }
0x1174   : > { %11432 = vst [vmem:[#allocation34_spill] sm:$0xff] %v10879_v21  ;;  %v7502_v6 = vpop.eup %7501  ;;  %5535 = vmatprep.mubr.bf16.mxu1 %v5207_v40  ;;  %v5161_v9 = vmul.f32 %v5101_v10, %v11435_v55  ;;  %v4988_v52 = vmul.f32 0.7978846, %v4928_v20  ;;  %v4992_v11 = vmul.f32 0.7978846, %v4932_v38  ;;  %v6337_v40 = vadd.f32 %v10826_v56, %v10815_v27  ;;  %v11439_v38 = vld [vmem:[#allocation39_spill] sm:$0xff] }
0x1175   : > { %v7504_v17 = vpop.eup %7503  ;;  %v5165_v28 = vmul.f32 %v5105_v49, %v11438_v46  ;;  %v5098_v37 = vadd.f32 1.0, %v7502_v6  ;;  %7519 = vtanh.f32 %v4990_v8  ;;  %v6276_v10 = vadd.f32 %v10852_v44, %v10843_v19 }
0x1176   : > { %v7506_v57 = vpop.eup %7505  ;;  %v5102_v43 = vadd.f32 1.0, %v7504_v17  ;;  %7521 = vtanh.f32 %v4988_v52  ;;  %v5604_v8 = vadd.f32 %v6337_v40, %v6273_v62  ;;  %v10894_v17 = vadd.f32 %v5601_v0, %v11439_v38 }
0x1177   : > { %v7508_v54 = vpop.eup %7507  ;;  %v5209_v55 = vpack.c.bf16 %v5165_v28, %v5161_v9  ;;  %v5158_v1 = vmul.f32 %v5098_v37, %v4678_v35  ;;  %v5100_v21 = vadd.f32 1.0, %v7506_v57  ;;  %7523 = vtanh.f32 %v4992_v11  ;;  %v11441_v28 = vld [vmem:[#allocation51_spill] sm:$0xff] }
0x1178   : > { %v7510_v51 = vpop.eup %7509  ;;  %v5162_v53 = vmul.f32 %v5102_v43, %v4682_v34  ;;  %v5104_v49 = vadd.f32 1.0, %v7508_v54  ;;  %v4689_v27 = vmul.f32 0.5, %v10589_v50  ;;  %v4693_v56 = vmul.f32 0.5, %v11424_v26  ;;  %v11440_v34 = vld [vmem:[#allocation44_spill] sm:$0xff] }
0x1179   : > { %v7512_v20 = vpop.eup %7511  ;;  %5619 = vmatprep.mubr.bf16.mxu0 %v5209_v55  ;;  %v5107_v6 = vadd.f32 1.0, %v7510_v51  ;;  %v5160_v44 = vmul.f32 %v5100_v21, %v4680_v32  ;;  %v4686_v46 = vmul.f32 0.5, %v11428_v61  ;;  %v4935_v37 = vadd.f32 %v11441_v28, %v11440_v34 }
0x117a   : > { %v5206_v19 = vpack.c.bf16 %v5162_v53, %v5158_v1  ;;  %v5164_v35 = vmul.f32 %v5104_v49, %v4684_v14  ;;  %v5111_v9 = vadd.f32 1.0, %v7512_v20  ;;  %v4939_v62 = vadd.f32 %v10750_v30, %v10668_v60  ;;  %v11442_v30 = vld [vmem:[#allocation57_spill] sm:$0xff]  ;;  %v11443_v1 = vld [vmem:[#allocation24_spill] sm:$0xff] }
0x117b   : > { %v6340_v0 = vadd.f32 %v10854_v7, %v10845_v48  ;;  %v7514_v52 = vpop.eup %7513  ;;  %v5167_v57 = vmul.f32 %v5107_v6, %v4687_v24  ;;  %v4690_v32 = vmul.f32 0.5, %v11430_v3  ;;  %v4995_v43 = vmul.f32 0.7978846, %v4935_v37 }
0x117c   : > { %5536 = vmatmul.mubr.bf16.gmra.mrb[140].mxu1 %v5206_v19  ;;  %v5208_v50 = vpack.c.bf16 %v5164_v35, %v5160_v44  ;;  %v5171_v26 = vmul.f32 %v5111_v9, %v4691_v22  ;;  %v7516_v14 = vpop.eup %7515  ;;  %v5109_v21 = vadd.f32 1.0, %v7514_v52  ;;  %v4999_v61 = vmul.f32 0.7978846, %v4939_v62  ;;  %v11444_v19 = vld [vmem:[#allocation42_spill] sm:$0xff]  ;;  %v11446_v62 = vld [vmem:[#allocation47_spill] sm:$0xff] }
0x117d   : > { %v5609_v11 = vadd.f32 %v6340_v0, %v6276_v10  ;;  %v7518_v40 = vpop.eup %7517  ;;  %v5113_v55 = vadd.f32 1.0, %v7516_v14  ;;  %v4937_v51 = vadd.f32 %v11443_v1, %v11442_v30  ;;  %v4941_v48 = vadd.f32 %v10757_v25, %v10671_v2  ;;  %v11447_v0 = vld [vmem:[#allocation26_spill] sm:$0xff] }
0x117e   : > { %5620 = vmatmul.mubr.bf16.gmra.mrb[164].mxu0 %v5208_v50  ;;  %v5211_v54 = vpack.c.bf16 %v5171_v26, %v5167_v57  ;;  %v5169_v24 = vmul.f32 %v5109_v21, %v4689_v27  ;;  %v5106_v22 = vadd.f32 1.0, %v7518_v40  ;;  %v4688_v3 = vmul.f32 0.5, %v11433_v41  ;;  %v11445_v41 = vld [vmem:[#allocation67_spill] sm:$0xff]  ;;  %v11448_v21 = vld [vmem:[#allocation52_spill] sm:$0xff] }
0x117f   : > { %v7520_v7 = vpop.eup %7519  ;;  %7525 = vtanh.f32 %v4995_v43  ;;  %v5173_v53 = vmul.f32 %v5113_v55, %v4693_v56  ;;  %v4997_v10 = vmul.f32 0.7978846, %v4937_v51  ;;  %v4692_v38 = vmul.f32 0.5, %v11436_v15  ;;  %v6082_v15 = vld [vmem:[%s11070_s8 + $0x8] ss:$0 sm:$0xff]  ;;  %v11451_v55 = vld [vmem:[#allocation25_spill] sm:$0xff] }
0x1180   : > { %5541 = vmatprep.mubr.bf16.mxu1 %v5211_v54  ;;  %v5110_v49 = vadd.f32 1.0, %v7520_v7  ;;  %7527 = vtanh.f32 %v4999_v61  ;;  %v7522_v20 = vpop.eup %7521  ;;  %v5166_v6 = vmul.f32 %v5106_v22, %v4686_v46  ;;  %v5651_v44 = vadd.f32 %v5604_v8, %v11444_v19  ;;  %v11449_v43 = vld [vmem:[#allocation40_spill] sm:$0xff]  ;;  %v11450_v54 = vld [vmem:[#allocation53_spill] sm:$0xff] }
0x1181   : > { %v5001_v35 = vmul.f32 0.7978846, %v4941_v48  ;;  %v7524_v9 = vpop.eup %7523  ;;  %v5213_v25 = vpack.c.bf16 %v5173_v53, %v5169_v24  ;;  %v5108_v27 = vadd.f32 1.0, %v7522_v20  ;;  %7529 = vtanh.f32 %v4997_v10  ;;  %v11452_v7 = vld [vmem:[#allocation45_spill] sm:$0xff] }
0x1182   : > { %v5170_v28 = vmul.f32 %v5110_v49, %v4690_v32  ;;  %v5112_v37 = vadd.f32 1.0, %v7524_v9  ;;  %v4934_v56 = vadd.f32 %v11446_v62, %v11445_v41  ;;  %v4938_v52 = vadd.f32 %v11447_v0, %v10658_v59 }
0x1183   : > { %7531 = vtanh.f32 %v5001_v35  ;;  %5625 = vmatprep.mubr.bf16.mxu0 %v5213_v25  ;;  %v5168_v46 = vmul.f32 %v5108_v27, %v4688_v3  ;;  %v4695_v50 = vmul.f32 0.5, %v11440_v34  ;;  %v4699_v57 = vmul.f32 0.5, %v10668_v60 }
0x1184   : > { %v5210_v8 = vpack.c.bf16 %v5170_v28, %v5166_v6  ;;  %v5172_v26 = vmul.f32 %v5112_v37, %v4692_v38  ;;  %v4994_v32 = vmul.f32 0.7978846, %v4934_v56  ;;  %v4998_v14 = vmul.f32 0.7978846, %v4938_v52 }
0x1185   : > { %v4936_v61 = vadd.f32 %v11449_v43, %v11448_v21  ;;  %v4697_v40 = vmul.f32 0.5, %v11442_v30  ;;  %v4940_v1 = vadd.f32 %v11451_v55, %v11450_v54  ;;  %v10928_v51 = vadd.f32 %v6082_v15, %v10894_v17  ;;  %v11453_v43 = vld [vmem:[#allocation34_spill] sm:$0xff] }
0x1186   : > { %5542 = vmatmul.mubr.bf16.gmra.mrb[144].mxu1 %v5210_v8  ;;  %v10930_v48 = vadd.f32 %v6082_v15, %v5651_v44  ;;  %v5212_v34 = vpack.c.bf16 %v5172_v26, %v5168_v46  ;;  %v5652_v60 = vadd.f32 %v5609_v11, %v11452_v7  ;;  %7533 = vtanh.f32 %v4994_v32 }
0x1187   : > { %v4996_v24 = vmul.f32 0.7978846, %v4936_v61  ;;  %7535 = vtanh.f32 %v4998_v14  ;;  %v5000_v22 = vmul.f32 0.7978846, %v4940_v1  ;;  %5660 = vadd.xlane.f32.xlu1 %v10928_v51  ;;  %v4943_v30 = vadd.f32 %v10795_v63, %v10720_v45 }
0x1188   : > { %5662 = vadd.xlane.f32.xlu0 %v10930_v48  ;;  %v4947_v17 = vadd.f32 %v10818_v5, %v10767_v39  ;;  %5626 = vmatmul.mubr.bf16.gmra.mrb[168].mxu0 %v5212_v34  ;;  %v4701_v53 = vmul.f32 0.5, %v10671_v2  ;;  %v4694_v11 = vmul.f32 0.5, %v11445_v41  ;;  %v4942_v49 = vadd.f32 %v10773_v36, %v10710_v4 }
0x1189   : > { %v7526_v3 = vpop.eup %7525  ;;  %7537 = vtanh.f32 %v4996_v24  ;;  %v5003_v6 = vmul.f32 0.7978846, %v4943_v30  ;;  %v4946_v63 = vadd.f32 %v10803_v47, %v10747_v31  ;;  %v10945_v44 = vadd.f32 %v6082_v15, %v5652_v60  ;;  %v11454_v60 = vld [vmem:[#allocation27_spill] sm:$0xff] }
0x118a   : > { %v7528_v10 = vpop.eup %7527  ;;  %v5115_v20 = vadd.f32 1.0, %v7526_v3  ;;  %7539 = vtanh.f32 %v5000_v22  ;;  %v5007_v38 = vmul.f32 0.7978846, %v4947_v17  ;;  %v5002_v5 = vmul.f32 0.7978846, %v4942_v49  ;;  %v11456_v49 = vld [vmem:[#allocation30_spill] sm:$0xff] }
0x118b   : > { %v5119_v19 = vadd.f32 1.0, %v7528_v10  ;;  %v7530_v35 = vpop.eup %7529  ;;  %v4698_v9 = vmul.f32 0.5, %v10658_v59  ;;  %7541 = vtanh.f32 %v5003_v6  ;;  %v4891_v36 = vmul.f32 %v10848_v42, %v10786_v23  ;;  %5664 = vadd.xlane.f32.xlu1 %v10945_v44  ;;  %v11457_v10 = vld [vmem:[#allocation32_spill] sm:$0xff] }
0x118c   : > { %v5175_v2 = vmul.f32 %v5115_v20, %v4695_v50  ;;  %v5117_v27 = vadd.f32 1.0, %v7530_v35  ;;  %7543 = vtanh.f32 %v5007_v38  ;;  %v5006_v37 = vmul.f32 0.7978846, %v4946_v63 }
0x118d   : > { %v7532_v25 = vpop.eup %7531  ;;  %v5179_v28 = vmul.f32 %v5119_v19, %v4699_v57  ;;  %v4696_v47 = vmul.f32 0.5, %v11448_v21  ;;  %7545 = vtanh.f32 %v5002_v5  ;;  %v4951_v62 = vadd.f32 %v4891_v36, %v10786_v23  ;;  %v11459_v36 = vld [vmem:[#allocation31_spill] sm:$0xff] }
0x118e   : > { %v5121_v41 = vadd.f32 1.0, %v7532_v25  ;;  %v4700_v59 = vmul.f32 0.5, %v11450_v54  ;;  %7547 = vtanh.f32 %v5006_v37  ;;  %v4890_v42 = vmul.f32 %v10821_v13, %v10777_v16 }
0x118f   : > { %v5215_v56 = vpack.c.bf16 %v5179_v28, %v5175_v2  ;;  %v5177_v0 = vmul.f32 %v5117_v27, %v4697_v40  ;;  %v4703_v15 = vmul.f32 0.5, %v10720_v45  ;;  %v5011_v8 = vmul.f32 0.7978846, %v4951_v62 }
0x1190   : > { %v5181_v52 = vmul.f32 %v5121_v41, %v4701_v53  ;;  %v7534_v46 = vpop.eup %7533  ;;  %v4950_v50 = vadd.f32 %v4890_v42, %v10777_v16  ;;  %v4945_v57 = vadd.f32 %v10798_v58, %v10723_v29  ;;  %v4949_v26 = vadd.f32 %v10833_v33, %v10770_v18 }
0x1191   : > { %5547 = vmatprep.mubr.bf16.mxu1 %v5215_v56  ;;  %v5124_v32 = vadd.f32 1.0, %v10858_v12  ;;  %v7536_v14 = vpop.eup %7535  ;;  %v5114_v13 = vadd.f32 1.0, %v7534_v46  ;;  %7549 = vtanh.f32 %v5011_v8  ;;  %v5128_v61 = vadd.f32 1.0, %v11453_v43  ;;  %v11455_v12 = vld [vmem:[#allocation29_spill] sm:$0xff] }
0x1192   : > { %v5217_v21 = vpack.c.bf16 %v5181_v52, %v5177_v0  ;;  %v5118_v40 = vadd.f32 1.0, %v7536_v14  ;;  %v4707_v54 = vmul.f32 0.5, %v10767_v39  ;;  %v5010_v55 = vmul.f32 0.7978846, %v4950_v50 }
0x1193   : > { %v7538_v45 = vpop.eup %7537  ;;  %v5005_v1 = vmul.f32 0.7978846, %v4945_v57  ;;  %v5009_v7 = vmul.f32 0.7978846, %v4949_v26  ;;  %v10966_v33 = vmul.f32 %v5124_v32, %v11454_v60  ;;  %v10969_v24 = vmul.f32 %v5128_v61, %v11455_v12 }
0x1194   : > { %v7540_v34 = vpop.eup %7539  ;;  %5631 = vmatprep.mubr.bf16.mxu0 %v5217_v21  ;;  %v5116_v58 = vadd.f32 1.0, %v7538_v45  ;;  %v5174_v22 = vmul.f32 %v5114_v13, %v4694_v11  ;;  %v5178_v30 = vmul.f32 %v5118_v40, %v4698_v9  ;;  %7551 = vtanh.f32 %v5010_v55  ;;  %v11458_v9 = vld [vmem:[#allocation28_spill] sm:$0xff] }
0x1195   : > { %v5120_v17 = vadd.f32 1.0, %v7540_v34  ;;  %v7542_v3 = vpop.eup %7541  ;;  %7553 = vtanh.f32 %v5005_v1  ;;  %v5220_v39 = vpack.c.bf16 %v10969_v24, %v10966_v33  ;;  %v4893_v20 = vmul.f32 %v11457_v10, %v11456_v49 }
0x1196   : > { %v5176_v53 = vmul.f32 %v5116_v58, %v4696_v47  ;;  %v7544_v6 = vpop.eup %7543  ;;  %v5214_v38 = vpack.c.bf16 %v5178_v30, %v5174_v22  ;;  %v5123_v63 = vadd.f32 1.0, %v7542_v3  ;;  %7555 = vtanh.f32 %v5009_v7 }
0x1197   : > { %v5180_v19 = vmul.f32 %v5120_v17, %v4700_v59  ;;  %v7546_v5 = vpop.eup %7545  ;;  %v5127_v35 = vadd.f32 1.0, %v7544_v6  ;;  %v4702_v11 = vmul.f32 0.5, %v10710_v4  ;;  %v4953_v2 = vadd.f32 %v4893_v20, %v11456_v49 }
0x1198   : > { %v4892_v25 = vmul.f32 %v11459_v36, %v11458_v9  ;;  %v7548_v28 = vpop.eup %7547  ;;  %5548 = vmatmul.mubr.bf16.gmra.mrb[148].mxu1 %v5214_v38  ;;  %v5183_v37 = vmul.f32 %v5123_v63, %v4703_v15  ;;  %v4706_v41 = vmul.f32 0.5, %v10747_v31  ;;  %v5122_v47 = vadd.f32 1.0, %v7546_v5 }
0x1199   : > { %v5216_v27 = vpack.c.bf16 %v5180_v19, %v5176_v53  ;;  %v5187_v62 = vmul.f32 %v5127_v35, %v4707_v54  ;;  %v5126_v56 = vadd.f32 1.0, %v7548_v28  ;;  %v5013_v59 = vmul.f32 0.7978846, %v4953_v2 }
0x119a   : > { %v4952_v42 = vadd.f32 %v4892_v25, %v11458_v9  ;;  %v5182_v52 = vmul.f32 %v5122_v47, %v4702_v11  ;;  %v4711_v46 = vmul.f32 0.5, %v10786_v23  ;;  %v4710_v43 = vmul.f32 0.5, %v10777_v16 }
0x119b   : > { %5632 = vmatmul.mubr.bf16.gmra.mrb[172].mxu0 %v5216_v27  ;;  %v7550_v0 = vpop.eup %7549  ;;  %v5219_v4 = vpack.c.bf16 %v5187_v62, %v5183_v37  ;;  %v5186_v8 = vmul.f32 %v5126_v56, %v4706_v41  ;;  %7557 = vtanh.f32 %v5013_v59  ;;  %v4705_v45 = vmul.f32 0.5, %v10723_v29 }
0x119c   : > { %v5131_v50 = vadd.f32 1.0, %v7550_v0  ;;  %v5012_v15 = vmul.f32 0.7978846, %v4952_v42  ;;  %v4709_v40 = vmul.f32 0.5, %v10770_v18  ;;  %v4713_v33 = vmul.f32 0.5, %v11456_v49 }
0x119d   : > { %5553 = vmatprep.mubr.bf16.mxu1 %v5219_v4  ;;  %v5218_v57 = vpack.c.bf16 %v5186_v8, %v5182_v52  ;;  %v4712_v18 = vmul.f32 0.5, %v11458_v9 }
0x119e   : > { %v7552_v26 = vpop.eup %7551  ;;  %v5191_v31 = vmul.f32 %v5131_v50, %v4711_v46  ;;  %7559 = vtanh.f32 %v5012_v15 }
0x119f   : > { %v7554_v32 = vpop.eup %7553  ;;  %v5130_v14 = vadd.f32 1.0, %v7552_v26 }
0x11a0   : > { %v7556_v21 = vpop.eup %7555  ;;  %5554 = vmatmul.mubr.bf16.gmra.mrb[152].mxu1 %v5218_v57  ;;  %v5223_v13 = vpack.c.bf16 %v5191_v31, %v5191_v31  ;;  %v5125_v61 = vadd.f32 1.0, %v7554_v32 }
0x11a1   : > { %v5129_v54 = vadd.f32 1.0, %v7556_v21  ;;  %v5190_v23 = vmul.f32 %v5130_v14, %v4710_v43 }
0x11a2   : > { %5559 = vmatprep.mubr.bf16.mxu1 %v5223_v13  ;;  %v5185_v55 = vmul.f32 %v5125_v61, %v4705_v45 }
0x11a3   : > { %v5189_v1 = vmul.f32 %v5129_v54, %v4709_v40  ;;  %v5222_v7 = vpack.c.bf16 %v5190_v23, %v5190_v23 }
0x11a5   : > { %v7558_v34 = vpop.eup %7557  ;;  %v5221_v58 = vpack.c.bf16 %v5189_v1, %v5185_v55 }
0x11a6   : > { %v5133_v60 = vadd.f32 1.0, %v7558_v34 }
0x11a8   : > { %5560 = vmatmul.mubr.bf16.gmra.mrb[156].mxu1 %v5222_v7  ;;  %v7560_v16 = vpop.eup %7559  ;;  %v5193_v12 = vmul.f32 %v5133_v60, %v4713_v33 }
0x11a9   : > { %5637 = vmatprep.mubr.bf16.mxu1 %v5221_v58  ;;  %v5132_v24 = vadd.f32 1.0, %v7560_v16 }
0x11aa   : > { %v5225_v29 = vpack.c.bf16 %v5193_v12, %v5193_v12 }
0x11ab   : > { %v5192_v22 = vmul.f32 %v5132_v24, %v4712_v18 }
0x11ad   : > { %v5224_v30 = vpack.c.bf16 %v5192_v22, %v5192_v22 }
0x11b0   : > { %5638 = vmatmul.mubr.bf16.vlgmr.msra.gmra.mrb[160].mxu1 %v5220_v39 }
0x11b1   : > { %5643 = vmatprep.mubr.bf16.mxu1 %v5225_v29 }
0x11b8   : > { %5644 = vmatmul.mubr.bf16.gmra.mrb[164].mxu1 %v5224_v30 }
0x1214   : > { %v5661_v17 = vpop.xlane.xlu1 %5660 }
0x1215   : > { %v5663_v3 = vpop.xlane.xlu0 %5662  ;;  %v5666_v53 = vmul.f32 0.0078125, %v5661_v17 }
0x1216   : > { %v5667_v10 = vmul.f32 0.0078125, %v5663_v3 }
0x1217   : > { %v10988_v20 = vsub.f32 %v10928_v51, %v5666_v53 }
0x1218   : > { %v10991_v49 = vsub.f32 %v10930_v48, %v5667_v10  ;;  %v5665_v39 = vpop.xlane.xlu1 %5664 }
0x1219   : > { %v5672_v6 = vmul.f32 %v10988_v20, %v10988_v20  ;;  %v5668_v19 = vmul.f32 0.0078125, %v5665_v39 }
0x121a   : > { %v5673_v38 = vmul.f32 %v10991_v49, %v10991_v49 }
0x121b   : > { %5675 = vadd.xlane.f32.xlu0 %v5672_v6  ;;  %v10998_v63 = vsub.f32 %v10945_v44, %v5668_v19 }
0x121c   : > { %5677 = vadd.xlane.f32.xlu1 %v5673_v38  ;;  %v6083_v38 = vld [vmem:[%s11070_s8 + $0x9] ss:$0 sm:$0xff] }
0x121d   : > { %v5674_v51 = vmul.f32 %v10998_v63, %v10998_v63 }
0x121f   : > { %5679 = vadd.xlane.f32.xlu0 %v5674_v51 }
0x1233   : > { %v6280_v5 = vpop.f32.mrb[136].mxu1 }
0x1234   : > { %v6281_v48 = vpop.f32.mrb[137].mxu1  ;;  %v6084_v5 = vld [vmem:[%s11070_s8 + $0xa] ss:$0 sm:$0xff] }
0x1235   : > { %v6283_v35 = vpop.f32.mrb[138].mxu1 }
0x1236   : > { %v6284_v11 = vpop.f32.mrb[139].mxu1 }
0x123e   : > { %v6344_v2 = vpop.f32.mrb[160].mxu0 }
0x123f   : > { %v6345_v9 = vpop.f32.mrb[161].mxu0 }
0x1240   : > { %v6347_v36 = vpop.f32.mrb[162].mxu0 }
0x1241   : > { %v6348_v25 = vpop.f32.mrb[163].mxu0 }
0x124f   : > { %v6286_v28 = vpop.f32.mrb[140].mxu1 }
0x1250   : > { %v6287_v27 = vpop.f32.mrb[141].mxu1 }
0x1251   : > { %v6350_v37 = vpop.f32.mrb[164].mxu0  ;;  %v6289_v41 = vpop.f32.mrb[142].mxu1 }
0x1252   : > { %v6351_v47 = vpop.f32.mrb[165].mxu0  ;;  %v6290_v62 = vpop.f32.mrb[143].mxu1 }
0x1253   : > { %v6353_v44 = vpop.f32.mrb[166].mxu0 }
0x1254   : > { %v6354_v56 = vpop.f32.mrb[167].mxu0 }
0x1259   : > { %v6292_v59 = vpop.f32.mrb[144].mxu1 }
0x125a   : > { %v6293_v42 = vpop.f32.mrb[145].mxu1 }
0x125b   : > { %v6295_v0 = vpop.f32.mrb[146].mxu1  ;;  %v6356_v4 = vpop.f32.mrb[168].mxu0 }
0x125c   : > { %v6296_v52 = vpop.f32.mrb[147].mxu1  ;;  %v6357_v8 = vpop.f32.mrb[169].mxu0 }
0x125d   : > { %v6359_v46 = vpop.f32.mrb[170].mxu0 }
0x125e   : > { %v6360_v50 = vpop.f32.mrb[171].mxu0 }
0x126b   : > { %v6298_v57 = vpop.f32.mrb[148].mxu1 }
0x126c   : > { %v6299_v15 = vpop.f32.mrb[149].mxu1 }
0x126d   : > { %v6301_v31 = vpop.f32.mrb[150].mxu1 }
0x126e   : > { %v6362_v26 = vpop.f32.mrb[172].mxu0  ;;  %v6302_v14 = vpop.f32.mrb[151].mxu1 }
0x126f   : > { %v6363_v32 = vpop.f32.mrb[173].mxu0 }
0x1270   : > { %v6365_v21 = vpop.f32.mrb[174].mxu0 }
0x1271   : > { %v6366_v13 = vpop.f32.mrb[175].mxu0 }
0x1273   : > { %v6304_v43 = vpop.f32.mrb[152].mxu1 }
0x1274   : > { %v6305_v61 = vpop.f32.mrb[153].mxu1 }
0x1275   : > { %v6307_v45 = vpop.f32.mrb[154].mxu1 }
0x1276   : > { %v6308_v40 = vpop.f32.mrb[155].mxu1 }
0x127b   : > { %v6310_v54 = vpop.f32.mrb[156].mxu1 }
0x127c   : > { %v6311_v23 = vpop.f32.mrb[157].mxu1 }
0x127d   : > { %v6313_v55 = vpop.f32.mrb[158].mxu1 }
0x127e   : > { %v6314_v1 = vpop.f32.mrb[159].mxu1 }
0x1283   : > { %v6368_v34 = vpop.f32.mrb[160].mxu1 }
0x1284   : > { %v6369_v58 = vpop.f32.mrb[161].mxu1 }
0x1285   : > { %v6371_v7 = vpop.f32.mrb[162].mxu1 }
0x1286   : > { %v6372_v60 = vpop.f32.mrb[163].mxu1 }
0x128b   : > { %v6374_v33 = vpop.f32.mrb[164].mxu1 }
0x128c   : > { %v6375_v16 = vpop.f32.mrb[165].mxu1 }
0x128d   : > { %v6377_v12 = vpop.f32.mrb[166].mxu1 }
0x128e   : > { %v6378_v24 = vpop.f32.mrb[167].mxu1 }
0x12a8   : > { %v5676_v29 = vpop.xlane.xlu0 %5675 }
0x12a9   : > { %v5678_v18 = vpop.xlane.xlu1 %5677  ;;  %v5681_v22 = vmul.f32 0.0078125, %v5676_v29 }
0x12aa   : > { %v5682_v30 = vmul.f32 0.0078125, %v5678_v18 }
0x12ab   : > { %v5684_v17 = vadd.f32 1e-06, %v5681_v22 }
0x12ac   : > { %v5685_v3 = vadd.f32 1e-06, %v5682_v30  ;;  %v5680_v53 = vpop.xlane.xlu0 %5679 }
0x12ad   : > { %7561 = vrsqrt.f32 %v5684_v17  ;;  %v5683_v10 = vmul.f32 0.0078125, %v5680_v53 }
0x12ae   : > { %7563 = vrsqrt.f32 %v5685_v3 }
0x12af   : > { %v5686_v6 = vadd.f32 1e-06, %v5683_v10 }
0x12b1   : > { %7565 = vrsqrt.f32 %v5686_v6 }
0x12b7   : > { %v7562_v39 = vpop.eup %7561 }
0x12b8   : > { %v7564_v19 = vpop.eup %7563  ;;  %v5690_v51 = vmul.f32 %v7562_v39, %v10988_v20 }
0x12b9   : > { %v5691_v48 = vmul.f32 %v7564_v19, %v10991_v49 }
0x12ba   : > { %v5697_v35 = vmul.f32 %v6083_v38, %v5690_v51 }
0x12bb   : > { %v5698_v11 = vmul.f32 %v6083_v38, %v5691_v48  ;;  %v7566_v2 = vpop.eup %7565 }
0x12bc   : > { %v5704_v9 = vadd.f32 %v6084_v5, %v5697_v35  ;;  %v5692_v25 = vmul.f32 %v7566_v2, %v10998_v63 }
0x12bd   : > { %v5705_v36 = vadd.f32 %v6084_v5, %v5698_v11 }
0x12be   : > { %5707 = vst [vmem:[%s480_s12] sm:$0xff] %v5704_v9  ;;  %v5699_v20 = vmul.f32 %v6083_v38, %v5692_v25 }
0x12bf   : > { %5708 = vst [vmem:[%s480_s12 + $0x8] sm:$0xff] %v5705_v36 }
0x12c0   : > { %v5706_v49 = vadd.f32 %v6084_v5, %v5699_v20 }
0x12c2   : > { %5709 = vst [vmem:[%s480_s12 + $0x10] sm:$0xff] %v5706_v49 }
0x12c3   : > { %7824 = shalt.err (!%p7821_p9)
}
0x12c4   : > { %s7825_s22 = scalar_lea.hbm %s11018_s30, 384  ;;  %s7829_s23 = scalar_lea.hbm %s11460_s6, 768 }
0x12c5   : > { %p7826_p4 = scmp.ne.s32.totalorder %s11018_s30, %s7825_s22  ;;  %p7830_p5 = scmp.lt.u32.totalorder %s11018_s30, %s11460_s6 }
0x12c6   : > { %p7831_p2 = scmp.lt.u32.totalorder %s7829_s23, %s7825_s22  ;;  %p7833_p10 = scmp.lt.u32.totalorder %s7825_s22, %s11018_s30 }
0x12c7   : > { %p7827_p3 = pnand %p7826_p4, %p11461_p1 }
0x12c8   : > { %p7832_p7 = por %p7831_p2, %p7830_p5 }
0x12c9   : > { %p7828_p0 = pneg %p7827_p3 }
0x12ca   : > { %p7834_p11 = por %p7833_p10, %p7832_p7 }
0x12cc   : > { %p7835_p12 = pnand %p7834_p11, %p7828_p0 }
0x12ce   : > { %7838 = shalt.err (!%p7835_p12)
}
0x12cf   : > { %s7916_s12 = smov 128   ;;  %s7917_s1 = smov 8  }
0x12d0   : > { %6785 = dma.vmem_to_hbm [thread:$0]  (%p11461_p1), %s11013_s27, 384, %s11018_s30, %s5711_s25, %s7916_s12, %s7916_s12, %s7917_s1  }
0x12d1 PF: > { %s5739_s20 = sand.u32 1, %s7881_s13   ;;  %p11462_p13 = scmp.ne.s32.totalorder %s11216_s29, 0 }
0x12d2   : > { %p11463_p8 = scmp.ge.s32.totalorder %s7893_s16, 2  ;;  %s5740_s28 = scalar_lea.sflag [#allocation4], %s5739_s20 }
0x12d4   : > { %p6814_p6 = pnand %p11463_p8, %p11462_p13 }
0x12d6   : > { %7876 = dma.done.wait (!%p6814_p6), %s5740_s28, 384  }
0x12d7   : > { %7878 = vsyncadd (!%p6814_p6), %s5740_s28, 4294966912  ;;  %p27_p9 = scmp.ge.s32.totalorder %s8185_s11, 4   ;;  %s11464_s13 = smov %s7885_s14 }
0x12d8   : > { %s11465_s14 = smov %s7889_s15  ;;  %s11466_s15 = smov %s8197_s10 }
0x12d9   : > { %s11467_s16 = smov %s8185_s11  ;;  %29 = sbr.rel (!%p27_p9) target bundleno = 16 (0x10), region = 133 }
0x12e0   :  { %5745 = vsyncpa [#allocation3], 1 }
0x12e1   :  { %5747 = vsyncpa [#allocation3 + $0x1], 1 }
0x12e2   :  { %5748 = vsyncpa [#allocation6], 1 }
0x12e3   :  { %5749 = vsyncpa [#allocation9], 1 }
0x12e4   :  { %5750 = vsyncpa [#allocation12], 1 }
0x12e5   :  { %5751 = vsyncpa [#allocation15], 1 }
0x12e6   :  { %5752 = vsyncpa [#allocation4], 1 }
0x12e7   :  { %5754 = vsyncpa [#allocation4 + $0x1], 1 }

</bundles_post_ra>
